<compile_context>
chip_gen: v6e
topology: v6e:2x2x1
jax: 0.10.0
libtpu: 0.0.40
codegen_flags: <defaults>
</compile_context>

<pallas_src>
import jax
import jax.numpy as jnp
from jax import lax
from jax.experimental import pallas as pl
from jax.experimental.pallas import tpu as pltpu


def char_encoder_kernel(char_idx_ref, word_emb_ref, folded_ref, bias_ref,
                        w_hh_t_ref, g_scale_ref, g_shift_ref,
                        w_comb_t_ref, b_lin_ref, out_ref, xg_ref):
    BB, T = char_idx_ref.shape          # words in this block, chars per word
    V, H4 = folded_ref.shape            # char vocab, 4*hidden
    H = H4 // 4

    idx = char_idx_ref[...]             # [BB, T] int32 (batch on sublanes, time on lanes)
    vocab_iota = lax.broadcasted_iota(jnp.int32, (BB, V), 1)     # lane index == char id

    # ---- hoisted input path (independent of the recurrent state) ----
    # One-hot rows for every timestep, stacked along sublanes: row t*BB + b.
    onehot_all = jnp.concatenate(
        [(idx[:, t:t + 1] == vocab_iota).astype(jnp.float32) for t in range(T)],
        axis=0)                                                   # [T*BB, V]
    # Single matmul for ALL x-gate pre-activations; bias folded in once.
    # folded = emb_tbl @ W_ih^T with the g-quarter pre-scaled x2 (for tanh(x)=2*sigmoid(2x)-1).
    xg_ref[...] = jnp.dot(onehot_all, folded_ref[...],
                          preferred_element_type=jnp.float32) + bias_ref[...]

    # ---- constants / broadcasts hoisted out of the unrolled recurrence ----
    w_hh_t = w_hh_t_ref[...]                                      # [H, 4H], g-quarter cols x2
    gsc = jnp.broadcast_to(g_scale_ref[...], (BB, H4))            # 2 in g quarter, 1 elsewhere
    gsh = jnp.broadcast_to(g_shift_ref[...], (BB, H4))            # -1 in g quarter, 0 elsewhere

    h = jnp.zeros((BB, H), jnp.float32)
    c = jnp.zeros((BB, H), jnp.float32)

    # Fully-unrolled LSTM recurrence (T static and small); PyTorch gate order (i, f, g, o).
    # Per step only the recurrent K=32 matmul + elementwise remain on the serial chain.
    for t in range(T):
        gates = xg_ref[t * BB:(t + 1) * BB, :]                    # static, tile-aligned slice
        if t > 0:  # h == 0 at t == 0; skip the recurrent matmul
            gates = gates + jnp.dot(h, w_hh_t, preferred_element_type=jnp.float32)

        # One full-width sigmoid + one FMA; the g-quarter yields tanh(x) = 2*sigmoid(2x) - 1
        # (its pre-activation was pre-scaled by 2 wrapper-side).
        act = jax.nn.sigmoid(gates) * gsc + gsh

        i_g = act[:, 0 * H:1 * H]
        f_g = act[:, 1 * H:2 * H]
        g_g = act[:, 2 * H:3 * H]
        o_g = act[:, 3 * H:4 * H]
        c = f_g * c + i_g * g_g
        h = o_g * jnp.tanh(c)

    # combined = cat(word_emb, h_T); out = relu(combined @ [W_lw | W_lh]^T + b_lin)
    combined = jnp.concatenate([word_emb_ref[...], h], axis=1)    # [BB, Dw+H]
    out_ref[...] = jnp.maximum(
        jnp.dot(combined, w_comb_t_ref[...], preferred_element_type=jnp.float32)
        + b_lin_ref[...], 0.0)


def char_level_encoder(char_indices, word_embedding, params, *, block_b=128):
    """char_indices: int32 [B, T]; word_embedding: float32 [B, Dw] -> float32 [B, Dw]."""
    B, T = char_indices.shape
    Dw = word_embedding.shape[1]
    H4 = params["w_ih"].shape[0]
    H = H4 // 4
    V = params["emb_tbl"].shape[0]

    # ---- wrapper-side parameter prep (free layout/scale work; nothing in-kernel) ----
    col = jnp.arange(H4)
    is_g = (col >= 2 * H) & (col < 3 * H)
    pre = jnp.where(is_g, 2.0, 1.0).astype(jnp.float32)                 # x2 on the g quarter
    g_scale = pre[None, :]                                              # [1, 4H]
    g_shift = jnp.where(is_g, -1.0, 0.0).astype(jnp.float32)[None, :]   # [1, 4H]

    folded = (params["emb_tbl"] @ params["w_ih"].T) * pre[None, :]      # [V, 4H]
    w_hh_t = params["w_hh"].T * pre[None, :]                            # [H, 4H]
    bias = params["bias"] * pre[None, :]                                # [1, 4H] (b_ih + b_hh)
    w_comb_t = jnp.concatenate([params["w_lw"], params["w_lh"]], axis=1).T  # [Dw+H, Dw]

    # ---- pad batch to a multiple of the block size (index 0 / zero rows, sliced off after) ----
    n_blk = (B + block_b - 1) // block_b
    Bp = n_blk * block_b
    if Bp != B:
        char_indices = jnp.pad(char_indices, ((0, Bp - B), (0, 0)))
        word_embedding = jnp.pad(word_embedding, ((0, Bp - B), (0, 0)))

    out = pl.pallas_call(
        char_encoder_kernel,
        out_shape=jax.ShapeDtypeStruct((Bp, Dw), jnp.float32),
        grid_spec=pltpu.PrefetchScalarGridSpec(
            num_scalar_prefetch=0,
            grid=(n_blk,),
            in_specs=[
                pl.BlockSpec((block_b, T), lambda i: (i, 0)),       # char indices   [BB, T]
                pl.BlockSpec((block_b, Dw), lambda i: (i, 0)),      # word embeddings
                pl.BlockSpec((V, H4), lambda i: (0, 0)),            # folded emb@W_ih^T (g x2)
                pl.BlockSpec((1, H4), lambda i: (0, 0)),            # bias (g x2)
                pl.BlockSpec((H, H4), lambda i: (0, 0)),            # W_hh^T (g cols x2)
                pl.BlockSpec((1, H4), lambda i: (0, 0)),            # g_scale
                pl.BlockSpec((1, H4), lambda i: (0, 0)),            # g_shift
                pl.BlockSpec((Dw + H, Dw), lambda i: (0, 0)),       # [W_lw | W_lh]^T
                pl.BlockSpec((1, Dw), lambda i: (0, 0)),            # b_lin
            ],
            out_specs=pl.BlockSpec((block_b, Dw), lambda i: (i, 0)),
            scratch_shapes=[pltpu.VMEM((T * block_b, H4), jnp.float32)],  # all x-gate pre-acts
        ),
        compiler_params=pltpu.CompilerParams(
            dimension_semantics=("parallel",)),     # batch axis shards across v7x's 2 TCs
    )(char_indices, word_embedding, folded, bias, w_hh_t, g_scale, g_shift,
      w_comb_t, params["b_lin"])
    return out[:B]


def reference(char_indices, word_embedding, p):
    """Pure-JAX reference of the per-word numeric path of CharLevelEncoder.forward."""
    x = p["emb_tbl"][char_indices]                       # [B, T, E]
    B, T, _ = x.shape
    H = p["w_hh"].shape[1]
    h = jnp.zeros((B, H), jnp.float32)
    c = jnp.zeros((B, H), jnp.float32)
    for t in range(T):
        gates = x[:, t] @ p["w_ih"].T + h @ p["w_hh"].T + p["bias"][0]
        i_g = jax.nn.sigmoid(gates[:, :H])
        f_g = jax.nn.sigmoid(gates[:, H:2 * H])
        g_g = jnp.tanh(gates[:, 2 * H:3 * H])
        o_g = jax.nn.sigmoid(gates[:, 3 * H:])
        c = f_g * c + i_g * g_g
        h = o_g * jnp.tanh(c)
    out = word_embedding @ p["w_lw"].T + h @ p["w_lh"].T + p["b_lin"][0]
    return jnp.maximum(out, 0.0)


if __name__ == "__main__":
    # Module hyper-parameters (consistent with __init__):
    word_embedding_dim = 32   # Dw
    char_embedding_dim = 16   # E
    hidden_dim = 32           # H
    num_embeddings = 64       # V (character vocab)
    B, T = 200, 8             # words per batch (pads to 256 -> even grid of 2), chars per word

    key = jax.random.PRNGKey(0)
    k_idx, k_wemb, k_tbl, k_ih, k_hh, k_b, k_lw, k_lh, k_bl = jax.random.split(key, 9)

    char_indices = jax.random.randint(k_idx, (B, T), 0, num_embeddings, dtype=jnp.int32)
    word_embedding = jax.random.normal(k_wemb, (B, word_embedding_dim), jnp.float32)

    s = 0.1
    params = {
        "emb_tbl": jax.random.normal(k_tbl, (num_embeddings, char_embedding_dim), jnp.float32) * s,
        "w_ih":    jax.random.normal(k_ih, (4 * hidden_dim, char_embedding_dim), jnp.float32) * s,
        "w_hh":    jax.random.normal(k_hh, (4 * hidden_dim, hidden_dim), jnp.float32) * s,
        "bias":    jax.random.normal(k_b, (1, 4 * hidden_dim), jnp.float32) * s,   # b_ih + b_hh
        "w_lw":    jax.random.normal(k_lw, (word_embedding_dim, word_embedding_dim), jnp.float32) * s,
        "w_lh":    jax.random.normal(k_lh, (word_embedding_dim, hidden_dim), jnp.float32) * s,
        "b_lin":   jax.random.normal(k_bl, (1, word_embedding_dim), jnp.float32) * s,
    }

    out = char_level_encoder(char_indices, word_embedding, params)
    out = jax.block_until_ready(out)

    ref = reference(char_indices, word_embedding, params)
    assert out.shape == (B, word_embedding_dim)
    assert jnp.allclose(out, ref, atol=1e-4, rtol=1e-4)

    print("KERNEL_OK")
</pallas_src>

<mosaic_0001>
module attributes {stable_mosaic.version = 11 : i64} {
  func.func @char_encoder_kernel(%arg0: i32, %arg1: memref<128x8xi32, #tpu.memory_space<vmem>>, %arg2: memref<128x32xf32, #tpu.memory_space<vmem>>, %arg3: memref<64x128xf32, #tpu.memory_space<vmem>>, %arg4: memref<1x128xf32, #tpu.memory_space<vmem>>, %arg5: memref<32x128xf32, #tpu.memory_space<vmem>>, %arg6: memref<1x128xf32, #tpu.memory_space<vmem>>, %arg7: memref<1x128xf32, #tpu.memory_space<vmem>>, %arg8: memref<64x32xf32, #tpu.memory_space<vmem>>, %arg9: memref<1x32xf32, #tpu.memory_space<vmem>>, %arg10: memref<128x32xf32, #tpu.memory_space<vmem>>, %arg11: memref<1024x128xf32, #tpu.memory_space<vmem>>) attributes {dimension_semantics = [#tpu.dimension_semantics<parallel>], iteration_bounds = array<i64: 2>, scalar_prefetch = 0 : i64, scratch_operands = 1 : i64, tpu.core_type = #tpu.core_type<tc>, window_params = [{transform_indices = @transform_0, window_bounds = array<i64: 128, 8>}, {transform_indices = @transform_1, window_bounds = array<i64: 128, 32>}, {pipeline_mode = #tpu.pipeline_mode<synchronous>, transform_indices = @transform_2, window_bounds = array<i64: 64, 128>}, {pipeline_mode = #tpu.pipeline_mode<synchronous>, transform_indices = @transform_3, window_bounds = array<i64: 1, 128>}, {pipeline_mode = #tpu.pipeline_mode<synchronous>, transform_indices = @transform_4, window_bounds = array<i64: 32, 128>}, {pipeline_mode = #tpu.pipeline_mode<synchronous>, transform_indices = @transform_5, window_bounds = array<i64: 1, 128>}, {pipeline_mode = #tpu.pipeline_mode<synchronous>, transform_indices = @transform_6, window_bounds = array<i64: 1, 128>}, {pipeline_mode = #tpu.pipeline_mode<synchronous>, transform_indices = @transform_7, window_bounds = array<i64: 64, 32>}, {pipeline_mode = #tpu.pipeline_mode<synchronous>, transform_indices = @transform_8, window_bounds = array<i64: 1, 32>}, {transform_indices = @transform_9, window_bounds = array<i64: 128, 32>}]} {
    %c0 = arith.constant 0 : index
    %c0_0 = arith.constant 0 : index
    %0 = vector.load %arg1[%c0, %c0_0] : memref<128x8xi32, #tpu.memory_space<vmem>>, vector<128x8xi32>
    %1 = tpu.iota {dimensions = array<i32: 1>} : vector<128x64xi32>
    %2 = vector.extract_strided_slice %0 {offsets = [0, 0], sizes = [128, 1], strides = [1, 1]} : vector<128x8xi32> to vector<128x1xi32>
    %3 = vector.broadcast %2 : vector<128x1xi32> to vector<128x64xi32>
    %4 = arith.cmpi eq, %3, %1 : vector<128x64xi32>
    %5 = arith.extui %4 : vector<128x64xi1> to vector<128x64xi32>
    %6 = arith.sitofp %5 : vector<128x64xi32> to vector<128x64xf32>
    %7 = vector.extract_strided_slice %0 {offsets = [0, 1], sizes = [128, 1], strides = [1, 1]} : vector<128x8xi32> to vector<128x1xi32>
    %8 = vector.broadcast %7 : vector<128x1xi32> to vector<128x64xi32>
    %9 = arith.cmpi eq, %8, %1 : vector<128x64xi32>
    %10 = arith.extui %9 : vector<128x64xi1> to vector<128x64xi32>
    %11 = arith.sitofp %10 : vector<128x64xi32> to vector<128x64xf32>
    %12 = vector.extract_strided_slice %0 {offsets = [0, 2], sizes = [128, 1], strides = [1, 1]} : vector<128x8xi32> to vector<128x1xi32>
    %13 = vector.broadcast %12 : vector<128x1xi32> to vector<128x64xi32>
    %14 = arith.cmpi eq, %13, %1 : vector<128x64xi32>
    %15 = arith.extui %14 : vector<128x64xi1> to vector<128x64xi32>
    %16 = arith.sitofp %15 : vector<128x64xi32> to vector<128x64xf32>
    %17 = vector.extract_strided_slice %0 {offsets = [0, 3], sizes = [128, 1], strides = [1, 1]} : vector<128x8xi32> to vector<128x1xi32>
    %18 = vector.broadcast %17 : vector<128x1xi32> to vector<128x64xi32>
    %19 = arith.cmpi eq, %18, %1 : vector<128x64xi32>
    %20 = arith.extui %19 : vector<128x64xi1> to vector<128x64xi32>
    %21 = arith.sitofp %20 : vector<128x64xi32> to vector<128x64xf32>
    %22 = vector.extract_strided_slice %0 {offsets = [0, 4], sizes = [128, 1], strides = [1, 1]} : vector<128x8xi32> to vector<128x1xi32>
    %23 = vector.broadcast %22 : vector<128x1xi32> to vector<128x64xi32>
    %24 = arith.cmpi eq, %23, %1 : vector<128x64xi32>
    %25 = arith.extui %24 : vector<128x64xi1> to vector<128x64xi32>
    %26 = arith.sitofp %25 : vector<128x64xi32> to vector<128x64xf32>
    %27 = vector.extract_strided_slice %0 {offsets = [0, 5], sizes = [128, 1], strides = [1, 1]} : vector<128x8xi32> to vector<128x1xi32>
    %28 = vector.broadcast %27 : vector<128x1xi32> to vector<128x64xi32>
    %29 = arith.cmpi eq, %28, %1 : vector<128x64xi32>
    %30 = arith.extui %29 : vector<128x64xi1> to vector<128x64xi32>
    %31 = arith.sitofp %30 : vector<128x64xi32> to vector<128x64xf32>
    %32 = vector.extract_strided_slice %0 {offsets = [0, 6], sizes = [128, 1], strides = [1, 1]} : vector<128x8xi32> to vector<128x1xi32>
    %33 = vector.broadcast %32 : vector<128x1xi32> to vector<128x64xi32>
    %34 = arith.cmpi eq, %33, %1 : vector<128x64xi32>
    %35 = arith.extui %34 : vector<128x64xi1> to vector<128x64xi32>
    %36 = arith.sitofp %35 : vector<128x64xi32> to vector<128x64xf32>
    %37 = vector.extract_strided_slice %0 {offsets = [0, 7], sizes = [128, 1], strides = [1, 1]} : vector<128x8xi32> to vector<128x1xi32>
    %38 = vector.broadcast %37 : vector<128x1xi32> to vector<128x64xi32>
    %39 = arith.cmpi eq, %38, %1 : vector<128x64xi32>
    %40 = arith.extui %39 : vector<128x64xi1> to vector<128x64xi32>
    %41 = arith.sitofp %40 : vector<128x64xi32> to vector<128x64xf32>
    %42 = tpu.concatenate %6, %11, %16, %21, %26, %31, %36, %41 in 0 : vector<128x64xf32>, vector<128x64xf32>, vector<128x64xf32>, vector<128x64xf32>, vector<128x64xf32>, vector<128x64xf32>, vector<128x64xf32>, vector<128x64xf32> -> vector<1024x64xf32>
    %c0_1 = arith.constant 0 : index
    %c0_2 = arith.constant 0 : index
    %43 = vector.load %arg3[%c0_1, %c0_2] : memref<64x128xf32, #tpu.memory_space<vmem>>, vector<64x128xf32>
    %cst = arith.constant dense<0.000000e+00> : vector<1024x128xf32>
    %44 = tpu.matmul %42, %43, %cst {dimension_numbers = #tpu.dot_dimension_numbers<[1], [0], [0], [1], [0, 0, 1, 1], [], []>} : vector<1024x64xf32>, vector<64x128xf32>, vector<1024x128xf32> -> vector<1024x128xf32>
    %c0_3 = arith.constant 0 : index
    %c0_4 = arith.constant 0 : index
    %45 = vector.load %arg4[%c0_3, %c0_4] : memref<1x128xf32, #tpu.memory_space<vmem>>, vector<1x128xf32>
    %46 = vector.broadcast %45 : vector<1x128xf32> to vector<1024x128xf32>
    %47 = arith.addf %44, %46 : vector<1024x128xf32>
    %c0_5 = arith.constant 0 : index
    %c0_6 = arith.constant 0 : index
    %48 = vector.load %arg11[%c0_5, %c0_6] : memref<1024x128xf32, #tpu.memory_space<vmem>>, vector<1024x128xf32>
    tpu.vector_store %arg11[%c0_5, %c0_6], %47 {strides = array<i32>} : memref<1024x128xf32, #tpu.memory_space<vmem>>, vector<1024x128xf32>,
    %c0_7 = arith.constant 0 : index
    %c0_8 = arith.constant 0 : index
    %49 = vector.load %arg5[%c0_7, %c0_8] : memref<32x128xf32, #tpu.memory_space<vmem>>, vector<32x128xf32>
    %c0_9 = arith.constant 0 : index
    %c0_10 = arith.constant 0 : index
    %50 = vector.load %arg6[%c0_9, %c0_10] : memref<1x128xf32, #tpu.memory_space<vmem>>, vector<1x128xf32>
    %51 = vector.shape_cast %50 : vector<1x128xf32> to vector<1x128xf32>
    %52 = vector.broadcast %51 : vector<1x128xf32> to vector<128x128xf32>
    %c0_11 = arith.constant 0 : index
    %c0_12 = arith.constant 0 : index
    %53 = vector.load %arg7[%c0_11, %c0_12] : memref<1x128xf32, #tpu.memory_space<vmem>>, vector<1x128xf32>
    %54 = vector.shape_cast %53 : vector<1x128xf32> to vector<1x128xf32>
    %55 = vector.broadcast %54 : vector<1x128xf32> to vector<128x128xf32>
    %cst_13 = arith.constant 0.000000e+00 : f32
    %56 = vector.broadcast %cst_13 : f32 to vector<128x32xf32>
    %c0_14 = arith.constant 0 : index
    %c0_15 = arith.constant 0 : index
    %57 = vector.load %arg11[%c0_14, %c0_15] : memref<1024x128xf32, #tpu.memory_space<vmem>>, vector<128x128xf32>
    %58 = arith.negf %57 : vector<128x128xf32>
    %59 = math.exp %58 : vector<128x128xf32>
    %cst_16 = arith.constant 1.000000e+00 : f32
    %60 = vector.broadcast %cst_16 : f32 to vector<128x128xf32>
    %61 = arith.addf %60, %59 : vector<128x128xf32>
    %62 = arith.divf %60, %61 : vector<128x128xf32>
    %63 = arith.mulf %62, %52 : vector<128x128xf32>
    %64 = arith.addf %63, %55 : vector<128x128xf32>
    %65 = vector.extract_strided_slice %64 {offsets = [0, 0], sizes = [128, 32], strides = [1, 1]} : vector<128x128xf32> to vector<128x32xf32>
    %66 = vector.extract_strided_slice %64 {offsets = [0, 32], sizes = [128, 32], strides = [1, 1]} : vector<128x128xf32> to vector<128x32xf32>
    %67 = vector.extract_strided_slice %64 {offsets = [0, 64], sizes = [128, 32], strides = [1, 1]} : vector<128x128xf32> to vector<128x32xf32>
    %68 = vector.extract_strided_slice %64 {offsets = [0, 96], sizes = [128, 32], strides = [1, 1]} : vector<128x128xf32> to vector<128x32xf32>
    %69 = arith.mulf %66, %56 : vector<128x32xf32>
    %70 = arith.mulf %65, %67 : vector<128x32xf32>
    %71 = arith.addf %69, %70 : vector<128x32xf32>
    %72 = math.tanh %71 : vector<128x32xf32>
    %73 = arith.mulf %68, %72 : vector<128x32xf32>
    %c128 = arith.constant 128 : index
    %c0_17 = arith.constant 0 : index
    %74 = vector.load %arg11[%c128, %c0_17] : memref<1024x128xf32, #tpu.memory_space<vmem>>, vector<128x128xf32>
    %cst_18 = arith.constant dense<0.000000e+00> : vector<128x128xf32>
    %75 = tpu.matmul %73, %49, %cst_18 {dimension_numbers = #tpu.dot_dimension_numbers<[1], [0], [0], [1], [0, 0, 1, 1], [], []>} : vector<128x32xf32>, vector<32x128xf32>, vector<128x128xf32> -> vector<128x128xf32>
    %76 = arith.addf %74, %75 : vector<128x128xf32>
    %77 = arith.negf %76 : vector<128x128xf32>
    %78 = math.exp %77 : vector<128x128xf32>
    %cst_19 = arith.constant 1.000000e+00 : f32
    %79 = vector.broadcast %cst_19 : f32 to vector<128x128xf32>
    %80 = arith.addf %79, %78 : vector<128x128xf32>
    %81 = arith.divf %79, %80 : vector<128x128xf32>
    %82 = arith.mulf %81, %52 : vector<128x128xf32>
    %83 = arith.addf %82, %55 : vector<128x128xf32>
    %84 = vector.extract_strided_slice %83 {offsets = [0, 0], sizes = [128, 32], strides = [1, 1]} : vector<128x128xf32> to vector<128x32xf32>
    %85 = vector.extract_strided_slice %83 {offsets = [0, 32], sizes = [128, 32], strides = [1, 1]} : vector<128x128xf32> to vector<128x32xf32>
    %86 = vector.extract_strided_slice %83 {offsets = [0, 64], sizes = [128, 32], strides = [1, 1]} : vector<128x128xf32> to vector<128x32xf32>
    %87 = vector.extract_strided_slice %83 {offsets = [0, 96], sizes = [128, 32], strides = [1, 1]} : vector<128x128xf32> to vector<128x32xf32>
    %88 = arith.mulf %85, %71 : vector<128x32xf32>
    %89 = arith.mulf %84, %86 : vector<128x32xf32>
    %90 = arith.addf %88, %89 : vector<128x32xf32>
    %91 = math.tanh %90 : vector<128x32xf32>
    %92 = arith.mulf %87, %91 : vector<128x32xf32>
    %c256 = arith.constant 256 : index
    %c0_20 = arith.constant 0 : index
    %93 = vector.load %arg11[%c256, %c0_20] : memref<1024x128xf32, #tpu.memory_space<vmem>>, vector<128x128xf32>
    %cst_21 = arith.constant dense<0.000000e+00> : vector<128x128xf32>
    %94 = tpu.matmul %92, %49, %cst_21 {dimension_numbers = #tpu.dot_dimension_numbers<[1], [0], [0], [1], [0, 0, 1, 1], [], []>} : vector<128x32xf32>, vector<32x128xf32>, vector<128x128xf32> -> vector<128x128xf32>
    %95 = arith.addf %93, %94 : vector<128x128xf32>
    %96 = arith.negf %95 : vector<128x128xf32>
    %97 = math.exp %96 : vector<128x128xf32>
    %cst_22 = arith.constant 1.000000e+00 : f32
    %98 = vector.broadcast %cst_22 : f32 to vector<128x128xf32>
    %99 = arith.addf %98, %97 : vector<128x128xf32>
    %100 = arith.divf %98, %99 : vector<128x128xf32>
    %101 = arith.mulf %100, %52 : vector<128x128xf32>
    %102 = arith.addf %101, %55 : vector<128x128xf32>
    %103 = vector.extract_strided_slice %102 {offsets = [0, 0], sizes = [128, 32], strides = [1, 1]} : vector<128x128xf32> to vector<128x32xf32>
    %104 = vector.extract_strided_slice %102 {offsets = [0, 32], sizes = [128, 32], strides = [1, 1]} : vector<128x128xf32> to vector<128x32xf32>
    %105 = vector.extract_strided_slice %102 {offsets = [0, 64], sizes = [128, 32], strides = [1, 1]} : vector<128x128xf32> to vector<128x32xf32>
    %106 = vector.extract_strided_slice %102 {offsets = [0, 96], sizes = [128, 32], strides = [1, 1]} : vector<128x128xf32> to vector<128x32xf32>
    %107 = arith.mulf %104, %90 : vector<128x32xf32>
    %108 = arith.mulf %103, %105 : vector<128x32xf32>
    %109 = arith.addf %107, %108 : vector<128x32xf32>
    %110 = math.tanh %109 : vector<128x32xf32>
    %111 = arith.mulf %106, %110 : vector<128x32xf32>
    %c384 = arith.constant 384 : index
    %c0_23 = arith.constant 0 : index
    %112 = vector.load %arg11[%c384, %c0_23] : memref<1024x128xf32, #tpu.memory_space<vmem>>, vector<128x128xf32>
    %cst_24 = arith.constant dense<0.000000e+00> : vector<128x128xf32>
    %113 = tpu.matmul %111, %49, %cst_24 {dimension_numbers = #tpu.dot_dimension_numbers<[1], [0], [0], [1], [0, 0, 1, 1], [], []>} : vector<128x32xf32>, vector<32x128xf32>, vector<128x128xf32> -> vector<128x128xf32>
    %114 = arith.addf %112, %113 : vector<128x128xf32>
    %115 = arith.negf %114 : vector<128x128xf32>
    %116 = math.exp %115 : vector<128x128xf32>
    %cst_25 = arith.constant 1.000000e+00 : f32
    %117 = vector.broadcast %cst_25 : f32 to vector<128x128xf32>
    %118 = arith.addf %117, %116 : vector<128x128xf32>
    %119 = arith.divf %117, %118 : vector<128x128xf32>
    %120 = arith.mulf %119, %52 : vector<128x128xf32>
    %121 = arith.addf %120, %55 : vector<128x128xf32>
    %122 = vector.extract_strided_slice %121 {offsets = [0, 0], sizes = [128, 32], strides = [1, 1]} : vector<128x128xf32> to vector<128x32xf32>
    %123 = vector.extract_strided_slice %121 {offsets = [0, 32], sizes = [128, 32], strides = [1, 1]} : vector<128x128xf32> to vector<128x32xf32>
    %124 = vector.extract_strided_slice %121 {offsets = [0, 64], sizes = [128, 32], strides = [1, 1]} : vector<128x128xf32> to vector<128x32xf32>
    %125 = vector.extract_strided_slice %121 {offsets = [0, 96], sizes = [128, 32], strides = [1, 1]} : vector<128x128xf32> to vector<128x32xf32>
    %126 = arith.mulf %123, %109 : vector<128x32xf32>
    %127 = arith.mulf %122, %124 : vector<128x32xf32>
    %128 = arith.addf %126, %127 : vector<128x32xf32>
    %129 = math.tanh %128 : vector<128x32xf32>
    %130 = arith.mulf %125, %129 : vector<128x32xf32>
    %c512 = arith.constant 512 : index
    %c0_26 = arith.constant 0 : index
    %131 = vector.load %arg11[%c512, %c0_26] : memref<1024x128xf32, #tpu.memory_space<vmem>>, vector<128x128xf32>
    %cst_27 = arith.constant dense<0.000000e+00> : vector<128x128xf32>
    %132 = tpu.matmul %130, %49, %cst_27 {dimension_numbers = #tpu.dot_dimension_numbers<[1], [0], [0], [1], [0, 0, 1, 1], [], []>} : vector<128x32xf32>, vector<32x128xf32>, vector<128x128xf32> -> vector<128x128xf32>
    %133 = arith.addf %131, %132 : vector<128x128xf32>
    %134 = arith.negf %133 : vector<128x128xf32>
    %135 = math.exp %134 : vector<128x128xf32>
    %cst_28 = arith.constant 1.000000e+00 : f32
    %136 = vector.broadcast %cst_28 : f32 to vector<128x128xf32>
    %137 = arith.addf %136, %135 : vector<128x128xf32>
    %138 = arith.divf %136, %137 : vector<128x128xf32>
    %139 = arith.mulf %138, %52 : vector<128x128xf32>
    %140 = arith.addf %139, %55 : vector<128x128xf32>
    %141 = vector.extract_strided_slice %140 {offsets = [0, 0], sizes = [128, 32], strides = [1, 1]} : vector<128x128xf32> to vector<128x32xf32>
    %142 = vector.extract_strided_slice %140 {offsets = [0, 32], sizes = [128, 32], strides = [1, 1]} : vector<128x128xf32> to vector<128x32xf32>
    %143 = vector.extract_strided_slice %140 {offsets = [0, 64], sizes = [128, 32], strides = [1, 1]} : vector<128x128xf32> to vector<128x32xf32>
    %144 = vector.extract_strided_slice %140 {offsets = [0, 96], sizes = [128, 32], strides = [1, 1]} : vector<128x128xf32> to vector<128x32xf32>
    %145 = arith.mulf %142, %128 : vector<128x32xf32>
    %146 = arith.mulf %141, %143 : vector<128x32xf32>
    %147 = arith.addf %145, %146 : vector<128x32xf32>
    %148 = math.tanh %147 : vector<128x32xf32>
    %149 = arith.mulf %144, %148 : vector<128x32xf32>
    %c640 = arith.constant 640 : index
    %c0_29 = arith.constant 0 : index
    %150 = vector.load %arg11[%c640, %c0_29] : memref<1024x128xf32, #tpu.memory_space<vmem>>, vector<128x128xf32>
    %cst_30 = arith.constant dense<0.000000e+00> : vector<128x128xf32>
    %151 = tpu.matmul %149, %49, %cst_30 {dimension_numbers = #tpu.dot_dimension_numbers<[1], [0], [0], [1], [0, 0, 1, 1], [], []>} : vector<128x32xf32>, vector<32x128xf32>, vector<128x128xf32> -> vector<128x128xf32>
    %152 = arith.addf %150, %151 : vector<128x128xf32>
    %153 = arith.negf %152 : vector<128x128xf32>
    %154 = math.exp %153 : vector<128x128xf32>
    %cst_31 = arith.constant 1.000000e+00 : f32
    %155 = vector.broadcast %cst_31 : f32 to vector<128x128xf32>
    %156 = arith.addf %155, %154 : vector<128x128xf32>
    %157 = arith.divf %155, %156 : vector<128x128xf32>
    %158 = arith.mulf %157, %52 : vector<128x128xf32>
    %159 = arith.addf %158, %55 : vector<128x128xf32>
    %160 = vector.extract_strided_slice %159 {offsets = [0, 0], sizes = [128, 32], strides = [1, 1]} : vector<128x128xf32> to vector<128x32xf32>
    %161 = vector.extract_strided_slice %159 {offsets = [0, 32], sizes = [128, 32], strides = [1, 1]} : vector<128x128xf32> to vector<128x32xf32>
    %162 = vector.extract_strided_slice %159 {offsets = [0, 64], sizes = [128, 32], strides = [1, 1]} : vector<128x128xf32> to vector<128x32xf32>
    %163 = vector.extract_strided_slice %159 {offsets = [0, 96], sizes = [128, 32], strides = [1, 1]} : vector<128x128xf32> to vector<128x32xf32>
    %164 = arith.mulf %161, %147 : vector<128x32xf32>
    %165 = arith.mulf %160, %162 : vector<128x32xf32>
    %166 = arith.addf %164, %165 : vector<128x32xf32>
    %167 = math.tanh %166 : vector<128x32xf32>
    %168 = arith.mulf %163, %167 : vector<128x32xf32>
    %c768 = arith.constant 768 : index
    %c0_32 = arith.constant 0 : index
    %169 = vector.load %arg11[%c768, %c0_32] : memref<1024x128xf32, #tpu.memory_space<vmem>>, vector<128x128xf32>
    %cst_33 = arith.constant dense<0.000000e+00> : vector<128x128xf32>
    %170 = tpu.matmul %168, %49, %cst_33 {dimension_numbers = #tpu.dot_dimension_numbers<[1], [0], [0], [1], [0, 0, 1, 1], [], []>} : vector<128x32xf32>, vector<32x128xf32>, vector<128x128xf32> -> vector<128x128xf32>
    %171 = arith.addf %169, %170 : vector<128x128xf32>
    %172 = arith.negf %171 : vector<128x128xf32>
    %173 = math.exp %172 : vector<128x128xf32>
    %cst_34 = arith.constant 1.000000e+00 : f32
    %174 = vector.broadcast %cst_34 : f32 to vector<128x128xf32>
    %175 = arith.addf %174, %173 : vector<128x128xf32>
    %176 = arith.divf %174, %175 : vector<128x128xf32>
    %177 = arith.mulf %176, %52 : vector<128x128xf32>
    %178 = arith.addf %177, %55 : vector<128x128xf32>
    %179 = vector.extract_strided_slice %178 {offsets = [0, 0], sizes = [128, 32], strides = [1, 1]} : vector<128x128xf32> to vector<128x32xf32>
    %180 = vector.extract_strided_slice %178 {offsets = [0, 32], sizes = [128, 32], strides = [1, 1]} : vector<128x128xf32> to vector<128x32xf32>
    %181 = vector.extract_strided_slice %178 {offsets = [0, 64], sizes = [128, 32], strides = [1, 1]} : vector<128x128xf32> to vector<128x32xf32>
    %182 = vector.extract_strided_slice %178 {offsets = [0, 96], sizes = [128, 32], strides = [1, 1]} : vector<128x128xf32> to vector<128x32xf32>
    %183 = arith.mulf %180, %166 : vector<128x32xf32>
    %184 = arith.mulf %179, %181 : vector<128x32xf32>
    %185 = arith.addf %183, %184 : vector<128x32xf32>
    %186 = math.tanh %185 : vector<128x32xf32>
    %187 = arith.mulf %182, %186 : vector<128x32xf32>
    %c896 = arith.constant 896 : index
    %c0_35 = arith.constant 0 : index
    %188 = vector.load %arg11[%c896, %c0_35] : memref<1024x128xf32, #tpu.memory_space<vmem>>, vector<128x128xf32>
    %cst_36 = arith.constant dense<0.000000e+00> : vector<128x128xf32>
    %189 = tpu.matmul %187, %49, %cst_36 {dimension_numbers = #tpu.dot_dimension_numbers<[1], [0], [0], [1], [0, 0, 1, 1], [], []>} : vector<128x32xf32>, vector<32x128xf32>, vector<128x128xf32> -> vector<128x128xf32>
    %190 = arith.addf %188, %189 : vector<128x128xf32>
    %191 = arith.negf %190 : vector<128x128xf32>
    %192 = math.exp %191 : vector<128x128xf32>
    %cst_37 = arith.constant 1.000000e+00 : f32
    %193 = vector.broadcast %cst_37 : f32 to vector<128x128xf32>
    %194 = arith.addf %193, %192 : vector<128x128xf32>
    %195 = arith.divf %193, %194 : vector<128x128xf32>
    %196 = arith.mulf %195, %52 : vector<128x128xf32>
    %197 = arith.addf %196, %55 : vector<128x128xf32>
    %198 = vector.extract_strided_slice %197 {offsets = [0, 0], sizes = [128, 32], strides = [1, 1]} : vector<128x128xf32> to vector<128x32xf32>
    %199 = vector.extract_strided_slice %197 {offsets = [0, 32], sizes = [128, 32], strides = [1, 1]} : vector<128x128xf32> to vector<128x32xf32>
    %200 = vector.extract_strided_slice %197 {offsets = [0, 64], sizes = [128, 32], strides = [1, 1]} : vector<128x128xf32> to vector<128x32xf32>
    %201 = vector.extract_strided_slice %197 {offsets = [0, 96], sizes = [128, 32], strides = [1, 1]} : vector<128x128xf32> to vector<128x32xf32>
    %202 = arith.mulf %199, %185 : vector<128x32xf32>
    %203 = arith.mulf %198, %200 : vector<128x32xf32>
    %204 = arith.addf %202, %203 : vector<128x32xf32>
    %205 = math.tanh %204 : vector<128x32xf32>
    %206 = arith.mulf %201, %205 : vector<128x32xf32>
    %c0_38 = arith.constant 0 : index
    %c0_39 = arith.constant 0 : index
    %207 = vector.load %arg2[%c0_38, %c0_39] : memref<128x32xf32, #tpu.memory_space<vmem>>, vector<128x32xf32>
    %208 = tpu.concatenate %207, %206 in 1 : vector<128x32xf32>, vector<128x32xf32> -> vector<128x64xf32>
    %c0_40 = arith.constant 0 : index
    %c0_41 = arith.constant 0 : index
    %209 = vector.load %arg8[%c0_40, %c0_41] : memref<64x32xf32, #tpu.memory_space<vmem>>, vector<64x32xf32>
    %cst_42 = arith.constant dense<0.000000e+00> : vector<128x32xf32>
    %210 = tpu.matmul %208, %209, %cst_42 {dimension_numbers = #tpu.dot_dimension_numbers<[1], [0], [0], [1], [0, 0, 1, 1], [], []>} : vector<128x64xf32>, vector<64x32xf32>, vector<128x32xf32> -> vector<128x32xf32>
    %c0_43 = arith.constant 0 : index
    %c0_44 = arith.constant 0 : index
    %211 = vector.load %arg9[%c0_43, %c0_44] : memref<1x32xf32, #tpu.memory_space<vmem>>, vector<1x32xf32>
    %212 = vector.broadcast %211 : vector<1x32xf32> to vector<128x32xf32>
    %213 = arith.addf %210, %212 : vector<128x32xf32>
    %cst_45 = arith.constant 0.000000e+00 : f32
    %214 = vector.broadcast %cst_45 : f32 to vector<128x32xf32>
    %215 = arith.maximumf %213, %214 : vector<128x32xf32>
    %c0_46 = arith.constant 0 : index
    %c0_47 = arith.constant 0 : index
    %216 = vector.load %arg10[%c0_46, %c0_47] : memref<128x32xf32, #tpu.memory_space<vmem>>, vector<128x32xf32>
    tpu.vector_store %arg10[%c0_46, %c0_47], %215 {strides = array<i32>} : memref<128x32xf32, #tpu.memory_space<vmem>>, vector<128x32xf32>,
    return
  }
  func.func @transform_0(%arg0: i32) -> (i32, i32) {
    %c0_i32 = arith.constant 0 : i32
    %c0_i32_0 = arith.constant 0 : i32
    return %arg0, %c0_i32 : i32, i32
  }
  func.func @transform_1(%arg0: i32) -> (i32, i32) {
    %c0_i32 = arith.constant 0 : i32
    %c0_i32_0 = arith.constant 0 : i32
    return %arg0, %c0_i32 : i32, i32
  }
  func.func @transform_2(%arg0: i32) -> (i32, i32) {
    %c0_i32 = arith.constant 0 : i32
    %c0_i32_0 = arith.constant 0 : i32
    %c0_i32_1 = arith.constant 0 : i32
    return %c0_i32, %c0_i32_0 : i32, i32
  }
  func.func @transform_3(%arg0: i32) -> (i32, i32) {
    %c0_i32 = arith.constant 0 : i32
    %c0_i32_0 = arith.constant 0 : i32
    %c0_i32_1 = arith.constant 0 : i32
    return %c0_i32, %c0_i32_0 : i32, i32
  }
  func.func @transform_4(%arg0: i32) -> (i32, i32) {
    %c0_i32 = arith.constant 0 : i32
    %c0_i32_0 = arith.constant 0 : i32
    %c0_i32_1 = arith.constant 0 : i32
    return %c0_i32, %c0_i32_0 : i32, i32
  }
  func.func @transform_5(%arg0: i32) -> (i32, i32) {
    %c0_i32 = arith.constant 0 : i32
    %c0_i32_0 = arith.constant 0 : i32
    %c0_i32_1 = arith.constant 0 : i32
    return %c0_i32, %c0_i32_0 : i32, i32
  }
  func.func @transform_6(%arg0: i32) -> (i32, i32) {
    %c0_i32 = arith.constant 0 : i32
    %c0_i32_0 = arith.constant 0 : i32
    %c0_i32_1 = arith.constant 0 : i32
    return %c0_i32, %c0_i32_0 : i32, i32
  }
  func.func @transform_7(%arg0: i32) -> (i32, i32) {
    %c0_i32 = arith.constant 0 : i32
    %c0_i32_0 = arith.constant 0 : i32
    %c0_i32_1 = arith.constant 0 : i32
    return %c0_i32, %c0_i32_0 : i32, i32
  }
  func.func @transform_8(%arg0: i32) -> (i32, i32) {
    %c0_i32 = arith.constant 0 : i32
    %c0_i32_0 = arith.constant 0 : i32
    %c0_i32_1 = arith.constant 0 : i32
    return %c0_i32, %c0_i32_0 : i32, i32
  }
  func.func @transform_9(%arg0: i32) -> (i32, i32) {
    %c0_i32 = arith.constant 0 : i32
    %c0_i32_0 = arith.constant 0 : i32
    return %arg0, %c0_i32 : i32, i32
  }
}

</mosaic_0001>

<bundles_post_ra>
// kernel: tpu_custom_call.1
= control target key start
LH: loop header
LB: loop body
LE: loop exit
PB: predicated region body
PF: predicated region fallthrough
CT: control target
= control target key end

     0   :  { %s10125_s30 = smov 0   ;;  %s13290_s0 = inlined_call_operand.vmem [shape: s32[256,8], index: 0, kind: input, shape index: {}]   ;;  %s13291_s1 = inlined_call_operand.vmem [shape: f32[256,32], index: 1, kind: input, shape index: {}]   ;;  %s13292_s2 = inlined_call_operand.vmem [shape: f32[64,128], index: 2, kind: input, shape index: {}]   ;;  %s13293_s3 = inlined_call_operand.vmem [shape: f32[1,128], index: 3, kind: input, shape index: {}]   ;;  %s13294_s4 = inlined_call_operand.vmem [shape: f32[32,128], index: 4, kind: input, shape index: {}]   ;;  %s13295_s5 = inlined_call_operand.vmem [shape: f32[1,128], index: 5, kind: input, shape index: {}]   ;;  %s13296_s6 = inlined_call_operand.vmem [shape: f32[1,128], index: 6, kind: input, shape index: {}]   ;;  %s13297_s7 = inlined_call_operand.vmem [shape: f32[64,32], index: 7, kind: input, shape index: {}]   ;;  %s13298_s8 = inlined_call_operand.vmem [shape: f32[1,32], index: 8, kind: input, shape index: {}]   ;;  %s13299_s9 = inlined_call_operand.vmem [shape: f32[256,32], index: 9, kind: output, shape index: {}]  }
   0x1 LB: > { %s7815_s10 = sadd.s32 4294967295, %s10062_s30   ;;  %p7819_p0 = scmp.ge.s32.totalorder %s10062_s30, 1  ;;  %s10062_s30 = sphi %s10125_s30, %s19_s30  }
   0x2   : > { %p299_p1 = scmp.lt.s32.totalorder %s10062_s30, 3 }
   0x4   : > { %p300_p2 = pnand %p7819_p0, %p299_p1 }
   0x5   : > { %s7820_s11 = sshll.u32 (!%p300_p2), %s7815_s10, 4  ;;  %s10066_s19 = smov (!%p300_p2), 64  }
   0x6   : > { %303 = sbr.rel (%p300_p2) target bundleno = 6088 (0x17c8), region = 56  ;;  %p341_p3 = scmp.lt.s32.totalorder (!%p300_p2), %s7820_s11, 31 }
   0x7   : > { %s10068_s20 = smov (!%p300_p2), 32  }
   0xb   : > { %v1151_v0 = vld [vmem:[%s13292_s2 + $0x38] sm:$0xff]  ;;  %v10064_v1 = vmov 0   ;;  %v1150_v2 = vld [vmem:[%s13292_s2 + $0x30] sm:$0xff]  ;;  %s13301_s11 = smov (!%p341_p3, %s7820_s11), 31  ;;  %v1149_v3 = vld [vmem:[%s13292_s2 + $0x28] sm:$0xff]  ;;  %v374_v25 = vlaneseq  ;;  %vm1159_vm0 = vcmask 523264  }
   0xc   : > { %9136 = vset.pattern.permute.xlu1 %v10064_v1  ;;  %9135 = vset.pattern.permute.xlu0 %v10064_v1  ;;  %s10142_s18 = sshll.u32 %s13301_s11, 3  ;;  %v1148_v4 = vld [vmem:[%s13292_s2 + $0x20] sm:$0xff]  ;;  %v1147_v7 = vld [vmem:[%s13292_s2 + $0x18] sm:$0xff]  ;;  %v1146_v10 = vld [vmem:[%s13292_s2 + $0x10] sm:$0xff]  ;;  %v10065_v29 = vmov 0.0  }
   0xd   : > { %8644 = vmatprep.subr.mxu0 %v1151_v0  ;;  %s10148_s21 = scalar_lea.vmem %s13290_s0, %s10142_s18  ;;  %v1145_v13 = vld [vmem:[%s13292_s2 + $0x8] sm:$0xff]  ;;  %v1144_v14 = vld [vmem:[%s13292_s2] sm:$0xff]  ;;  %v10229_v26 = vand.u32 127, %v374_v25  ;;  %s13253_s14 = scalar_lea.vmem %s13299_s9, %s10142_s18 }
   0xe   : > { %8645 = vmatpush3.msra.mxu0 %v1151_v0  ;;  %v10154_v5 = vld [vmem:[%s10148_s21 + $0x10] sm:$0xff]  ;;  %v10157_v6 = vld [vmem:[%s10148_s21] sm:$0xff]  ;;  %v10165_v8 = vld [vmem:[%s10148_s21 + $0x18] sm:$0xff] }
   0xf   : > { %8646 = vmatprep.subr.mxu0 %v1150_v2  ;;  %383 = vperm.xlu1 %9136, %v10154_v5   ;;  %v10168_v9 = vld [vmem:[%s10148_s21 + $0x8] sm:$0xff]  ;;  %v10179_v12 = vld [vmem:[%s10148_s21 + $0x20] sm:$0xff]  ;;  %v10190_v15 = vld [vmem:[%s10148_s21 + $0x38] sm:$0xff] }
  0x10   : > { %8647 = vmatpush3.msra.mxu0 %v1150_v2  ;;  %377 = vperm.xlu0 %9135, %v10157_v6   ;;  %v10176_v11 = vld [vmem:[%s10148_s21 + $0x28] sm:$0xff]  ;;  %v10193_v16 = vld [vmem:[%s10148_s21 + $0x30] sm:$0xff]  ;;  %v10201_v18 = vld [vmem:[%s10148_s21 + $0x40] sm:$0xff] }
  0x11   : > { %8648 = vmatprep.subr.mxu0 %v1149_v3  ;;  %v10198_v17 = vld [vmem:[%s10148_s21 + $0x48] sm:$0xff]  ;;  %v10206_v19 = vld [vmem:[%s10148_s21 + $0x58] sm:$0xff]  ;;  %v10209_v20 = vld [vmem:[%s10148_s21 + $0x50] sm:$0xff] }
  0x12   : > { %8649 = vmatpush3.msra.mxu0 %v1149_v3  ;;  %v10214_v21 = vld [vmem:[%s10148_s21 + $0x68] sm:$0xff]  ;;  %v10217_v22 = vld [vmem:[%s10148_s21 + $0x60] sm:$0xff]  ;;  %v10222_v23 = vld [vmem:[%s10148_s21 + $0x78] sm:$0xff] }
  0x13   : > { %8650 = vmatprep.subr.mxu0 %v1148_v4  ;;  %386 = vperm.xlu1 %9136, %v10165_v8   ;;  %v10225_v24 = vld [vmem:[%s10148_s21 + $0x70] sm:$0xff]  ;;  %v10282_v60 = vld [vmem:[%s13293_s3] ss:$0 sm:$0xff] }
  0x14   : > { %8651 = vmatpush3.msra.mxu0 %v1148_v4  ;;  %380 = vperm.xlu0 %9135, %v10168_v9  }
  0x15   : > { %8652 = vmatprep.subr.mxu0 %v1147_v7 }
  0x16   : > { %8653 = vmatpush3.msra.mxu0 %v1147_v7 }
  0x17   : > { %8654 = vmatprep.subr.mxu0 %v1146_v10  ;;  %392 = vperm.xlu1 %9136, %v10176_v11  }
  0x18   : > { %8655 = vmatpush3.msra.mxu0 %v1146_v10  ;;  %389 = vperm.xlu0 %9135, %v10179_v12  }
  0x19   : > { %8656 = vmatprep.subr.mxu0 %v1145_v13 }
  0x1a   : > { %8657 = vmatpush3.msra.mxu0 %v1145_v13 }
  0x1b   : > { %8658 = vmatprep.subr.mxu0 %v1144_v14  ;;  %398 = vperm.xlu1 %9136, %v10190_v15  }
  0x1c   : > { %395 = vperm.xlu0 %9135, %v10193_v16   ;;  %8659 = vmatpush3.msra.mxu0 %v1144_v14 }
  0x1f   : > { %404 = vperm.xlu1 %9136, %v10198_v17  }
  0x20   : > { %401 = vperm.xlu0 %9135, %v10201_v18  }
  0x23   : > { %410 = vperm.xlu1 %9136, %v10206_v19  }
  0x24   : > { %407 = vperm.xlu0 %9135, %v10209_v20  }
  0x27   : > { %416 = vperm.xlu1 %9136, %v10214_v21  }
  0x28   : > { %413 = vperm.xlu0 %9135, %v10217_v22  }
  0x2b   : > { %422 = vperm.xlu1 %9136, %v10222_v23  }
  0x2c   : > { %419 = vperm.xlu0 %9135, %v10225_v24  }
  0x8a   : > { %v384_v27 = vpop.permute.xlu1 %383 }
  0x8b   : > { %v378_v28 = vpop.permute.xlu0 %377  ;;  %vm426_vm2 = vcmp.eq.s32.totalorder %v384_v27, %v10229_v26 }
  0x8c   : > { %vm424_vm1 = vcmp.eq.s32.totalorder %v378_v28, %v10229_v26  ;;  %v7828_v33 = vsel %vm426_vm2, 1.0, %v10065_v29 }
  0x8d   : > { %v7826_v30 = vsel %vm424_vm1, 1.0, %v10065_v29 }
  0x8e   : > { %8660 = vmatprep.mubr.msk.f32.mxu0 %vm1159_vm0, %v7826_v30  ;;  %v387_v31 = vpop.permute.xlu1 %386 }
  0x8f   : > { %v381_v32 = vpop.permute.xlu0 %380  ;;  %vm427_vm4 = vcmp.eq.s32.totalorder %v387_v31, %v10229_v26 }
  0x90   : > { %vm425_vm3 = vcmp.eq.s32.totalorder %v381_v32, %v10229_v26  ;;  %v7829_v37 = vsel %vm427_vm4, 1.0, %v10065_v29 }
  0x91   : > { %v7827_v34 = vsel %vm425_vm3, 1.0, %v10065_v29 }
  0x92   : > { %8661 = vmatmul.mubr.msk.f32.vlgmr.msra.gmra.mxu0 %vm1159_vm0, %v7827_v34  ;;  %v393_v35 = vpop.permute.xlu1 %392 }
  0x93   : > { %8663 = vmatprep.mubr.msk.f32.mxu0 %vm1159_vm0, %v7828_v33  ;;  %v390_v36 = vpop.permute.xlu0 %389  ;;  %vm429_vm6 = vcmp.eq.s32.totalorder %v393_v35, %v10229_v26 }
  0x94   : > { %vm428_vm5 = vcmp.eq.s32.totalorder %v390_v36, %v10229_v26  ;;  %v7831_v41 = vsel %vm429_vm6, 1.0, %v10065_v29 }
  0x95   : > { %v7830_v38 = vsel %vm428_vm5, 1.0, %v10065_v29 }
  0x96   : > { %8664 = vmatmul.mubr.msk.f32.gmra.mxu0 %vm1159_vm0, %v7829_v37  ;;  %v399_v39 = vpop.permute.xlu1 %398 }
  0x97   : > { %8666 = vmatprep.mubr.msk.f32.mxu0 %vm1159_vm0, %v7830_v38  ;;  %v396_v40 = vpop.permute.xlu0 %395  ;;  %vm431_vm8 = vcmp.eq.s32.totalorder %v399_v39, %v10229_v26 }
  0x98   : > { %vm430_vm7 = vcmp.eq.s32.totalorder %v396_v40, %v10229_v26  ;;  %v7833_v45 = vsel %vm431_vm8, 1.0, %v10065_v29 }
  0x99   : > { %v7832_v42 = vsel %vm430_vm7, 1.0, %v10065_v29 }
  0x9a   : > { %8667 = vmatmul.mubr.msk.f32.gmra.mxu0 %vm1159_vm0, %v7831_v41  ;;  %v405_v43 = vpop.permute.xlu1 %404 }
  0x9b   : > { %8669 = vmatprep.mubr.msk.f32.mxu0 %vm1159_vm0, %v7832_v42  ;;  %v402_v44 = vpop.permute.xlu0 %401  ;;  %vm433_vm10 = vcmp.eq.s32.totalorder %v405_v43, %v10229_v26 }
  0x9c   : > { %vm432_vm9 = vcmp.eq.s32.totalorder %v402_v44, %v10229_v26  ;;  %v7835_v49 = vsel %vm433_vm10, 1.0, %v10065_v29 }
  0x9d   : > { %v7834_v46 = vsel %vm432_vm9, 1.0, %v10065_v29 }
  0x9e   : > { %8670 = vmatmul.mubr.msk.f32.gmra.mxu0 %vm1159_vm0, %v7833_v45  ;;  %v411_v47 = vpop.permute.xlu1 %410 }
  0x9f   : > { %8672 = vmatprep.mubr.msk.f32.mxu0 %vm1159_vm0, %v7834_v46  ;;  %v408_v48 = vpop.permute.xlu0 %407  ;;  %vm435_vm12 = vcmp.eq.s32.totalorder %v411_v47, %v10229_v26 }
  0xa0   : > { %vm434_vm11 = vcmp.eq.s32.totalorder %v408_v48, %v10229_v26  ;;  %v7837_v53 = vsel %vm435_vm12, 1.0, %v10065_v29 }
  0xa1   : > { %v7836_v50 = vsel %vm434_vm11, 1.0, %v10065_v29 }
  0xa2   : > { %8673 = vmatmul.mubr.msk.f32.gmra.mxu0 %vm1159_vm0, %v7835_v49  ;;  %v417_v51 = vpop.permute.xlu1 %416 }
  0xa3   : > { %8675 = vmatprep.mubr.msk.f32.mxu0 %vm1159_vm0, %v7836_v50  ;;  %v414_v52 = vpop.permute.xlu0 %413  ;;  %vm437_vm14 = vcmp.eq.s32.totalorder %v417_v51, %v10229_v26 }
  0xa4   : > { %vm436_vm13 = vcmp.eq.s32.totalorder %v414_v52, %v10229_v26  ;;  %v7839_v57 = vsel %vm437_vm14, 1.0, %v10065_v29 }
  0xa5   : > { %v7838_v54 = vsel %vm436_vm13, 1.0, %v10065_v29 }
  0xa6   : > { %8676 = vmatmul.mubr.msk.f32.gmra.mxu0 %vm1159_vm0, %v7837_v53  ;;  %v423_v55 = vpop.permute.xlu1 %422 }
  0xa7   : > { %8678 = vmatprep.mubr.msk.f32.mxu0 %vm1159_vm0, %v7838_v54  ;;  %v420_v56 = vpop.permute.xlu0 %419  ;;  %vm439_vm1 = vcmp.eq.s32.totalorder %v423_v55, %v10229_v26 }
  0xa8   : > { %vm438_vm15 = vcmp.eq.s32.totalorder %v420_v56, %v10229_v26  ;;  %v7841_v59 = vsel %vm439_vm1, 1.0, %v10065_v29 }
  0xa9   : > { %v7840_v58 = vsel %vm438_vm15, 1.0, %v10065_v29 }
  0xaa   : > { %8679 = vmatmul.mubr.msk.f32.gmra.mxu0 %vm1159_vm0, %v7839_v57 }
  0xab   : > { %8681 = vmatprep.mubr.msk.f32.mxu0 %vm1159_vm0, %v7840_v58 }
  0xae   : > { %8682 = vmatmul.mubr.msk.f32.gmra.mxu0 %vm1159_vm0, %v7841_v59 }
 0x152   : > { %v8662_v61 = vpop.f32.mrf.mxu0 }
 0x153   : > { %v1616_v62 = vadd.f32 %v8662_v61, %v10282_v60 }
 0x154   : > { %v1610_v63 = vpop.f32.mrf.mxu0 }
 0x155   : > { %v8086_v0 = vmul.f32 -1.442695, %v1616_v62  ;;  %v1611_v1 = vadd.f32 %v10282_v60, %v1610_v63 }
 0x156   : > { %v8665_v2 = vpop.f32.mrf.mxu0 }
 0x157   : > { %9151 = vpow2.f32 %v8086_v0  ;;  %v8085_v3 = vmul.f32 -1.442695, %v1611_v1  ;;  %v1626_v4 = vadd.f32 %v8665_v2, %v10282_v60 }
 0x158   : > { %v1620_v7 = vpop.f32.mrf.mxu0 }
 0x159   : > { %9153 = vpow2.f32 %v8085_v3  ;;  %v8088_v10 = vmul.f32 -1.442695, %v1626_v4  ;;  %v1621_v13 = vadd.f32 %v10282_v60, %v1620_v7 }
 0x15a   : > { %v8668_v14 = vpop.f32.mrf.mxu0 }
 0x15b   : > { %9155 = vpow2.f32 %v8088_v10  ;;  %v8087_v25 = vmul.f32 -1.442695, %v1621_v13  ;;  %v1636_v27 = vadd.f32 %v8668_v14, %v10282_v60 }
 0x15c   : > { %v1630_v28 = vpop.f32.mrf.mxu0 }
 0x15d   : > { %9157 = vpow2.f32 %v8087_v25  ;;  %v8090_v30 = vmul.f32 -1.442695, %v1636_v27  ;;  %v1631_v31 = vadd.f32 %v10282_v60, %v1630_v28 }
 0x15e   : > { %v8671_v32 = vpop.f32.mrf.mxu0 }
 0x15f   : > { %9159 = vpow2.f32 %v8090_v30  ;;  %v8089_v33 = vmul.f32 -1.442695, %v1631_v31  ;;  %v1646_v34 = vadd.f32 %v8671_v32, %v10282_v60  ;;  %v10303_v32 = vld [vmem:[%s13295_s5] ss:$0 sm:$0xff] }
 0x160   : > { %v1640_v35 = vpop.f32.mrf.mxu0 }
 0x161   : > { %9161 = vpow2.f32 %v8089_v33  ;;  %v8092_v36 = vmul.f32 -1.442695, %v1646_v34  ;;  %v1641_v37 = vadd.f32 %v10282_v60, %v1640_v35 }
 0x162   : > { %v8674_v38 = vpop.f32.mrf.mxu0 }
 0x163   : > { %9163 = vpow2.f32 %v8092_v36  ;;  %v8091_v39 = vmul.f32 -1.442695, %v1641_v37  ;;  %v1656_v40 = vadd.f32 %v8674_v38, %v10282_v60  ;;  %v10308_v36 = vld [vmem:[%s13296_s6] ss:$0 sm:$0xff] }
 0x164   : > { %v9152_v41 = vpop.eup %9151  ;;  %v1650_v42 = vpop.f32.mrf.mxu0 }
 0x165   : > { %v2460_v43 = vadd.f32 1.0, %v9152_v41  ;;  %9165 = vpow2.f32 %v8091_v39  ;;  %v8094_v44 = vmul.f32 -1.442695, %v1656_v40  ;;  %v1651_v45 = vadd.f32 %v10282_v60, %v1650_v42 }
 0x166   : > { %v9154_v46 = vpop.eup %9153  ;;  %v8677_v47 = vpop.f32.mrf.mxu0 }
 0x167   : > { %9167 = vrcp.f32 %v2460_v43  ;;  %v2459_v48 = vadd.f32 1.0, %v9154_v46  ;;  %v8093_v49 = vmul.f32 -1.442695, %v1651_v45  ;;  %v1666_v50 = vadd.f32 %v8677_v47, %v10282_v60 }
 0x168   : > { %v9156_v51 = vpop.eup %9155  ;;  %9169 = vpow2.f32 %v8094_v44  ;;  %v1660_v52 = vpop.f32.mrf.mxu0 }
 0x169   : > { %9171 = vrcp.f32 %v2459_v48  ;;  %v2462_v53 = vadd.f32 1.0, %v9156_v51  ;;  %v8096_v54 = vmul.f32 -1.442695, %v1666_v50  ;;  %v1661_v55 = vadd.f32 %v10282_v60, %v1660_v52 }
 0x16a   : > { %v9158_v56 = vpop.eup %9157  ;;  %9173 = vpow2.f32 %v8093_v49  ;;  %v8680_v57 = vpop.f32.mrf.mxu0 }
 0x16b   : > { %9175 = vrcp.f32 %v2462_v53  ;;  %v2461_v58 = vadd.f32 1.0, %v9158_v56  ;;  %v8095_v59 = vmul.f32 -1.442695, %v1661_v55  ;;  %v1676_v61 = vadd.f32 %v8680_v57, %v10282_v60 }
 0x16c   : > { %v9160_v62 = vpop.eup %9159  ;;  %9177 = vpow2.f32 %v8096_v54  ;;  %v1670_v63 = vpop.f32.mrf.mxu0 }
 0x16d   : > { %9179 = vrcp.f32 %v2461_v58  ;;  %v2464_v0 = vadd.f32 1.0, %v9160_v62  ;;  %v8098_v1 = vmul.f32 -1.442695, %v1676_v61  ;;  %v1671_v2 = vadd.f32 %v10282_v60, %v1670_v63 }
 0x16e   : > { %v9162_v3 = vpop.eup %9161  ;;  %9181 = vpow2.f32 %v8095_v59  ;;  %v8683_v4 = vpop.f32.mrf.mxu0 }
 0x16f   : > { %9183 = vrcp.f32 %v2464_v0  ;;  %v2463_v7 = vadd.f32 1.0, %v9162_v3  ;;  %v8097_v10 = vmul.f32 -1.442695, %v1671_v2  ;;  %v1686_v13 = vadd.f32 %v8683_v4, %v10282_v60 }
 0x170   : > { %v9164_v14 = vpop.eup %9163  ;;  %9185 = vpow2.f32 %v8098_v1  ;;  %v1680_v25 = vpop.f32.mrf.mxu0 }
 0x171   : > { %9187 = vrcp.f32 %v2463_v7  ;;  %v2466_v27 = vadd.f32 1.0, %v9164_v14  ;;  %v8100_v28 = vmul.f32 -1.442695, %v1686_v13  ;;  %v1681_v30 = vadd.f32 %v10282_v60, %v1680_v25 }
 0x172   : > { %v9166_v31 = vpop.eup %9165  ;;  %9189 = vpow2.f32 %v8097_v10 }
 0x173   : > { %9191 = vrcp.f32 %v2466_v27  ;;  %v2465_v33 = vadd.f32 1.0, %v9166_v31  ;;  %v8099_v34 = vmul.f32 -1.442695, %v1681_v30 }
 0x174   : > { %v9168_v35 = vpop.eup %9167  ;;  %9193 = vpow2.f32 %v8100_v28 }
 0x175   : > { %v9170_v37 = vpop.eup %9169  ;;  %9195 = vrcp.f32 %v2465_v33  ;;  %v2508_v60 = vmul.f32 %v9168_v35, %v10303_v32 }
 0x176   : > { %v9172_v38 = vpop.eup %9171  ;;  %v2468_v39 = vadd.f32 1.0, %v9170_v37  ;;  %9197 = vpow2.f32 %v8099_v34 }
 0x177   : > { %v9174_v40 = vpop.eup %9173  ;;  %v10312_v41 = vadd.f32 %v10308_v36, %v2508_v60  ;;  %v2507_v42 = vmul.f32 %v9172_v38, %v10303_v32 }
 0x178   : > { %v9176_v43 = vpop.eup %9175  ;;  %9199 = vrcp.f32 %v2468_v39  ;;  %v2467_v44 = vadd.f32 1.0, %v9174_v40 }
 0x179   : > { %v9178_v45 = vpop.eup %9177  ;;  %2573 = vrot.lane.b32.xlu1 %v10312_v41, %s10066_s19  ;;  %v10318_v46 = vadd.f32 %v10308_v36, %v2507_v42  ;;  %v2510_v47 = vmul.f32 %v9176_v43, %v10303_v32 }
 0x17a   : > { %v9180_v48 = vpop.eup %9179  ;;  %9201 = vrcp.f32 %v2467_v44  ;;  %v2470_v49 = vadd.f32 1.0, %v9178_v45 }
 0x17b   : > { %v9182_v50 = vpop.eup %9181  ;;  %2571 = vrot.lane.b32.xlu0 %v10318_v46, %s10066_s19  ;;  %v10324_v51 = vadd.f32 %v10308_v36, %v2510_v47  ;;  %v2509_v52 = vmul.f32 %v9180_v48, %v10303_v32 }
 0x17c   : > { %v9184_v53 = vpop.eup %9183  ;;  %9203 = vrcp.f32 %v2470_v49  ;;  %v2469_v54 = vadd.f32 1.0, %v9182_v50 }
 0x17d   : > { %v9186_v55 = vpop.eup %9185  ;;  %2577 = vrot.lane.b32.xlu1 %v10324_v51, %s10066_s19  ;;  %v10330_v56 = vadd.f32 %v10308_v36, %v2509_v52  ;;  %v2512_v57 = vmul.f32 %v9184_v53, %v10303_v32 }
 0x17e   : > { %v9188_v58 = vpop.eup %9187  ;;  %9205 = vrcp.f32 %v2469_v54  ;;  %v2472_v59 = vadd.f32 1.0, %v9186_v55 }
 0x17f   : > { %v9190_v61 = vpop.eup %9189  ;;  %2575 = vrot.lane.b32.xlu0 %v10330_v56, %s10066_s19  ;;  %v10336_v62 = vadd.f32 %v10308_v36, %v2512_v57  ;;  %v2511_v63 = vmul.f32 %v9188_v58, %v10303_v32 }
 0x180   : > { %v9192_v0 = vpop.eup %9191  ;;  %9207 = vrcp.f32 %v2472_v59  ;;  %v2471_v1 = vadd.f32 1.0, %v9190_v61  ;;  %v10067_v59 = vmov 1  }
 0x181   : > { %v9194_v2 = vpop.eup %9193  ;;  %2581 = vrot.lane.b32.xlu1 %v10336_v62, %s10066_s19  ;;  %v10342_v3 = vadd.f32 %v10308_v36, %v2511_v63  ;;  %v2514_v4 = vmul.f32 %v9192_v0, %v10303_v32  ;;  %9137 = vset.pattern.permute.xlu0 %v10067_v59 }
 0x182   : > { %v9196_v7 = vpop.eup %9195  ;;  %9209 = vrcp.f32 %v2471_v1  ;;  %v2474_v10 = vadd.f32 1.0, %v9194_v2  ;;  %9138 = vset.pattern.permute.xlu1 %v10067_v59 }
 0x183   : > { %v9198_v13 = vpop.eup %9197  ;;  %2579 = vrot.lane.b32.xlu0 %v10342_v3, %s10066_s19  ;;  %v10348_v14 = vadd.f32 %v10308_v36, %v2514_v4  ;;  %v2513_v25 = vmul.f32 %v9196_v7, %v10303_v32 }
 0x184   : > { %9211 = vrcp.f32 %v2474_v10  ;;  %v2473_v27 = vadd.f32 1.0, %v9198_v13 }
 0x185   : > { %v9200_v28 = vpop.eup %9199  ;;  %2585 = vrot.lane.b32.xlu1 %v10348_v14, %s10066_s19  ;;  %v10354_v30 = vadd.f32 %v10308_v36, %v2513_v25 }
 0x186   : > { %9213 = vrcp.f32 %v2473_v27  ;;  %v2516_v31 = vmul.f32 %v9200_v28, %v10303_v32 }
 0x187   : > { %v9202_v33 = vpop.eup %9201  ;;  %2583 = vrot.lane.b32.xlu0 %v10354_v30, %s10066_s19 }
 0x188   : > { %v10360_v34 = vadd.f32 %v10308_v36, %v2516_v31  ;;  %v2515_v35 = vmul.f32 %v9202_v33, %v10303_v32 }
 0x189   : > { %v9204_v37 = vpop.eup %9203 }
 0x18a   : > { %2589 = vrot.lane.b32.xlu1 %v10360_v34, %s10066_s19  ;;  %v10366_v60 = vadd.f32 %v10308_v36, %v2515_v35  ;;  %v2518_v38 = vmul.f32 %v9204_v37, %v10303_v32 }
 0x18b   : > { %v9206_v39 = vpop.eup %9205 }
 0x18c   : > { %2587 = vrot.lane.b32.xlu0 %v10366_v60, %s10066_s19  ;;  %v10372_v40 = vadd.f32 %v10308_v36, %v2518_v38  ;;  %v2517_v42 = vmul.f32 %v9206_v39, %v10303_v32 }
 0x18d   : > { %v9208_v43 = vpop.eup %9207 }
 0x18e   : > { %2593 = vrot.lane.b32.xlu1 %v10372_v40, %s10066_s19  ;;  %v10378_v44 = vadd.f32 %v10308_v36, %v2517_v42  ;;  %v2520_v45 = vmul.f32 %v9208_v43, %v10303_v32 }
 0x18f   : > { %v9210_v47 = vpop.eup %9209 }
 0x190   : > { %2591 = vrot.lane.b32.xlu0 %v10378_v44, %s10066_s19  ;;  %v10384_v48 = vadd.f32 %v10308_v36, %v2520_v45  ;;  %v2519_v49 = vmul.f32 %v9210_v47, %v10303_v32 }
 0x191   : > { %v9212_v50 = vpop.eup %9211 }
 0x192   : > { %2597 = vrot.lane.b32.xlu1 %v10384_v48, %s10066_s19  ;;  %v10390_v52 = vadd.f32 %v10308_v36, %v2519_v49  ;;  %v2522_v53 = vmul.f32 %v9212_v50, %v10303_v32 }
 0x193   : > { %v9214_v54 = vpop.eup %9213 }
 0x194   : > { %2595 = vrot.lane.b32.xlu0 %v10390_v52, %s10066_s19  ;;  %v10396_v55 = vadd.f32 %v10308_v36, %v2522_v53  ;;  %v2521_v57 = vmul.f32 %v9214_v54, %v10303_v32 }
 0x196   : > { %2601 = vrot.lane.b32.xlu1 %v10396_v55, %s10066_s19  ;;  %v10402_v58 = vadd.f32 %v10308_v36, %v2521_v57 }
 0x198   : > { %2599 = vrot.lane.b32.xlu0 %v10402_v58, %s10066_s19 }
 0x1eb   : > { %v2574_v61 = vpop.permute.xlu1 %2573 }
 0x1ec   : > { %v2620_v63 = vmul.f32 %v2574_v61, %v10312_v41 }
 0x1ed   : > { %v2572_v0 = vpop.permute.xlu0 %2571 }
 0x1ee   : > { %v2619_v1 = vmul.f32 %v2572_v0, %v10318_v46  ;;  %2653 = vrot.lane.b32.xlu1 %v2620_v63, %s10068_s20  ;;  %v2540_v0 = vmul.f32 0.0, %v10312_v41 }
 0x1ef   : > { %v2578_v32 = vpop.permute.xlu1 %2577 }
 0x1f0   : > { %v2622_v2 = vmul.f32 %v2578_v32, %v10324_v51  ;;  %2651 = vrot.lane.b32.xlu0 %v2619_v1, %s10068_s20 }
 0x1f1   : > { %v2576_v36 = vpop.permute.xlu0 %2575 }
 0x1f2   : > { %v2621_v4 = vmul.f32 %v2576_v36, %v10330_v56  ;;  %2657 = vrot.lane.b32.xlu1 %v2622_v2, %s10068_s20  ;;  %v2539_v2 = vmul.f32 0.0, %v10318_v46 }
 0x1f3   : > { %v2582_v7 = vpop.permute.xlu1 %2581 }
 0x1f4   : > { %v2624_v10 = vmul.f32 %v2582_v7, %v10336_v62  ;;  %2655 = vrot.lane.b32.xlu0 %v2621_v4, %s10068_s20  ;;  %v2542_v7 = vmul.f32 0.0, %v10324_v51 }
 0x1f5   : > { %v2580_v13 = vpop.permute.xlu0 %2579 }
 0x1f6   : > { %v2623_v25 = vmul.f32 %v2580_v13, %v10342_v3  ;;  %2661 = vrot.lane.b32.xlu1 %v2624_v10, %s10068_s20 }
 0x1f7   : > { %v2586_v27 = vpop.permute.xlu1 %2585 }
 0x1f8   : > { %v2626_v28 = vmul.f32 %v2586_v27, %v10348_v14  ;;  %2659 = vrot.lane.b32.xlu0 %v2623_v25, %s10068_s20  ;;  %v2544_v27 = vmul.f32 0.0, %v10336_v62 }
 0x1f9   : > { %v2584_v31 = vpop.permute.xlu0 %2583 }
 0x1fa   : > { %v2625_v33 = vmul.f32 %v2584_v31, %v10354_v30  ;;  %2665 = vrot.lane.b32.xlu1 %v2626_v28, %s10068_s20 }
 0x1fc   : > { %v2590_v35 = vpop.permute.xlu1 %2589  ;;  %2663 = vrot.lane.b32.xlu0 %v2625_v33, %s10068_s20  ;;  %v2543_v33 = vmul.f32 0.0, %v10342_v3 }
 0x1fd   : > { %v2628_v37 = vmul.f32 %v2590_v35, %v10360_v34 }
 0x1fe   : > { %v2588_v38 = vpop.permute.xlu0 %2587 }
 0x1ff   : > { %v2627_v39 = vmul.f32 %v2588_v38, %v10366_v60  ;;  %2669 = vrot.lane.b32.xlu1 %v2628_v37, %s10068_s20  ;;  %v2546_v38 = vmul.f32 0.0, %v10348_v14 }
 0x200   : > { %v2594_v42 = vpop.permute.xlu1 %2593 }
 0x201   : > { %v2630_v43 = vmul.f32 %v2594_v42, %v10372_v40  ;;  %2667 = vrot.lane.b32.xlu0 %v2627_v39, %s10068_s20 }
 0x202   : > { %v2592_v45 = vpop.permute.xlu0 %2591 }
 0x203   : > { %v2629_v47 = vmul.f32 %v2592_v45, %v10378_v44  ;;  %2673 = vrot.lane.b32.xlu1 %v2630_v43, %s10068_s20  ;;  %v2545_v43 = vmul.f32 0.0, %v10354_v30 }
 0x204   : > { %v2598_v49 = vpop.permute.xlu1 %2597 }
 0x205   : > { %v2632_v50 = vmul.f32 %v2598_v49, %v10384_v48  ;;  %2671 = vrot.lane.b32.xlu0 %v2629_v47, %s10068_s20 }
 0x206   : > { %v2596_v53 = vpop.permute.xlu0 %2595 }
 0x207   : > { %v2631_v54 = vmul.f32 %v2596_v53, %v10390_v52  ;;  %2677 = vrot.lane.b32.xlu1 %v2632_v50, %s10068_s20  ;;  %v2548_v50 = vmul.f32 0.0, %v10360_v34 }
 0x208   : > { %v2602_v57 = vpop.permute.xlu1 %2601 }
 0x209   : > { %v2634_v59 = vmul.f32 %v2602_v57, %v10396_v55  ;;  %2675 = vrot.lane.b32.xlu0 %v2631_v54, %s10068_s20 }
 0x20a   : > { %v2600_v61 = vpop.permute.xlu0 %2599 }
 0x20b   : > { %v2633_v63 = vmul.f32 %v2600_v61, %v10402_v58  ;;  %2681 = vrot.lane.b32.xlu1 %v2634_v59, %s10068_s20  ;;  %v2547_v59 = vmul.f32 0.0, %v10366_v60 }
 0x20d   : > { %2679 = vrot.lane.b32.xlu0 %v2633_v63, %s10068_s20 }
 0x20f   : > { %476 = vperm.xlu1 %9138, %v10168_v9  }
 0x211   : > { %473 = vperm.xlu0 %9137, %v10157_v6   ;;  %v2541_v6 = vmul.f32 0.0, %v10330_v56 }
 0x260   : > { %v2654_v1 = vpop.permute.xlu1 %2653 }
 0x261   : > { %v10441_v32 = vadd.f32 %v2654_v1, %v2540_v0  ;;  %v2550_v1 = vmul.f32 0.0, %v10372_v40 }
 0x262   : > { %v2652_v36 = vpop.permute.xlu0 %2651 }
 0x263   : > { %9215 = vtanh.f32 %v10441_v32  ;;  %v10445_v4 = vadd.f32 %v2652_v36, %v2539_v2 }
 0x264   : > { %v2658_v10 = vpop.permute.xlu1 %2657 }
 0x265   : > { %9217 = vtanh.f32 %v10445_v4  ;;  %v10449_v9 = vadd.f32 %v2658_v10, %v2542_v7  ;;  %v2549_v10 = vmul.f32 0.0, %v10378_v44 }
 0x266   : > { %v2656_v13 = vpop.permute.xlu0 %2655 }
 0x267   : > { %9219 = vtanh.f32 %v10449_v9  ;;  %v10453_v25 = vadd.f32 %v2656_v13, %v2541_v6 }
 0x268   : > { %v2662_v28 = vpop.permute.xlu1 %2661 }
 0x269   : > { %9221 = vtanh.f32 %v10453_v25  ;;  %v10457_v31 = vadd.f32 %v2662_v28, %v2544_v27  ;;  %v2552_v28 = vmul.f32 0.0, %v10384_v48 }
 0x26a   : > { %v2660_v35 = vpop.permute.xlu0 %2659 }
 0x26b   : > { %9223 = vtanh.f32 %v10457_v31  ;;  %v10461_v37 = vadd.f32 %v2660_v35, %v2543_v33 }
 0x26c   : > { %v2666_v39 = vpop.permute.xlu1 %2665 }
 0x26d   : > { %9225 = vtanh.f32 %v10461_v37  ;;  %v10465_v42 = vadd.f32 %v2666_v39, %v2546_v38  ;;  %v2551_v39 = vmul.f32 0.0, %v10390_v52 }
 0x26e   : > { %v2664_v45 = vpop.permute.xlu0 %2663 }
 0x26f   : > { %9227 = vtanh.f32 %v10465_v42  ;;  %v10469_v47 = vadd.f32 %v2664_v45, %v2545_v43 }
 0x270   : > { %v9216_v49 = vpop.eup %9215 }
 0x271   : > { %9229 = vtanh.f32 %v10469_v47  ;;  %v2670_v53 = vpop.permute.xlu1 %2669  ;;  %2749 = vrot.lane.b32.xlu1 %v9216_v49, %s10066_s19 }
 0x272   : > { %v9218_v54 = vpop.eup %9217  ;;  %v10474_v57 = vadd.f32 %v2670_v53, %v2548_v50  ;;  %v2554_v50 = vmul.f32 0.0, %v10396_v55 }
 0x273   : > { %v2668_v61 = vpop.permute.xlu0 %2667  ;;  %2747 = vrot.lane.b32.xlu0 %v9218_v54, %s10066_s19 }
 0x274   : > { %v9220_v63 = vpop.eup %9219  ;;  %9231 = vtanh.f32 %v10474_v57  ;;  %v10479_v0 = vadd.f32 %v2668_v61, %v2547_v59  ;;  %v2553_v61 = vmul.f32 0.0, %v10402_v58 }
 0x275   : > { %v2674_v2 = vpop.permute.xlu1 %2673  ;;  %2753 = vrot.lane.b32.xlu1 %v9220_v63, %s10066_s19 }
 0x276   : > { %v9222_v36 = vpop.eup %9221  ;;  %9233 = vtanh.f32 %v10479_v0  ;;  %v10484_v7 = vadd.f32 %v2674_v2, %v2550_v1 }
 0x277   : > { %v2672_v6 = vpop.permute.xlu0 %2671  ;;  %2751 = vrot.lane.b32.xlu0 %v9222_v36, %s10066_s19 }
 0x278   : > { %v9224_v13 = vpop.eup %9223  ;;  %9235 = vtanh.f32 %v10484_v7  ;;  %v10489_v27 = vadd.f32 %v2672_v6, %v2549_v10 }
 0x279   : > { %v2678_v33 = vpop.permute.xlu1 %2677  ;;  %2757 = vrot.lane.b32.xlu1 %v9224_v13, %s10066_s19 }
 0x27a   : > { %v9226_v35 = vpop.eup %9225  ;;  %9237 = vtanh.f32 %v10489_v27  ;;  %v10494_v38 = vadd.f32 %v2678_v33, %v2552_v28 }
 0x27b   : > { %v2676_v43 = vpop.permute.xlu0 %2675  ;;  %2755 = vrot.lane.b32.xlu0 %v9226_v35, %s10066_s19 }
 0x27c   : > { %v9228_v45 = vpop.eup %9227  ;;  %9239 = vtanh.f32 %v10494_v38  ;;  %v10499_v49 = vadd.f32 %v2676_v43, %v2551_v39 }
 0x27d   : > { %v2682_v53 = vpop.permute.xlu1 %2681  ;;  %2761 = vrot.lane.b32.xlu1 %v9228_v45, %s10066_s19 }
 0x27e   : > { %v9230_v54 = vpop.eup %9229  ;;  %9241 = vtanh.f32 %v10499_v49  ;;  %v10504_v59 = vadd.f32 %v2682_v53, %v2554_v50 }
 0x27f   : > { %v2680_v63 = vpop.permute.xlu0 %2679  ;;  %2759 = vrot.lane.b32.xlu0 %v9230_v54, %s10066_s19 }
 0x280   : > { %9243 = vtanh.f32 %v10504_v59  ;;  %v10509_v1 = vadd.f32 %v2680_v63, %v2553_v61 }
 0x281   : > { %v9232_v2 = vpop.eup %9231 }
 0x282   : > { %9245 = vtanh.f32 %v10509_v1  ;;  %2765 = vrot.lane.b32.xlu1 %v9232_v2, %s10066_s19 }
 0x283   : > { %v9234_v36 = vpop.eup %9233 }
 0x284   : > { %2763 = vrot.lane.b32.xlu0 %v9234_v36, %s10066_s19 }
 0x285   : > { %v9236_v10 = vpop.eup %9235 }
 0x286   : > { %2769 = vrot.lane.b32.xlu1 %v9236_v10, %s10066_s19 }
 0x287   : > { %v9238_v6 = vpop.eup %9237 }
 0x288   : > { %2767 = vrot.lane.b32.xlu0 %v9238_v6, %s10066_s19 }
 0x289   : > { %v9240_v13 = vpop.eup %9239 }
 0x28a   : > { %2773 = vrot.lane.b32.xlu1 %v9240_v13, %s10066_s19  ;;  %v477_v28 = vpop.permute.xlu1 %476 }
 0x28b   : > { %v9242_v33 = vpop.eup %9241  ;;  %vm521_vm2 = vcmp.eq.s32.totalorder %v477_v28, %v10229_v26 }
 0x28c   : > { %2771 = vrot.lane.b32.xlu0 %v9242_v33, %s10066_s19  ;;  %v474_v35 = vpop.permute.xlu0 %473  ;;  %v7843_v43 = vsel %vm521_vm2, 1.0, %v10065_v29 }
 0x28d   : > { %v9244_v39 = vpop.eup %9243  ;;  %vm520_vm3 = vcmp.eq.s32.totalorder %v474_v35, %v10229_v26 }
 0x28e   : > { %2777 = vrot.lane.b32.xlu1 %v9244_v39, %s10066_s19  ;;  %v7842_v45 = vsel %vm520_vm3, 1.0, %v10065_v29  ;;  %vm2875_vm3 = vcmask 261120  }
 0x28f   : > { %v9246_v50 = vpop.eup %9245  ;;  %8684 = vmatprep.mubr.msk.f32.mxu0 %vm1159_vm0, %v7842_v45 }
 0x290   : > { %2775 = vrot.lane.b32.xlu0 %v9246_v50, %s10066_s19  ;;  %8685 = vmatmul.mubr.msk.f32.gmra.mxu0 %vm1159_vm0, %v7843_v43 }
 0x292   : > { %479 = vperm.xlu1 %9138, %v10154_v5   ;;  %v10542_v5 = vld [vmem:[%s13294_s4 + $0x18] sm:$0xff] }
 0x293   : > { %8852 = vmatprep.subr.mxu1 %v10542_v5 }
 0x294   : > { %482 = vperm.xlu0 %9137, %v10165_v8   ;;  %v10547_v8 = vld [vmem:[%s13294_s4 + $0x10] sm:$0xff]  ;;  %8853 = vmatpush3.msra.mxu1 %v10542_v5 }
 0x295   : > { %8854 = vmatprep.subr.mxu1 %v10547_v8 }
 0x296   : > { %485 = vperm.xlu1 %9138, %v10179_v12   ;;  %8855 = vmatpush3.msra.mxu1 %v10547_v8  ;;  %v10564_v12 = vld [vmem:[%s13294_s4] sm:$0xff] }
 0x298   : > { %488 = vperm.xlu0 %9137, %v10176_v11   ;;  %v10555_v11 = vld [vmem:[%s13294_s4 + $0x8] sm:$0xff] }
 0x299   : > { %8856 = vmatprep.subr.mxu1 %v10555_v11 }
 0x29a   : > { %491 = vperm.xlu1 %9138, %v10193_v16   ;;  %8857 = vmatpush3.msra.mxu1 %v10555_v11 }
 0x29b   : > { %8858 = vmatprep.subr.mxu1 %v10564_v12 }
 0x29c   : > { %494 = vperm.xlu0 %9137, %v10190_v15   ;;  %8859 = vmatpush3.msra.mxu1 %v10564_v12 }
 0x29d   : > { %8884 = vmatprep.subr.mxu1 %v10542_v5 }
 0x29e   : > { %497 = vperm.xlu1 %9138, %v10201_v18  }
 0x2a0   : > { %500 = vperm.xlu0 %9137, %v10198_v17  }
 0x2a2   : > { %503 = vperm.xlu1 %9138, %v10209_v20  }
 0x2a4   : > { %506 = vperm.xlu0 %9137, %v10206_v19  }
 0x2a6   : > { %509 = vperm.xlu1 %9138, %v10217_v22  }
 0x2a8   : > { %512 = vperm.xlu0 %9137, %v10214_v21  }
 0x2aa   : > { %515 = vperm.xlu1 %9138, %v10225_v24  }
 0x2ac   : > { %518 = vperm.xlu0 %9137, %v10222_v23  }
 0x2e3   : > { %v2750_v15 = vpop.permute.xlu1 %2749 }
 0x2e4   : > { %v2796_v16 = vmul.f32 %v2750_v15, %v10312_v41 }
 0x2e5   : > { %v2748_v17 = vpop.permute.xlu0 %2747 }
 0x2e6   : > { %v2795_v18 = vmul.f32 %v2748_v17, %v10318_v46  ;;  %2845 = vrot.lane.b32.xlu0 %v2796_v16, %s10068_s20 }
 0x2e7   : > { %v2754_v19 = vpop.permute.xlu1 %2753 }
 0x2e8   : > { %v2798_v20 = vmul.f32 %v2754_v19, %v10324_v51  ;;  %2843 = vrot.lane.b32.xlu1 %v2795_v18, %s10068_s20 }
 0x2e9   : > { %v2752_v21 = vpop.permute.xlu0 %2751 }
 0x2ea   : > { %v2797_v22 = vmul.f32 %v2752_v21, %v10330_v56  ;;  %2849 = vrot.lane.b32.xlu0 %v2798_v20, %s10068_s20 }
 0x2eb   : > { %v2758_v23 = vpop.permute.xlu1 %2757 }
 0x2ec   : > { %v2800_v24 = vmul.f32 %v2758_v23, %v10336_v62  ;;  %2847 = vrot.lane.b32.xlu1 %v2797_v22, %s10068_s20 }
 0x2ed   : > { %v2756_v41 = vpop.permute.xlu0 %2755 }
 0x2ee   : > { %v2799_v46 = vmul.f32 %v2756_v41, %v10342_v3  ;;  %2853 = vrot.lane.b32.xlu0 %v2800_v24, %s10068_s20 }
 0x2ef   : > { %v2762_v53 = vpop.permute.xlu1 %2761 }
 0x2f0   : > { %v2802_v51 = vmul.f32 %v2762_v53, %v10348_v14  ;;  %2851 = vrot.lane.b32.xlu1 %v2799_v46, %s10068_s20 }
 0x2f1   : > { %v2760_v54 = vpop.permute.xlu0 %2759 }
 0x2f2   : > { %v2801_v56 = vmul.f32 %v2760_v54, %v10354_v30  ;;  %2857 = vrot.lane.b32.xlu0 %v2802_v51, %s10068_s20 }
 0x2f4   : > { %v2766_v61 = vpop.permute.xlu1 %2765  ;;  %2855 = vrot.lane.b32.xlu1 %v2801_v56, %s10068_s20 }
 0x2f5   : > { %v2804_v62 = vmul.f32 %v2766_v61, %v10360_v34 }
 0x2f6   : > { %v2764_v63 = vpop.permute.xlu0 %2763 }
 0x2f7   : > { %v2803_v3 = vmul.f32 %v2764_v63, %v10366_v60  ;;  %2861 = vrot.lane.b32.xlu0 %v2804_v62, %s10068_s20 }
 0x2f8   : > { %v2770_v2 = vpop.permute.xlu1 %2769 }
 0x2f9   : > { %v2806_v14 = vmul.f32 %v2770_v2, %v10372_v40  ;;  %2859 = vrot.lane.b32.xlu1 %v2803_v3, %s10068_s20 }
 0x2fa   : > { %v2768_v36 = vpop.permute.xlu0 %2767 }
 0x2fb   : > { %v2805_v30 = vmul.f32 %v2768_v36, %v10378_v44  ;;  %2865 = vrot.lane.b32.xlu0 %v2806_v14, %s10068_s20 }
 0x2fc   : > { %v2774_v10 = vpop.permute.xlu1 %2773 }
 0x2fd   : > { %v2808_v6 = vmul.f32 %v2774_v10, %v10384_v48  ;;  %2863 = vrot.lane.b32.xlu1 %v2805_v30, %s10068_s20 }
 0x2fe   : > { %v2772_v34 = vpop.permute.xlu0 %2771 }
 0x2ff   : > { %v2807_v60 = vmul.f32 %v2772_v34, %v10390_v52  ;;  %2869 = vrot.lane.b32.xlu0 %v2808_v6, %s10068_s20 }
 0x300   : > { %v2778_v13 = vpop.permute.xlu1 %2777 }
 0x301   : > { %v2810_v40 = vmul.f32 %v2778_v13, %v10396_v55  ;;  %2867 = vrot.lane.b32.xlu1 %v2807_v60, %s10068_s20 }
 0x302   : > { %v2776_v28 = vpop.permute.xlu0 %2775 }
 0x303   : > { %v2809_v44 = vmul.f32 %v2776_v28, %v10402_v58  ;;  %2873 = vrot.lane.b32.xlu0 %v2810_v40, %s10068_s20 }
 0x305   : > { %2871 = vrot.lane.b32.xlu1 %v2809_v44, %s10068_s20 }
 0x30d   : > { %v480_v48 = vpop.permute.xlu1 %479 }
 0x30e   : > { %vm522_vm4 = vcmp.eq.s32.totalorder %v480_v48, %v10229_v26 }
 0x30f   : > { %v7844_v33 = vsel %vm522_vm4, 1.0, %v10065_v29  ;;  %v483_v52 = vpop.permute.xlu0 %482 }
 0x310   : > { %vm523_vm5 = vcmp.eq.s32.totalorder %v483_v52, %v10229_v26  ;;  %8687 = vmatprep.mubr.msk.f32.mxu0 %vm1159_vm0, %v7844_v33 }
 0x311   : > { %v7845_v55 = vsel %vm523_vm5, 1.0, %v10065_v29  ;;  %v486_v35 = vpop.permute.xlu1 %485 }
 0x312   : > { %vm524_vm6 = vcmp.eq.s32.totalorder %v486_v35, %v10229_v26  ;;  %8688 = vmatmul.mubr.msk.f32.gmra.mxu0 %vm1159_vm0, %v7845_v55 }
 0x313   : > { %v7846_v58 = vsel %vm524_vm6, 1.0, %v10065_v29  ;;  %v489_v39 = vpop.permute.xlu0 %488 }
 0x314   : > { %vm525_vm7 = vcmp.eq.s32.totalorder %v489_v39, %v10229_v26  ;;  %8690 = vmatprep.mubr.msk.f32.mxu0 %vm1159_vm0, %v7846_v58  ;;  %v10670_v39 = vld [vmem:[%s13293_s3] ss:$0 sm:$0xff] }
 0x315   : > { %v7847_v43 = vsel %vm525_vm7, 1.0, %v10065_v29  ;;  %v492_v45 = vpop.permute.xlu1 %491 }
 0x316   : > { %vm526_vm8 = vcmp.eq.s32.totalorder %v492_v45, %v10229_v26  ;;  %8691 = vmatmul.mubr.msk.f32.gmra.mxu0 %vm1159_vm0, %v7847_v43 }
 0x317   : > { %v7848_v50 = vsel %vm526_vm8, 1.0, %v10065_v29  ;;  %v495_v15 = vpop.permute.xlu0 %494 }
 0x318   : > { %vm527_vm9 = vcmp.eq.s32.totalorder %v495_v15, %v10229_v26  ;;  %8693 = vmatprep.mubr.msk.f32.mxu0 %vm1159_vm0, %v7848_v50 }
 0x319   : > { %v7849_v16 = vsel %vm527_vm9, 1.0, %v10065_v29  ;;  %v498_v17 = vpop.permute.xlu1 %497 }
 0x31a   : > { %vm528_vm10 = vcmp.eq.s32.totalorder %v498_v17, %v10229_v26  ;;  %8694 = vmatmul.mubr.msk.f32.gmra.mxu0 %vm1159_vm0, %v7849_v16 }
 0x31b   : > { %v7850_v18 = vsel %vm528_vm10, 1.0, %v10065_v29  ;;  %v501_v19 = vpop.permute.xlu0 %500 }
 0x31c   : > { %vm529_vm11 = vcmp.eq.s32.totalorder %v501_v19, %v10229_v26  ;;  %8696 = vmatprep.mubr.msk.f32.mxu0 %vm1159_vm0, %v7850_v18 }
 0x31d   : > { %v7851_v20 = vsel %vm529_vm11, 1.0, %v10065_v29  ;;  %v504_v21 = vpop.permute.xlu1 %503 }
 0x31e   : > { %vm530_vm12 = vcmp.eq.s32.totalorder %v504_v21, %v10229_v26  ;;  %8697 = vmatmul.mubr.msk.f32.gmra.mxu0 %vm1159_vm0, %v7851_v20 }
 0x31f   : > { %v7852_v22 = vsel %vm530_vm12, 1.0, %v10065_v29  ;;  %v507_v23 = vpop.permute.xlu0 %506 }
 0x320   : > { %vm531_vm13 = vcmp.eq.s32.totalorder %v507_v23, %v10229_v26  ;;  %8699 = vmatprep.mubr.msk.f32.mxu0 %vm1159_vm0, %v7852_v22 }
 0x321   : > { %v7853_v24 = vsel %vm531_vm13, 1.0, %v10065_v29  ;;  %v510_v41 = vpop.permute.xlu1 %509 }
 0x322   : > { %vm532_vm14 = vcmp.eq.s32.totalorder %v510_v41, %v10229_v26  ;;  %8700 = vmatmul.mubr.msk.f32.gmra.mxu0 %vm1159_vm0, %v7853_v24 }
 0x323   : > { %v7854_v46 = vsel %vm532_vm14, 1.0, %v10065_v29  ;;  %v513_v53 = vpop.permute.xlu0 %512 }
 0x324   : > { %vm533_vm15 = vcmp.eq.s32.totalorder %v513_v53, %v10229_v26  ;;  %8702 = vmatprep.mubr.msk.f32.mxu0 %vm1159_vm0, %v7854_v46 }
 0x325   : > { %v7855_v51 = vsel %vm533_vm15, 1.0, %v10065_v29  ;;  %v516_v54 = vpop.permute.xlu1 %515 }
 0x326   : > { %vm534_vm1 = vcmp.eq.s32.totalorder %v516_v54, %v10229_v26  ;;  %8703 = vmatmul.mubr.msk.f32.gmra.mxu0 %vm1159_vm0, %v7855_v51 }
 0x327   : > { %v7856_v56 = vsel %vm534_vm1, 1.0, %v10065_v29  ;;  %v519_v61 = vpop.permute.xlu0 %518 }
 0x328   : > { %vm535_vm2 = vcmp.eq.s32.totalorder %v519_v61, %v10229_v26  ;;  %8705 = vmatprep.mubr.msk.f32.mxu0 %vm1159_vm0, %v7856_v56 }
 0x329   : > { %v7857_v62 = vsel %vm535_vm2, 1.0, %v10065_v29 }
 0x32a   : > { %8706 = vmatmul.mubr.msk.f32.gmra.mxu0 %vm1159_vm0, %v7857_v62 }
 0x350   : > { %v8686_v28 = vpop.f32.mrf.mxu0 }
 0x351   : > { %v1696_v43 = vadd.f32 %v10670_v39, %v8686_v28 }
 0x352   : > { %v1690_v44 = vpop.f32.mrf.mxu0 }
 0x353   : > { %v1691_v15 = vadd.f32 %v10670_v39, %v1690_v44 }
 0x358   : > { %v2846_v63 = vpop.permute.xlu0 %2845 }
 0x35a   : > { %v2844_v3 = vpop.permute.xlu1 %2843 }
 0x35b   : > { %8860 = vmatprep.mubr.msk.f32.mxu1 %vm2875_vm3, %v2844_v3 }
 0x35c   : > { %8861 = vmatmul.mubr.msk.f32.vlgmr.msra.gmra.mxu1 %vm2875_vm3, %v2846_v63  ;;  %v2850_v2 = vpop.permute.xlu0 %2849 }
 0x35d   : > { %8885 = vmatpush3.msra.mxu1 %v10542_v5 }
 0x35e   : > { %v2848_v14 = vpop.permute.xlu1 %2847  ;;  %8886 = vmatprep.subr.mxu1 %v10547_v8 }
 0x35f   : > { %8863 = vmatprep.mubr.msk.f32.mxu1 %vm2875_vm3, %v2848_v14  ;;  %8887 = vmatpush3.msra.mxu1 %v10547_v8 }
 0x360   : > { %8864 = vmatmul.mubr.msk.f32.gmra.mxu1 %vm2875_vm3, %v2850_v2  ;;  %v2854_v36 = vpop.permute.xlu0 %2853  ;;  %8888 = vmatprep.subr.mxu1 %v10555_v11 }
 0x361   : > { %8889 = vmatpush3.msra.mxu1 %v10555_v11 }
 0x362   : > { %v2852_v30 = vpop.permute.xlu1 %2851  ;;  %8890 = vmatprep.subr.mxu1 %v10564_v12 }
 0x363   : > { %8866 = vmatprep.mubr.msk.f32.mxu1 %vm2875_vm3, %v2852_v30  ;;  %8891 = vmatpush3.msra.mxu1 %v10564_v12 }
 0x364   : > { %8867 = vmatmul.mubr.msk.f32.gmra.mxu1 %vm2875_vm3, %v2854_v36  ;;  %v2858_v10 = vpop.permute.xlu0 %2857  ;;  %8916 = vmatprep.subr.mxu1 %v10542_v5 }
 0x366   : > { %v2856_v8 = vpop.permute.xlu1 %2855 }
 0x367   : > { %8869 = vmatprep.mubr.msk.f32.mxu1 %vm2875_vm3, %v2856_v8 }
 0x368   : > { %8870 = vmatmul.mubr.msk.f32.gmra.mxu1 %vm2875_vm3, %v2858_v10 }
 0x369   : > { %v2862_v6 = vpop.permute.xlu0 %2861 }
 0x36b   : > { %v2860_v34 = vpop.permute.xlu1 %2859 }
 0x36c   : > { %8872 = vmatprep.mubr.msk.f32.mxu1 %vm2875_vm3, %v2860_v34 }
 0x36d   : > { %8873 = vmatmul.mubr.msk.f32.gmra.mxu1 %vm2875_vm3, %v2862_v6  ;;  %v2866_v11 = vpop.permute.xlu0 %2865 }
 0x36f   : > { %v2864_v60 = vpop.permute.xlu1 %2863 }
 0x370   : > { %8875 = vmatprep.mubr.msk.f32.mxu1 %vm2875_vm3, %v2864_v60 }
 0x371   : > { %8876 = vmatmul.mubr.msk.f32.gmra.mxu1 %vm2875_vm3, %v2866_v11  ;;  %v2870_v12 = vpop.permute.xlu0 %2869 }
 0x373   : > { %v2868_v13 = vpop.permute.xlu1 %2867 }
 0x374   : > { %8878 = vmatprep.mubr.msk.f32.mxu1 %vm2875_vm3, %v2868_v13 }
 0x375   : > { %8879 = vmatmul.mubr.msk.f32.gmra.mxu1 %vm2875_vm3, %v2870_v12  ;;  %v2874_v40 = vpop.permute.xlu0 %2873 }
 0x377   : > { %v2872_v5 = vpop.permute.xlu1 %2871 }
 0x378   : > { %8881 = vmatprep.mubr.msk.f32.mxu1 %vm2875_vm3, %v2872_v5 }
 0x379   : > { %8882 = vmatmul.mubr.msk.f32.gmra.mxu1 %vm2875_vm3, %v2874_v40 }
 0x3d2   : > { %v8689_v48 = vpop.f32.mrf.mxu0 }
 0x3d3   : > { %v1706_v18 = vadd.f32 %v10670_v39, %v8689_v48 }
 0x3d4   : > { %v1700_v33 = vpop.f32.mrf.mxu0 }
 0x3d5   : > { %v1701_v23 = vadd.f32 %v10670_v39, %v1700_v33 }
 0x3d6   : > { %v8692_v52 = vpop.f32.mrf.mxu0 }
 0x3d7   : > { %v1716_v53 = vadd.f32 %v10670_v39, %v8692_v52 }
 0x3d8   : > { %v1710_v55 = vpop.f32.mrf.mxu0 }
 0x3d9   : > { %v1711_v62 = vadd.f32 %v10670_v39, %v1710_v55 }
 0x3da   : > { %v8695_v35 = vpop.f32.mrf.mxu0 }
 0x3db   : > { %v1726_v14 = vadd.f32 %v10670_v39, %v8695_v35 }
 0x3dc   : > { %v1720_v58 = vpop.f32.mrf.mxu0 }
 0x3dd   : > { %v1721_v6 = vadd.f32 %v10670_v39, %v1720_v58 }
 0x3de   : > { %v8698_v45 = vpop.f32.mrf.mxu0 }
 0x3df   : > { %v1736_v40 = vadd.f32 %v10670_v39, %v8698_v45 }
 0x3e0   : > { %v1730_v19 = vpop.f32.mrf.mxu0 }
 0x3e1   : > { %v1731_v33 = vadd.f32 %v10670_v39, %v1730_v19 }
 0x3e2   : > { %v8701_v51 = vpop.f32.mrf.mxu0 }
 0x3e4   : > { %v1740_v36 = vpop.f32.mrf.mxu0 }
 0x3e6   : > { %v8704_v12 = vpop.f32.mrf.mxu0 }
 0x3e8   : > { %v1750_v55 = vpop.f32.mrf.mxu0 }
 0x3ea   : > { %v8707_v19 = vpop.f32.mrf.mxu0 }
 0x41c   : > { %v8862_v50 = vpop.f32.mrf.mxu1 }
 0x41d   : > { %v3054_v16 = vadd.f32 %v8862_v50, %v1696_v43  ;;  %v1746_v50 = vadd.f32 %v10670_v39, %v8701_v51 }
 0x41e   : > { %v2974_v17 = vpop.f32.mrf.mxu1 }
 0x41f   : > { %v8118_v20 = vmul.f32 -1.442695, %v3054_v16  ;;  %v3053_v21 = vadd.f32 %v2974_v17, %v1691_v15 }
 0x420   : > { %v8865_v22 = vpop.f32.mrf.mxu1 }
 0x421   : > { %9247 = vpow2.f32 %v8118_v20  ;;  %v8117_v24 = vmul.f32 -1.442695, %v3053_v21  ;;  %v3056_v41 = vadd.f32 %v8865_v22, %v1706_v18  ;;  %v1741_v20 = vadd.f32 %v10670_v39, %v1740_v36 }
 0x422   : > { %v2984_v46 = vpop.f32.mrf.mxu1 }
 0x423   : > { %9249 = vpow2.f32 %v8117_v24  ;;  %v8120_v54 = vmul.f32 -1.442695, %v3056_v41  ;;  %v3055_v56 = vadd.f32 %v2984_v46, %v1701_v23  ;;  %v1756_v46 = vadd.f32 %v10670_v39, %v8704_v12 }
 0x424   : > { %v8868_v61 = vpop.f32.mrf.mxu1 }
 0x425   : > { %9251 = vpow2.f32 %v8120_v54  ;;  %v8119_v63 = vmul.f32 -1.442695, %v3055_v56  ;;  %v3058_v3 = vadd.f32 %v8868_v61, %v1716_v53 }
 0x426   : > { %v2994_v2 = vpop.f32.mrf.mxu1 }
 0x427   : > { %9253 = vpow2.f32 %v8119_v63  ;;  %v8122_v30 = vmul.f32 -1.442695, %v3058_v3  ;;  %v3057_v10 = vadd.f32 %v2994_v2, %v1711_v62  ;;  %v1751_v62 = vadd.f32 %v10670_v39, %v1750_v55  ;;  %v1760_v2 = vpop.f32.mrf.mxu0 }
 0x428   : > { %v8871_v8 = vpop.f32.mrf.mxu1  ;;  %v1761_v12 = vadd.f32 %v10670_v39, %v1760_v2 }
 0x429   : > { %9255 = vpow2.f32 %v8122_v30  ;;  %v8121_v34 = vmul.f32 -1.442695, %v3057_v10  ;;  %v3060_v11 = vadd.f32 %v8871_v8, %v1726_v14  ;;  %v1766_v10 = vadd.f32 %v10670_v39, %v8707_v19  ;;  %v10691_v39 = vld [vmem:[%s13295_s5] ss:$0 sm:$0xff] }
 0x42a   : > { %v3004_v60 = vpop.f32.mrf.mxu1 }
 0x42b   : > { %9257 = vpow2.f32 %v8121_v34  ;;  %v8124_v13 = vmul.f32 -1.442695, %v3060_v11  ;;  %v3059_v5 = vadd.f32 %v3004_v60, %v1721_v6 }
 0x42d   : > { %9259 = vpow2.f32 %v8124_v13  ;;  %v8123_v28 = vmul.f32 -1.442695, %v3059_v5  ;;  %v8874_v44 = vpop.f32.mrf.mxu1 }
 0x42e   : > { %v9248_v48 = vpop.eup %9247  ;;  %v3062_v52 = vadd.f32 %v8874_v44, %v1736_v40 }
 0x42f   : > { %v3118_v35 = vadd.f32 1.0, %v9248_v48  ;;  %9261 = vpow2.f32 %v8123_v28  ;;  %v3014_v58 = vpop.f32.mrf.mxu1 }
 0x430   : > { %v9250_v43 = vpop.eup %9249  ;;  %v8126_v15 = vmul.f32 -1.442695, %v3062_v52  ;;  %v3061_v16 = vadd.f32 %v3014_v58, %v1731_v33 }
 0x431   : > { %9263 = vrcp.f32 %v3118_v35  ;;  %v3117_v17 = vadd.f32 1.0, %v9250_v43  ;;  %v8877_v18 = vpop.f32.mrf.mxu1 }
 0x432   : > { %v9252_v45 = vpop.eup %9251  ;;  %9265 = vpow2.f32 %v8126_v15  ;;  %v8125_v21 = vmul.f32 -1.442695, %v3061_v16  ;;  %v3064_v22 = vadd.f32 %v8877_v18, %v1746_v50 }
 0x433   : > { %9267 = vrcp.f32 %v3117_v17  ;;  %v3120_v23 = vadd.f32 1.0, %v9252_v45  ;;  %v3024_v24 = vpop.f32.mrf.mxu1  ;;  %v10697_v17 = vld [vmem:[%s13296_s6] ss:$0 sm:$0xff] }
 0x434   : > { %v9254_v41 = vpop.eup %9253  ;;  %9269 = vpow2.f32 %v8125_v21  ;;  %v8128_v53 = vmul.f32 -1.442695, %v3064_v22  ;;  %v3063_v51 = vadd.f32 %v3024_v24, %v1741_v20 }
 0x435   : > { %9271 = vrcp.f32 %v3120_v23  ;;  %v3119_v54 = vadd.f32 1.0, %v9254_v41  ;;  %v8880_v56 = vpop.f32.mrf.mxu1 }
 0x436   : > { %v9256_v61 = vpop.eup %9255  ;;  %9273 = vpow2.f32 %v8128_v53  ;;  %v8127_v63 = vmul.f32 -1.442695, %v3063_v51  ;;  %v3066_v3 = vadd.f32 %v8880_v56, %v1756_v46 }
 0x437   : > { %9275 = vrcp.f32 %v3119_v54  ;;  %v3122_v14 = vadd.f32 1.0, %v9256_v61  ;;  %v3034_v36 = vpop.f32.mrf.mxu1 }
 0x438   : > { %v9258_v30 = vpop.eup %9257  ;;  %9277 = vpow2.f32 %v8127_v63  ;;  %v8130_v8 = vmul.f32 -1.442695, %v3066_v3  ;;  %v3065_v6 = vadd.f32 %v3034_v36, %v1751_v62 }
 0x439   : > { %9279 = vrcp.f32 %v3122_v14  ;;  %v3121_v34 = vadd.f32 1.0, %v9258_v30  ;;  %v8883_v11 = vpop.f32.mrf.mxu1 }
 0x43a   : > { %v9260_v60 = vpop.eup %9259  ;;  %9281 = vpow2.f32 %v8130_v8  ;;  %v8129_v13 = vmul.f32 -1.442695, %v3065_v6  ;;  %v3068_v5 = vadd.f32 %v8883_v11, %v1766_v10 }
 0x43b   : > { %9283 = vrcp.f32 %v3121_v34  ;;  %v3124_v40 = vadd.f32 1.0, %v9260_v60  ;;  %v3044_v28 = vpop.f32.mrf.mxu1 }
 0x43c   : > { %v9262_v44 = vpop.eup %9261  ;;  %9285 = vpow2.f32 %v8129_v13  ;;  %v8132_v48 = vmul.f32 -1.442695, %v3068_v5  ;;  %v3067_v33 = vadd.f32 %v3044_v28, %v1761_v12 }
 0x43d   : > { %9287 = vrcp.f32 %v3124_v40  ;;  %v3123_v52 = vadd.f32 1.0, %v9262_v44 }
 0x43e   : > { %v9264_v55 = vpop.eup %9263  ;;  %9289 = vpow2.f32 %v8132_v48  ;;  %v8131_v35 = vmul.f32 -1.442695, %v3067_v33 }
 0x43f   : > { %v9266_v58 = vpop.eup %9265  ;;  %9291 = vrcp.f32 %v3123_v52  ;;  %v3166_v43 = vmul.f32 %v10691_v39, %v9264_v55 }
 0x440   : > { %v9268_v50 = vpop.eup %9267  ;;  %v3126_v15 = vadd.f32 1.0, %v9266_v58  ;;  %9293 = vpow2.f32 %v8131_v35 }
 0x441   : > { %v9270_v16 = vpop.eup %9269  ;;  %v10700_v18 = vadd.f32 %v10697_v17, %v3166_v43  ;;  %v3165_v45 = vmul.f32 %v10691_v39, %v9268_v50 }
 0x442   : > { %v9272_v20 = vpop.eup %9271  ;;  %9295 = vrcp.f32 %v3126_v15  ;;  %v3125_v21 = vadd.f32 1.0, %v9270_v16 }
 0x443   : > { %v9274_v22 = vpop.eup %9273  ;;  %3231 = vrot.lane.b32.xlu0 %v10700_v18, %s10066_s19  ;;  %v10706_v19 = vadd.f32 %v10697_v17, %v3165_v45  ;;  %v3168_v23 = vmul.f32 %v10691_v39, %v9272_v20 }
 0x444   : > { %v9276_v24 = vpop.eup %9275  ;;  %9297 = vrcp.f32 %v3125_v21  ;;  %v3128_v41 = vadd.f32 1.0, %v9274_v22 }
 0x445   : > { %v9278_v46 = vpop.eup %9277  ;;  %3229 = vrot.lane.b32.xlu1 %v10706_v19, %s10066_s19  ;;  %v10712_v53 = vadd.f32 %v10697_v17, %v3168_v23  ;;  %v3167_v51 = vmul.f32 %v10691_v39, %v9276_v24 }
 0x446   : > { %v9280_v54 = vpop.eup %9279  ;;  %9299 = vrcp.f32 %v3128_v41  ;;  %v3127_v56 = vadd.f32 1.0, %v9278_v46 }
 0x447   : > { %v9282_v61 = vpop.eup %9281  ;;  %3235 = vrot.lane.b32.xlu0 %v10712_v53, %s10066_s19  ;;  %v10718_v62 = vadd.f32 %v10697_v17, %v3167_v51  ;;  %v3170_v63 = vmul.f32 %v10691_v39, %v9280_v54 }
 0x448   : > { %v9284_v3 = vpop.eup %9283  ;;  %9301 = vrcp.f32 %v3127_v56  ;;  %v3130_v2 = vadd.f32 1.0, %v9282_v61 }
 0x449   : > { %v9286_v14 = vpop.eup %9285  ;;  %3233 = vrot.lane.b32.xlu1 %v10718_v62, %s10066_s19  ;;  %v10724_v36 = vadd.f32 %v10697_v17, %v3170_v63  ;;  %v3169_v30 = vmul.f32 %v10691_v39, %v9284_v3 }
 0x44a   : > { %v9288_v10 = vpop.eup %9287  ;;  %9303 = vrcp.f32 %v3130_v2  ;;  %v3129_v8 = vadd.f32 1.0, %v9286_v14  ;;  %v10069_v2 = vmov 2  }
 0x44b   : > { %v9290_v6 = vpop.eup %9289  ;;  %3239 = vrot.lane.b32.xlu0 %v10724_v36, %s10066_s19  ;;  %v10730_v34 = vadd.f32 %v10697_v17, %v3169_v30  ;;  %v3172_v11 = vmul.f32 %v10691_v39, %v9288_v10  ;;  %9139 = vset.pattern.permute.xlu1 %v10069_v2 }
 0x44c   : > { %v9292_v60 = vpop.eup %9291  ;;  %9305 = vrcp.f32 %v3129_v8  ;;  %v3132_v12 = vadd.f32 1.0, %v9290_v6  ;;  %9140 = vset.pattern.permute.xlu0 %v10069_v2 }
 0x44d   : > { %v9294_v13 = vpop.eup %9293  ;;  %3237 = vrot.lane.b32.xlu1 %v10730_v34, %s10066_s19  ;;  %v10736_v5 = vadd.f32 %v10697_v17, %v3172_v11  ;;  %v3171_v40 = vmul.f32 %v10691_v39, %v9292_v60 }
 0x44e   : > { %9307 = vrcp.f32 %v3132_v12  ;;  %v3131_v28 = vadd.f32 1.0, %v9294_v13 }
 0x44f   : > { %v9296_v44 = vpop.eup %9295  ;;  %3243 = vrot.lane.b32.xlu0 %v10736_v5, %s10066_s19  ;;  %v10742_v48 = vadd.f32 %v10697_v17, %v3171_v40 }
 0x450   : > { %9309 = vrcp.f32 %v3131_v28  ;;  %v3174_v33 = vmul.f32 %v10691_v39, %v9296_v44 }
 0x451   : > { %v9298_v52 = vpop.eup %9297  ;;  %3241 = vrot.lane.b32.xlu1 %v10742_v48, %s10066_s19 }
 0x452   : > { %v10748_v55 = vadd.f32 %v10697_v17, %v3174_v33  ;;  %v3173_v35 = vmul.f32 %v10691_v39, %v9298_v52 }
 0x453   : > { %v9300_v58 = vpop.eup %9299 }
 0x454   : > { %3247 = vrot.lane.b32.xlu0 %v10748_v55, %s10066_s19  ;;  %v10754_v43 = vadd.f32 %v10697_v17, %v3173_v35  ;;  %v3176_v50 = vmul.f32 %v10691_v39, %v9300_v58 }
 0x455   : > { %v9302_v15 = vpop.eup %9301 }
 0x456   : > { %3245 = vrot.lane.b32.xlu1 %v10754_v43, %s10066_s19  ;;  %v10760_v16 = vadd.f32 %v10697_v17, %v3176_v50  ;;  %v3175_v45 = vmul.f32 %v10691_v39, %v9302_v15 }
 0x457   : > { %v9304_v20 = vpop.eup %9303 }
 0x458   : > { %3251 = vrot.lane.b32.xlu0 %v10760_v16, %s10066_s19  ;;  %v10766_v21 = vadd.f32 %v10697_v17, %v3175_v45  ;;  %v3178_v22 = vmul.f32 %v10691_v39, %v9304_v20 }
 0x459   : > { %v9306_v23 = vpop.eup %9305 }
 0x45a   : > { %3249 = vrot.lane.b32.xlu1 %v10766_v21, %s10066_s19  ;;  %v10772_v24 = vadd.f32 %v10697_v17, %v3178_v22  ;;  %v3177_v41 = vmul.f32 %v10691_v39, %v9306_v23 }
 0x45b   : > { %v9308_v46 = vpop.eup %9307 }
 0x45c   : > { %3255 = vrot.lane.b32.xlu0 %v10772_v24, %s10066_s19  ;;  %v10778_v51 = vadd.f32 %v10697_v17, %v3177_v41  ;;  %v3180_v54 = vmul.f32 %v10691_v39, %v9308_v46 }
 0x45d   : > { %v9310_v56 = vpop.eup %9309 }
 0x45e   : > { %3253 = vrot.lane.b32.xlu1 %v10778_v51, %s10066_s19  ;;  %v10784_v61 = vadd.f32 %v10697_v17, %v3180_v54  ;;  %v3179_v63 = vmul.f32 %v10691_v39, %v9310_v56 }
 0x460   : > { %3259 = vrot.lane.b32.xlu0 %v10784_v61, %s10066_s19  ;;  %v10790_v3 = vadd.f32 %v10697_v17, %v3179_v63 }
 0x462   : > { %3257 = vrot.lane.b32.xlu1 %v10790_v3, %s10066_s19 }
 0x4b5   : > { %v3232_v14 = vpop.permute.xlu0 %3231 }
 0x4b6   : > { %v3278_v30 = vmul.f32 %v3232_v14, %v10700_v18 }
 0x4b7   : > { %v3230_v10 = vpop.permute.xlu1 %3229 }
 0x4b8   : > { %v3277_v8 = vmul.f32 %v3230_v10, %v10706_v19  ;;  %3311 = vrot.lane.b32.xlu0 %v3278_v30, %s10068_s20  ;;  %v9922_v10 = vld [vmem:[%s10148_s21 + $0x8] sm:$0xff] }
 0x4b9   : > { %v3236_v39 = vpop.permute.xlu0 %3235 }
 0x4ba   : > { %v3280_v6 = vmul.f32 %v3236_v39, %v10712_v53  ;;  %3309 = vrot.lane.b32.xlu1 %v3277_v8, %s10068_s20  ;;  %v9923_v8 = vld [vmem:[%s10148_s21] sm:$0xff]  ;;  %v3198_v39 = vmul.f32 %v10700_v18, %v10441_v32  ;;  %v3199_v32 = vmul.f32 %v10718_v62, %v10453_v25 }
 0x4bb   : > { %v3234_v17 = vpop.permute.xlu1 %3233 }
 0x4bc   : > { %v3279_v11 = vmul.f32 %v3234_v17, %v10718_v62  ;;  %3315 = vrot.lane.b32.xlu0 %v3280_v6, %s10068_s20 }
 0x4bd   : > { %v3240_v60 = vpop.permute.xlu0 %3239 }
 0x4be   : > { %v3282_v12 = vmul.f32 %v3240_v60, %v10724_v36  ;;  %3313 = vrot.lane.b32.xlu1 %v3279_v11, %s10068_s20  ;;  %v3197_v11 = vmul.f32 %v10706_v19, %v10445_v4 }
 0x4bf   : > { %v3238_v13 = vpop.permute.xlu1 %3237 }
 0x4c0   : > { %v3281_v40 = vmul.f32 %v3238_v13, %v10730_v34  ;;  %3319 = vrot.lane.b32.xlu0 %v3282_v12, %s10068_s20  ;;  %v3200_v13 = vmul.f32 %v10712_v53, %v10449_v9 }
 0x4c1   : > { %v3244_v28 = vpop.permute.xlu0 %3243 }
 0x4c2   : > { %v3284_v44 = vmul.f32 %v3244_v28, %v10736_v5  ;;  %3317 = vrot.lane.b32.xlu1 %v3281_v40, %s10068_s20 }
 0x4c3   : > { %v3242_v33 = vpop.permute.xlu1 %3241 }
 0x4c4   : > { %v3283_v52 = vmul.f32 %v3242_v33, %v10742_v48  ;;  %3323 = vrot.lane.b32.xlu0 %v3284_v44, %s10068_s20  ;;  %v3202_v33 = vmul.f32 %v10724_v36, %v10457_v31 }
 0x4c6   : > { %v3248_v35 = vpop.permute.xlu0 %3247  ;;  %3321 = vrot.lane.b32.xlu1 %v3283_v52, %s10068_s20 }
 0x4c7   : > { %v3286_v58 = vmul.f32 %v3248_v35, %v10748_v55  ;;  %v3201_v35 = vmul.f32 %v10730_v34, %v10461_v37 }
 0x4c8   : > { %v3246_v50 = vpop.permute.xlu1 %3245 }
 0x4c9   : > { %v3285_v15 = vmul.f32 %v3246_v50, %v10754_v43  ;;  %3327 = vrot.lane.b32.xlu0 %v3286_v58, %s10068_s20  ;;  %v3204_v50 = vmul.f32 %v10736_v5, %v10465_v42 }
 0x4ca   : > { %v3252_v45 = vpop.permute.xlu0 %3251 }
 0x4cb   : > { %v3288_v20 = vmul.f32 %v3252_v45, %v10760_v16  ;;  %3325 = vrot.lane.b32.xlu1 %v3285_v15, %s10068_s20  ;;  %v3203_v45 = vmul.f32 %v10742_v48, %v10469_v47  ;;  %v3205_v47 = vmul.f32 %v10754_v43, %v10479_v0  ;;  %v3207_v0 = vmul.f32 %v10766_v21, %v10489_v27 }
 0x4cc   : > { %v3250_v22 = vpop.permute.xlu1 %3249  ;;  %v3209_v27 = vmul.f32 %v10778_v51, %v10499_v49  ;;  %v3211_v49 = vmul.f32 %v10790_v3, %v10509_v1 }
 0x4cd   : > { %v3287_v23 = vmul.f32 %v3250_v22, %v10766_v21  ;;  %3331 = vrot.lane.b32.xlu0 %v3288_v20, %s10068_s20 }
 0x4ce   : > { %v3256_v41 = vpop.permute.xlu0 %3255 }
 0x4cf   : > { %v3290_v46 = vmul.f32 %v3256_v41, %v10772_v24  ;;  %3329 = vrot.lane.b32.xlu1 %v3287_v23, %s10068_s20  ;;  %v3206_v23 = vmul.f32 %v10748_v55, %v10474_v57  ;;  %v3208_v57 = vmul.f32 %v10760_v16, %v10484_v7  ;;  %v3210_v7 = vmul.f32 %v10772_v24, %v10494_v38 }
 0x4d0   : > { %v3254_v54 = vpop.permute.xlu1 %3253  ;;  %v3212_v38 = vmul.f32 %v10784_v61, %v10504_v59 }
 0x4d1   : > { %v3289_v56 = vmul.f32 %v3254_v54, %v10778_v51  ;;  %3335 = vrot.lane.b32.xlu0 %v3290_v46, %s10068_s20 }
 0x4d2   : > { %v3260_v63 = vpop.permute.xlu0 %3259 }
 0x4d3   : > { %v3292_v2 = vmul.f32 %v3260_v63, %v10784_v61  ;;  %3333 = vrot.lane.b32.xlu1 %v3289_v56, %s10068_s20 }
 0x4d4   : > { %v3258_v14 = vpop.permute.xlu1 %3257 }
 0x4d5   : > { %v3291_v30 = vmul.f32 %v3258_v14, %v10790_v3  ;;  %3339 = vrot.lane.b32.xlu0 %v3292_v2, %s10068_s20 }
 0x4d7   : > { %3337 = vrot.lane.b32.xlu1 %v3291_v30, %s10068_s20 }
 0x4d9   : > { %572 = vperm.xlu0 %9140, %v9922_v10  }
 0x4db   : > { %569 = vperm.xlu1 %9139, %v9923_v8  }
 0x52a   : > { %v3312_v6 = vpop.permute.xlu0 %3311 }
 0x52b   : > { %v10830_v17 = vadd.f32 %v3312_v6, %v3198_v39 }
 0x52c   : > { %v3310_v60 = vpop.permute.xlu1 %3309 }
 0x52d   : > { %9311 = vtanh.f32 %v10830_v17  ;;  %v10835_v12 = vadd.f32 %v3310_v60, %v3197_v11 }
 0x52e   : > { %v3316_v40 = vpop.permute.xlu0 %3315 }
 0x52f   : > { %9313 = vtanh.f32 %v10835_v12  ;;  %v10840_v28 = vadd.f32 %v3316_v40, %v3200_v13 }
 0x530   : > { %v3314_v44 = vpop.permute.xlu1 %3313 }
 0x531   : > { %9315 = vtanh.f32 %v10840_v28  ;;  %v10845_v4 = vadd.f32 %v3314_v44, %v3199_v32 }
 0x532   : > { %v3320_v52 = vpop.permute.xlu0 %3319 }
 0x533   : > { %9317 = vtanh.f32 %v10845_v4  ;;  %v10850_v9 = vadd.f32 %v3320_v52, %v3202_v33 }
 0x534   : > { %v3318_v58 = vpop.permute.xlu1 %3317 }
 0x535   : > { %9319 = vtanh.f32 %v10850_v9  ;;  %v10855_v25 = vadd.f32 %v3318_v58, %v3201_v35 }
 0x536   : > { %v3324_v15 = vpop.permute.xlu0 %3323 }
 0x537   : > { %9321 = vtanh.f32 %v10855_v25  ;;  %v10860_v31 = vadd.f32 %v3324_v15, %v3204_v50 }
 0x538   : > { %v3322_v20 = vpop.permute.xlu1 %3321 }
 0x539   : > { %9323 = vtanh.f32 %v10860_v31  ;;  %v10865_v37 = vadd.f32 %v3322_v20, %v3203_v45 }
 0x53a   : > { %v9312_v22 = vpop.eup %9311 }
 0x53b   : > { %9325 = vtanh.f32 %v10865_v37  ;;  %v3328_v42 = vpop.permute.xlu0 %3327  ;;  %3407 = vrot.lane.b32.xlu0 %v9312_v22, %s10066_s19 }
 0x53c   : > { %v9314_v41 = vpop.eup %9313  ;;  %v10871_v46 = vadd.f32 %v3328_v42, %v3206_v23 }
 0x53d   : > { %v3326_v54 = vpop.permute.xlu1 %3325  ;;  %3405 = vrot.lane.b32.xlu1 %v9314_v41, %s10066_s19 }
 0x53e   : > { %v9316_v56 = vpop.eup %9315  ;;  %9327 = vtanh.f32 %v10871_v46  ;;  %v10877_v63 = vadd.f32 %v3326_v54, %v3205_v47 }
 0x53f   : > { %v3332_v2 = vpop.permute.xlu0 %3331  ;;  %3411 = vrot.lane.b32.xlu0 %v9316_v56, %s10066_s19  ;;  %v9924_v56 = vld [vmem:[%s10148_s21 + $0x20] sm:$0xff] }
 0x540   : > { %v9318_v14 = vpop.eup %9317  ;;  %9329 = vtanh.f32 %v10877_v63  ;;  %v10883_v30 = vadd.f32 %v3332_v2, %v3208_v57  ;;  %v9925_v57 = vld [vmem:[%s10148_s21 + $0x10] sm:$0xff] }
 0x541   : > { %v3330_v10 = vpop.permute.xlu1 %3329  ;;  %3409 = vrot.lane.b32.xlu1 %v9318_v14, %s10066_s19  ;;  %v9926_v2 = vld [vmem:[%s10148_s21 + $0x30] sm:$0xff]  ;;  %v9927_v14 = vld [vmem:[%s10148_s21 + $0x18] sm:$0xff] }
 0x542   : > { %v9320_v8 = vpop.eup %9319  ;;  %9331 = vtanh.f32 %v10883_v30  ;;  %v10889_v39 = vadd.f32 %v3330_v10, %v3207_v0  ;;  %v9928_v0 = vld [vmem:[%s10148_s21 + $0x40] sm:$0xff]  ;;  %v9929_v10 = vld [vmem:[%s10148_s21 + $0x28] sm:$0xff] }
 0x543   : > { %v3336_v6 = vpop.permute.xlu0 %3335  ;;  %3415 = vrot.lane.b32.xlu0 %v9320_v8, %s10066_s19  ;;  %v9930_v8 = vld [vmem:[%s10148_s21 + $0x50] sm:$0xff] }
 0x544   : > { %v9322_v11 = vpop.eup %9321  ;;  %9333 = vtanh.f32 %v10889_v39  ;;  %v10895_v60 = vadd.f32 %v3336_v6, %v3210_v7  ;;  %v9931_v7 = vld [vmem:[%s10148_s21 + $0x38] sm:$0xff]  ;;  %v9932_v6 = vld [vmem:[%s10148_s21 + $0x60] sm:$0xff] }
 0x545   : > { %v3334_v13 = vpop.permute.xlu1 %3333  ;;  %3413 = vrot.lane.b32.xlu1 %v9322_v11, %s10066_s19  ;;  %v9933_v11 = vld [vmem:[%s10148_s21 + $0x48] sm:$0xff] }
 0x546   : > { %v9324_v40 = vpop.eup %9323  ;;  %9335 = vtanh.f32 %v10895_v60  ;;  %v10901_v32 = vadd.f32 %v3334_v13, %v3209_v27  ;;  %v9934_v27 = vld [vmem:[%s10148_s21 + $0x70] sm:$0xff]  ;;  %v9935_v13 = vld [vmem:[%s10148_s21 + $0x58] sm:$0xff] }
 0x547   : > { %v3340_v44 = vpop.permute.xlu0 %3339  ;;  %3419 = vrot.lane.b32.xlu0 %v9324_v40, %s10066_s19  ;;  %v9936_v40 = vld [vmem:[%s10148_s21 + $0x68] sm:$0xff] }
 0x548   : > { %v9326_v33 = vpop.eup %9325  ;;  %9337 = vtanh.f32 %v10901_v32  ;;  %v10907_v52 = vadd.f32 %v3340_v44, %v3212_v38  ;;  %v9937_v38 = vld [vmem:[%s10148_s21 + $0x78] sm:$0xff] }
 0x549   : > { %v3338_v35 = vpop.permute.xlu1 %3337  ;;  %3417 = vrot.lane.b32.xlu1 %v9326_v33, %s10066_s19 }
 0x54a   : > { %9339 = vtanh.f32 %v10907_v52  ;;  %v10913_v58 = vadd.f32 %v3338_v35, %v3211_v49 }
 0x54b   : > { %v9328_v50 = vpop.eup %9327 }
 0x54c   : > { %9341 = vtanh.f32 %v10913_v58  ;;  %3423 = vrot.lane.b32.xlu0 %v9328_v50, %s10066_s19 }
 0x54d   : > { %v9330_v59 = vpop.eup %9329 }
 0x54e   : > { %3421 = vrot.lane.b32.xlu1 %v9330_v59, %s10066_s19 }
 0x54f   : > { %v9332_v15 = vpop.eup %9331 }
 0x550   : > { %3427 = vrot.lane.b32.xlu0 %v9332_v15, %s10066_s19 }
 0x551   : > { %v9334_v45 = vpop.eup %9333 }
 0x552   : > { %3425 = vrot.lane.b32.xlu1 %v9334_v45, %s10066_s19 }
 0x553   : > { %v9336_v1 = vpop.eup %9335 }
 0x554   : > { %3431 = vrot.lane.b32.xlu0 %v9336_v1, %s10066_s19  ;;  %v573_v20 = vpop.permute.xlu0 %572 }
 0x555   : > { %v9338_v22 = vpop.eup %9337  ;;  %vm617_vm4 = vcmp.eq.s32.totalorder %v573_v20, %v10229_v26 }
 0x556   : > { %3429 = vrot.lane.b32.xlu1 %v9338_v22, %s10066_s19  ;;  %v570_v23 = vpop.permute.xlu1 %569  ;;  %v7859_v41 = vsel %vm617_vm4, 1.0, %v10065_v29 }
 0x557   : > { %v9340_v42 = vpop.eup %9339  ;;  %vm616_vm5 = vcmp.eq.s32.totalorder %v570_v23, %v10229_v26 }
 0x558   : > { %3435 = vrot.lane.b32.xlu0 %v9340_v42, %s10066_s19  ;;  %v7858_v47 = vsel %vm616_vm5, 1.0, %v10065_v29 }
 0x559   : > { %v9342_v54 = vpop.eup %9341  ;;  %8708 = vmatprep.mubr.msk.f32.mxu0 %vm1159_vm0, %v7858_v47 }
 0x55a   : > { %3433 = vrot.lane.b32.xlu1 %v9342_v54, %s10066_s19  ;;  %8709 = vmatmul.mubr.msk.f32.gmra.mxu0 %vm1159_vm0, %v7859_v41 }
 0x55c   : > { %581 = vperm.xlu0 %9140, %v9924_v56  }
 0x55e   : > { %575 = vperm.xlu1 %9139, %v9925_v57  }
 0x560   : > { %587 = vperm.xlu0 %9140, %v9926_v2  }
 0x562   : > { %578 = vperm.xlu1 %9139, %v9927_v14  }
 0x564   : > { %593 = vperm.xlu0 %9140, %v9928_v0  }
 0x566   : > { %584 = vperm.xlu1 %9139, %v9929_v10  }
 0x568   : > { %599 = vperm.xlu0 %9140, %v9930_v8  }
 0x56a   : > { %590 = vperm.xlu1 %9139, %v9931_v7  }
 0x56c   : > { %605 = vperm.xlu0 %9140, %v9932_v6  }
 0x56e   : > { %596 = vperm.xlu1 %9139, %v9933_v11  }
 0x570   : > { %611 = vperm.xlu0 %9140, %v9934_v27  }
 0x572   : > { %602 = vperm.xlu1 %9139, %v9935_v13  }
 0x576   : > { %608 = vperm.xlu1 %9139, %v9936_v40  }
 0x57a   : > { %614 = vperm.xlu1 %9139, %v9937_v38  }
 0x5ad   : > { %v3408_v44 = vpop.permute.xlu0 %3407 }
 0x5ae   : > { %v3454_v33 = vmul.f32 %v3408_v44, %v10700_v18 }
 0x5af   : > { %v3406_v49 = vpop.permute.xlu1 %3405 }
 0x5b0   : > { %v3453_v35 = vmul.f32 %v3406_v49, %v10706_v19  ;;  %3503 = vrot.lane.b32.xlu1 %v3454_v33, %s10068_s20 }
 0x5b1   : > { %v3412_v50 = vpop.permute.xlu0 %3411 }
 0x5b2   : > { %v3456_v59 = vmul.f32 %v3412_v50, %v10712_v53  ;;  %3501 = vrot.lane.b32.xlu0 %v3453_v35, %s10068_s20 }
 0x5b3   : > { %v3410_v15 = vpop.permute.xlu1 %3409 }
 0x5b4   : > { %v3455_v45 = vmul.f32 %v3410_v15, %v10718_v62  ;;  %3507 = vrot.lane.b32.xlu1 %v3456_v59, %s10068_s20 }
 0x5b5   : > { %v3416_v1 = vpop.permute.xlu0 %3415 }
 0x5b6   : > { %v3458_v20 = vmul.f32 %v3416_v1, %v10724_v36  ;;  %3505 = vrot.lane.b32.xlu0 %v3455_v45, %s10068_s20 }
 0x5b7   : > { %v3414_v18 = vpop.permute.xlu1 %3413 }
 0x5b8   : > { %v3457_v19 = vmul.f32 %v3414_v18, %v10730_v34  ;;  %3511 = vrot.lane.b32.xlu1 %v3458_v20, %s10068_s20 }
 0x5b9   : > { %v3420_v22 = vpop.permute.xlu0 %3419 }
 0x5ba   : > { %v3460_v53 = vmul.f32 %v3420_v22, %v10736_v5  ;;  %3509 = vrot.lane.b32.xlu0 %v3457_v19, %s10068_s20 }
 0x5bb   : > { %v3418_v23 = vpop.permute.xlu1 %3417 }
 0x5bc   : > { %v3459_v62 = vmul.f32 %v3418_v23, %v10742_v48  ;;  %3515 = vrot.lane.b32.xlu1 %v3460_v53, %s10068_s20 }
 0x5be   : > { %v3424_v42 = vpop.permute.xlu0 %3423  ;;  %3513 = vrot.lane.b32.xlu0 %v3459_v62, %s10068_s20 }
 0x5bf   : > { %v3462_v36 = vmul.f32 %v3424_v42, %v10748_v55 }
 0x5c0   : > { %v3422_v41 = vpop.permute.xlu1 %3421 }
 0x5c1   : > { %v3461_v34 = vmul.f32 %v3422_v41, %v10754_v43  ;;  %3519 = vrot.lane.b32.xlu1 %v3462_v36, %s10068_s20  ;;  %v9938_v36 = vld [vmem:[%s13294_s4 + $0x18] sm:$0xff] }
 0x5c2   : > { %v3428_v47 = vpop.permute.xlu0 %3427 }
 0x5c3   : > { %v3464_v5 = vmul.f32 %v3428_v47, %v10760_v16  ;;  %3517 = vrot.lane.b32.xlu0 %v3461_v34, %s10068_s20  ;;  %v9939_v34 = vld [vmem:[%s13294_s4 + $0x10] sm:$0xff] }
 0x5c4   : > { %v3426_v54 = vpop.permute.xlu1 %3425 }
 0x5c5   : > { %v3463_v48 = vmul.f32 %v3426_v54, %v10766_v21  ;;  %3523 = vrot.lane.b32.xlu1 %v3464_v5, %s10068_s20  ;;  %v9940_v5 = vld [vmem:[%s13294_s4 + $0x8] sm:$0xff] }
 0x5c6   : > { %v3432_v56 = vpop.permute.xlu0 %3431 }
 0x5c7   : > { %v3466_v57 = vmul.f32 %v3432_v56, %v10772_v24  ;;  %3521 = vrot.lane.b32.xlu0 %v3463_v48, %s10068_s20  ;;  %v9941_v48 = vld [vmem:[%s13294_s4] sm:$0xff] }
 0x5c8   : > { %v3430_v55 = vpop.permute.xlu1 %3429 }
 0x5c9   : > { %v3465_v43 = vmul.f32 %v3430_v55, %v10778_v51  ;;  %3527 = vrot.lane.b32.xlu1 %v3466_v57, %s10068_s20 }
 0x5ca   : > { %v3436_v2 = vpop.permute.xlu0 %3435 }
 0x5cb   : > { %v3468_v16 = vmul.f32 %v3436_v2, %v10784_v61  ;;  %3525 = vrot.lane.b32.xlu0 %v3465_v43, %s10068_s20 }
 0x5cc   : > { %v3434_v14 = vpop.permute.xlu1 %3433 }
 0x5cd   : > { %v3467_v21 = vmul.f32 %v3434_v14, %v10790_v3  ;;  %3531 = vrot.lane.b32.xlu1 %v3468_v16, %s10068_s20 }
 0x5cf   : > { %3529 = vrot.lane.b32.xlu0 %v3467_v21, %s10068_s20 }
 0x5d7   : > { %v582_v24 = vpop.permute.xlu0 %581 }
 0x5d8   : > { %vm620_vm7 = vcmp.eq.s32.totalorder %v582_v24, %v10229_v26 }
 0x5d9   : > { %v576_v0 = vpop.permute.xlu1 %575  ;;  %v7862_v7 = vsel %vm620_vm7, 1.0, %v10065_v29 }
 0x5da   : > { %vm618_vm6 = vcmp.eq.s32.totalorder %v576_v0, %v10229_v26 }
 0x5db   : > { %v7860_v51 = vsel %vm618_vm6, 1.0, %v10065_v29  ;;  %v588_v10 = vpop.permute.xlu0 %587 }
 0x5dc   : > { %8711 = vmatprep.mubr.msk.f32.mxu0 %vm1159_vm0, %v7860_v51  ;;  %vm622_vm9 = vcmp.eq.s32.totalorder %v588_v10, %v10229_v26 }
 0x5dd   : > { %v579_v61 = vpop.permute.xlu1 %578  ;;  %v7864_v13 = vsel %vm622_vm9, 1.0, %v10065_v29 }
 0x5de   : > { %vm619_vm8 = vcmp.eq.s32.totalorder %v579_v61, %v10229_v26 }
 0x5df   : > { %v7861_v3 = vsel %vm619_vm8, 1.0, %v10065_v29  ;;  %v594_v8 = vpop.permute.xlu0 %593 }
 0x5e0   : > { %8712 = vmatmul.mubr.msk.f32.gmra.mxu0 %vm1159_vm0, %v7861_v3  ;;  %vm624_vm11 = vcmp.eq.s32.totalorder %v594_v8, %v10229_v26 }
 0x5e1   : > { %v585_v6 = vpop.permute.xlu1 %584  ;;  %8714 = vmatprep.mubr.msk.f32.mxu0 %vm1159_vm0, %v7862_v7  ;;  %v7866_v44 = vsel %vm624_vm11, 1.0, %v10065_v29 }
 0x5e2   : > { %vm621_vm10 = vcmp.eq.s32.totalorder %v585_v6, %v10229_v26 }
 0x5e3   : > { %v7863_v11 = vsel %vm621_vm10, 1.0, %v10065_v29  ;;  %v600_v27 = vpop.permute.xlu0 %599 }
 0x5e4   : > { %8715 = vmatmul.mubr.msk.f32.gmra.mxu0 %vm1159_vm0, %v7863_v11  ;;  %vm626_vm13 = vcmp.eq.s32.totalorder %v600_v27, %v10229_v26  ;;  %v11049_v27 = vld [vmem:[%s13293_s3] ss:$0 sm:$0xff] }
 0x5e5   : > { %v591_v40 = vpop.permute.xlu1 %590  ;;  %8717 = vmatprep.mubr.msk.f32.mxu0 %vm1159_vm0, %v7864_v13  ;;  %v7868_v50 = vsel %vm626_vm13, 1.0, %v10065_v29 }
 0x5e6   : > { %vm623_vm12 = vcmp.eq.s32.totalorder %v591_v40, %v10229_v26 }
 0x5e7   : > { %v7865_v38 = vsel %vm623_vm12, 1.0, %v10065_v29  ;;  %v606_v33 = vpop.permute.xlu0 %605 }
 0x5e8   : > { %8718 = vmatmul.mubr.msk.f32.gmra.mxu0 %vm1159_vm0, %v7865_v38  ;;  %vm628_vm15 = vcmp.eq.s32.totalorder %v606_v33, %v10229_v26 }
 0x5e9   : > { %v597_v49 = vpop.permute.xlu1 %596  ;;  %8720 = vmatprep.mubr.msk.f32.mxu0 %vm1159_vm0, %v7866_v44  ;;  %v7870_v1 = vsel %vm628_vm15, 1.0, %v10065_v29 }
 0x5ea   : > { %vm625_vm14 = vcmp.eq.s32.totalorder %v597_v49, %v10229_v26 }
 0x5eb   : > { %v7867_v35 = vsel %vm625_vm14, 1.0, %v10065_v29  ;;  %v612_v15 = vpop.permute.xlu0 %611 }
 0x5ec   : > { %8721 = vmatmul.mubr.msk.f32.gmra.mxu0 %vm1159_vm0, %v7867_v35  ;;  %vm630_vm2 = vcmp.eq.s32.totalorder %v612_v15, %v10229_v26 }
 0x5ed   : > { %v603_v59 = vpop.permute.xlu1 %602  ;;  %8723 = vmatprep.mubr.msk.f32.mxu0 %vm1159_vm0, %v7868_v50  ;;  %v7872_v19 = vsel %vm630_vm2, 1.0, %v10065_v29 }
 0x5ee   : > { %vm627_vm1 = vcmp.eq.s32.totalorder %v603_v59, %v10229_v26 }
 0x5ef   : > { %v7869_v45 = vsel %vm627_vm1, 1.0, %v10065_v29 }
 0x5f0   : > { %8724 = vmatmul.mubr.msk.f32.gmra.mxu0 %vm1159_vm0, %v7869_v45 }
 0x5f1   : > { %v609_v20 = vpop.permute.xlu1 %608  ;;  %8726 = vmatprep.mubr.msk.f32.mxu0 %vm1159_vm0, %v7870_v1 }
 0x5f2   : > { %vm629_vm4 = vcmp.eq.s32.totalorder %v609_v20, %v10229_v26 }
 0x5f3   : > { %v7871_v18 = vsel %vm629_vm4, 1.0, %v10065_v29 }
 0x5f4   : > { %8727 = vmatmul.mubr.msk.f32.gmra.mxu0 %vm1159_vm0, %v7871_v18 }
 0x5f5   : > { %v615_v22 = vpop.permute.xlu1 %614  ;;  %8729 = vmatprep.mubr.msk.f32.mxu0 %vm1159_vm0, %v7872_v19 }
 0x5f6   : > { %vm631_vm5 = vcmp.eq.s32.totalorder %v615_v22, %v10229_v26 }
 0x5f7   : > { %v7873_v53 = vsel %vm631_vm5, 1.0, %v10065_v29 }
 0x5f8   : > { %8730 = vmatmul.mubr.msk.f32.gmra.mxu0 %vm1159_vm0, %v7873_v53 }
 0x61a   : > { %v8710_v51 = vpop.f32.mrf.mxu0 }
 0x61b   : > { %v1776_v13 = vadd.f32 %v11049_v27, %v8710_v51 }
 0x61c   : > { %v1770_v10 = vpop.f32.mrf.mxu0 }
 0x61d   : > { %v1771_v44 = vadd.f32 %v11049_v27, %v1770_v10 }
 0x622   : > { %v3504_v23 = vpop.permute.xlu1 %3503 }
 0x624   : > { %v3502_v62 = vpop.permute.xlu0 %3501 }
 0x625   : > { %8892 = vmatprep.mubr.msk.f32.mxu1 %vm2875_vm3, %v3502_v62 }
 0x626   : > { %v3508_v42 = vpop.permute.xlu1 %3507  ;;  %8893 = vmatmul.mubr.msk.f32.vlgmr.msra.gmra.mxu1 %vm2875_vm3, %v3504_v23 }
 0x627   : > { %8917 = vmatpush3.msra.mxu1 %v9938_v36 }
 0x628   : > { %v3506_v41 = vpop.permute.xlu0 %3505  ;;  %8918 = vmatprep.subr.mxu1 %v9939_v34 }
 0x629   : > { %8895 = vmatprep.mubr.msk.f32.mxu1 %vm2875_vm3, %v3506_v41  ;;  %8919 = vmatpush3.msra.mxu1 %v9939_v34 }
 0x62a   : > { %v3512_v47 = vpop.permute.xlu1 %3511  ;;  %8896 = vmatmul.mubr.msk.f32.gmra.mxu1 %vm2875_vm3, %v3508_v42  ;;  %8920 = vmatprep.subr.mxu1 %v9940_v5 }
 0x62b   : > { %8921 = vmatpush3.msra.mxu1 %v9940_v5 }
 0x62c   : > { %v3510_v54 = vpop.permute.xlu0 %3509  ;;  %8922 = vmatprep.subr.mxu1 %v9941_v48 }
 0x62d   : > { %8898 = vmatprep.mubr.msk.f32.mxu1 %vm2875_vm3, %v3510_v54  ;;  %8923 = vmatpush3.msra.mxu1 %v9941_v48 }
 0x62e   : > { %v3516_v56 = vpop.permute.xlu1 %3515  ;;  %8899 = vmatmul.mubr.msk.f32.gmra.mxu1 %vm2875_vm3, %v3512_v47  ;;  %8948 = vmatprep.subr.mxu1 %v9938_v36 }
 0x630   : > { %v3514_v57 = vpop.permute.xlu0 %3513 }
 0x631   : > { %8901 = vmatprep.mubr.msk.f32.mxu1 %vm2875_vm3, %v3514_v57 }
 0x632   : > { %8902 = vmatmul.mubr.msk.f32.gmra.mxu1 %vm2875_vm3, %v3516_v56 }
 0x633   : > { %v3520_v55 = vpop.permute.xlu1 %3519 }
 0x635   : > { %v3518_v43 = vpop.permute.xlu0 %3517 }
 0x636   : > { %8904 = vmatprep.mubr.msk.f32.mxu1 %vm2875_vm3, %v3518_v43 }
 0x637   : > { %v3524_v2 = vpop.permute.xlu1 %3523  ;;  %8905 = vmatmul.mubr.msk.f32.gmra.mxu1 %vm2875_vm3, %v3520_v55 }
 0x639   : > { %v3522_v16 = vpop.permute.xlu0 %3521 }
 0x63a   : > { %8907 = vmatprep.mubr.msk.f32.mxu1 %vm2875_vm3, %v3522_v16 }
 0x63b   : > { %8908 = vmatmul.mubr.msk.f32.gmra.mxu1 %vm2875_vm3, %v3524_v2  ;;  %v3528_v14 = vpop.permute.xlu1 %3527 }
 0x63d   : > { %v3526_v21 = vpop.permute.xlu0 %3525 }
 0x63e   : > { %8910 = vmatprep.mubr.msk.f32.mxu1 %vm2875_vm3, %v3526_v21 }
 0x63f   : > { %8911 = vmatmul.mubr.msk.f32.gmra.mxu1 %vm2875_vm3, %v3528_v14  ;;  %v3532_v0 = vpop.permute.xlu1 %3531 }
 0x641   : > { %v3530_v24 = vpop.permute.xlu0 %3529 }
 0x642   : > { %8913 = vmatprep.mubr.msk.f32.mxu1 %vm2875_vm3, %v3530_v24 }
 0x643   : > { %8914 = vmatmul.mubr.msk.f32.gmra.mxu1 %vm2875_vm3, %v3532_v0 }
 0x6a0   : > { %v8713_v61 = vpop.f32.mrf.mxu0 }
 0x6a1   : > { %v1786_v35 = vadd.f32 %v11049_v27, %v8713_v61 }
 0x6a2   : > { %v1780_v3 = vpop.f32.mrf.mxu0 }
 0x6a3   : > { %v1781_v1 = vadd.f32 %v11049_v27, %v1780_v3 }
 0x6a4   : > { %v8716_v8 = vpop.f32.mrf.mxu0 }
 0x6a5   : > { %v1796_v22 = vadd.f32 %v11049_v27, %v8716_v8 }
 0x6a6   : > { %v1790_v7 = vpop.f32.mrf.mxu0 }
 0x6a7   : > { %v1791_v36 = vadd.f32 %v11049_v27, %v1790_v7 }
 0x6a8   : > { %v8719_v6 = vpop.f32.mrf.mxu0 }
 0x6a9   : > { %v1806_v5 = vadd.f32 %v11049_v27, %v8719_v6 }
 0x6aa   : > { %v1800_v11 = vpop.f32.mrf.mxu0 }
 0x6ab   : > { %v1801_v55 = vadd.f32 %v11049_v27, %v1800_v11 }
 0x6ac   : > { %v8722_v40 = vpop.f32.mrf.mxu0 }
 0x6ad   : > { %v1816_v0 = vadd.f32 %v11049_v27, %v8722_v40 }
 0x6ae   : > { %v1810_v50 = vpop.f32.mrf.mxu0 }
 0x6af   : > { %v1811_v3 = vadd.f32 %v11049_v27, %v1810_v50 }
 0x6b0   : > { %v8725_v53 = vpop.f32.mrf.mxu0 }
 0x6b2   : > { %v1820_v54 = vpop.f32.mrf.mxu0 }
 0x6b4   : > { %v8728_v14 = vpop.f32.mrf.mxu0 }
 0x6b6   : > { %v1830_v7 = vpop.f32.mrf.mxu0 }
 0x6b8   : > { %v8731_v50 = vpop.f32.mrf.mxu0 }
 0x6e6   : > { %v8894_v38 = vpop.f32.mrf.mxu1 }
 0x6e7   : > { %v3711_v33 = vadd.f32 %v8894_v38, %v1776_v13  ;;  %v1826_v38 = vadd.f32 %v11049_v27, %v8725_v53 }
 0x6e8   : > { %v3631_v49 = vpop.f32.mrf.mxu1 }
 0x6e9   : > { %v8150_v59 = vmul.f32 -1.442695, %v3711_v33  ;;  %v3710_v15 = vadd.f32 %v3631_v49, %v1771_v44 }
 0x6ea   : > { %v8897_v45 = vpop.f32.mrf.mxu1 }
 0x6eb   : > { %9343 = vpow2.f32 %v8150_v59  ;;  %v8149_v20 = vmul.f32 -1.442695, %v3710_v15  ;;  %v3713_v18 = vadd.f32 %v8897_v45, %v1786_v35  ;;  %v1821_v59 = vadd.f32 %v11049_v27, %v1820_v54 }
 0x6ec   : > { %v3641_v19 = vpop.f32.mrf.mxu1 }
 0x6ed   : > { %9345 = vpow2.f32 %v8149_v20  ;;  %v8152_v23 = vmul.f32 -1.442695, %v3713_v18  ;;  %v3712_v62 = vadd.f32 %v3641_v19, %v1781_v1  ;;  %v1836_v19 = vadd.f32 %v11049_v27, %v8728_v14 }
 0x6ee   : > { %v8900_v42 = vpop.f32.mrf.mxu1 }
 0x6ef   : > { %9347 = vpow2.f32 %v8152_v23  ;;  %v8151_v41 = vmul.f32 -1.442695, %v3712_v62  ;;  %v3715_v34 = vadd.f32 %v8900_v42, %v1796_v22 }
 0x6f0   : > { %v3651_v47 = vpop.f32.mrf.mxu1 }
 0x6f1   : > { %9349 = vpow2.f32 %v8151_v41  ;;  %v8154_v48 = vmul.f32 -1.442695, %v3715_v34  ;;  %v3714_v56 = vadd.f32 %v3651_v47, %v1791_v36  ;;  %v1831_v36 = vadd.f32 %v11049_v27, %v1830_v7  ;;  %v1840_v47 = vpop.f32.mrf.mxu0 }
 0x6f2   : > { %v8903_v57 = vpop.f32.mrf.mxu1  ;;  %v1841_v14 = vadd.f32 %v11049_v27, %v1840_v47 }
 0x6f3   : > { %9351 = vpow2.f32 %v8154_v48  ;;  %v8153_v43 = vmul.f32 -1.442695, %v3714_v56  ;;  %v3717_v2 = vadd.f32 %v8903_v57, %v1806_v5  ;;  %v1846_v56 = vadd.f32 %v11049_v27, %v8731_v50  ;;  %v11070_v27 = vld [vmem:[%s13295_s5] ss:$0 sm:$0xff] }
 0x6f4   : > { %v3661_v16 = vpop.f32.mrf.mxu1 }
 0x6f5   : > { %9353 = vpow2.f32 %v8153_v43  ;;  %v8156_v21 = vmul.f32 -1.442695, %v3717_v2  ;;  %v3716_v24 = vadd.f32 %v3661_v16, %v1801_v55 }
 0x6f7   : > { %9355 = vpow2.f32 %v8156_v21  ;;  %v8155_v51 = vmul.f32 -1.442695, %v3716_v24  ;;  %v8906_v10 = vpop.f32.mrf.mxu1 }
 0x6f8   : > { %v9344_v61 = vpop.eup %9343  ;;  %v3719_v8 = vadd.f32 %v8906_v10, %v1816_v0 }
 0x6f9   : > { %v3775_v6 = vadd.f32 1.0, %v9344_v61  ;;  %9357 = vpow2.f32 %v8155_v51  ;;  %v3671_v11 = vpop.f32.mrf.mxu1 }
 0x6fa   : > { %v9346_v13 = vpop.eup %9345  ;;  %v8158_v44 = vmul.f32 -1.442695, %v3719_v8  ;;  %v3718_v33 = vadd.f32 %v3671_v11, %v1811_v3 }
 0x6fb   : > { %9359 = vrcp.f32 %v3775_v6  ;;  %v3774_v49 = vadd.f32 1.0, %v9346_v13  ;;  %v8909_v35 = vpop.f32.mrf.mxu1 }
 0x6fc   : > { %v9348_v40 = vpop.eup %9347  ;;  %9361 = vpow2.f32 %v8158_v44  ;;  %v8157_v15 = vmul.f32 -1.442695, %v3718_v33  ;;  %v3721_v45 = vadd.f32 %v8909_v35, %v1826_v38 }
 0x6fd   : > { %9363 = vrcp.f32 %v3774_v49  ;;  %v3777_v1 = vadd.f32 1.0, %v9348_v40  ;;  %v3681_v20 = vpop.f32.mrf.mxu1  ;;  %v11076_v49 = vld [vmem:[%s13296_s6] ss:$0 sm:$0xff] }
 0x6fe   : > { %v9350_v18 = vpop.eup %9349  ;;  %9365 = vpow2.f32 %v8157_v15  ;;  %v8160_v22 = vmul.f32 -1.442695, %v3721_v45  ;;  %v3720_v53 = vadd.f32 %v3681_v20, %v1821_v59 }
 0x6ff   : > { %9367 = vrcp.f32 %v3777_v1  ;;  %v3776_v23 = vadd.f32 1.0, %v9350_v18  ;;  %v8912_v62 = vpop.f32.mrf.mxu1 }
 0x700   : > { %v9352_v42 = vpop.eup %9351  ;;  %9369 = vpow2.f32 %v8160_v22  ;;  %v8159_v41 = vmul.f32 -1.442695, %v3720_v53  ;;  %v3723_v34 = vadd.f32 %v8912_v62, %v1836_v19 }
 0x701   : > { %9371 = vrcp.f32 %v3776_v23  ;;  %v3779_v5 = vadd.f32 1.0, %v9352_v42  ;;  %v3691_v54 = vpop.f32.mrf.mxu1 }
 0x702   : > { %v9354_v48 = vpop.eup %9353  ;;  %9373 = vpow2.f32 %v8159_v41  ;;  %v8162_v57 = vmul.f32 -1.442695, %v3723_v34  ;;  %v3722_v55 = vadd.f32 %v3691_v54, %v1831_v36 }
 0x703   : > { %9375 = vrcp.f32 %v3779_v5  ;;  %v3778_v43 = vadd.f32 1.0, %v9354_v48  ;;  %v8915_v2 = vpop.f32.mrf.mxu1 }
 0x704   : > { %v9356_v16 = vpop.eup %9355  ;;  %9377 = vpow2.f32 %v8162_v57  ;;  %v8161_v21 = vmul.f32 -1.442695, %v3722_v55  ;;  %v3725_v24 = vadd.f32 %v8915_v2, %v1846_v56 }
 0x705   : > { %9379 = vrcp.f32 %v3778_v43  ;;  %v3781_v0 = vadd.f32 1.0, %v9356_v16  ;;  %v3701_v51 = vpop.f32.mrf.mxu1 }
 0x706   : > { %v9358_v10 = vpop.eup %9357  ;;  %9381 = vpow2.f32 %v8161_v21  ;;  %v8164_v61 = vmul.f32 -1.442695, %v3725_v24  ;;  %v3724_v3 = vadd.f32 %v3701_v51, %v1841_v14 }
 0x707   : > { %9383 = vrcp.f32 %v3781_v0  ;;  %v3780_v8 = vadd.f32 1.0, %v9358_v10 }
 0x708   : > { %v9360_v7 = vpop.eup %9359  ;;  %9385 = vpow2.f32 %v8164_v61  ;;  %v8163_v6 = vmul.f32 -1.442695, %v3724_v3 }
 0x709   : > { %v9362_v11 = vpop.eup %9361  ;;  %9387 = vrcp.f32 %v3780_v8  ;;  %v3823_v13 = vmul.f32 %v11070_v27, %v9360_v7 }
 0x70a   : > { %v9364_v38 = vpop.eup %9363  ;;  %v3783_v44 = vadd.f32 1.0, %v9362_v11  ;;  %9389 = vpow2.f32 %v8163_v6 }
 0x70b   : > { %v9366_v33 = vpop.eup %9365  ;;  %v11079_v35 = vadd.f32 %v11076_v49, %v3823_v13  ;;  %v3822_v40 = vmul.f32 %v11070_v27, %v9364_v38 }
 0x70c   : > { %v9368_v59 = vpop.eup %9367  ;;  %9391 = vrcp.f32 %v3783_v44  ;;  %v3782_v15 = vadd.f32 1.0, %v9366_v33 }
 0x70d   : > { %v9370_v45 = vpop.eup %9369  ;;  %3888 = vrot.lane.b32.xlu1 %v11079_v35, %s10066_s19  ;;  %v11085_v50 = vadd.f32 %v11076_v49, %v3822_v40  ;;  %v3825_v1 = vmul.f32 %v11070_v27, %v9368_v59 }
 0x70e   : > { %v9372_v20 = vpop.eup %9371  ;;  %9393 = vrcp.f32 %v3782_v15  ;;  %v3785_v18 = vadd.f32 1.0, %v9370_v45 }
 0x70f   : > { %v9374_v19 = vpop.eup %9373  ;;  %3886 = vrot.lane.b32.xlu0 %v11085_v50, %s10066_s19  ;;  %v11091_v22 = vadd.f32 %v11076_v49, %v3825_v1  ;;  %v3824_v53 = vmul.f32 %v11070_v27, %v9372_v20 }
 0x710   : > { %v9376_v23 = vpop.eup %9375  ;;  %9395 = vrcp.f32 %v3785_v18  ;;  %v3784_v62 = vadd.f32 1.0, %v9374_v19 }
 0x711   : > { %v9378_v42 = vpop.eup %9377  ;;  %3892 = vrot.lane.b32.xlu1 %v11091_v22, %s10066_s19  ;;  %v11097_v36 = vadd.f32 %v11076_v49, %v3824_v53  ;;  %v3827_v41 = vmul.f32 %v11070_v27, %v9376_v23 }
 0x712   : > { %v9380_v34 = vpop.eup %9379  ;;  %9397 = vrcp.f32 %v3784_v62  ;;  %v3787_v47 = vadd.f32 1.0, %v9378_v42 }
 0x713   : > { %v9382_v5 = vpop.eup %9381  ;;  %3890 = vrot.lane.b32.xlu0 %v11097_v36, %s10066_s19  ;;  %v11103_v54 = vadd.f32 %v11076_v49, %v3827_v41  ;;  %v3826_v48 = vmul.f32 %v11070_v27, %v9380_v34 }
 0x714   : > { %v9384_v56 = vpop.eup %9383  ;;  %9399 = vrcp.f32 %v3787_v47  ;;  %v3786_v57 = vadd.f32 1.0, %v9382_v5  ;;  %v10070_v47 = vmov 3  }
 0x715   : > { %v9386_v55 = vpop.eup %9385  ;;  %3896 = vrot.lane.b32.xlu1 %v11103_v54, %s10066_s19  ;;  %v11109_v43 = vadd.f32 %v11076_v49, %v3826_v48  ;;  %v3829_v2 = vmul.f32 %v11070_v27, %v9384_v56  ;;  %9141 = vset.pattern.permute.xlu0 %v10070_v47 }
 0x716   : > { %v9388_v16 = vpop.eup %9387  ;;  %9401 = vrcp.f32 %v3786_v57  ;;  %v3789_v14 = vadd.f32 1.0, %v9386_v55  ;;  %9142 = vset.pattern.permute.xlu1 %v10070_v47 }
 0x717   : > { %v9390_v21 = vpop.eup %9389  ;;  %3894 = vrot.lane.b32.xlu0 %v11109_v43, %s10066_s19  ;;  %v11115_v24 = vadd.f32 %v11076_v49, %v3829_v2  ;;  %v3828_v0 = vmul.f32 %v11070_v27, %v9388_v16 }
 0x718   : > { %9403 = vrcp.f32 %v3789_v14  ;;  %v3788_v51 = vadd.f32 1.0, %v9390_v21 }
 0x719   : > { %v9392_v10 = vpop.eup %9391  ;;  %3900 = vrot.lane.b32.xlu1 %v11115_v24, %s10066_s19  ;;  %v11121_v61 = vadd.f32 %v11076_v49, %v3828_v0 }
 0x71a   : > { %9405 = vrcp.f32 %v3788_v51  ;;  %v3831_v3 = vmul.f32 %v11070_v27, %v9392_v10 }
 0x71b   : > { %v9394_v8 = vpop.eup %9393  ;;  %3898 = vrot.lane.b32.xlu0 %v11121_v61, %s10066_s19 }
 0x71c   : > { %v11127_v7 = vadd.f32 %v11076_v49, %v3831_v3  ;;  %v3830_v6 = vmul.f32 %v11070_v27, %v9394_v8 }
 0x71d   : > { %v9396_v11 = vpop.eup %9395 }
 0x71e   : > { %3904 = vrot.lane.b32.xlu1 %v11127_v7, %s10066_s19  ;;  %v11133_v13 = vadd.f32 %v11076_v49, %v3830_v6  ;;  %v3833_v38 = vmul.f32 %v11070_v27, %v9396_v11 }
 0x71f   : > { %v9398_v44 = vpop.eup %9397 }
 0x720   : > { %3902 = vrot.lane.b32.xlu0 %v11133_v13, %s10066_s19  ;;  %v11139_v33 = vadd.f32 %v11076_v49, %v3833_v38  ;;  %v3832_v40 = vmul.f32 %v11070_v27, %v9398_v44 }
 0x721   : > { %v9400_v59 = vpop.eup %9399 }
 0x722   : > { %3908 = vrot.lane.b32.xlu1 %v11139_v33, %s10066_s19  ;;  %v11145_v15 = vadd.f32 %v11076_v49, %v3832_v40  ;;  %v3835_v45 = vmul.f32 %v11070_v27, %v9400_v59 }
 0x723   : > { %v9402_v1 = vpop.eup %9401 }
 0x724   : > { %3906 = vrot.lane.b32.xlu0 %v11145_v15, %s10066_s19  ;;  %v11151_v20 = vadd.f32 %v11076_v49, %v3835_v45  ;;  %v3834_v18 = vmul.f32 %v11070_v27, %v9402_v1 }
 0x725   : > { %v9404_v19 = vpop.eup %9403 }
 0x726   : > { %3912 = vrot.lane.b32.xlu1 %v11151_v20, %s10066_s19  ;;  %v11157_v53 = vadd.f32 %v11076_v49, %v3834_v18  ;;  %v3837_v23 = vmul.f32 %v11070_v27, %v9404_v19 }
 0x727   : > { %v9406_v62 = vpop.eup %9405 }
 0x728   : > { %3910 = vrot.lane.b32.xlu0 %v11157_v53, %s10066_s19  ;;  %v11163_v42 = vadd.f32 %v11076_v49, %v3837_v23  ;;  %v3836_v41 = vmul.f32 %v11070_v27, %v9406_v62 }
 0x72a   : > { %3916 = vrot.lane.b32.xlu1 %v11163_v42, %s10066_s19  ;;  %v11169_v34 = vadd.f32 %v11076_v49, %v3836_v41 }
 0x72c   : > { %3914 = vrot.lane.b32.xlu0 %v11169_v34, %s10066_s19 }
 0x77f   : > { %v3889_v5 = vpop.permute.xlu1 %3888 }
 0x780   : > { %v3935_v48 = vmul.f32 %v3889_v5, %v11079_v35 }
 0x781   : > { %v3887_v56 = vpop.permute.xlu0 %3886 }
 0x782   : > { %v3934_v57 = vmul.f32 %v3887_v56, %v11085_v50  ;;  %3968 = vrot.lane.b32.xlu1 %v3935_v48, %s10068_s20  ;;  %v9945_v56 = vld [vmem:[%s10148_s21 + $0x8] sm:$0xff] }
 0x783   : > { %v3893_v27 = vpop.permute.xlu1 %3892 }
 0x784   : > { %v3937_v55 = vmul.f32 %v3893_v27, %v11091_v22  ;;  %3966 = vrot.lane.b32.xlu0 %v3934_v57, %s10068_s20  ;;  %v9946_v57 = vld [vmem:[%s10148_s21] sm:$0xff]  ;;  %v3855_v27 = vmul.f32 %v11079_v35, %v10830_v17  ;;  %v3856_v17 = vmul.f32 %v11097_v36, %v10845_v4 }
 0x785   : > { %v3891_v49 = vpop.permute.xlu0 %3890 }
 0x786   : > { %v3936_v2 = vmul.f32 %v3891_v49, %v11097_v36  ;;  %3972 = vrot.lane.b32.xlu1 %v3937_v55, %s10068_s20 }
 0x787   : > { %v3897_v16 = vpop.permute.xlu1 %3896 }
 0x788   : > { %v3939_v14 = vmul.f32 %v3897_v16, %v11103_v54  ;;  %3970 = vrot.lane.b32.xlu0 %v3936_v2, %s10068_s20  ;;  %v3854_v2 = vmul.f32 %v11085_v50, %v10835_v12 }
 0x789   : > { %v3895_v21 = vpop.permute.xlu0 %3894 }
 0x78a   : > { %v3938_v0 = vmul.f32 %v3895_v21, %v11109_v43  ;;  %3976 = vrot.lane.b32.xlu1 %v3939_v14, %s10068_s20  ;;  %v3857_v21 = vmul.f32 %v11091_v22, %v10840_v28 }
 0x78b   : > { %v3901_v51 = vpop.permute.xlu1 %3900 }
 0x78c   : > { %v3941_v10 = vmul.f32 %v3901_v51, %v11115_v24  ;;  %3974 = vrot.lane.b32.xlu0 %v3938_v0, %s10068_s20 }
 0x78d   : > { %v3899_v3 = vpop.permute.xlu0 %3898 }
 0x78e   : > { %v3940_v8 = vmul.f32 %v3899_v3, %v11121_v61  ;;  %3980 = vrot.lane.b32.xlu1 %v3941_v10, %s10068_s20  ;;  %v3859_v3 = vmul.f32 %v11103_v54, %v10850_v9 }
 0x790   : > { %v3905_v6 = vpop.permute.xlu1 %3904  ;;  %3978 = vrot.lane.b32.xlu0 %v3940_v8, %s10068_s20 }
 0x791   : > { %v3943_v11 = vmul.f32 %v3905_v6, %v11127_v7  ;;  %v3858_v6 = vmul.f32 %v11109_v43, %v10855_v25 }
 0x792   : > { %v3903_v38 = vpop.permute.xlu0 %3902 }
 0x793   : > { %v3942_v44 = vmul.f32 %v3903_v38, %v11133_v13  ;;  %3984 = vrot.lane.b32.xlu1 %v3943_v11, %s10068_s20  ;;  %v3861_v38 = vmul.f32 %v11115_v24, %v10860_v31 }
 0x794   : > { %v3909_v40 = vpop.permute.xlu1 %3908 }
 0x795   : > { %v3945_v59 = vmul.f32 %v3909_v40, %v11139_v33  ;;  %3982 = vrot.lane.b32.xlu0 %v3942_v44, %s10068_s20  ;;  %v3860_v40 = vmul.f32 %v11121_v61, %v10865_v37  ;;  %v3862_v37 = vmul.f32 %v11133_v13, %v10877_v63  ;;  %v3864_v63 = vmul.f32 %v11145_v15, %v10889_v39 }
 0x796   : > { %v3907_v45 = vpop.permute.xlu0 %3906  ;;  %v3866_v39 = vmul.f32 %v11157_v53, %v10901_v32  ;;  %v3868_v32 = vmul.f32 %v11169_v34, %v10913_v58 }
 0x797   : > { %v3944_v1 = vmul.f32 %v3907_v45, %v11145_v15  ;;  %3988 = vrot.lane.b32.xlu1 %v3945_v59, %s10068_s20 }
 0x798   : > { %v3913_v18 = vpop.permute.xlu1 %3912 }
 0x799   : > { %v3947_v19 = vmul.f32 %v3913_v18, %v11151_v20  ;;  %3986 = vrot.lane.b32.xlu0 %v3944_v1, %s10068_s20  ;;  %v3863_v1 = vmul.f32 %v11127_v7, %v10871_v46  ;;  %v3865_v46 = vmul.f32 %v11139_v33, %v10883_v30  ;;  %v3867_v30 = vmul.f32 %v11151_v20, %v10895_v60 }
 0x79a   : > { %v3911_v23 = vpop.permute.xlu0 %3910  ;;  %v3869_v60 = vmul.f32 %v11163_v42, %v10907_v52 }
 0x79b   : > { %v3946_v62 = vmul.f32 %v3911_v23, %v11157_v53  ;;  %3992 = vrot.lane.b32.xlu1 %v3947_v19, %s10068_s20 }
 0x79c   : > { %v3917_v41 = vpop.permute.xlu1 %3916 }
 0x79d   : > { %v3949_v47 = vmul.f32 %v3917_v41, %v11163_v42  ;;  %3990 = vrot.lane.b32.xlu0 %v3946_v62, %s10068_s20 }
 0x79e   : > { %v3915_v5 = vpop.permute.xlu0 %3914 }
 0x79f   : > { %v3948_v48 = vmul.f32 %v3915_v5, %v11169_v34  ;;  %3996 = vrot.lane.b32.xlu1 %v3949_v47, %s10068_s20 }
 0x7a1   : > { %3994 = vrot.lane.b32.xlu0 %v3948_v48, %s10068_s20 }
 0x7a3   : > { %668 = vperm.xlu1 %9142, %v9945_v56  }
 0x7a5   : > { %665 = vperm.xlu0 %9141, %v9946_v57  }
 0x7f4   : > { %v3969_v55 = vpop.permute.xlu1 %3968 }
 0x7f5   : > { %v11209_v49 = vadd.f32 %v3969_v55, %v3855_v27 }
 0x7f6   : > { %v3967_v16 = vpop.permute.xlu0 %3966 }
 0x7f7   : > { %9407 = vtanh.f32 %v11209_v49  ;;  %v11214_v14 = vadd.f32 %v3967_v16, %v3854_v2 }
 0x7f8   : > { %v3973_v0 = vpop.permute.xlu1 %3972 }
 0x7f9   : > { %9409 = vtanh.f32 %v11214_v14  ;;  %v11219_v51 = vadd.f32 %v3973_v0, %v3857_v21 }
 0x7fa   : > { %v3971_v10 = vpop.permute.xlu0 %3970 }
 0x7fb   : > { %9411 = vtanh.f32 %v11219_v51  ;;  %v11224_v12 = vadd.f32 %v3971_v10, %v3856_v17 }
 0x7fc   : > { %v3977_v8 = vpop.permute.xlu1 %3976 }
 0x7fd   : > { %9413 = vtanh.f32 %v11224_v12  ;;  %v11229_v28 = vadd.f32 %v3977_v8, %v3859_v3 }
 0x7fe   : > { %v3975_v11 = vpop.permute.xlu0 %3974 }
 0x7ff   : > { %9415 = vtanh.f32 %v11229_v28  ;;  %v11234_v4 = vadd.f32 %v3975_v11, %v3858_v6 }
 0x800   : > { %v3981_v44 = vpop.permute.xlu1 %3980 }
 0x801   : > { %9417 = vtanh.f32 %v11234_v4  ;;  %v11239_v9 = vadd.f32 %v3981_v44, %v3861_v38 }
 0x802   : > { %v3979_v59 = vpop.permute.xlu0 %3978 }
 0x803   : > { %9419 = vtanh.f32 %v11239_v9  ;;  %v11244_v25 = vadd.f32 %v3979_v59, %v3860_v40 }
 0x804   : > { %v9408_v45 = vpop.eup %9407 }
 0x805   : > { %9421 = vtanh.f32 %v11244_v25  ;;  %v3985_v31 = vpop.permute.xlu1 %3984  ;;  %4064 = vrot.lane.b32.xlu1 %v9408_v45, %s10066_s19 }
 0x806   : > { %v9410_v18 = vpop.eup %9409  ;;  %v11250_v19 = vadd.f32 %v3985_v31, %v3863_v1 }
 0x807   : > { %v3983_v23 = vpop.permute.xlu0 %3982  ;;  %4062 = vrot.lane.b32.xlu0 %v9410_v18, %s10066_s19 }
 0x808   : > { %v9412_v62 = vpop.eup %9411  ;;  %9423 = vtanh.f32 %v11250_v19  ;;  %v11256_v41 = vadd.f32 %v3983_v23, %v3862_v37 }
 0x809   : > { %v3989_v47 = vpop.permute.xlu1 %3988  ;;  %4068 = vrot.lane.b32.xlu1 %v9412_v62, %s10066_s19  ;;  %v9947_v62 = vld [vmem:[%s10148_s21 + $0x10] sm:$0xff] }
 0x80a   : > { %v9414_v5 = vpop.eup %9413  ;;  %9425 = vtanh.f32 %v11256_v41  ;;  %v11262_v48 = vadd.f32 %v3989_v47, %v3865_v46  ;;  %v9948_v46 = vld [vmem:[%s10148_s21 + $0x18] sm:$0xff]  ;;  %v9949_v47 = vld [vmem:[%s10148_s21 + $0x20] sm:$0xff] }
 0x80b   : > { %v3987_v56 = vpop.permute.xlu0 %3986  ;;  %4066 = vrot.lane.b32.xlu0 %v9414_v5, %s10066_s19  ;;  %v9950_v5 = vld [vmem:[%s10148_s21 + $0x28] sm:$0xff] }
 0x80c   : > { %v9416_v57 = vpop.eup %9415  ;;  %9427 = vtanh.f32 %v11262_v48  ;;  %v11268_v27 = vadd.f32 %v3987_v56, %v3864_v63  ;;  %v9951_v63 = vld [vmem:[%s10148_s21 + $0x30] sm:$0xff]  ;;  %v9952_v56 = vld [vmem:[%s10148_s21 + $0x38] sm:$0xff] }
 0x80d   : > { %v3993_v55 = vpop.permute.xlu1 %3992  ;;  %4072 = vrot.lane.b32.xlu1 %v9416_v57, %s10066_s19  ;;  %v9953_v57 = vld [vmem:[%s10148_s21 + $0x40] sm:$0xff] }
 0x80e   : > { %v9418_v2 = vpop.eup %9417  ;;  %9429 = vtanh.f32 %v11268_v27  ;;  %v11274_v16 = vadd.f32 %v3993_v55, %v3867_v30  ;;  %v9954_v30 = vld [vmem:[%s10148_s21 + $0x48] sm:$0xff]  ;;  %v9955_v55 = vld [vmem:[%s10148_s21 + $0x50] sm:$0xff] }
 0x80f   : > { %v3991_v21 = vpop.permute.xlu0 %3990  ;;  %4070 = vrot.lane.b32.xlu0 %v9418_v2, %s10066_s19  ;;  %v9956_v2 = vld [vmem:[%s10148_s21 + $0x58] sm:$0xff] }
 0x810   : > { %v9420_v0 = vpop.eup %9419  ;;  %9431 = vtanh.f32 %v11274_v16  ;;  %v11280_v17 = vadd.f32 %v3991_v21, %v3866_v39  ;;  %v9957_v39 = vld [vmem:[%s10148_s21 + $0x60] sm:$0xff]  ;;  %v9958_v21 = vld [vmem:[%s10148_s21 + $0x68] sm:$0xff] }
 0x811   : > { %v3997_v10 = vpop.permute.xlu1 %3996  ;;  %4076 = vrot.lane.b32.xlu1 %v9420_v0, %s10066_s19  ;;  %v9959_v0 = vld [vmem:[%s10148_s21 + $0x70] sm:$0xff] }
 0x812   : > { %v9422_v3 = vpop.eup %9421  ;;  %9433 = vtanh.f32 %v11280_v17  ;;  %v11286_v8 = vadd.f32 %v3997_v10, %v3869_v60  ;;  %v9960_v60 = vld [vmem:[%s10148_s21 + $0x78] sm:$0xff] }
 0x813   : > { %v3995_v6 = vpop.permute.xlu0 %3994  ;;  %4074 = vrot.lane.b32.xlu0 %v9422_v3, %s10066_s19 }
 0x814   : > { %9435 = vtanh.f32 %v11286_v8  ;;  %v11292_v11 = vadd.f32 %v3995_v6, %v3868_v32 }
 0x815   : > { %v9424_v38 = vpop.eup %9423 }
 0x816   : > { %9437 = vtanh.f32 %v11292_v11  ;;  %4080 = vrot.lane.b32.xlu1 %v9424_v38, %s10066_s19 }
 0x817   : > { %v9426_v52 = vpop.eup %9425 }
 0x818   : > { %4078 = vrot.lane.b32.xlu0 %v9426_v52, %s10066_s19 }
 0x819   : > { %v9428_v44 = vpop.eup %9427 }
 0x81a   : > { %4084 = vrot.lane.b32.xlu1 %v9428_v44, %s10066_s19 }
 0x81b   : > { %v9430_v40 = vpop.eup %9429 }
 0x81c   : > { %4082 = vrot.lane.b32.xlu0 %v9430_v40, %s10066_s19 }
 0x81d   : > { %v9432_v58 = vpop.eup %9431 }
 0x81e   : > { %4088 = vrot.lane.b32.xlu1 %v9432_v58, %s10066_s19  ;;  %v669_v59 = vpop.permute.xlu1 %668 }
 0x81f   : > { %v9434_v45 = vpop.eup %9433  ;;  %vm713_vm6 = vcmp.eq.s32.totalorder %v669_v59, %v10229_v26 }
 0x820   : > { %4086 = vrot.lane.b32.xlu0 %v9434_v45, %s10066_s19  ;;  %v666_v1 = vpop.permute.xlu0 %665  ;;  %v7875_v18 = vsel %vm713_vm6, 1.0, %v10065_v29 }
 0x821   : > { %v9436_v31 = vpop.eup %9435  ;;  %vm712_vm7 = vcmp.eq.s32.totalorder %v666_v1, %v10229_v26 }
 0x822   : > { %4092 = vrot.lane.b32.xlu1 %v9436_v31, %s10066_s19  ;;  %v7874_v37 = vsel %vm712_vm7, 1.0, %v10065_v29 }
 0x823   : > { %v9438_v23 = vpop.eup %9437  ;;  %8732 = vmatprep.mubr.msk.f32.mxu0 %vm1159_vm0, %v7874_v37 }
 0x824   : > { %4090 = vrot.lane.b32.xlu0 %v9438_v23, %s10066_s19  ;;  %8733 = vmatmul.mubr.msk.f32.gmra.mxu0 %vm1159_vm0, %v7875_v18 }
 0x826   : > { %671 = vperm.xlu1 %9142, %v9947_v62  }
 0x828   : > { %674 = vperm.xlu0 %9141, %v9948_v46  }
 0x82a   : > { %677 = vperm.xlu1 %9142, %v9949_v47  }
 0x82c   : > { %680 = vperm.xlu0 %9141, %v9950_v5  }
 0x82e   : > { %683 = vperm.xlu1 %9142, %v9951_v63  }
 0x830   : > { %686 = vperm.xlu0 %9141, %v9952_v56  }
 0x832   : > { %689 = vperm.xlu1 %9142, %v9953_v57  }
 0x834   : > { %692 = vperm.xlu0 %9141, %v9954_v30  }
 0x836   : > { %695 = vperm.xlu1 %9142, %v9955_v55  }
 0x838   : > { %698 = vperm.xlu0 %9141, %v9956_v2  }
 0x83a   : > { %701 = vperm.xlu1 %9142, %v9957_v39  }
 0x83c   : > { %704 = vperm.xlu0 %9141, %v9958_v21  }
 0x83e   : > { %707 = vperm.xlu1 %9142, %v9959_v0  }
 0x840   : > { %710 = vperm.xlu0 %9141, %v9960_v60  }
 0x877   : > { %v4065_v10 = vpop.permute.xlu1 %4064 }
 0x878   : > { %v4111_v3 = vmul.f32 %v4065_v10, %v11079_v35 }
 0x879   : > { %v4063_v32 = vpop.permute.xlu0 %4062 }
 0x87a   : > { %v4110_v6 = vmul.f32 %v4063_v32, %v11085_v50  ;;  %4160 = vrot.lane.b32.xlu0 %v4111_v3, %s10068_s20 }
 0x87b   : > { %v4069_v38 = vpop.permute.xlu1 %4068 }
 0x87c   : > { %v4113_v52 = vmul.f32 %v4069_v38, %v11091_v22  ;;  %4158 = vrot.lane.b32.xlu1 %v4110_v6, %s10068_s20 }
 0x87d   : > { %v4067_v44 = vpop.permute.xlu0 %4066 }
 0x87e   : > { %v4112_v40 = vmul.f32 %v4067_v44, %v11097_v36  ;;  %4164 = vrot.lane.b32.xlu0 %v4113_v52, %s10068_s20 }
 0x87f   : > { %v4073_v58 = vpop.permute.xlu1 %4072 }
 0x880   : > { %v4115_v59 = vmul.f32 %v4073_v58, %v11103_v54  ;;  %4162 = vrot.lane.b32.xlu1 %v4112_v40, %s10068_s20 }
 0x881   : > { %v4071_v35 = vpop.permute.xlu0 %4070 }
 0x882   : > { %v4114_v50 = vmul.f32 %v4071_v35, %v11109_v43  ;;  %4168 = vrot.lane.b32.xlu0 %v4115_v59, %s10068_s20 }
 0x883   : > { %v4077_v45 = vpop.permute.xlu1 %4076 }
 0x884   : > { %v4117_v22 = vmul.f32 %v4077_v45, %v11115_v24  ;;  %4166 = vrot.lane.b32.xlu1 %v4114_v50, %s10068_s20 }
 0x885   : > { %v4075_v1 = vpop.permute.xlu0 %4074 }
 0x886   : > { %v4116_v36 = vmul.f32 %v4075_v1, %v11121_v61  ;;  %4172 = vrot.lane.b32.xlu0 %v4117_v22, %s10068_s20 }
 0x888   : > { %v4081_v31 = vpop.permute.xlu1 %4080  ;;  %4170 = vrot.lane.b32.xlu1 %v4116_v36, %s10068_s20 }
 0x889   : > { %v4119_v54 = vmul.f32 %v4081_v31, %v11127_v7 }
 0x88a   : > { %v4079_v18 = vpop.permute.xlu0 %4078 }
 0x88b   : > { %v4118_v43 = vmul.f32 %v4079_v18, %v11133_v13  ;;  %4176 = vrot.lane.b32.xlu0 %v4119_v54, %s10068_s20  ;;  %v9961_v54 = vld [vmem:[%s13294_s4 + $0x18] sm:$0xff] }
 0x88c   : > { %v4085_v37 = vpop.permute.xlu1 %4084 }
 0x88d   : > { %v4121_v24 = vmul.f32 %v4085_v37, %v11139_v33  ;;  %4174 = vrot.lane.b32.xlu1 %v4118_v43, %s10068_s20  ;;  %v9962_v43 = vld [vmem:[%s13294_s4 + $0x10] sm:$0xff] }
 0x88e   : > { %v4083_v23 = vpop.permute.xlu0 %4082 }
 0x88f   : > { %v4120_v61 = vmul.f32 %v4083_v23, %v11145_v15  ;;  %4180 = vrot.lane.b32.xlu0 %v4121_v24, %s10068_s20  ;;  %v9963_v24 = vld [vmem:[%s13294_s4 + $0x8] sm:$0xff] }
 0x890   : > { %v4089_v62 = vpop.permute.xlu1 %4088 }
 0x891   : > { %v4123_v46 = vmul.f32 %v4089_v62, %v11151_v20  ;;  %4178 = vrot.lane.b32.xlu1 %v4120_v61, %s10068_s20  ;;  %v9964_v61 = vld [vmem:[%s13294_s4] sm:$0xff] }
 0x892   : > { %v4087_v7 = vpop.permute.xlu0 %4086 }
 0x893   : > { %v4122_v13 = vmul.f32 %v4087_v7, %v11157_v53  ;;  %4184 = vrot.lane.b32.xlu0 %v4123_v46, %s10068_s20 }
 0x894   : > { %v4093_v47 = vpop.permute.xlu1 %4092 }
 0x895   : > { %v4125_v33 = vmul.f32 %v4093_v47, %v11163_v42  ;;  %4182 = vrot.lane.b32.xlu1 %v4122_v13, %s10068_s20 }
 0x896   : > { %v4091_v5 = vpop.permute.xlu0 %4090 }
 0x897   : > { %v4124_v15 = vmul.f32 %v4091_v5, %v11169_v34  ;;  %4188 = vrot.lane.b32.xlu0 %v4125_v33, %s10068_s20 }
 0x899   : > { %4186 = vrot.lane.b32.xlu1 %v4124_v15, %s10068_s20 }
 0x8a1   : > { %v672_v20 = vpop.permute.xlu1 %671 }
 0x8a2   : > { %vm714_vm8 = vcmp.eq.s32.totalorder %v672_v20, %v10229_v26 }
 0x8a3   : > { %v7876_v63 = vsel %vm714_vm8, 1.0, %v10065_v29  ;;  %v675_v53 = vpop.permute.xlu0 %674 }
 0x8a4   : > { %vm715_vm9 = vcmp.eq.s32.totalorder %v675_v53, %v10229_v26  ;;  %8735 = vmatprep.mubr.msk.f32.mxu0 %vm1159_vm0, %v7876_v63 }
 0x8a5   : > { %v7877_v42 = vsel %vm715_vm9, 1.0, %v10065_v29  ;;  %v678_v56 = vpop.permute.xlu1 %677 }
 0x8a6   : > { %vm716_vm10 = vcmp.eq.s32.totalorder %v678_v56, %v10229_v26  ;;  %8736 = vmatmul.mubr.msk.f32.gmra.mxu0 %vm1159_vm0, %v7877_v42 }
 0x8a7   : > { %v7878_v34 = vsel %vm716_vm10, 1.0, %v10065_v29  ;;  %v681_v57 = vpop.permute.xlu0 %680 }
 0x8a8   : > { %vm717_vm11 = vcmp.eq.s32.totalorder %v681_v57, %v10229_v26  ;;  %8738 = vmatprep.mubr.msk.f32.mxu0 %vm1159_vm0, %v7878_v34 }
 0x8a9   : > { %v7879_v30 = vsel %vm717_vm11, 1.0, %v10065_v29  ;;  %v684_v55 = vpop.permute.xlu1 %683 }
 0x8aa   : > { %vm718_vm12 = vcmp.eq.s32.totalorder %v684_v55, %v10229_v26  ;;  %8739 = vmatmul.mubr.msk.f32.gmra.mxu0 %vm1159_vm0, %v7879_v30 }
 0x8ab   : > { %v7880_v2 = vsel %vm718_vm12, 1.0, %v10065_v29  ;;  %v687_v39 = vpop.permute.xlu0 %686 }
 0x8ac   : > { %vm719_vm13 = vcmp.eq.s32.totalorder %v687_v39, %v10229_v26  ;;  %8741 = vmatprep.mubr.msk.f32.mxu0 %vm1159_vm0, %v7880_v2  ;;  %v11428_v39 = vld [vmem:[%s13293_s3] ss:$0 sm:$0xff] }
 0x8ad   : > { %v7881_v21 = vsel %vm719_vm13, 1.0, %v10065_v29  ;;  %v690_v0 = vpop.permute.xlu1 %689 }
 0x8ae   : > { %vm720_vm14 = vcmp.eq.s32.totalorder %v690_v0, %v10229_v26  ;;  %8742 = vmatmul.mubr.msk.f32.gmra.mxu0 %vm1159_vm0, %v7881_v21 }
 0x8af   : > { %v7882_v60 = vsel %vm720_vm14, 1.0, %v10065_v29  ;;  %v693_v10 = vpop.permute.xlu0 %692 }
 0x8b0   : > { %vm721_vm15 = vcmp.eq.s32.totalorder %v693_v10, %v10229_v26  ;;  %8744 = vmatprep.mubr.msk.f32.mxu0 %vm1159_vm0, %v7882_v60 }
 0x8b1   : > { %v7883_v3 = vsel %vm721_vm15, 1.0, %v10065_v29  ;;  %v696_v32 = vpop.permute.xlu1 %695 }
 0x8b2   : > { %vm722_vm1 = vcmp.eq.s32.totalorder %v696_v32, %v10229_v26  ;;  %8745 = vmatmul.mubr.msk.f32.gmra.mxu0 %vm1159_vm0, %v7883_v3 }
 0x8b3   : > { %v7884_v6 = vsel %vm722_vm1, 1.0, %v10065_v29  ;;  %v699_v38 = vpop.permute.xlu0 %698 }
 0x8b4   : > { %vm723_vm2 = vcmp.eq.s32.totalorder %v699_v38, %v10229_v26  ;;  %8747 = vmatprep.mubr.msk.f32.mxu0 %vm1159_vm0, %v7884_v6 }
 0x8b5   : > { %v7885_v52 = vsel %vm723_vm2, 1.0, %v10065_v29  ;;  %v702_v44 = vpop.permute.xlu1 %701 }
 0x8b6   : > { %vm724_vm4 = vcmp.eq.s32.totalorder %v702_v44, %v10229_v26  ;;  %8748 = vmatmul.mubr.msk.f32.gmra.mxu0 %vm1159_vm0, %v7885_v52 }
 0x8b7   : > { %v7886_v40 = vsel %vm724_vm4, 1.0, %v10065_v29  ;;  %v705_v58 = vpop.permute.xlu0 %704 }
 0x8b8   : > { %vm725_vm5 = vcmp.eq.s32.totalorder %v705_v58, %v10229_v26  ;;  %8750 = vmatprep.mubr.msk.f32.mxu0 %vm1159_vm0, %v7886_v40 }
 0x8b9   : > { %v7887_v59 = vsel %vm725_vm5, 1.0, %v10065_v29  ;;  %v708_v35 = vpop.permute.xlu1 %707 }
 0x8ba   : > { %vm726_vm6 = vcmp.eq.s32.totalorder %v708_v35, %v10229_v26  ;;  %8751 = vmatmul.mubr.msk.f32.gmra.mxu0 %vm1159_vm0, %v7887_v59 }
 0x8bb   : > { %v7888_v50 = vsel %vm726_vm6, 1.0, %v10065_v29  ;;  %v711_v45 = vpop.permute.xlu0 %710 }
 0x8bc   : > { %vm727_vm7 = vcmp.eq.s32.totalorder %v711_v45, %v10229_v26  ;;  %8753 = vmatprep.mubr.msk.f32.mxu0 %vm1159_vm0, %v7888_v50 }
 0x8bd   : > { %v7889_v22 = vsel %vm727_vm7, 1.0, %v10065_v29 }
 0x8be   : > { %8754 = vmatmul.mubr.msk.f32.gmra.mxu0 %vm1159_vm0, %v7889_v22 }
 0x8e4   : > { %v8734_v53 = vpop.f32.mrf.mxu0 }
 0x8e5   : > { %v1856_v21 = vadd.f32 %v11428_v39, %v8734_v53 }
 0x8e6   : > { %v1850_v42 = vpop.f32.mrf.mxu0 }
 0x8e7   : > { %v1851_v10 = vadd.f32 %v11428_v39, %v1850_v42 }
 0x8ec   : > { %v4161_v1 = vpop.permute.xlu0 %4160 }
 0x8ee   : > { %v4159_v36 = vpop.permute.xlu1 %4158 }
 0x8ef   : > { %8924 = vmatprep.mubr.msk.f32.mxu1 %vm2875_vm3, %v4159_v36 }
 0x8f0   : > { %8925 = vmatmul.mubr.msk.f32.vlgmr.msra.gmra.mxu1 %vm2875_vm3, %v4161_v1  ;;  %v4165_v31 = vpop.permute.xlu0 %4164 }
 0x8f1   : > { %8949 = vmatpush3.msra.mxu1 %v9961_v54 }
 0x8f2   : > { %v4163_v18 = vpop.permute.xlu1 %4162  ;;  %8950 = vmatprep.subr.mxu1 %v9962_v43 }
 0x8f3   : > { %8927 = vmatprep.mubr.msk.f32.mxu1 %vm2875_vm3, %v4163_v18  ;;  %8951 = vmatpush3.msra.mxu1 %v9962_v43 }
 0x8f4   : > { %8928 = vmatmul.mubr.msk.f32.gmra.mxu1 %vm2875_vm3, %v4165_v31  ;;  %v4169_v37 = vpop.permute.xlu0 %4168  ;;  %8952 = vmatprep.subr.mxu1 %v9963_v24 }
 0x8f5   : > { %8953 = vmatpush3.msra.mxu1 %v9963_v24 }
 0x8f6   : > { %v4167_v23 = vpop.permute.xlu1 %4166  ;;  %8954 = vmatprep.subr.mxu1 %v9964_v61 }
 0x8f7   : > { %8930 = vmatprep.mubr.msk.f32.mxu1 %vm2875_vm3, %v4167_v23  ;;  %8955 = vmatpush3.msra.mxu1 %v9964_v61 }
 0x8f8   : > { %8931 = vmatmul.mubr.msk.f32.gmra.mxu1 %vm2875_vm3, %v4169_v37  ;;  %v4173_v62 = vpop.permute.xlu0 %4172  ;;  %8980 = vmatprep.subr.mxu1 %v9961_v54 }
 0x8fa   : > { %v4171_v46 = vpop.permute.xlu1 %4170 }
 0x8fb   : > { %8933 = vmatprep.mubr.msk.f32.mxu1 %vm2875_vm3, %v4171_v46 }
 0x8fc   : > { %8934 = vmatmul.mubr.msk.f32.gmra.mxu1 %vm2875_vm3, %v4173_v62 }
 0x8fd   : > { %v4177_v7 = vpop.permute.xlu0 %4176 }
 0x8ff   : > { %v4175_v13 = vpop.permute.xlu1 %4174 }
 0x900   : > { %8936 = vmatprep.mubr.msk.f32.mxu1 %vm2875_vm3, %v4175_v13 }
 0x901   : > { %8937 = vmatmul.mubr.msk.f32.gmra.mxu1 %vm2875_vm3, %v4177_v7  ;;  %v4181_v47 = vpop.permute.xlu0 %4180 }
 0x903   : > { %v4179_v33 = vpop.permute.xlu1 %4178 }
 0x904   : > { %8939 = vmatprep.mubr.msk.f32.mxu1 %vm2875_vm3, %v4179_v33 }
 0x905   : > { %8940 = vmatmul.mubr.msk.f32.gmra.mxu1 %vm2875_vm3, %v4181_v47  ;;  %v4185_v5 = vpop.permute.xlu0 %4184 }
 0x907   : > { %v4183_v15 = vpop.permute.xlu1 %4182 }
 0x908   : > { %8942 = vmatprep.mubr.msk.f32.mxu1 %vm2875_vm3, %v4183_v15 }
 0x909   : > { %8943 = vmatmul.mubr.msk.f32.gmra.mxu1 %vm2875_vm3, %v4185_v5  ;;  %v4189_v63 = vpop.permute.xlu0 %4188 }
 0x90b   : > { %v4187_v20 = vpop.permute.xlu1 %4186 }
 0x90c   : > { %8945 = vmatprep.mubr.msk.f32.mxu1 %vm2875_vm3, %v4187_v20 }
 0x90d   : > { %8946 = vmatmul.mubr.msk.f32.gmra.mxu1 %vm2875_vm3, %v4189_v63 }
 0x966   : > { %v8737_v56 = vpop.f32.mrf.mxu0 }
 0x967   : > { %v1866_v6 = vadd.f32 %v11428_v39, %v8737_v56 }
 0x968   : > { %v1860_v34 = vpop.f32.mrf.mxu0 }
 0x969   : > { %v1861_v58 = vadd.f32 %v11428_v39, %v1860_v34 }
 0x96a   : > { %v8740_v57 = vpop.f32.mrf.mxu0 }
 0x96b   : > { %v1876_v45 = vadd.f32 %v11428_v39, %v8740_v57 }
 0x96c   : > { %v1870_v30 = vpop.f32.mrf.mxu0 }
 0x96d   : > { %v1871_v54 = vadd.f32 %v11428_v39, %v1870_v30 }
 0x96e   : > { %v8743_v55 = vpop.f32.mrf.mxu0 }
 0x96f   : > { %v1886_v24 = vadd.f32 %v11428_v39, %v8743_v55 }
 0x970   : > { %v1880_v2 = vpop.f32.mrf.mxu0 }
 0x971   : > { %v1881_v7 = vadd.f32 %v11428_v39, %v1880_v2 }
 0x972   : > { %v8746_v0 = vpop.f32.mrf.mxu0 }
 0x973   : > { %v1896_v63 = vadd.f32 %v11428_v39, %v8746_v0 }
 0x974   : > { %v1890_v38 = vpop.f32.mrf.mxu0 }
 0x975   : > { %v1891_v34 = vadd.f32 %v11428_v39, %v1890_v38 }
 0x976   : > { %v8749_v22 = vpop.f32.mrf.mxu0 }
 0x978   : > { %v1900_v23 = vpop.f32.mrf.mxu0 }
 0x97a   : > { %v8752_v5 = vpop.f32.mrf.mxu0 }
 0x97c   : > { %v1910_v30 = vpop.f32.mrf.mxu0 }
 0x97e   : > { %v8755_v38 = vpop.f32.mrf.mxu0 }
 0x9b0   : > { %v8926_v60 = vpop.f32.mrf.mxu1 }
 0x9b1   : > { %v4368_v3 = vadd.f32 %v8926_v60, %v1856_v21  ;;  %v1906_v60 = vadd.f32 %v11428_v39, %v8749_v22 }
 0x9b2   : > { %v4288_v32 = vpop.f32.mrf.mxu1 }
 0x9b3   : > { %v8182_v52 = vmul.f32 -1.442695, %v4368_v3  ;;  %v4367_v44 = vadd.f32 %v4288_v32, %v1851_v10 }
 0x9b4   : > { %v8929_v40 = vpop.f32.mrf.mxu1 }
 0x9b5   : > { %9439 = vpow2.f32 %v8182_v52  ;;  %v8181_v59 = vmul.f32 -1.442695, %v4367_v44  ;;  %v4370_v35 = vadd.f32 %v8929_v40, %v1866_v6  ;;  %v1901_v52 = vadd.f32 %v11428_v39, %v1900_v23 }
 0x9b6   : > { %v4298_v50 = vpop.f32.mrf.mxu1 }
 0x9b7   : > { %9441 = vpow2.f32 %v8181_v59  ;;  %v8184_v1 = vmul.f32 -1.442695, %v4370_v35  ;;  %v4369_v36 = vadd.f32 %v4298_v50, %v1861_v58  ;;  %v1916_v50 = vadd.f32 %v11428_v39, %v8752_v5 }
 0x9b8   : > { %v8932_v31 = vpop.f32.mrf.mxu1 }
 0x9b9   : > { %9443 = vpow2.f32 %v8184_v1  ;;  %v8183_v18 = vmul.f32 -1.442695, %v4369_v36  ;;  %v4372_v43 = vadd.f32 %v8932_v31, %v1876_v45 }
 0x9ba   : > { %v4308_v37 = vpop.f32.mrf.mxu1 }
 0x9bb   : > { %9445 = vpow2.f32 %v8183_v18  ;;  %v8186_v61 = vmul.f32 -1.442695, %v4372_v43  ;;  %v4371_v62 = vadd.f32 %v4308_v37, %v1871_v54  ;;  %v1911_v54 = vadd.f32 %v11428_v39, %v1910_v30  ;;  %v1920_v37 = vpop.f32.mrf.mxu0 }
 0x9bc   : > { %v8935_v46 = vpop.f32.mrf.mxu1  ;;  %v1921_v5 = vadd.f32 %v11428_v39, %v1920_v37 }
 0x9bd   : > { %9447 = vpow2.f32 %v8186_v61  ;;  %v8185_v13 = vmul.f32 -1.442695, %v4371_v62  ;;  %v4374_v47 = vadd.f32 %v8935_v46, %v1886_v24  ;;  %v1926_v62 = vadd.f32 %v11428_v39, %v8755_v38  ;;  %v11449_v39 = vld [vmem:[%s13295_s5] ss:$0 sm:$0xff] }
 0x9be   : > { %v4318_v33 = vpop.f32.mrf.mxu1 }
 0x9bf   : > { %9449 = vpow2.f32 %v8185_v13  ;;  %v8188_v15 = vmul.f32 -1.442695, %v4374_v47  ;;  %v4373_v20 = vadd.f32 %v4318_v33, %v1881_v7 }
 0x9c1   : > { %9451 = vpow2.f32 %v8188_v15  ;;  %v8187_v53 = vmul.f32 -1.442695, %v4373_v20  ;;  %v8938_v42 = vpop.f32.mrf.mxu1 }
 0x9c2   : > { %v9440_v56 = vpop.eup %9439  ;;  %v4376_v57 = vadd.f32 %v8938_v42, %v1896_v63 }
 0x9c3   : > { %v4432_v55 = vadd.f32 1.0, %v9440_v56  ;;  %9453 = vpow2.f32 %v8187_v53  ;;  %v4328_v2 = vpop.f32.mrf.mxu1 }
 0x9c4   : > { %v9442_v21 = vpop.eup %9441  ;;  %v8190_v10 = vmul.f32 -1.442695, %v4376_v57  ;;  %v4375_v3 = vadd.f32 %v4328_v2, %v1891_v34 }
 0x9c5   : > { %9455 = vrcp.f32 %v4432_v55  ;;  %v4431_v32 = vadd.f32 1.0, %v9442_v21  ;;  %v8941_v6 = vpop.f32.mrf.mxu1 }
 0x9c6   : > { %v9444_v0 = vpop.eup %9443  ;;  %9457 = vpow2.f32 %v8190_v10  ;;  %v8189_v44 = vmul.f32 -1.442695, %v4375_v3  ;;  %v4378_v40 = vadd.f32 %v8941_v6, %v1906_v60 }
 0x9c7   : > { %9459 = vrcp.f32 %v4431_v32  ;;  %v4434_v58 = vadd.f32 1.0, %v9444_v0  ;;  %v4338_v59 = vpop.f32.mrf.mxu1  ;;  %v11455_v32 = vld [vmem:[%s13296_s6] ss:$0 sm:$0xff] }
 0x9c8   : > { %v9446_v35 = vpop.eup %9445  ;;  %9461 = vpow2.f32 %v8189_v44  ;;  %v8192_v45 = vmul.f32 -1.442695, %v4378_v40  ;;  %v4377_v22 = vadd.f32 %v4338_v59, %v1901_v52 }
 0x9c9   : > { %9463 = vrcp.f32 %v4434_v58  ;;  %v4433_v1 = vadd.f32 1.0, %v9446_v35  ;;  %v8944_v36 = vpop.f32.mrf.mxu1 }
 0x9ca   : > { %v9448_v31 = vpop.eup %9447  ;;  %9465 = vpow2.f32 %v8192_v45  ;;  %v8191_v18 = vmul.f32 -1.442695, %v4377_v22  ;;  %v4380_v43 = vadd.f32 %v8944_v36, %v1916_v50 }
 0x9cb   : > { %9467 = vrcp.f32 %v4433_v1  ;;  %v4436_v24 = vadd.f32 1.0, %v9448_v31  ;;  %v4348_v23 = vpop.f32.mrf.mxu1 }
 0x9cc   : > { %v9450_v61 = vpop.eup %9449  ;;  %9469 = vpow2.f32 %v8191_v18  ;;  %v8194_v46 = vmul.f32 -1.442695, %v4380_v43  ;;  %v4379_v7 = vadd.f32 %v4348_v23, %v1911_v54 }
 0x9cd   : > { %9471 = vrcp.f32 %v4436_v24  ;;  %v4435_v13 = vadd.f32 1.0, %v9450_v61  ;;  %v8947_v47 = vpop.f32.mrf.mxu1 }
 0x9ce   : > { %v9452_v33 = vpop.eup %9451  ;;  %9473 = vpow2.f32 %v8194_v46  ;;  %v8193_v15 = vmul.f32 -1.442695, %v4379_v7  ;;  %v4382_v20 = vadd.f32 %v8947_v47, %v1926_v62 }
 0x9cf   : > { %9475 = vrcp.f32 %v4435_v13  ;;  %v4438_v63 = vadd.f32 1.0, %v9452_v33  ;;  %v4358_v53 = vpop.f32.mrf.mxu1 }
 0x9d0   : > { %v9454_v42 = vpop.eup %9453  ;;  %9477 = vpow2.f32 %v8193_v15  ;;  %v8196_v56 = vmul.f32 -1.442695, %v4382_v20  ;;  %v4381_v34 = vadd.f32 %v4358_v53, %v1921_v5 }
 0x9d1   : > { %9479 = vrcp.f32 %v4438_v63  ;;  %v4437_v57 = vadd.f32 1.0, %v9454_v42 }
 0x9d2   : > { %v9456_v30 = vpop.eup %9455  ;;  %9481 = vpow2.f32 %v8196_v56  ;;  %v8195_v55 = vmul.f32 -1.442695, %v4381_v34 }
 0x9d3   : > { %v9458_v2 = vpop.eup %9457  ;;  %9483 = vrcp.f32 %v4437_v57  ;;  %v4480_v21 = vmul.f32 %v11449_v39, %v9456_v30 }
 0x9d4   : > { %v9460_v60 = vpop.eup %9459  ;;  %v4440_v10 = vadd.f32 1.0, %v9458_v2  ;;  %9485 = vpow2.f32 %v8195_v55 }
 0x9d5   : > { %v9462_v3 = vpop.eup %9461  ;;  %v11458_v6 = vadd.f32 %v11455_v32, %v4480_v21  ;;  %v4479_v0 = vmul.f32 %v11449_v39, %v9460_v60 }
 0x9d6   : > { %v9464_v52 = vpop.eup %9463  ;;  %9487 = vrcp.f32 %v4440_v10  ;;  %v4439_v44 = vadd.f32 1.0, %v9462_v3 }
 0x9d7   : > { %v9466_v40 = vpop.eup %9465  ;;  %4545 = vrot.lane.b32.xlu0 %v11458_v6, %s10066_s19  ;;  %v11464_v38 = vadd.f32 %v11455_v32, %v4479_v0  ;;  %v4482_v58 = vmul.f32 %v11449_v39, %v9464_v52 }
 0x9d8   : > { %v9468_v59 = vpop.eup %9467  ;;  %9489 = vrcp.f32 %v4439_v44  ;;  %v4442_v35 = vadd.f32 1.0, %v9466_v40 }
 0x9d9   : > { %v9470_v50 = vpop.eup %9469  ;;  %4543 = vrot.lane.b32.xlu1 %v11464_v38, %s10066_s19  ;;  %v11470_v45 = vadd.f32 %v11455_v32, %v4482_v58  ;;  %v4481_v22 = vmul.f32 %v11449_v39, %v9468_v59 }
 0x9da   : > { %v9472_v1 = vpop.eup %9471  ;;  %9491 = vrcp.f32 %v4442_v35  ;;  %v4441_v36 = vadd.f32 1.0, %v9470_v50 }
 0x9db   : > { %v9474_v31 = vpop.eup %9473  ;;  %4549 = vrot.lane.b32.xlu0 %v11470_v45, %s10066_s19  ;;  %v11476_v54 = vadd.f32 %v11455_v32, %v4481_v22  ;;  %v4484_v18 = vmul.f32 %v11449_v39, %v9472_v1 }
 0x9dc   : > { %v9476_v43 = vpop.eup %9475  ;;  %9493 = vrcp.f32 %v4441_v36  ;;  %v4444_v37 = vadd.f32 1.0, %v9474_v31 }
 0x9dd   : > { %v9478_v24 = vpop.eup %9477  ;;  %4547 = vrot.lane.b32.xlu1 %v11476_v54, %s10066_s19  ;;  %v11482_v23 = vadd.f32 %v11455_v32, %v4484_v18  ;;  %v4483_v61 = vmul.f32 %v11449_v39, %v9476_v43 }
 0x9de   : > { %v9480_v62 = vpop.eup %9479  ;;  %9495 = vrcp.f32 %v4444_v37  ;;  %v4443_v46 = vadd.f32 1.0, %v9478_v24  ;;  %v10071_v37 = vmov 4  }
 0x9df   : > { %v9482_v7 = vpop.eup %9481  ;;  %4553 = vrot.lane.b32.xlu0 %v11482_v23, %s10066_s19  ;;  %v11488_v13 = vadd.f32 %v11455_v32, %v4483_v61  ;;  %v4486_v47 = vmul.f32 %v11449_v39, %v9480_v62  ;;  %9143 = vset.pattern.permute.xlu1 %v10071_v37 }
 0x9e0   : > { %v9484_v33 = vpop.eup %9483  ;;  %9497 = vrcp.f32 %v4443_v46  ;;  %v4446_v5 = vadd.f32 1.0, %v9482_v7  ;;  %9144 = vset.pattern.permute.xlu0 %v10071_v37 }
 0x9e1   : > { %v9486_v15 = vpop.eup %9485  ;;  %4551 = vrot.lane.b32.xlu1 %v11488_v13, %s10066_s19  ;;  %v11494_v20 = vadd.f32 %v11455_v32, %v4486_v47  ;;  %v4485_v63 = vmul.f32 %v11449_v39, %v9484_v33 }
 0x9e2   : > { %9499 = vrcp.f32 %v4446_v5  ;;  %v4445_v53 = vadd.f32 1.0, %v9486_v15 }
 0x9e3   : > { %v9488_v42 = vpop.eup %9487  ;;  %4557 = vrot.lane.b32.xlu0 %v11494_v20, %s10066_s19  ;;  %v11500_v56 = vadd.f32 %v11455_v32, %v4485_v63 }
 0x9e4   : > { %9501 = vrcp.f32 %v4445_v53  ;;  %v4488_v34 = vmul.f32 %v11449_v39, %v9488_v42 }
 0x9e5   : > { %v9490_v57 = vpop.eup %9489  ;;  %4555 = vrot.lane.b32.xlu1 %v11500_v56, %s10066_s19 }
 0x9e6   : > { %v11506_v30 = vadd.f32 %v11455_v32, %v4488_v34  ;;  %v4487_v55 = vmul.f32 %v11449_v39, %v9490_v57 }
 0x9e7   : > { %v9492_v2 = vpop.eup %9491 }
 0x9e8   : > { %4561 = vrot.lane.b32.xlu0 %v11506_v30, %s10066_s19  ;;  %v11512_v21 = vadd.f32 %v11455_v32, %v4487_v55  ;;  %v4490_v60 = vmul.f32 %v11449_v39, %v9492_v2 }
 0x9e9   : > { %v9494_v10 = vpop.eup %9493 }
 0x9ea   : > { %4559 = vrot.lane.b32.xlu1 %v11512_v21, %s10066_s19  ;;  %v11518_v3 = vadd.f32 %v11455_v32, %v4490_v60  ;;  %v4489_v0 = vmul.f32 %v11449_v39, %v9494_v10 }
 0x9eb   : > { %v9496_v52 = vpop.eup %9495 }
 0x9ec   : > { %4565 = vrot.lane.b32.xlu0 %v11518_v3, %s10066_s19  ;;  %v11524_v44 = vadd.f32 %v11455_v32, %v4489_v0  ;;  %v4492_v40 = vmul.f32 %v11449_v39, %v9496_v52 }
 0x9ed   : > { %v9498_v58 = vpop.eup %9497 }
 0x9ee   : > { %4563 = vrot.lane.b32.xlu1 %v11524_v44, %s10066_s19  ;;  %v11530_v59 = vadd.f32 %v11455_v32, %v4492_v40  ;;  %v4491_v35 = vmul.f32 %v11449_v39, %v9498_v58 }
 0x9ef   : > { %v9500_v50 = vpop.eup %9499 }
 0x9f0   : > { %4569 = vrot.lane.b32.xlu0 %v11530_v59, %s10066_s19  ;;  %v11536_v22 = vadd.f32 %v11455_v32, %v4491_v35  ;;  %v4494_v1 = vmul.f32 %v11449_v39, %v9500_v50 }
 0x9f1   : > { %v9502_v36 = vpop.eup %9501 }
 0x9f2   : > { %4567 = vrot.lane.b32.xlu1 %v11536_v22, %s10066_s19  ;;  %v11542_v31 = vadd.f32 %v11455_v32, %v4494_v1  ;;  %v4493_v18 = vmul.f32 %v11449_v39, %v9502_v36 }
 0x9f4   : > { %4573 = vrot.lane.b32.xlu0 %v11542_v31, %s10066_s19  ;;  %v11548_v43 = vadd.f32 %v11455_v32, %v4493_v18 }
 0x9f6   : > { %4571 = vrot.lane.b32.xlu1 %v11548_v43, %s10066_s19 }
 0xa49   : > { %v4546_v24 = vpop.permute.xlu0 %4545 }
 0xa4a   : > { %v4592_v61 = vmul.f32 %v4546_v24, %v11458_v6 }
 0xa4b   : > { %v4544_v62 = vpop.permute.xlu1 %4543 }
 0xa4c   : > { %v4591_v46 = vmul.f32 %v4544_v62, %v11464_v38  ;;  %4625 = vrot.lane.b32.xlu0 %v4592_v61, %s10068_s20  ;;  %v9968_v62 = vld [vmem:[%s10148_s21 + $0x8] sm:$0xff] }
 0xa4d   : > { %v4550_v39 = vpop.permute.xlu0 %4549 }
 0xa4e   : > { %v4594_v7 = vmul.f32 %v4550_v39, %v11470_v45  ;;  %4623 = vrot.lane.b32.xlu1 %v4591_v46, %s10068_s20  ;;  %v9969_v46 = vld [vmem:[%s10148_s21] sm:$0xff]  ;;  %v4512_v39 = vmul.f32 %v11458_v6, %v11209_v49  ;;  %v4513_v49 = vmul.f32 %v11476_v54, %v11224_v12 }
 0xa4f   : > { %v4548_v32 = vpop.permute.xlu1 %4547 }
 0xa50   : > { %v4593_v47 = vmul.f32 %v4548_v32, %v11476_v54  ;;  %4629 = vrot.lane.b32.xlu0 %v4594_v7, %s10068_s20 }
 0xa51   : > { %v4554_v33 = vpop.permute.xlu0 %4553 }
 0xa52   : > { %v4596_v5 = vmul.f32 %v4554_v33, %v11482_v23  ;;  %4627 = vrot.lane.b32.xlu1 %v4593_v47, %s10068_s20  ;;  %v4511_v47 = vmul.f32 %v11464_v38, %v11214_v14 }
 0xa53   : > { %v4552_v15 = vpop.permute.xlu1 %4551 }
 0xa54   : > { %v4595_v63 = vmul.f32 %v4552_v15, %v11488_v13  ;;  %4633 = vrot.lane.b32.xlu0 %v4596_v5, %s10068_s20  ;;  %v4514_v15 = vmul.f32 %v11470_v45, %v11219_v51 }
 0xa55   : > { %v4558_v53 = vpop.permute.xlu0 %4557 }
 0xa56   : > { %v4598_v42 = vmul.f32 %v4558_v53, %v11494_v20  ;;  %4631 = vrot.lane.b32.xlu1 %v4595_v63, %s10068_s20 }
 0xa57   : > { %v4556_v34 = vpop.permute.xlu1 %4555 }
 0xa58   : > { %v4597_v57 = vmul.f32 %v4556_v34, %v11500_v56  ;;  %4637 = vrot.lane.b32.xlu0 %v4598_v42, %s10068_s20  ;;  %v4516_v34 = vmul.f32 %v11482_v23, %v11229_v28 }
 0xa5a   : > { %v4562_v55 = vpop.permute.xlu0 %4561  ;;  %4635 = vrot.lane.b32.xlu1 %v4597_v57, %s10068_s20 }
 0xa5b   : > { %v4600_v2 = vmul.f32 %v4562_v55, %v11506_v30  ;;  %v4515_v55 = vmul.f32 %v11488_v13, %v11234_v4 }
 0xa5c   : > { %v4560_v60 = vpop.permute.xlu1 %4559 }
 0xa5d   : > { %v4599_v10 = vmul.f32 %v4560_v60, %v11512_v21  ;;  %4641 = vrot.lane.b32.xlu0 %v4600_v2, %s10068_s20  ;;  %v4518_v60 = vmul.f32 %v11494_v20, %v11239_v9 }
 0xa5e   : > { %v4566_v0 = vpop.permute.xlu0 %4565 }
 0xa5f   : > { %v4602_v52 = vmul.f32 %v4566_v0, %v11518_v3  ;;  %4639 = vrot.lane.b32.xlu1 %v4599_v10, %s10068_s20  ;;  %v4517_v0 = vmul.f32 %v11500_v56, %v11244_v25  ;;  %v4519_v25 = vmul.f32 %v11512_v21, %v11256_v41  ;;  %v4521_v41 = vmul.f32 %v11524_v44, %v11268_v27 }
 0xa60   : > { %v4564_v40 = vpop.permute.xlu1 %4563  ;;  %v4523_v27 = vmul.f32 %v11536_v22, %v11280_v17  ;;  %v4525_v17 = vmul.f32 %v11548_v43, %v11292_v11 }
 0xa61   : > { %v4601_v58 = vmul.f32 %v4564_v40, %v11524_v44  ;;  %4645 = vrot.lane.b32.xlu0 %v4602_v52, %s10068_s20 }
 0xa62   : > { %v4570_v35 = vpop.permute.xlu0 %4569 }
 0xa63   : > { %v4604_v50 = vmul.f32 %v4570_v35, %v11530_v59  ;;  %4643 = vrot.lane.b32.xlu1 %v4601_v58, %s10068_s20  ;;  %v4520_v58 = vmul.f32 %v11506_v30, %v11250_v19  ;;  %v4522_v19 = vmul.f32 %v11518_v3, %v11262_v48  ;;  %v4524_v48 = vmul.f32 %v11530_v59, %v11274_v16 }
 0xa64   : > { %v4568_v1 = vpop.permute.xlu1 %4567  ;;  %v4526_v16 = vmul.f32 %v11542_v31, %v11286_v8 }
 0xa65   : > { %v4603_v36 = vmul.f32 %v4568_v1, %v11536_v22  ;;  %4649 = vrot.lane.b32.xlu0 %v4604_v50, %s10068_s20 }
 0xa66   : > { %v4574_v18 = vpop.permute.xlu0 %4573 }
 0xa67   : > { %v4606_v37 = vmul.f32 %v4574_v18, %v11542_v31  ;;  %4647 = vrot.lane.b32.xlu1 %v4603_v36, %s10068_s20 }
 0xa68   : > { %v4572_v24 = vpop.permute.xlu1 %4571 }
 0xa69   : > { %v4605_v61 = vmul.f32 %v4572_v24, %v11548_v43  ;;  %4653 = vrot.lane.b32.xlu0 %v4606_v37, %s10068_s20 }
 0xa6b   : > { %4651 = vrot.lane.b32.xlu1 %v4605_v61, %s10068_s20 }
 0xa6d   : > { %764 = vperm.xlu0 %9144, %v9968_v62  }
 0xa6f   : > { %761 = vperm.xlu1 %9143, %v9969_v46  }
 0xabe   : > { %v4626_v7 = vpop.permute.xlu0 %4625 }
 0xabf   : > { %v11588_v32 = vadd.f32 %v4626_v7, %v4512_v39 }
 0xac0   : > { %v4624_v33 = vpop.permute.xlu1 %4623 }
 0xac1   : > { %9503 = vtanh.f32 %v11588_v32  ;;  %v11593_v5 = vadd.f32 %v4624_v33, %v4511_v47 }
 0xac2   : > { %v4630_v63 = vpop.permute.xlu0 %4629 }
 0xac3   : > { %9505 = vtanh.f32 %v11593_v5  ;;  %v11598_v53 = vadd.f32 %v4630_v63, %v4514_v15 }
 0xac4   : > { %v4628_v42 = vpop.permute.xlu1 %4627 }
 0xac5   : > { %9507 = vtanh.f32 %v11598_v53  ;;  %v11603_v14 = vadd.f32 %v4628_v42, %v4513_v49 }
 0xac6   : > { %v4634_v57 = vpop.permute.xlu0 %4633 }
 0xac7   : > { %9509 = vtanh.f32 %v11603_v14  ;;  %v11608_v51 = vadd.f32 %v4634_v57, %v4516_v34 }
 0xac8   : > { %v4632_v2 = vpop.permute.xlu1 %4631 }
 0xac9   : > { %9511 = vtanh.f32 %v11608_v51  ;;  %v11613_v12 = vadd.f32 %v4632_v2, %v4515_v55 }
 0xaca   : > { %v4638_v10 = vpop.permute.xlu0 %4637 }
 0xacb   : > { %9513 = vtanh.f32 %v11613_v12  ;;  %v11618_v28 = vadd.f32 %v4638_v10, %v4518_v60 }
 0xacc   : > { %v4636_v52 = vpop.permute.xlu1 %4635 }
 0xacd   : > { %9515 = vtanh.f32 %v11618_v28  ;;  %v11623_v4 = vadd.f32 %v4636_v52, %v4517_v0 }
 0xace   : > { %v9504_v40 = vpop.eup %9503 }
 0xacf   : > { %9517 = vtanh.f32 %v11623_v4  ;;  %v4642_v9 = vpop.permute.xlu0 %4641  ;;  %4721 = vrot.lane.b32.xlu0 %v9504_v40, %s10066_s19 }
 0xad0   : > { %v9506_v35 = vpop.eup %9505  ;;  %v11629_v50 = vadd.f32 %v4642_v9, %v4520_v58 }
 0xad1   : > { %v4640_v1 = vpop.permute.xlu1 %4639  ;;  %4719 = vrot.lane.b32.xlu1 %v9506_v35, %s10066_s19 }
 0xad2   : > { %v9508_v36 = vpop.eup %9507  ;;  %9519 = vtanh.f32 %v11629_v50  ;;  %v11635_v18 = vadd.f32 %v4640_v1, %v4519_v25 }
 0xad3   : > { %v4646_v37 = vpop.permute.xlu0 %4645  ;;  %4725 = vrot.lane.b32.xlu0 %v9508_v36, %s10066_s19  ;;  %v9970_v36 = vld [vmem:[%s10148_s21 + $0x20] sm:$0xff] }
 0xad4   : > { %v9510_v24 = vpop.eup %9509  ;;  %9521 = vtanh.f32 %v11635_v18  ;;  %v11641_v61 = vadd.f32 %v4646_v37, %v4522_v19  ;;  %v9971_v19 = vld [vmem:[%s10148_s21 + $0x10] sm:$0xff] }
 0xad5   : > { %v4644_v62 = vpop.permute.xlu1 %4643  ;;  %4723 = vrot.lane.b32.xlu1 %v9510_v24, %s10066_s19  ;;  %v9972_v37 = vld [vmem:[%s10148_s21 + $0x30] sm:$0xff]  ;;  %v9973_v24 = vld [vmem:[%s10148_s21 + $0x18] sm:$0xff] }
 0xad6   : > { %v9512_v46 = vpop.eup %9511  ;;  %9523 = vtanh.f32 %v11641_v61  ;;  %v11647_v39 = vadd.f32 %v4644_v62, %v4521_v41  ;;  %v9974_v41 = vld [vmem:[%s10148_s21 + $0x40] sm:$0xff]  ;;  %v9975_v62 = vld [vmem:[%s10148_s21 + $0x28] sm:$0xff] }
 0xad7   : > { %v4650_v7 = vpop.permute.xlu0 %4649  ;;  %4729 = vrot.lane.b32.xlu0 %v9512_v46, %s10066_s19  ;;  %v9976_v46 = vld [vmem:[%s10148_s21 + $0x50] sm:$0xff] }
 0xad8   : > { %v9514_v47 = vpop.eup %9513  ;;  %9525 = vtanh.f32 %v11647_v39  ;;  %v11653_v33 = vadd.f32 %v4650_v7, %v4524_v48  ;;  %v9977_v48 = vld [vmem:[%s10148_s21 + $0x38] sm:$0xff]  ;;  %v9978_v7 = vld [vmem:[%s10148_s21 + $0x60] sm:$0xff] }
 0xad9   : > { %v4648_v15 = vpop.permute.xlu1 %4647  ;;  %4727 = vrot.lane.b32.xlu1 %v9514_v47, %s10066_s19  ;;  %v9979_v47 = vld [vmem:[%s10148_s21 + $0x48] sm:$0xff] }
 0xada   : > { %v9516_v63 = vpop.eup %9515  ;;  %9527 = vtanh.f32 %v11653_v33  ;;  %v11659_v49 = vadd.f32 %v4648_v15, %v4523_v27  ;;  %v9980_v27 = vld [vmem:[%s10148_s21 + $0x70] sm:$0xff]  ;;  %v9981_v15 = vld [vmem:[%s10148_s21 + $0x58] sm:$0xff] }
 0xadb   : > { %v4654_v42 = vpop.permute.xlu0 %4653  ;;  %4733 = vrot.lane.b32.xlu0 %v9516_v63, %s10066_s19  ;;  %v9982_v63 = vld [vmem:[%s10148_s21 + $0x68] sm:$0xff] }
 0xadc   : > { %v9518_v34 = vpop.eup %9517  ;;  %9529 = vtanh.f32 %v11659_v49  ;;  %v11665_v57 = vadd.f32 %v4654_v42, %v4526_v16  ;;  %v9983_v16 = vld [vmem:[%s10148_s21 + $0x78] sm:$0xff] }
 0xadd   : > { %v4652_v55 = vpop.permute.xlu1 %4651  ;;  %4731 = vrot.lane.b32.xlu1 %v9518_v34, %s10066_s19 }
 0xade   : > { %9531 = vtanh.f32 %v11665_v57  ;;  %v11671_v2 = vadd.f32 %v4652_v55, %v4525_v17 }
 0xadf   : > { %v9520_v60 = vpop.eup %9519 }
 0xae0   : > { %9533 = vtanh.f32 %v11671_v2  ;;  %4737 = vrot.lane.b32.xlu0 %v9520_v60, %s10066_s19 }
 0xae1   : > { %v9522_v8 = vpop.eup %9521 }
 0xae2   : > { %4735 = vrot.lane.b32.xlu1 %v9522_v8, %s10066_s19 }
 0xae3   : > { %v9524_v10 = vpop.eup %9523 }
 0xae4   : > { %4741 = vrot.lane.b32.xlu0 %v9524_v10, %s10066_s19 }
 0xae5   : > { %v9526_v0 = vpop.eup %9525 }
 0xae6   : > { %4739 = vrot.lane.b32.xlu1 %v9526_v0, %s10066_s19 }
 0xae7   : > { %v9528_v11 = vpop.eup %9527 }
 0xae8   : > { %4745 = vrot.lane.b32.xlu0 %v9528_v11, %s10066_s19  ;;  %v765_v52 = vpop.permute.xlu0 %764 }
 0xae9   : > { %v9530_v40 = vpop.eup %9529  ;;  %vm809_vm8 = vcmp.eq.s32.totalorder %v765_v52, %v10229_v26 }
 0xaea   : > { %4743 = vrot.lane.b32.xlu1 %v9530_v40, %s10066_s19  ;;  %v762_v58 = vpop.permute.xlu1 %761  ;;  %v7891_v35 = vsel %vm809_vm8, 1.0, %v10065_v29 }
 0xaeb   : > { %v9532_v9 = vpop.eup %9531  ;;  %vm808_vm9 = vcmp.eq.s32.totalorder %v762_v58, %v10229_v26 }
 0xaec   : > { %4749 = vrot.lane.b32.xlu0 %v9532_v9, %s10066_s19  ;;  %v7890_v25 = vsel %vm808_vm9, 1.0, %v10065_v29 }
 0xaed   : > { %v9534_v1 = vpop.eup %9533  ;;  %8756 = vmatprep.mubr.msk.f32.mxu0 %vm1159_vm0, %v7890_v25 }
 0xaee   : > { %4747 = vrot.lane.b32.xlu1 %v9534_v1, %s10066_s19  ;;  %8757 = vmatmul.mubr.msk.f32.gmra.mxu0 %vm1159_vm0, %v7891_v35 }
 0xaf0   : > { %773 = vperm.xlu0 %9144, %v9970_v36  }
 0xaf2   : > { %767 = vperm.xlu1 %9143, %v9971_v19  }
 0xaf4   : > { %779 = vperm.xlu0 %9144, %v9972_v37  }
 0xaf6   : > { %770 = vperm.xlu1 %9143, %v9973_v24  }
 0xaf8   : > { %785 = vperm.xlu0 %9144, %v9974_v41  }
 0xafa   : > { %776 = vperm.xlu1 %9143, %v9975_v62  }
 0xafc   : > { %791 = vperm.xlu0 %9144, %v9976_v46  }
 0xafe   : > { %782 = vperm.xlu1 %9143, %v9977_v48  }
 0xb00   : > { %797 = vperm.xlu0 %9144, %v9978_v7  }
 0xb02   : > { %788 = vperm.xlu1 %9143, %v9979_v47  }
 0xb04   : > { %803 = vperm.xlu0 %9144, %v9980_v27  }
 0xb06   : > { %794 = vperm.xlu1 %9143, %v9981_v15  }
 0xb0a   : > { %800 = vperm.xlu1 %9143, %v9982_v63  }
 0xb0e   : > { %806 = vperm.xlu1 %9143, %v9983_v16  }
 0xb41   : > { %v4722_v42 = vpop.permute.xlu0 %4721 }
 0xb42   : > { %v4768_v34 = vmul.f32 %v4722_v42, %v11458_v6 }
 0xb43   : > { %v4720_v17 = vpop.permute.xlu1 %4719 }
 0xb44   : > { %v4767_v55 = vmul.f32 %v4720_v17, %v11464_v38  ;;  %4817 = vrot.lane.b32.xlu1 %v4768_v34, %s10068_s20 }
 0xb45   : > { %v4726_v60 = vpop.permute.xlu0 %4725 }
 0xb46   : > { %v4770_v8 = vmul.f32 %v4726_v60, %v11470_v45  ;;  %4815 = vrot.lane.b32.xlu0 %v4767_v55, %s10068_s20 }
 0xb47   : > { %v4724_v10 = vpop.permute.xlu1 %4723 }
 0xb48   : > { %v4769_v0 = vmul.f32 %v4724_v10, %v11476_v54  ;;  %4821 = vrot.lane.b32.xlu1 %v4770_v8, %s10068_s20 }
 0xb49   : > { %v4730_v11 = vpop.permute.xlu0 %4729 }
 0xb4a   : > { %v4772_v52 = vmul.f32 %v4730_v11, %v11482_v23  ;;  %4819 = vrot.lane.b32.xlu0 %v4769_v0, %s10068_s20 }
 0xb4b   : > { %v4728_v6 = vpop.permute.xlu1 %4727 }
 0xb4c   : > { %v4771_v38 = vmul.f32 %v4728_v6, %v11488_v13  ;;  %4825 = vrot.lane.b32.xlu1 %v4772_v52, %s10068_s20 }
 0xb4d   : > { %v4734_v40 = vpop.permute.xlu0 %4733 }
 0xb4e   : > { %v4774_v45 = vmul.f32 %v4734_v40, %v11494_v20  ;;  %4823 = vrot.lane.b32.xlu0 %v4771_v38, %s10068_s20 }
 0xb4f   : > { %v4732_v58 = vpop.permute.xlu1 %4731 }
 0xb50   : > { %v4773_v54 = vmul.f32 %v4732_v58, %v11500_v56  ;;  %4829 = vrot.lane.b32.xlu1 %v4774_v45, %s10068_s20 }
 0xb52   : > { %v4738_v9 = vpop.permute.xlu0 %4737  ;;  %4827 = vrot.lane.b32.xlu0 %v4773_v54, %s10068_s20 }
 0xb53   : > { %v4776_v23 = vmul.f32 %v4738_v9, %v11506_v30 }
 0xb54   : > { %v4736_v35 = vpop.permute.xlu1 %4735 }
 0xb55   : > { %v4775_v13 = vmul.f32 %v4736_v35, %v11512_v21  ;;  %4833 = vrot.lane.b32.xlu1 %v4776_v23, %s10068_s20  ;;  %v9984_v23 = vld [vmem:[%s13294_s4 + $0x18] sm:$0xff] }
 0xb56   : > { %v4742_v25 = vpop.permute.xlu0 %4741 }
 0xb57   : > { %v4778_v20 = vmul.f32 %v4742_v25, %v11518_v3  ;;  %4831 = vrot.lane.b32.xlu0 %v4775_v13, %s10068_s20  ;;  %v9985_v13 = vld [vmem:[%s13294_s4 + $0x10] sm:$0xff] }
 0xb58   : > { %v4740_v1 = vpop.permute.xlu1 %4739 }
 0xb59   : > { %v4777_v56 = vmul.f32 %v4740_v1, %v11524_v44  ;;  %4837 = vrot.lane.b32.xlu1 %v4778_v20, %s10068_s20  ;;  %v9986_v20 = vld [vmem:[%s13294_s4 + $0x8] sm:$0xff] }
 0xb5a   : > { %v4746_v36 = vpop.permute.xlu0 %4745 }
 0xb5b   : > { %v4780_v19 = vmul.f32 %v4746_v36, %v11530_v59  ;;  %4835 = vrot.lane.b32.xlu0 %v4777_v56, %s10068_s20  ;;  %v9987_v56 = vld [vmem:[%s13294_s4] sm:$0xff] }
 0xb5c   : > { %v4744_v30 = vpop.permute.xlu1 %4743 }
 0xb5d   : > { %v4779_v21 = vmul.f32 %v4744_v30, %v11536_v22  ;;  %4841 = vrot.lane.b32.xlu1 %v4780_v19, %s10068_s20 }
 0xb5e   : > { %v4750_v37 = vpop.permute.xlu0 %4749 }
 0xb5f   : > { %v4782_v3 = vmul.f32 %v4750_v37, %v11542_v31  ;;  %4839 = vrot.lane.b32.xlu0 %v4779_v21, %s10068_s20 }
 0xb60   : > { %v4748_v24 = vpop.permute.xlu1 %4747 }
 0xb61   : > { %v4781_v44 = vmul.f32 %v4748_v24, %v11548_v43  ;;  %4845 = vrot.lane.b32.xlu1 %v4782_v3, %s10068_s20 }
 0xb63   : > { %4843 = vrot.lane.b32.xlu0 %v4781_v44, %s10068_s20 }
 0xb6b   : > { %v774_v59 = vpop.permute.xlu0 %773 }
 0xb6c   : > { %vm812_vm11 = vcmp.eq.s32.totalorder %v774_v59, %v10229_v26 }
 0xb6d   : > { %v768_v41 = vpop.permute.xlu1 %767  ;;  %v7894_v48 = vsel %vm812_vm11, 1.0, %v10065_v29 }
 0xb6e   : > { %vm810_vm10 = vcmp.eq.s32.totalorder %v768_v41, %v10229_v26 }
 0xb6f   : > { %v7892_v22 = vsel %vm810_vm10, 1.0, %v10065_v29  ;;  %v780_v62 = vpop.permute.xlu0 %779 }
 0xb70   : > { %8759 = vmatprep.mubr.msk.f32.mxu0 %vm1159_vm0, %v7892_v22  ;;  %vm814_vm13 = vcmp.eq.s32.totalorder %v780_v62, %v10229_v26 }
 0xb71   : > { %v771_v31 = vpop.permute.xlu1 %770  ;;  %v7896_v15 = vsel %vm814_vm13, 1.0, %v10065_v29 }
 0xb72   : > { %vm811_vm12 = vcmp.eq.s32.totalorder %v771_v31, %v10229_v26 }
 0xb73   : > { %v7893_v43 = vsel %vm811_vm12, 1.0, %v10065_v29  ;;  %v786_v46 = vpop.permute.xlu0 %785 }
 0xb74   : > { %8760 = vmatmul.mubr.msk.f32.gmra.mxu0 %vm1159_vm0, %v7893_v43  ;;  %vm816_vm15 = vcmp.eq.s32.totalorder %v786_v46, %v10229_v26 }
 0xb75   : > { %v777_v7 = vpop.permute.xlu1 %776  ;;  %8762 = vmatprep.mubr.msk.f32.mxu0 %vm1159_vm0, %v7894_v48  ;;  %v7898_v42 = vsel %vm816_vm15, 1.0, %v10065_v29 }
 0xb76   : > { %vm813_vm14 = vcmp.eq.s32.totalorder %v777_v7, %v10229_v26 }
 0xb77   : > { %v7895_v47 = vsel %vm813_vm14, 1.0, %v10065_v29  ;;  %v792_v27 = vpop.permute.xlu0 %791 }
 0xb78   : > { %8763 = vmatmul.mubr.msk.f32.gmra.mxu0 %vm1159_vm0, %v7895_v47  ;;  %vm818_vm2 = vcmp.eq.s32.totalorder %v792_v27, %v10229_v26  ;;  %v11807_v27 = vld [vmem:[%s13293_s3] ss:$0 sm:$0xff] }
 0xb79   : > { %v783_v63 = vpop.permute.xlu1 %782  ;;  %8765 = vmatprep.mubr.msk.f32.mxu0 %vm1159_vm0, %v7896_v15  ;;  %v7900_v60 = vsel %vm818_vm2, 1.0, %v10065_v29 }
 0xb7a   : > { %vm815_vm1 = vcmp.eq.s32.totalorder %v783_v63, %v10229_v26 }
 0xb7b   : > { %v7897_v16 = vsel %vm815_vm1, 1.0, %v10065_v29  ;;  %v798_v34 = vpop.permute.xlu0 %797 }
 0xb7c   : > { %8766 = vmatmul.mubr.msk.f32.gmra.mxu0 %vm1159_vm0, %v7897_v16  ;;  %vm820_vm5 = vcmp.eq.s32.totalorder %v798_v34, %v10229_v26 }
 0xb7d   : > { %v789_v17 = vpop.permute.xlu1 %788  ;;  %8768 = vmatprep.mubr.msk.f32.mxu0 %vm1159_vm0, %v7898_v42  ;;  %v7902_v11 = vsel %vm820_vm5, 1.0, %v10065_v29 }
 0xb7e   : > { %vm817_vm4 = vcmp.eq.s32.totalorder %v789_v17, %v10229_v26 }
 0xb7f   : > { %v7899_v55 = vsel %vm817_vm4, 1.0, %v10065_v29  ;;  %v804_v10 = vpop.permute.xlu0 %803 }
 0xb80   : > { %8769 = vmatmul.mubr.msk.f32.gmra.mxu0 %vm1159_vm0, %v7899_v55  ;;  %vm822_vm7 = vcmp.eq.s32.totalorder %v804_v10, %v10229_v26 }
 0xb81   : > { %v795_v8 = vpop.permute.xlu1 %794  ;;  %8771 = vmatprep.mubr.msk.f32.mxu0 %vm1159_vm0, %v7900_v60  ;;  %v7904_v38 = vsel %vm822_vm7, 1.0, %v10065_v29 }
 0xb82   : > { %vm819_vm6 = vcmp.eq.s32.totalorder %v795_v8, %v10229_v26 }
 0xb83   : > { %v7901_v0 = vsel %vm819_vm6, 1.0, %v10065_v29 }
 0xb84   : > { %8772 = vmatmul.mubr.msk.f32.gmra.mxu0 %vm1159_vm0, %v7901_v0 }
 0xb85   : > { %v801_v52 = vpop.permute.xlu1 %800  ;;  %8774 = vmatprep.mubr.msk.f32.mxu0 %vm1159_vm0, %v7902_v11 }
 0xb86   : > { %vm821_vm8 = vcmp.eq.s32.totalorder %v801_v52, %v10229_v26 }
 0xb87   : > { %v7903_v6 = vsel %vm821_vm8, 1.0, %v10065_v29 }
 0xb88   : > { %8775 = vmatmul.mubr.msk.f32.gmra.mxu0 %vm1159_vm0, %v7903_v6 }
 0xb89   : > { %v807_v40 = vpop.permute.xlu1 %806  ;;  %8777 = vmatprep.mubr.msk.f32.mxu0 %vm1159_vm0, %v7904_v38 }
 0xb8a   : > { %vm823_vm9 = vcmp.eq.s32.totalorder %v807_v40, %v10229_v26 }
 0xb8b   : > { %v7905_v45 = vsel %vm823_vm9, 1.0, %v10065_v29 }
 0xb8c   : > { %8778 = vmatmul.mubr.msk.f32.gmra.mxu0 %vm1159_vm0, %v7905_v45 }
 0xbae   : > { %v8758_v22 = vpop.f32.mrf.mxu0 }
 0xbaf   : > { %v1936_v15 = vadd.f32 %v11807_v27, %v8758_v22 }
 0xbb0   : > { %v1930_v62 = vpop.f32.mrf.mxu0 }
 0xbb1   : > { %v1931_v42 = vadd.f32 %v11807_v27, %v1930_v62 }
 0xbb6   : > { %v4818_v58 = vpop.permute.xlu1 %4817 }
 0xbb8   : > { %v4816_v54 = vpop.permute.xlu0 %4815 }
 0xbb9   : > { %8956 = vmatprep.mubr.msk.f32.mxu1 %vm2875_vm3, %v4816_v54 }
 0xbba   : > { %v4822_v9 = vpop.permute.xlu1 %4821  ;;  %8957 = vmatmul.mubr.msk.f32.vlgmr.msra.gmra.mxu1 %vm2875_vm3, %v4818_v58 }
 0xbbb   : > { %8981 = vmatpush3.msra.mxu1 %v9984_v23 }
 0xbbc   : > { %v4820_v35 = vpop.permute.xlu0 %4819  ;;  %8982 = vmatprep.subr.mxu1 %v9985_v13 }
 0xbbd   : > { %8959 = vmatprep.mubr.msk.f32.mxu1 %vm2875_vm3, %v4820_v35  ;;  %8983 = vmatpush3.msra.mxu1 %v9985_v13 }
 0xbbe   : > { %v4826_v25 = vpop.permute.xlu1 %4825  ;;  %8960 = vmatmul.mubr.msk.f32.gmra.mxu1 %vm2875_vm3, %v4822_v9  ;;  %8984 = vmatprep.subr.mxu1 %v9986_v20 }
 0xbbf   : > { %8985 = vmatpush3.msra.mxu1 %v9986_v20 }
 0xbc0   : > { %v4824_v1 = vpop.permute.xlu0 %4823  ;;  %8986 = vmatprep.subr.mxu1 %v9987_v56 }
 0xbc1   : > { %8962 = vmatprep.mubr.msk.f32.mxu1 %vm2875_vm3, %v4824_v1  ;;  %8987 = vmatpush3.msra.mxu1 %v9987_v56 }
 0xbc2   : > { %v4830_v36 = vpop.permute.xlu1 %4829  ;;  %8963 = vmatmul.mubr.msk.f32.gmra.mxu1 %vm2875_vm3, %v4826_v25  ;;  %9012 = vmatprep.subr.mxu1 %v9984_v23 }
 0xbc4   : > { %v4828_v19 = vpop.permute.xlu0 %4827 }
 0xbc5   : > { %8965 = vmatprep.mubr.msk.f32.mxu1 %vm2875_vm3, %v4828_v19 }
 0xbc6   : > { %8966 = vmatmul.mubr.msk.f32.gmra.mxu1 %vm2875_vm3, %v4830_v36 }
 0xbc7   : > { %v4834_v30 = vpop.permute.xlu1 %4833 }
 0xbc9   : > { %v4832_v21 = vpop.permute.xlu0 %4831 }
 0xbca   : > { %8968 = vmatprep.mubr.msk.f32.mxu1 %vm2875_vm3, %v4832_v21 }
 0xbcb   : > { %v4838_v37 = vpop.permute.xlu1 %4837  ;;  %8969 = vmatmul.mubr.msk.f32.gmra.mxu1 %vm2875_vm3, %v4834_v30 }
 0xbcd   : > { %v4836_v3 = vpop.permute.xlu0 %4835 }
 0xbce   : > { %8971 = vmatprep.mubr.msk.f32.mxu1 %vm2875_vm3, %v4836_v3 }
 0xbcf   : > { %8972 = vmatmul.mubr.msk.f32.gmra.mxu1 %vm2875_vm3, %v4838_v37  ;;  %v4842_v24 = vpop.permute.xlu1 %4841 }
 0xbd1   : > { %v4840_v44 = vpop.permute.xlu0 %4839 }
 0xbd2   : > { %8974 = vmatprep.mubr.msk.f32.mxu1 %vm2875_vm3, %v4840_v44 }
 0xbd3   : > { %8975 = vmatmul.mubr.msk.f32.gmra.mxu1 %vm2875_vm3, %v4842_v24  ;;  %v4846_v41 = vpop.permute.xlu1 %4845 }
 0xbd5   : > { %v4844_v59 = vpop.permute.xlu0 %4843 }
 0xbd6   : > { %8977 = vmatprep.mubr.msk.f32.mxu1 %vm2875_vm3, %v4844_v59 }
 0xbd7   : > { %8978 = vmatmul.mubr.msk.f32.gmra.mxu1 %vm2875_vm3, %v4846_v41 }
 0xc34   : > { %v8761_v31 = vpop.f32.mrf.mxu0 }
 0xc35   : > { %v1946_v55 = vadd.f32 %v11807_v27, %v8761_v31 }
 0xc36   : > { %v1940_v43 = vpop.f32.mrf.mxu0 }
 0xc37   : > { %v1941_v11 = vadd.f32 %v11807_v27, %v1940_v43 }
 0xc38   : > { %v8764_v46 = vpop.f32.mrf.mxu0 }
 0xc39   : > { %v1956_v40 = vadd.f32 %v11807_v27, %v8764_v46 }
 0xc3a   : > { %v1950_v48 = vpop.f32.mrf.mxu0 }
 0xc3b   : > { %v1951_v23 = vadd.f32 %v11807_v27, %v1950_v48 }
 0xc3c   : > { %v8767_v7 = vpop.f32.mrf.mxu0 }
 0xc3d   : > { %v1966_v20 = vadd.f32 %v11807_v27, %v8767_v7 }
 0xc3e   : > { %v1960_v47 = vpop.f32.mrf.mxu0 }
 0xc3f   : > { %v1961_v30 = vadd.f32 %v11807_v27, %v1960_v47 }
 0xc40   : > { %v8770_v63 = vpop.f32.mrf.mxu0 }
 0xc41   : > { %v1976_v41 = vadd.f32 %v11807_v27, %v8770_v63 }
 0xc42   : > { %v1970_v60 = vpop.f32.mrf.mxu0 }
 0xc43   : > { %v1971_v43 = vadd.f32 %v11807_v27, %v1970_v60 }
 0xc44   : > { %v8773_v45 = vpop.f32.mrf.mxu0 }
 0xc46   : > { %v1980_v1 = vpop.f32.mrf.mxu0 }
 0xc48   : > { %v8776_v24 = vpop.f32.mrf.mxu0 }
 0xc4a   : > { %v1990_v48 = vpop.f32.mrf.mxu0 }
 0xc4c   : > { %v8779_v60 = vpop.f32.mrf.mxu0 }
 0xc7a   : > { %v8958_v16 = vpop.f32.mrf.mxu1 }
 0xc7b   : > { %v5025_v34 = vadd.f32 %v8958_v16, %v1936_v15  ;;  %v1986_v16 = vadd.f32 %v11807_v27, %v8773_v45 }
 0xc7c   : > { %v4945_v17 = vpop.f32.mrf.mxu1 }
 0xc7d   : > { %v8214_v8 = vmul.f32 -1.442695, %v5025_v34  ;;  %v5024_v10 = vadd.f32 %v4945_v17, %v1931_v42 }
 0xc7e   : > { %v8961_v0 = vpop.f32.mrf.mxu1 }
 0xc7f   : > { %9535 = vpow2.f32 %v8214_v8  ;;  %v8213_v52 = vmul.f32 -1.442695, %v5024_v10  ;;  %v5027_v6 = vadd.f32 %v8961_v0, %v1946_v55  ;;  %v1981_v8 = vadd.f32 %v11807_v27, %v1980_v1 }
 0xc80   : > { %v4955_v38 = vpop.f32.mrf.mxu1 }
 0xc81   : > { %9537 = vpow2.f32 %v8213_v52  ;;  %v8216_v58 = vmul.f32 -1.442695, %v5027_v6  ;;  %v5026_v54 = vadd.f32 %v4955_v38, %v1941_v11  ;;  %v1996_v38 = vadd.f32 %v11807_v27, %v8776_v24 }
 0xc82   : > { %v8964_v9 = vpop.f32.mrf.mxu1 }
 0xc83   : > { %9539 = vpow2.f32 %v8216_v58  ;;  %v8215_v35 = vmul.f32 -1.442695, %v5026_v54  ;;  %v5029_v13 = vadd.f32 %v8964_v9, %v1956_v40 }
 0xc84   : > { %v4965_v25 = vpop.f32.mrf.mxu1 }
 0xc85   : > { %9541 = vpow2.f32 %v8215_v35  ;;  %v8218_v56 = vmul.f32 -1.442695, %v5029_v13  ;;  %v5028_v36 = vadd.f32 %v4965_v25, %v1951_v23  ;;  %v1991_v23 = vadd.f32 %v11807_v27, %v1990_v48  ;;  %v2000_v25 = vpop.f32.mrf.mxu0 }
 0xc86   : > { %v8967_v19 = vpop.f32.mrf.mxu1  ;;  %v2001_v24 = vadd.f32 %v11807_v27, %v2000_v25 }
 0xc87   : > { %9543 = vpow2.f32 %v8218_v56  ;;  %v8217_v21 = vmul.f32 -1.442695, %v5028_v36  ;;  %v5031_v37 = vadd.f32 %v8967_v19, %v1966_v20  ;;  %v2006_v36 = vadd.f32 %v11807_v27, %v8779_v60  ;;  %v11828_v27 = vld [vmem:[%s13295_s5] ss:$0 sm:$0xff] }
 0xc88   : > { %v4975_v3 = vpop.f32.mrf.mxu1 }
 0xc89   : > { %9545 = vpow2.f32 %v8217_v21  ;;  %v8220_v44 = vmul.f32 -1.442695, %v5031_v37  ;;  %v5030_v59 = vadd.f32 %v4975_v3, %v1961_v30 }
 0xc8b   : > { %9547 = vpow2.f32 %v8220_v44  ;;  %v8219_v22 = vmul.f32 -1.442695, %v5030_v59  ;;  %v8970_v62 = vpop.f32.mrf.mxu1 }
 0xc8c   : > { %v9536_v31 = vpop.eup %9535  ;;  %v5033_v46 = vadd.f32 %v8970_v62, %v1976_v41 }
 0xc8d   : > { %v5089_v7 = vadd.f32 1.0, %v9536_v31  ;;  %9549 = vpow2.f32 %v8219_v22  ;;  %v4985_v47 = vpop.f32.mrf.mxu1 }
 0xc8e   : > { %v9538_v15 = vpop.eup %9537  ;;  %v8222_v42 = vmul.f32 -1.442695, %v5033_v46  ;;  %v5032_v34 = vadd.f32 %v4985_v47, %v1971_v43 }
 0xc8f   : > { %9551 = vrcp.f32 %v5089_v7  ;;  %v5088_v17 = vadd.f32 1.0, %v9538_v15  ;;  %v8973_v55 = vpop.f32.mrf.mxu1 }
 0xc90   : > { %v9540_v63 = vpop.eup %9539  ;;  %9553 = vpow2.f32 %v8222_v42  ;;  %v8221_v10 = vmul.f32 -1.442695, %v5032_v34  ;;  %v5035_v0 = vadd.f32 %v8973_v55, %v1986_v16 }
 0xc91   : > { %9555 = vrcp.f32 %v5088_v17  ;;  %v5091_v11 = vadd.f32 1.0, %v9540_v63  ;;  %v4995_v52 = vpop.f32.mrf.mxu1  ;;  %v11834_v17 = vld [vmem:[%s13296_s6] ss:$0 sm:$0xff] }
 0xc92   : > { %v9542_v6 = vpop.eup %9541  ;;  %9557 = vpow2.f32 %v8221_v10  ;;  %v8224_v40 = vmul.f32 -1.442695, %v5035_v0  ;;  %v5034_v45 = vadd.f32 %v4995_v52, %v1981_v8 }
 0xc93   : > { %9559 = vrcp.f32 %v5091_v11  ;;  %v5090_v58 = vadd.f32 1.0, %v9542_v6  ;;  %v8976_v54 = vpop.f32.mrf.mxu1 }
 0xc94   : > { %v9544_v9 = vpop.eup %9543  ;;  %9561 = vpow2.f32 %v8224_v40  ;;  %v8223_v35 = vmul.f32 -1.442695, %v5034_v45  ;;  %v5037_v13 = vadd.f32 %v8976_v54, %v1996_v38 }
 0xc95   : > { %9563 = vrcp.f32 %v5090_v58  ;;  %v5093_v20 = vadd.f32 1.0, %v9544_v9  ;;  %v5005_v1 = vpop.f32.mrf.mxu1 }
 0xc96   : > { %v9546_v56 = vpop.eup %9545  ;;  %9565 = vpow2.f32 %v8223_v35  ;;  %v8226_v19 = vmul.f32 -1.442695, %v5037_v13  ;;  %v5036_v30 = vadd.f32 %v5005_v1, %v1991_v23 }
 0xc97   : > { %9567 = vrcp.f32 %v5093_v20  ;;  %v5092_v21 = vadd.f32 1.0, %v9546_v56  ;;  %v8979_v37 = vpop.f32.mrf.mxu1 }
 0xc98   : > { %v9548_v3 = vpop.eup %9547  ;;  %9569 = vpow2.f32 %v8226_v19  ;;  %v8225_v44 = vmul.f32 -1.442695, %v5036_v30  ;;  %v5039_v59 = vadd.f32 %v8979_v37, %v2006_v36 }
 0xc99   : > { %9571 = vrcp.f32 %v5092_v21  ;;  %v5095_v41 = vadd.f32 1.0, %v9548_v3  ;;  %v5015_v22 = vpop.f32.mrf.mxu1 }
 0xc9a   : > { %v9550_v62 = vpop.eup %9549  ;;  %9573 = vpow2.f32 %v8225_v44  ;;  %v8228_v31 = vmul.f32 -1.442695, %v5039_v59  ;;  %v5038_v43 = vadd.f32 %v5015_v22, %v2001_v24 }
 0xc9b   : > { %9575 = vrcp.f32 %v5095_v41  ;;  %v5094_v46 = vadd.f32 1.0, %v9550_v62 }
 0xc9c   : > { %v9552_v48 = vpop.eup %9551  ;;  %9577 = vpow2.f32 %v8228_v31  ;;  %v8227_v7 = vmul.f32 -1.442695, %v5038_v43 }
 0xc9d   : > { %v9554_v47 = vpop.eup %9553  ;;  %9579 = vrcp.f32 %v5094_v46  ;;  %v5137_v15 = vmul.f32 %v11828_v27, %v9552_v48 }
 0xc9e   : > { %v9556_v16 = vpop.eup %9555  ;;  %v5097_v42 = vadd.f32 1.0, %v9554_v47  ;;  %9581 = vpow2.f32 %v8227_v7 }
 0xc9f   : > { %v9558_v34 = vpop.eup %9557  ;;  %v11837_v55 = vadd.f32 %v11834_v17, %v5137_v15  ;;  %v5136_v63 = vmul.f32 %v11828_v27, %v9556_v16 }
 0xca0   : > { %v9560_v8 = vpop.eup %9559  ;;  %9583 = vrcp.f32 %v5097_v42  ;;  %v5096_v10 = vadd.f32 1.0, %v9558_v34 }
 0xca1   : > { %v9562_v0 = vpop.eup %9561  ;;  %5202 = vrot.lane.b32.xlu1 %v11837_v55, %s10066_s19  ;;  %v11843_v60 = vadd.f32 %v11834_v17, %v5136_v63  ;;  %v5139_v11 = vmul.f32 %v11828_v27, %v9560_v8 }
 0xca2   : > { %v9564_v52 = vpop.eup %9563  ;;  %9585 = vrcp.f32 %v5096_v10  ;;  %v5099_v6 = vadd.f32 1.0, %v9562_v0 }
 0xca3   : > { %v9566_v38 = vpop.eup %9565  ;;  %5200 = vrot.lane.b32.xlu0 %v11843_v60, %s10066_s19  ;;  %v11849_v40 = vadd.f32 %v11834_v17, %v5139_v11  ;;  %v5138_v45 = vmul.f32 %v11828_v27, %v9564_v52 }
 0xca4   : > { %v9568_v58 = vpop.eup %9567  ;;  %9587 = vrcp.f32 %v5099_v6  ;;  %v5098_v54 = vadd.f32 1.0, %v9566_v38 }
 0xca5   : > { %v9570_v9 = vpop.eup %9569  ;;  %5206 = vrot.lane.b32.xlu1 %v11849_v40, %s10066_s19  ;;  %v11855_v23 = vadd.f32 %v11834_v17, %v5138_v45  ;;  %v5141_v35 = vmul.f32 %v11828_v27, %v9568_v58 }
 0xca6   : > { %v9572_v13 = vpop.eup %9571  ;;  %9589 = vrcp.f32 %v5098_v54  ;;  %v5101_v25 = vadd.f32 1.0, %v9570_v9 }
 0xca7   : > { %v9574_v20 = vpop.eup %9573  ;;  %5204 = vrot.lane.b32.xlu0 %v11855_v23, %s10066_s19  ;;  %v11861_v1 = vadd.f32 %v11834_v17, %v5141_v35  ;;  %v5140_v56 = vmul.f32 %v11828_v27, %v9572_v13 }
 0xca8   : > { %v9576_v36 = vpop.eup %9575  ;;  %9591 = vrcp.f32 %v5101_v25  ;;  %v5100_v19 = vadd.f32 1.0, %v9574_v20  ;;  %v10072_v25 = vmov 5  }
 0xca9   : > { %v9578_v30 = vpop.eup %9577  ;;  %5210 = vrot.lane.b32.xlu1 %v11861_v1, %s10066_s19  ;;  %v11867_v21 = vadd.f32 %v11834_v17, %v5140_v56  ;;  %v5143_v37 = vmul.f32 %v11828_v27, %v9576_v36  ;;  %9145 = vset.pattern.permute.xlu0 %v10072_v25 }
 0xcaa   : > { %v9580_v3 = vpop.eup %9579  ;;  %9593 = vrcp.f32 %v5100_v19  ;;  %v5103_v24 = vadd.f32 1.0, %v9578_v30  ;;  %9146 = vset.pattern.permute.xlu1 %v10072_v25 }
 0xcab   : > { %v9582_v44 = vpop.eup %9581  ;;  %5208 = vrot.lane.b32.xlu0 %v11867_v21, %s10066_s19  ;;  %v11873_v59 = vadd.f32 %v11834_v17, %v5143_v37  ;;  %v5142_v41 = vmul.f32 %v11828_v27, %v9580_v3 }
 0xcac   : > { %9595 = vrcp.f32 %v5103_v24  ;;  %v5102_v22 = vadd.f32 1.0, %v9582_v44 }
 0xcad   : > { %v9584_v62 = vpop.eup %9583  ;;  %5214 = vrot.lane.b32.xlu1 %v11873_v59, %s10066_s19  ;;  %v11879_v31 = vadd.f32 %v11834_v17, %v5142_v41 }
 0xcae   : > { %9597 = vrcp.f32 %v5102_v22  ;;  %v5145_v43 = vmul.f32 %v11828_v27, %v9584_v62 }
 0xcaf   : > { %v9586_v46 = vpop.eup %9585  ;;  %5212 = vrot.lane.b32.xlu0 %v11879_v31, %s10066_s19 }
 0xcb0   : > { %v11885_v48 = vadd.f32 %v11834_v17, %v5145_v43  ;;  %v5144_v7 = vmul.f32 %v11828_v27, %v9586_v46 }
 0xcb1   : > { %v9588_v47 = vpop.eup %9587 }
 0xcb2   : > { %5218 = vrot.lane.b32.xlu1 %v11885_v48, %s10066_s19  ;;  %v11891_v15 = vadd.f32 %v11834_v17, %v5144_v7  ;;  %v5147_v16 = vmul.f32 %v11828_v27, %v9588_v47 }
 0xcb3   : > { %v9590_v42 = vpop.eup %9589 }
 0xcb4   : > { %5216 = vrot.lane.b32.xlu0 %v11891_v15, %s10066_s19  ;;  %v11897_v34 = vadd.f32 %v11834_v17, %v5147_v16  ;;  %v5146_v63 = vmul.f32 %v11828_v27, %v9590_v42 }
 0xcb5   : > { %v9592_v8 = vpop.eup %9591 }
 0xcb6   : > { %5222 = vrot.lane.b32.xlu1 %v11897_v34, %s10066_s19  ;;  %v11903_v10 = vadd.f32 %v11834_v17, %v5146_v63  ;;  %v5149_v0 = vmul.f32 %v11828_v27, %v9592_v8 }
 0xcb7   : > { %v9594_v11 = vpop.eup %9593 }
 0xcb8   : > { %5220 = vrot.lane.b32.xlu0 %v11903_v10, %s10066_s19  ;;  %v11909_v52 = vadd.f32 %v11834_v17, %v5149_v0  ;;  %v5148_v6 = vmul.f32 %v11828_v27, %v9594_v11 }
 0xcb9   : > { %v9596_v38 = vpop.eup %9595 }
 0xcba   : > { %5226 = vrot.lane.b32.xlu1 %v11909_v52, %s10066_s19  ;;  %v11915_v45 = vadd.f32 %v11834_v17, %v5148_v6  ;;  %v5151_v58 = vmul.f32 %v11828_v27, %v9596_v38 }
 0xcbb   : > { %v9598_v54 = vpop.eup %9597 }
 0xcbc   : > { %5224 = vrot.lane.b32.xlu0 %v11915_v45, %s10066_s19  ;;  %v11921_v9 = vadd.f32 %v11834_v17, %v5151_v58  ;;  %v5150_v35 = vmul.f32 %v11828_v27, %v9598_v54 }
 0xcbe   : > { %5230 = vrot.lane.b32.xlu1 %v11921_v9, %s10066_s19  ;;  %v11927_v13 = vadd.f32 %v11834_v17, %v5150_v35 }
 0xcc0   : > { %5228 = vrot.lane.b32.xlu0 %v11927_v13, %s10066_s19 }
 0xd13   : > { %v5203_v20 = vpop.permute.xlu1 %5202 }
 0xd14   : > { %v5249_v56 = vmul.f32 %v5203_v20, %v11837_v55 }
 0xd15   : > { %v5201_v36 = vpop.permute.xlu0 %5200 }
 0xd16   : > { %v5248_v19 = vmul.f32 %v5201_v36, %v11843_v60  ;;  %5282 = vrot.lane.b32.xlu1 %v5249_v56, %s10068_s20  ;;  %v9991_v36 = vld [vmem:[%s10148_s21 + $0x8] sm:$0xff] }
 0xd17   : > { %v5207_v27 = vpop.permute.xlu1 %5206 }
 0xd18   : > { %v5251_v30 = vmul.f32 %v5207_v27, %v11849_v40  ;;  %5280 = vrot.lane.b32.xlu0 %v5248_v19, %s10068_s20  ;;  %v9992_v19 = vld [vmem:[%s10148_s21] sm:$0xff]  ;;  %v5169_v27 = vmul.f32 %v11837_v55, %v11588_v32  ;;  %v5170_v32 = vmul.f32 %v11855_v23, %v11603_v14 }
 0xd19   : > { %v5205_v17 = vpop.permute.xlu0 %5204 }
 0xd1a   : > { %v5250_v37 = vmul.f32 %v5205_v17, %v11855_v23  ;;  %5286 = vrot.lane.b32.xlu1 %v5251_v30, %s10068_s20 }
 0xd1b   : > { %v5211_v3 = vpop.permute.xlu1 %5210 }
 0xd1c   : > { %v5253_v24 = vmul.f32 %v5211_v3, %v11861_v1  ;;  %5284 = vrot.lane.b32.xlu0 %v5250_v37, %s10068_s20  ;;  %v5168_v37 = vmul.f32 %v11843_v60, %v11593_v5 }
 0xd1d   : > { %v5209_v44 = vpop.permute.xlu0 %5208 }
 0xd1e   : > { %v5252_v41 = vmul.f32 %v5209_v44, %v11867_v21  ;;  %5290 = vrot.lane.b32.xlu1 %v5253_v24, %s10068_s20  ;;  %v5171_v44 = vmul.f32 %v11849_v40, %v11598_v53 }
 0xd1f   : > { %v5215_v22 = vpop.permute.xlu1 %5214 }
 0xd20   : > { %v5255_v62 = vmul.f32 %v5215_v22, %v11873_v59  ;;  %5288 = vrot.lane.b32.xlu0 %v5252_v41, %s10068_s20 }
 0xd21   : > { %v5213_v43 = vpop.permute.xlu0 %5212 }
 0xd22   : > { %v5254_v46 = vmul.f32 %v5213_v43, %v11879_v31  ;;  %5294 = vrot.lane.b32.xlu1 %v5255_v62, %s10068_s20  ;;  %v5173_v43 = vmul.f32 %v11861_v1, %v11608_v51 }
 0xd24   : > { %v5219_v7 = vpop.permute.xlu1 %5218  ;;  %5292 = vrot.lane.b32.xlu0 %v5254_v46, %s10068_s20 }
 0xd25   : > { %v5257_v47 = vmul.f32 %v5219_v7, %v11885_v48  ;;  %v5172_v7 = vmul.f32 %v11867_v21, %v11613_v12 }
 0xd26   : > { %v5217_v16 = vpop.permute.xlu0 %5216 }
 0xd27   : > { %v5256_v42 = vmul.f32 %v5217_v16, %v11891_v15  ;;  %5298 = vrot.lane.b32.xlu1 %v5257_v47, %s10068_s20  ;;  %v5175_v16 = vmul.f32 %v11873_v59, %v11618_v28 }
 0xd28   : > { %v5223_v63 = vpop.permute.xlu1 %5222 }
 0xd29   : > { %v5259_v8 = vmul.f32 %v5223_v63, %v11897_v34  ;;  %5296 = vrot.lane.b32.xlu0 %v5256_v42, %s10068_s20  ;;  %v5174_v63 = vmul.f32 %v11879_v31, %v11623_v4  ;;  %v5176_v4 = vmul.f32 %v11891_v15, %v11635_v18  ;;  %v5178_v18 = vmul.f32 %v11903_v10, %v11647_v39 }
 0xd2a   : > { %v5221_v0 = vpop.permute.xlu0 %5220  ;;  %v5180_v39 = vmul.f32 %v11915_v45, %v11659_v49  ;;  %v5182_v49 = vmul.f32 %v11927_v13, %v11671_v2 }
 0xd2b   : > { %v5258_v11 = vmul.f32 %v5221_v0, %v11903_v10  ;;  %5302 = vrot.lane.b32.xlu1 %v5259_v8, %s10068_s20 }
 0xd2c   : > { %v5227_v6 = vpop.permute.xlu1 %5226 }
 0xd2d   : > { %v5261_v38 = vmul.f32 %v5227_v6, %v11909_v52  ;;  %5300 = vrot.lane.b32.xlu0 %v5258_v11, %s10068_s20  ;;  %v5177_v11 = vmul.f32 %v11885_v48, %v11629_v50  ;;  %v5179_v50 = vmul.f32 %v11897_v34, %v11641_v61  ;;  %v5181_v61 = vmul.f32 %v11909_v52, %v11653_v33 }
 0xd2e   : > { %v5225_v58 = vpop.permute.xlu0 %5224  ;;  %v5183_v33 = vmul.f32 %v11921_v9, %v11665_v57 }
 0xd2f   : > { %v5260_v54 = vmul.f32 %v5225_v58, %v11915_v45  ;;  %5306 = vrot.lane.b32.xlu1 %v5261_v38, %s10068_s20 }
 0xd30   : > { %v5231_v35 = vpop.permute.xlu1 %5230 }
 0xd31   : > { %v5263_v25 = vmul.f32 %v5231_v35, %v11921_v9  ;;  %5304 = vrot.lane.b32.xlu0 %v5260_v54, %s10068_s20 }
 0xd32   : > { %v5229_v20 = vpop.permute.xlu0 %5228 }
 0xd33   : > { %v5262_v56 = vmul.f32 %v5229_v20, %v11927_v13  ;;  %5310 = vrot.lane.b32.xlu1 %v5263_v25, %s10068_s20 }
 0xd35   : > { %5308 = vrot.lane.b32.xlu0 %v5262_v56, %s10068_s20 }
 0xd37   : > { %860 = vperm.xlu1 %9146, %v9991_v36  }
 0xd39   : > { %857 = vperm.xlu0 %9145, %v9992_v19  }
 0xd88   : > { %v5283_v30 = vpop.permute.xlu1 %5282 }
 0xd89   : > { %v11967_v17 = vadd.f32 %v5283_v30, %v5169_v27 }
 0xd8a   : > { %v5281_v3 = vpop.permute.xlu0 %5280 }
 0xd8b   : > { %9599 = vtanh.f32 %v11967_v17  ;;  %v11972_v24 = vadd.f32 %v5281_v3, %v5168_v37 }
 0xd8c   : > { %v5287_v41 = vpop.permute.xlu1 %5286 }
 0xd8d   : > { %9601 = vtanh.f32 %v11972_v24  ;;  %v11977_v22 = vadd.f32 %v5287_v41, %v5171_v44 }
 0xd8e   : > { %v5285_v62 = vpop.permute.xlu0 %5284 }
 0xd8f   : > { %9603 = vtanh.f32 %v11977_v22  ;;  %v11982_v5 = vadd.f32 %v5285_v62, %v5170_v32 }
 0xd90   : > { %v5291_v46 = vpop.permute.xlu1 %5290 }
 0xd91   : > { %9605 = vtanh.f32 %v11982_v5  ;;  %v11987_v53 = vadd.f32 %v5291_v46, %v5173_v43 }
 0xd92   : > { %v5289_v47 = vpop.permute.xlu0 %5288 }
 0xd93   : > { %9607 = vtanh.f32 %v11987_v53  ;;  %v11992_v14 = vadd.f32 %v5289_v47, %v5172_v7 }
 0xd94   : > { %v5295_v42 = vpop.permute.xlu1 %5294 }
 0xd95   : > { %9609 = vtanh.f32 %v11992_v14  ;;  %v11997_v51 = vadd.f32 %v5295_v42, %v5175_v16 }
 0xd96   : > { %v5293_v8 = vpop.permute.xlu0 %5292 }
 0xd97   : > { %9611 = vtanh.f32 %v11997_v51  ;;  %v12002_v12 = vadd.f32 %v5293_v8, %v5174_v63 }
 0xd98   : > { %v9600_v0 = vpop.eup %9599 }
 0xd99   : > { %9613 = vtanh.f32 %v12002_v12  ;;  %v5299_v28 = vpop.permute.xlu1 %5298  ;;  %5378 = vrot.lane.b32.xlu1 %v9600_v0, %s10066_s19 }
 0xd9a   : > { %v9602_v6 = vpop.eup %9601  ;;  %v12008_v38 = vadd.f32 %v5299_v28, %v5177_v11 }
 0xd9b   : > { %v5297_v58 = vpop.permute.xlu0 %5296  ;;  %5376 = vrot.lane.b32.xlu0 %v9602_v6, %s10066_s19 }
 0xd9c   : > { %v9604_v54 = vpop.eup %9603  ;;  %9615 = vtanh.f32 %v12008_v38  ;;  %v12014_v35 = vadd.f32 %v5297_v58, %v5176_v4 }
 0xd9d   : > { %v5303_v25 = vpop.permute.xlu1 %5302  ;;  %5382 = vrot.lane.b32.xlu1 %v9604_v54, %s10066_s19  ;;  %v9993_v54 = vld [vmem:[%s10148_s21 + $0x10] sm:$0xff] }
 0xd9e   : > { %v9606_v20 = vpop.eup %9605  ;;  %9617 = vtanh.f32 %v12014_v35  ;;  %v12020_v56 = vadd.f32 %v5303_v25, %v5179_v50  ;;  %v9994_v50 = vld [vmem:[%s10148_s21 + $0x18] sm:$0xff]  ;;  %v9995_v25 = vld [vmem:[%s10148_s21 + $0x20] sm:$0xff] }
 0xd9f   : > { %v5301_v36 = vpop.permute.xlu0 %5300  ;;  %5380 = vrot.lane.b32.xlu0 %v9606_v20, %s10066_s19  ;;  %v9996_v20 = vld [vmem:[%s10148_s21 + $0x28] sm:$0xff] }
 0xda0   : > { %v9608_v19 = vpop.eup %9607  ;;  %9619 = vtanh.f32 %v12020_v56  ;;  %v12026_v27 = vadd.f32 %v5301_v36, %v5178_v18  ;;  %v9997_v18 = vld [vmem:[%s10148_s21 + $0x30] sm:$0xff]  ;;  %v9998_v36 = vld [vmem:[%s10148_s21 + $0x38] sm:$0xff] }
 0xda1   : > { %v5307_v30 = vpop.permute.xlu1 %5306  ;;  %5386 = vrot.lane.b32.xlu1 %v9608_v19, %s10066_s19  ;;  %v9999_v19 = vld [vmem:[%s10148_s21 + $0x40] sm:$0xff] }
 0xda2   : > { %v9610_v37 = vpop.eup %9609  ;;  %9621 = vtanh.f32 %v12026_v27  ;;  %v12032_v3 = vadd.f32 %v5307_v30, %v5181_v61  ;;  %v10000_v61 = vld [vmem:[%s10148_s21 + $0x48] sm:$0xff]  ;;  %v10001_v30 = vld [vmem:[%s10148_s21 + $0x50] sm:$0xff] }
 0xda3   : > { %v5305_v44 = vpop.permute.xlu0 %5304  ;;  %5384 = vrot.lane.b32.xlu0 %v9610_v37, %s10066_s19  ;;  %v10002_v37 = vld [vmem:[%s10148_s21 + $0x58] sm:$0xff] }
 0xda4   : > { %v9612_v41 = vpop.eup %9611  ;;  %9623 = vtanh.f32 %v12032_v3  ;;  %v12038_v32 = vadd.f32 %v5305_v44, %v5180_v39  ;;  %v10003_v39 = vld [vmem:[%s10148_s21 + $0x60] sm:$0xff]  ;;  %v10004_v44 = vld [vmem:[%s10148_s21 + $0x68] sm:$0xff] }
 0xda5   : > { %v5311_v62 = vpop.permute.xlu1 %5310  ;;  %5390 = vrot.lane.b32.xlu1 %v9612_v41, %s10066_s19  ;;  %v10005_v41 = vld [vmem:[%s10148_s21 + $0x70] sm:$0xff] }
 0xda6   : > { %v9614_v43 = vpop.eup %9613  ;;  %9625 = vtanh.f32 %v12038_v32  ;;  %v12044_v46 = vadd.f32 %v5311_v62, %v5183_v33  ;;  %v10006_v33 = vld [vmem:[%s10148_s21 + $0x78] sm:$0xff] }
 0xda7   : > { %v5309_v7 = vpop.permute.xlu0 %5308  ;;  %5388 = vrot.lane.b32.xlu0 %v9614_v43, %s10066_s19 }
 0xda8   : > { %9627 = vtanh.f32 %v12044_v46  ;;  %v12050_v47 = vadd.f32 %v5309_v7, %v5182_v49 }
 0xda9   : > { %v9616_v16 = vpop.eup %9615 }
 0xdaa   : > { %9629 = vtanh.f32 %v12050_v47  ;;  %5394 = vrot.lane.b32.xlu1 %v9616_v16, %s10066_s19 }
 0xdab   : > { %v9618_v57 = vpop.eup %9617 }
 0xdac   : > { %5392 = vrot.lane.b32.xlu0 %v9618_v57, %s10066_s19 }
 0xdad   : > { %v9620_v42 = vpop.eup %9619 }
 0xdae   : > { %5398 = vrot.lane.b32.xlu1 %v9620_v42, %s10066_s19 }
 0xdaf   : > { %v9622_v63 = vpop.eup %9621 }
 0xdb0   : > { %5396 = vrot.lane.b32.xlu0 %v9622_v63, %s10066_s19 }
 0xdb1   : > { %v9624_v2 = vpop.eup %9623 }
 0xdb2   : > { %5402 = vrot.lane.b32.xlu1 %v9624_v2, %s10066_s19  ;;  %v861_v8 = vpop.permute.xlu1 %860 }
 0xdb3   : > { %v9626_v0 = vpop.eup %9625  ;;  %vm905_vm10 = vcmp.eq.s32.totalorder %v861_v8, %v10229_v26 }
 0xdb4   : > { %5400 = vrot.lane.b32.xlu0 %v9626_v0, %s10066_s19  ;;  %v858_v11 = vpop.permute.xlu0 %857  ;;  %v7907_v6 = vsel %vm905_vm10, 1.0, %v10065_v29 }
 0xdb5   : > { %v9628_v28 = vpop.eup %9627  ;;  %vm904_vm11 = vcmp.eq.s32.totalorder %v858_v11, %v10229_v26 }
 0xdb6   : > { %5406 = vrot.lane.b32.xlu1 %v9628_v28, %s10066_s19  ;;  %v7906_v4 = vsel %vm904_vm11, 1.0, %v10065_v29 }
 0xdb7   : > { %v9630_v58 = vpop.eup %9629  ;;  %8780 = vmatprep.mubr.msk.f32.mxu0 %vm1159_vm0, %v7906_v4 }
 0xdb8   : > { %5404 = vrot.lane.b32.xlu0 %v9630_v58, %s10066_s19  ;;  %8781 = vmatmul.mubr.msk.f32.gmra.mxu0 %vm1159_vm0, %v7907_v6 }
 0xdba   : > { %863 = vperm.xlu1 %9146, %v9993_v54  }
 0xdbc   : > { %866 = vperm.xlu0 %9145, %v9994_v50  }
 0xdbe   : > { %869 = vperm.xlu1 %9146, %v9995_v25  }
 0xdc0   : > { %872 = vperm.xlu0 %9145, %v9996_v20  }
 0xdc2   : > { %875 = vperm.xlu1 %9146, %v9997_v18  }
 0xdc4   : > { %878 = vperm.xlu0 %9145, %v9998_v36  }
 0xdc6   : > { %881 = vperm.xlu1 %9146, %v9999_v19  }
 0xdc8   : > { %884 = vperm.xlu0 %9145, %v10000_v61  }
 0xdca   : > { %887 = vperm.xlu1 %9146, %v10001_v30  }
 0xdcc   : > { %890 = vperm.xlu0 %9145, %v10002_v37  }
 0xdce   : > { %893 = vperm.xlu1 %9146, %v10003_v39  }
 0xdd0   : > { %896 = vperm.xlu0 %9145, %v10004_v44  }
 0xdd2   : > { %899 = vperm.xlu1 %9146, %v10005_v41  }
 0xdd4   : > { %902 = vperm.xlu0 %9145, %v10006_v33  }
 0xe0b   : > { %v5379_v62 = vpop.permute.xlu1 %5378 }
 0xe0c   : > { %v5425_v43 = vmul.f32 %v5379_v62, %v11837_v55 }
 0xe0d   : > { %v5377_v49 = vpop.permute.xlu0 %5376 }
 0xe0e   : > { %v5424_v7 = vmul.f32 %v5377_v49, %v11843_v60  ;;  %5474 = vrot.lane.b32.xlu0 %v5425_v43, %s10068_s20 }
 0xe0f   : > { %v5383_v16 = vpop.permute.xlu1 %5382 }
 0xe10   : > { %v5427_v57 = vmul.f32 %v5383_v16, %v11849_v40  ;;  %5472 = vrot.lane.b32.xlu1 %v5424_v7, %s10068_s20 }
 0xe11   : > { %v5381_v42 = vpop.permute.xlu0 %5380 }
 0xe12   : > { %v5426_v63 = vmul.f32 %v5381_v42, %v11855_v23  ;;  %5478 = vrot.lane.b32.xlu0 %v5427_v57, %s10068_s20 }
 0xe13   : > { %v5387_v2 = vpop.permute.xlu1 %5386 }
 0xe14   : > { %v5429_v8 = vmul.f32 %v5387_v2, %v11861_v1  ;;  %5476 = vrot.lane.b32.xlu1 %v5426_v63, %s10068_s20 }
 0xe15   : > { %v5385_v55 = vpop.permute.xlu0 %5384 }
 0xe16   : > { %v5428_v60 = vmul.f32 %v5385_v55, %v11867_v21  ;;  %5482 = vrot.lane.b32.xlu0 %v5429_v8, %s10068_s20 }
 0xe17   : > { %v5391_v0 = vpop.permute.xlu1 %5390 }
 0xe18   : > { %v5431_v40 = vmul.f32 %v5391_v0, %v11873_v59  ;;  %5480 = vrot.lane.b32.xlu1 %v5428_v60, %s10068_s20 }
 0xe19   : > { %v5389_v11 = vpop.permute.xlu0 %5388 }
 0xe1a   : > { %v5430_v23 = vmul.f32 %v5389_v11, %v11879_v31  ;;  %5486 = vrot.lane.b32.xlu0 %v5431_v40, %s10068_s20 }
 0xe1c   : > { %v5395_v28 = vpop.permute.xlu1 %5394  ;;  %5484 = vrot.lane.b32.xlu1 %v5430_v23, %s10068_s20 }
 0xe1d   : > { %v5433_v1 = vmul.f32 %v5395_v28, %v11885_v48 }
 0xe1e   : > { %v5393_v6 = vpop.permute.xlu0 %5392 }
 0xe1f   : > { %v5432_v21 = vmul.f32 %v5393_v6, %v11891_v15  ;;  %5490 = vrot.lane.b32.xlu0 %v5433_v1, %s10068_s20  ;;  %v10007_v1 = vld [vmem:[%s13294_s4 + $0x18] sm:$0xff] }
 0xe20   : > { %v5399_v4 = vpop.permute.xlu1 %5398 }
 0xe21   : > { %v5435_v59 = vmul.f32 %v5399_v4, %v11897_v34  ;;  %5488 = vrot.lane.b32.xlu1 %v5432_v21, %s10068_s20  ;;  %v10008_v21 = vld [vmem:[%s13294_s4 + $0x10] sm:$0xff] }
 0xe22   : > { %v5397_v58 = vpop.permute.xlu0 %5396 }
 0xe23   : > { %v5434_v31 = vmul.f32 %v5397_v58, %v11903_v10  ;;  %5494 = vrot.lane.b32.xlu0 %v5435_v59, %s10068_s20  ;;  %v10009_v59 = vld [vmem:[%s13294_s4 + $0x8] sm:$0xff] }
 0xe24   : > { %v5403_v54 = vpop.permute.xlu1 %5402 }
 0xe25   : > { %v5437_v50 = vmul.f32 %v5403_v54, %v11909_v52  ;;  %5492 = vrot.lane.b32.xlu1 %v5434_v31, %s10068_s20  ;;  %v10010_v31 = vld [vmem:[%s13294_s4] sm:$0xff] }
 0xe26   : > { %v5401_v48 = vpop.permute.xlu0 %5400 }
 0xe27   : > { %v5436_v15 = vmul.f32 %v5401_v48, %v11915_v45  ;;  %5498 = vrot.lane.b32.xlu0 %v5437_v50, %s10068_s20 }
 0xe28   : > { %v5407_v25 = vpop.permute.xlu1 %5406 }
 0xe29   : > { %v5439_v34 = vmul.f32 %v5407_v25, %v11921_v9  ;;  %5496 = vrot.lane.b32.xlu1 %v5436_v15, %s10068_s20 }
 0xe2a   : > { %v5405_v20 = vpop.permute.xlu0 %5404 }
 0xe2b   : > { %v5438_v10 = vmul.f32 %v5405_v20, %v11927_v13  ;;  %5502 = vrot.lane.b32.xlu0 %v5439_v34, %s10068_s20 }
 0xe2d   : > { %5500 = vrot.lane.b32.xlu1 %v5438_v10, %s10068_s20 }
 0xe35   : > { %v864_v52 = vpop.permute.xlu1 %863 }
 0xe36   : > { %vm906_vm12 = vcmp.eq.s32.totalorder %v864_v52, %v10229_v26 }
 0xe37   : > { %v7908_v18 = vsel %vm906_vm12, 1.0, %v10065_v29  ;;  %v867_v45 = vpop.permute.xlu0 %866 }
 0xe38   : > { %vm907_vm13 = vcmp.eq.s32.totalorder %v867_v45, %v10229_v26  ;;  %8783 = vmatprep.mubr.msk.f32.mxu0 %vm1159_vm0, %v7908_v18 }
 0xe39   : > { %v7909_v9 = vsel %vm907_vm13, 1.0, %v10065_v29  ;;  %v870_v36 = vpop.permute.xlu1 %869 }
 0xe3a   : > { %vm908_vm14 = vcmp.eq.s32.totalorder %v870_v36, %v10229_v26  ;;  %8784 = vmatmul.mubr.msk.f32.gmra.mxu0 %vm1159_vm0, %v7909_v9 }
 0xe3b   : > { %v7910_v13 = vsel %vm908_vm14, 1.0, %v10065_v29  ;;  %v873_v19 = vpop.permute.xlu0 %872 }
 0xe3c   : > { %vm909_vm15 = vcmp.eq.s32.totalorder %v873_v19, %v10229_v26  ;;  %8786 = vmatprep.mubr.msk.f32.mxu0 %vm1159_vm0, %v7910_v13 }
 0xe3d   : > { %v7911_v61 = vsel %vm909_vm15, 1.0, %v10065_v29  ;;  %v876_v30 = vpop.permute.xlu1 %875 }
 0xe3e   : > { %vm910_vm1 = vcmp.eq.s32.totalorder %v876_v30, %v10229_v26  ;;  %8787 = vmatmul.mubr.msk.f32.gmra.mxu0 %vm1159_vm0, %v7911_v61 }
 0xe3f   : > { %v7912_v37 = vsel %vm910_vm1, 1.0, %v10065_v29  ;;  %v879_v39 = vpop.permute.xlu0 %878 }
 0xe40   : > { %vm911_vm2 = vcmp.eq.s32.totalorder %v879_v39, %v10229_v26  ;;  %8789 = vmatprep.mubr.msk.f32.mxu0 %vm1159_vm0, %v7912_v37  ;;  %v12186_v39 = vld [vmem:[%s13293_s3] ss:$0 sm:$0xff] }
 0xe41   : > { %v7913_v44 = vsel %vm911_vm2, 1.0, %v10065_v29  ;;  %v882_v41 = vpop.permute.xlu1 %881 }
 0xe42   : > { %vm912_vm4 = vcmp.eq.s32.totalorder %v882_v41, %v10229_v26  ;;  %8790 = vmatmul.mubr.msk.f32.gmra.mxu0 %vm1159_vm0, %v7913_v44 }
 0xe43   : > { %v7914_v33 = vsel %vm912_vm4, 1.0, %v10065_v29  ;;  %v885_v62 = vpop.permute.xlu0 %884 }
 0xe44   : > { %vm913_vm5 = vcmp.eq.s32.totalorder %v885_v62, %v10229_v26  ;;  %8792 = vmatprep.mubr.msk.f32.mxu0 %vm1159_vm0, %v7914_v33 }
 0xe45   : > { %v7915_v43 = vsel %vm913_vm5, 1.0, %v10065_v29  ;;  %v888_v49 = vpop.permute.xlu1 %887 }
 0xe46   : > { %vm914_vm6 = vcmp.eq.s32.totalorder %v888_v49, %v10229_v26  ;;  %8793 = vmatmul.mubr.msk.f32.gmra.mxu0 %vm1159_vm0, %v7915_v43 }
 0xe47   : > { %v7916_v7 = vsel %vm914_vm6, 1.0, %v10065_v29  ;;  %v891_v16 = vpop.permute.xlu0 %890 }
 0xe48   : > { %vm915_vm7 = vcmp.eq.s32.totalorder %v891_v16, %v10229_v26  ;;  %8795 = vmatprep.mubr.msk.f32.mxu0 %vm1159_vm0, %v7916_v7 }
 0xe49   : > { %v7917_v57 = vsel %vm915_vm7, 1.0, %v10065_v29  ;;  %v894_v42 = vpop.permute.xlu1 %893 }
 0xe4a   : > { %vm916_vm8 = vcmp.eq.s32.totalorder %v894_v42, %v10229_v26  ;;  %8796 = vmatmul.mubr.msk.f32.gmra.mxu0 %vm1159_vm0, %v7917_v57 }
 0xe4b   : > { %v7918_v63 = vsel %vm916_vm8, 1.0, %v10065_v29  ;;  %v897_v2 = vpop.permute.xlu0 %896 }
 0xe4c   : > { %vm917_vm9 = vcmp.eq.s32.totalorder %v897_v2, %v10229_v26  ;;  %8798 = vmatprep.mubr.msk.f32.mxu0 %vm1159_vm0, %v7918_v63 }
 0xe4d   : > { %v7919_v8 = vsel %vm917_vm9, 1.0, %v10065_v29  ;;  %v900_v55 = vpop.permute.xlu1 %899 }
 0xe4e   : > { %vm918_vm10 = vcmp.eq.s32.totalorder %v900_v55, %v10229_v26  ;;  %8799 = vmatmul.mubr.msk.f32.gmra.mxu0 %vm1159_vm0, %v7919_v8 }
 0xe4f   : > { %v7920_v60 = vsel %vm918_vm10, 1.0, %v10065_v29  ;;  %v903_v0 = vpop.permute.xlu0 %902 }
 0xe50   : > { %vm919_vm11 = vcmp.eq.s32.totalorder %v903_v0, %v10229_v26  ;;  %8801 = vmatprep.mubr.msk.f32.mxu0 %vm1159_vm0, %v7920_v60 }
 0xe51   : > { %v7921_v40 = vsel %vm919_vm11, 1.0, %v10065_v29 }
 0xe52   : > { %8802 = vmatmul.mubr.msk.f32.gmra.mxu0 %vm1159_vm0, %v7921_v40 }
 0xe78   : > { %v8782_v45 = vpop.f32.mrf.mxu0 }
 0xe79   : > { %v2016_v44 = vadd.f32 %v12186_v39, %v8782_v45 }
 0xe7a   : > { %v2010_v9 = vpop.f32.mrf.mxu0 }
 0xe7b   : > { %v2011_v62 = vadd.f32 %v12186_v39, %v2010_v9 }
 0xe80   : > { %v5475_v11 = vpop.permute.xlu0 %5474 }
 0xe82   : > { %v5473_v23 = vpop.permute.xlu1 %5472 }
 0xe83   : > { %8988 = vmatprep.mubr.msk.f32.mxu1 %vm2875_vm3, %v5473_v23 }
 0xe84   : > { %8989 = vmatmul.mubr.msk.f32.vlgmr.msra.gmra.mxu1 %vm2875_vm3, %v5475_v11  ;;  %v5479_v28 = vpop.permute.xlu0 %5478 }
 0xe85   : > { %9013 = vmatpush3.msra.mxu1 %v10007_v1 }
 0xe86   : > { %v5477_v6 = vpop.permute.xlu1 %5476  ;;  %9014 = vmatprep.subr.mxu1 %v10008_v21 }
 0xe87   : > { %8991 = vmatprep.mubr.msk.f32.mxu1 %vm2875_vm3, %v5477_v6  ;;  %9015 = vmatpush3.msra.mxu1 %v10008_v21 }
 0xe88   : > { %8992 = vmatmul.mubr.msk.f32.gmra.mxu1 %vm2875_vm3, %v5479_v28  ;;  %v5483_v4 = vpop.permute.xlu0 %5482  ;;  %9016 = vmatprep.subr.mxu1 %v10009_v59 }
 0xe89   : > { %9017 = vmatpush3.msra.mxu1 %v10009_v59 }
 0xe8a   : > { %v5481_v58 = vpop.permute.xlu1 %5480  ;;  %9018 = vmatprep.subr.mxu1 %v10010_v31 }
 0xe8b   : > { %8994 = vmatprep.mubr.msk.f32.mxu1 %vm2875_vm3, %v5481_v58  ;;  %9019 = vmatpush3.msra.mxu1 %v10010_v31 }
 0xe8c   : > { %8995 = vmatmul.mubr.msk.f32.gmra.mxu1 %vm2875_vm3, %v5483_v4  ;;  %v5487_v54 = vpop.permute.xlu0 %5486  ;;  %9044 = vmatprep.subr.mxu1 %v10007_v1 }
 0xe8e   : > { %v5485_v50 = vpop.permute.xlu1 %5484 }
 0xe8f   : > { %8997 = vmatprep.mubr.msk.f32.mxu1 %vm2875_vm3, %v5485_v50 }
 0xe90   : > { %8998 = vmatmul.mubr.msk.f32.gmra.mxu1 %vm2875_vm3, %v5487_v54 }
 0xe91   : > { %v5491_v48 = vpop.permute.xlu0 %5490 }
 0xe93   : > { %v5489_v15 = vpop.permute.xlu1 %5488 }
 0xe94   : > { %9000 = vmatprep.mubr.msk.f32.mxu1 %vm2875_vm3, %v5489_v15 }
 0xe95   : > { %9001 = vmatmul.mubr.msk.f32.gmra.mxu1 %vm2875_vm3, %v5491_v48  ;;  %v5495_v25 = vpop.permute.xlu0 %5494 }
 0xe97   : > { %v5493_v34 = vpop.permute.xlu1 %5492 }
 0xe98   : > { %9003 = vmatprep.mubr.msk.f32.mxu1 %vm2875_vm3, %v5493_v34 }
 0xe99   : > { %9004 = vmatmul.mubr.msk.f32.gmra.mxu1 %vm2875_vm3, %v5495_v25  ;;  %v5499_v20 = vpop.permute.xlu0 %5498 }
 0xe9b   : > { %v5497_v10 = vpop.permute.xlu1 %5496 }
 0xe9c   : > { %9006 = vmatprep.mubr.msk.f32.mxu1 %vm2875_vm3, %v5497_v10 }
 0xe9d   : > { %9007 = vmatmul.mubr.msk.f32.gmra.mxu1 %vm2875_vm3, %v5499_v20  ;;  %v5503_v18 = vpop.permute.xlu0 %5502 }
 0xe9f   : > { %v5501_v52 = vpop.permute.xlu1 %5500 }
 0xea0   : > { %9009 = vmatprep.mubr.msk.f32.mxu1 %vm2875_vm3, %v5501_v52 }
 0xea1   : > { %9010 = vmatmul.mubr.msk.f32.gmra.mxu1 %vm2875_vm3, %v5503_v18 }
 0xefa   : > { %v8785_v36 = vpop.f32.mrf.mxu0 }
 0xefb   : > { %v2026_v7 = vadd.f32 %v12186_v39, %v8785_v36 }
 0xefc   : > { %v2020_v13 = vpop.f32.mrf.mxu0 }
 0xefd   : > { %v2021_v2 = vadd.f32 %v12186_v39, %v2020_v13 }
 0xefe   : > { %v8788_v19 = vpop.f32.mrf.mxu0 }
 0xeff   : > { %v2036_v0 = vadd.f32 %v12186_v39, %v8788_v19 }
 0xf00   : > { %v2030_v61 = vpop.f32.mrf.mxu0 }
 0xf01   : > { %v2031_v1 = vadd.f32 %v12186_v39, %v2030_v61 }
 0xf02   : > { %v8791_v30 = vpop.f32.mrf.mxu0 }
 0xf03   : > { %v2046_v59 = vadd.f32 %v12186_v39, %v8791_v30 }
 0xf04   : > { %v2040_v37 = vpop.f32.mrf.mxu0 }
 0xf05   : > { %v2041_v48 = vadd.f32 %v12186_v39, %v2040_v37 }
 0xf06   : > { %v8794_v41 = vpop.f32.mrf.mxu0 }
 0xf07   : > { %v2056_v18 = vadd.f32 %v12186_v39, %v8794_v41 }
 0xf08   : > { %v2050_v16 = vpop.f32.mrf.mxu0 }
 0xf09   : > { %v2051_v13 = vadd.f32 %v12186_v39, %v2050_v16 }
 0xf0a   : > { %v8797_v40 = vpop.f32.mrf.mxu0 }
 0xf0c   : > { %v2060_v58 = vpop.f32.mrf.mxu0 }
 0xf0e   : > { %v8800_v20 = vpop.f32.mrf.mxu0 }
 0xf10   : > { %v2070_v61 = vpop.f32.mrf.mxu0 }
 0xf12   : > { %v8803_v16 = vpop.f32.mrf.mxu0 }
 0xf44   : > { %v8990_v33 = vpop.f32.mrf.mxu1 }
 0xf45   : > { %v5682_v43 = vadd.f32 %v8990_v33, %v2016_v44  ;;  %v2066_v33 = vadd.f32 %v12186_v39, %v8797_v40 }
 0xf46   : > { %v5602_v49 = vpop.f32.mrf.mxu1 }
 0xf47   : > { %v8246_v57 = vmul.f32 -1.442695, %v5682_v43  ;;  %v5681_v42 = vadd.f32 %v5602_v49, %v2011_v62 }
 0xf48   : > { %v8993_v63 = vpop.f32.mrf.mxu1 }
 0xf49   : > { %9631 = vpow2.f32 %v8246_v57  ;;  %v8245_v8 = vmul.f32 -1.442695, %v5681_v42  ;;  %v5684_v55 = vadd.f32 %v8993_v63, %v2026_v7  ;;  %v2061_v57 = vadd.f32 %v12186_v39, %v2060_v58 }
 0xf4a   : > { %v5612_v60 = vpop.f32.mrf.mxu1 }
 0xf4b   : > { %9633 = vpow2.f32 %v8245_v8  ;;  %v8248_v11 = vmul.f32 -1.442695, %v5684_v55  ;;  %v5683_v23 = vadd.f32 %v5612_v60, %v2021_v2  ;;  %v2076_v60 = vadd.f32 %v12186_v39, %v8800_v20 }
 0xf4c   : > { %v8996_v28 = vpop.f32.mrf.mxu1 }
 0xf4d   : > { %9635 = vpow2.f32 %v8248_v11  ;;  %v8247_v6 = vmul.f32 -1.442695, %v5683_v23  ;;  %v5686_v21 = vadd.f32 %v8996_v28, %v2036_v0 }
 0xf4e   : > { %v5622_v4 = vpop.f32.mrf.mxu1 }
 0xf4f   : > { %9637 = vpow2.f32 %v8247_v6  ;;  %v8250_v31 = vmul.f32 -1.442695, %v5686_v21  ;;  %v5685_v54 = vadd.f32 %v5622_v4, %v2031_v1  ;;  %v2071_v1 = vadd.f32 %v12186_v39, %v2070_v61  ;;  %v2080_v4 = vpop.f32.mrf.mxu0 }
 0xf50   : > { %v8999_v50 = vpop.f32.mrf.mxu1  ;;  %v2081_v20 = vadd.f32 %v12186_v39, %v2080_v4 }
 0xf51   : > { %9639 = vpow2.f32 %v8250_v31  ;;  %v8249_v15 = vmul.f32 -1.442695, %v5685_v54  ;;  %v5688_v25 = vadd.f32 %v8999_v50, %v2046_v59  ;;  %v2086_v54 = vadd.f32 %v12186_v39, %v8803_v16  ;;  %v12207_v39 = vld [vmem:[%s13295_s5] ss:$0 sm:$0xff] }
 0xf52   : > { %v5632_v34 = vpop.f32.mrf.mxu1 }
 0xf53   : > { %9641 = vpow2.f32 %v8249_v15  ;;  %v8252_v10 = vmul.f32 -1.442695, %v5688_v25  ;;  %v5687_v52 = vadd.f32 %v5632_v34, %v2041_v48 }
 0xf55   : > { %9643 = vpow2.f32 %v8252_v10  ;;  %v8251_v45 = vmul.f32 -1.442695, %v5687_v52  ;;  %v9002_v9 = vpop.f32.mrf.mxu1 }
 0xf56   : > { %v9632_v36 = vpop.eup %9631  ;;  %v5690_v19 = vadd.f32 %v9002_v9, %v2056_v18 }
 0xf57   : > { %v5746_v30 = vadd.f32 1.0, %v9632_v36  ;;  %9645 = vpow2.f32 %v8251_v45  ;;  %v5642_v37 = vpop.f32.mrf.mxu1 }
 0xf58   : > { %v9634_v44 = vpop.eup %9633  ;;  %v8254_v62 = vmul.f32 -1.442695, %v5690_v19  ;;  %v5689_v43 = vadd.f32 %v5642_v37, %v2051_v13 }
 0xf59   : > { %9647 = vrcp.f32 %v5746_v30  ;;  %v5745_v49 = vadd.f32 1.0, %v9634_v44  ;;  %v9005_v7 = vpop.f32.mrf.mxu1 }
 0xf5a   : > { %v9636_v41 = vpop.eup %9635  ;;  %9649 = vpow2.f32 %v8254_v62  ;;  %v8253_v42 = vmul.f32 -1.442695, %v5689_v43  ;;  %v5692_v63 = vadd.f32 %v9005_v7, %v2066_v33 }
 0xf5b   : > { %9651 = vrcp.f32 %v5745_v49  ;;  %v5748_v2 = vadd.f32 1.0, %v9636_v41  ;;  %v5652_v8 = vpop.f32.mrf.mxu1  ;;  %v12213_v49 = vld [vmem:[%s13296_s6] ss:$0 sm:$0xff] }
 0xf5c   : > { %v9638_v55 = vpop.eup %9637  ;;  %9653 = vpow2.f32 %v8253_v42  ;;  %v8256_v0 = vmul.f32 -1.442695, %v5692_v63  ;;  %v5691_v40 = vadd.f32 %v5652_v8, %v2061_v57 }
 0xf5d   : > { %9655 = vrcp.f32 %v5748_v2  ;;  %v5747_v11 = vadd.f32 1.0, %v9638_v55  ;;  %v9008_v23 = vpop.f32.mrf.mxu1 }
 0xf5e   : > { %v9640_v28 = vpop.eup %9639  ;;  %9657 = vpow2.f32 %v8256_v0  ;;  %v8255_v6 = vmul.f32 -1.442695, %v5691_v40  ;;  %v5694_v21 = vadd.f32 %v9008_v23, %v2076_v60 }
 0xf5f   : > { %9659 = vrcp.f32 %v5747_v11  ;;  %v5750_v59 = vadd.f32 1.0, %v9640_v28  ;;  %v5662_v58 = vpop.f32.mrf.mxu1 }
 0xf60   : > { %v9642_v31 = vpop.eup %9641  ;;  %9661 = vpow2.f32 %v8255_v6  ;;  %v8258_v50 = vmul.f32 -1.442695, %v5694_v21  ;;  %v5693_v48 = vadd.f32 %v5662_v58, %v2071_v1 }
 0xf61   : > { %9663 = vrcp.f32 %v5750_v59  ;;  %v5749_v15 = vadd.f32 1.0, %v9642_v31  ;;  %v9011_v25 = vpop.f32.mrf.mxu1 }
 0xf62   : > { %v9644_v34 = vpop.eup %9643  ;;  %9665 = vpow2.f32 %v8258_v50  ;;  %v8257_v10 = vmul.f32 -1.442695, %v5693_v48  ;;  %v5696_v52 = vadd.f32 %v9011_v25, %v2086_v54 }
 0xf63   : > { %9667 = vrcp.f32 %v5749_v15  ;;  %v5752_v18 = vadd.f32 1.0, %v9644_v34  ;;  %v5672_v45 = vpop.f32.mrf.mxu1 }
 0xf64   : > { %v9646_v9 = vpop.eup %9645  ;;  %9669 = vpow2.f32 %v8257_v10  ;;  %v8260_v36 = vmul.f32 -1.442695, %v5696_v52  ;;  %v5695_v13 = vadd.f32 %v5672_v45, %v2081_v20 }
 0xf65   : > { %9671 = vrcp.f32 %v5752_v18  ;;  %v5751_v19 = vadd.f32 1.0, %v9646_v9 }
 0xf66   : > { %v9648_v61 = vpop.eup %9647  ;;  %9673 = vpow2.f32 %v8260_v36  ;;  %v8259_v30 = vmul.f32 -1.442695, %v5695_v13 }
 0xf67   : > { %v9650_v37 = vpop.eup %9649  ;;  %9675 = vrcp.f32 %v5751_v19  ;;  %v5794_v44 = vmul.f32 %v12207_v39, %v9648_v61 }
 0xf68   : > { %v9652_v33 = vpop.eup %9651  ;;  %v5754_v62 = vadd.f32 1.0, %v9650_v37  ;;  %9677 = vpow2.f32 %v8259_v30 }
 0xf69   : > { %v9654_v43 = vpop.eup %9653  ;;  %v12216_v7 = vadd.f32 %v12213_v49, %v5794_v44  ;;  %v5793_v41 = vmul.f32 %v12207_v39, %v9652_v33 }
 0xf6a   : > { %v9656_v57 = vpop.eup %9655  ;;  %9679 = vrcp.f32 %v5754_v62  ;;  %v5753_v42 = vadd.f32 1.0, %v9654_v43 }
 0xf6b   : > { %v9658_v63 = vpop.eup %9657  ;;  %5859 = vrot.lane.b32.xlu0 %v12216_v7, %s10066_s19  ;;  %v12222_v16 = vadd.f32 %v12213_v49, %v5793_v41  ;;  %v5796_v2 = vmul.f32 %v12207_v39, %v9656_v57 }
 0xf6c   : > { %v9660_v8 = vpop.eup %9659  ;;  %9681 = vrcp.f32 %v5753_v42  ;;  %v5756_v55 = vadd.f32 1.0, %v9658_v63 }
 0xf6d   : > { %v9662_v60 = vpop.eup %9661  ;;  %5857 = vrot.lane.b32.xlu1 %v12222_v16, %s10066_s19  ;;  %v12228_v0 = vadd.f32 %v12213_v49, %v5796_v2  ;;  %v5795_v40 = vmul.f32 %v12207_v39, %v9660_v8 }
 0xf6e   : > { %v9664_v11 = vpop.eup %9663  ;;  %9683 = vrcp.f32 %v5756_v55  ;;  %v5755_v23 = vadd.f32 1.0, %v9662_v60 }
 0xf6f   : > { %v9666_v28 = vpop.eup %9665  ;;  %5863 = vrot.lane.b32.xlu0 %v12228_v0, %s10066_s19  ;;  %v12234_v1 = vadd.f32 %v12213_v49, %v5795_v40  ;;  %v5798_v6 = vmul.f32 %v12207_v39, %v9664_v11 }
 0xf70   : > { %v9668_v21 = vpop.eup %9667  ;;  %9685 = vrcp.f32 %v5755_v23  ;;  %v5758_v4 = vadd.f32 1.0, %v9666_v28 }
 0xf71   : > { %v9670_v59 = vpop.eup %9669  ;;  %5861 = vrot.lane.b32.xlu1 %v12234_v1, %s10066_s19  ;;  %v12240_v58 = vadd.f32 %v12213_v49, %v5798_v6  ;;  %v5797_v31 = vmul.f32 %v12207_v39, %v9668_v21 }
 0xf72   : > { %v9672_v54 = vpop.eup %9671  ;;  %9687 = vrcp.f32 %v5758_v4  ;;  %v5757_v50 = vadd.f32 1.0, %v9670_v59  ;;  %v10073_v4 = vmov 6  }
 0xf73   : > { %v9674_v48 = vpop.eup %9673  ;;  %5867 = vrot.lane.b32.xlu0 %v12240_v58, %s10066_s19  ;;  %v12246_v15 = vadd.f32 %v12213_v49, %v5797_v31  ;;  %v5800_v25 = vmul.f32 %v12207_v39, %v9672_v54  ;;  %9147 = vset.pattern.permute.xlu1 %v10073_v4 }
 0xf74   : > { %v9676_v34 = vpop.eup %9675  ;;  %9689 = vrcp.f32 %v5757_v50  ;;  %v5760_v20 = vadd.f32 1.0, %v9674_v48  ;;  %9148 = vset.pattern.permute.xlu0 %v10073_v4 }
 0xf75   : > { %v9678_v10 = vpop.eup %9677  ;;  %5865 = vrot.lane.b32.xlu1 %v12246_v15, %s10066_s19  ;;  %v12252_v52 = vadd.f32 %v12213_v49, %v5800_v25  ;;  %v5799_v18 = vmul.f32 %v12207_v39, %v9676_v34 }
 0xf76   : > { %9691 = vrcp.f32 %v5760_v20  ;;  %v5759_v45 = vadd.f32 1.0, %v9678_v10 }
 0xf77   : > { %v9680_v9 = vpop.eup %9679  ;;  %5871 = vrot.lane.b32.xlu0 %v12252_v52, %s10066_s19  ;;  %v12258_v36 = vadd.f32 %v12213_v49, %v5799_v18 }
 0xf78   : > { %9693 = vrcp.f32 %v5759_v45  ;;  %v5802_v13 = vmul.f32 %v12207_v39, %v9680_v9 }
 0xf79   : > { %v9682_v19 = vpop.eup %9681  ;;  %5869 = vrot.lane.b32.xlu1 %v12258_v36, %s10066_s19 }
 0xf7a   : > { %v12264_v61 = vadd.f32 %v12213_v49, %v5802_v13  ;;  %v5801_v30 = vmul.f32 %v12207_v39, %v9682_v19 }
 0xf7b   : > { %v9684_v37 = vpop.eup %9683 }
 0xf7c   : > { %5875 = vrot.lane.b32.xlu0 %v12264_v61, %s10066_s19  ;;  %v12270_v44 = vadd.f32 %v12213_v49, %v5801_v30  ;;  %v5804_v33 = vmul.f32 %v12207_v39, %v9684_v37 }
 0xf7d   : > { %v9686_v62 = vpop.eup %9685 }
 0xf7e   : > { %5873 = vrot.lane.b32.xlu1 %v12270_v44, %s10066_s19  ;;  %v12276_v43 = vadd.f32 %v12213_v49, %v5804_v33  ;;  %v5803_v41 = vmul.f32 %v12207_v39, %v9686_v62 }
 0xf7f   : > { %v9688_v57 = vpop.eup %9687 }
 0xf80   : > { %5879 = vrot.lane.b32.xlu0 %v12276_v43, %s10066_s19  ;;  %v12282_v42 = vadd.f32 %v12213_v49, %v5803_v41  ;;  %v5806_v63 = vmul.f32 %v12207_v39, %v9688_v57 }
 0xf81   : > { %v9690_v2 = vpop.eup %9689 }
 0xf82   : > { %5877 = vrot.lane.b32.xlu1 %v12282_v42, %s10066_s19  ;;  %v12288_v8 = vadd.f32 %v12213_v49, %v5806_v63  ;;  %v5805_v55 = vmul.f32 %v12207_v39, %v9690_v2 }
 0xf83   : > { %v9692_v60 = vpop.eup %9691 }
 0xf84   : > { %5883 = vrot.lane.b32.xlu0 %v12288_v8, %s10066_s19  ;;  %v12294_v40 = vadd.f32 %v12213_v49, %v5805_v55  ;;  %v5808_v11 = vmul.f32 %v12207_v39, %v9692_v60 }
 0xf85   : > { %v9694_v23 = vpop.eup %9693 }
 0xf86   : > { %5881 = vrot.lane.b32.xlu1 %v12294_v40, %s10066_s19  ;;  %v12300_v28 = vadd.f32 %v12213_v49, %v5808_v11  ;;  %v5807_v6 = vmul.f32 %v12207_v39, %v9694_v23 }
 0xf88   : > { %5887 = vrot.lane.b32.xlu0 %v12300_v28, %s10066_s19  ;;  %v12306_v21 = vadd.f32 %v12213_v49, %v5807_v6 }
 0xf8a   : > { %5885 = vrot.lane.b32.xlu1 %v12306_v21, %s10066_s19 }
 0xfdd   : > { %v5860_v59 = vpop.permute.xlu0 %5859 }
 0xfde   : > { %v5906_v31 = vmul.f32 %v5860_v59, %v12216_v7 }
 0xfdf   : > { %v5858_v54 = vpop.permute.xlu1 %5857 }
 0xfe0   : > { %v5905_v50 = vmul.f32 %v5858_v54, %v12222_v16  ;;  %5939 = vrot.lane.b32.xlu0 %v5906_v31, %s10068_s20  ;;  %v10014_v54 = vld [vmem:[%s10148_s21 + $0x8] sm:$0xff] }
 0xfe1   : > { %v5864_v39 = vpop.permute.xlu0 %5863 }
 0xfe2   : > { %v5908_v48 = vmul.f32 %v5864_v39, %v12228_v0  ;;  %5937 = vrot.lane.b32.xlu1 %v5905_v50, %s10068_s20  ;;  %v10015_v50 = vld [vmem:[%s10148_s21] sm:$0xff]  ;;  %v5826_v39 = vmul.f32 %v12216_v7, %v11967_v17  ;;  %v5827_v17 = vmul.f32 %v12234_v1, %v11982_v5 }
 0xfe3   : > { %v5862_v49 = vpop.permute.xlu1 %5861 }
 0xfe4   : > { %v5907_v25 = vmul.f32 %v5862_v49, %v12234_v1  ;;  %5943 = vrot.lane.b32.xlu0 %v5908_v48, %s10068_s20 }
 0xfe5   : > { %v5868_v34 = vpop.permute.xlu0 %5867 }
 0xfe6   : > { %v5910_v20 = vmul.f32 %v5868_v34, %v12240_v58  ;;  %5941 = vrot.lane.b32.xlu1 %v5907_v25, %s10068_s20  ;;  %v5825_v25 = vmul.f32 %v12222_v16, %v11972_v24 }
 0xfe7   : > { %v5866_v10 = vpop.permute.xlu1 %5865 }
 0xfe8   : > { %v5909_v18 = vmul.f32 %v5866_v10, %v12246_v15  ;;  %5947 = vrot.lane.b32.xlu0 %v5910_v20, %s10068_s20  ;;  %v5828_v10 = vmul.f32 %v12228_v0, %v11977_v22 }
 0xfe9   : > { %v5872_v45 = vpop.permute.xlu0 %5871 }
 0xfea   : > { %v5912_v9 = vmul.f32 %v5872_v45, %v12252_v52  ;;  %5945 = vrot.lane.b32.xlu1 %v5909_v18, %s10068_s20 }
 0xfeb   : > { %v5870_v13 = vpop.permute.xlu1 %5869 }
 0xfec   : > { %v5911_v19 = vmul.f32 %v5870_v13, %v12258_v36  ;;  %5951 = vrot.lane.b32.xlu0 %v5912_v9, %s10068_s20  ;;  %v5830_v13 = vmul.f32 %v12240_v58, %v11987_v53 }
 0xfee   : > { %v5876_v30 = vpop.permute.xlu0 %5875  ;;  %5949 = vrot.lane.b32.xlu1 %v5911_v19, %s10068_s20 }
 0xfef   : > { %v5914_v37 = vmul.f32 %v5876_v30, %v12264_v61  ;;  %v5829_v30 = vmul.f32 %v12246_v15, %v11992_v14 }
 0xff0   : > { %v5874_v33 = vpop.permute.xlu1 %5873 }
 0xff1   : > { %v5913_v62 = vmul.f32 %v5874_v33, %v12270_v44  ;;  %5955 = vrot.lane.b32.xlu0 %v5914_v37, %s10068_s20  ;;  %v5832_v33 = vmul.f32 %v12252_v52, %v11997_v51 }
 0xff2   : > { %v5880_v41 = vpop.permute.xlu0 %5879 }
 0xff3   : > { %v5916_v57 = vmul.f32 %v5880_v41, %v12276_v43  ;;  %5953 = vrot.lane.b32.xlu1 %v5913_v62, %s10068_s20  ;;  %v5831_v41 = vmul.f32 %v12258_v36, %v12002_v12  ;;  %v5833_v12 = vmul.f32 %v12270_v44, %v12014_v35  ;;  %v5835_v35 = vmul.f32 %v12282_v42, %v12026_v27 }
 0xff4   : > { %v5878_v63 = vpop.permute.xlu1 %5877  ;;  %v5837_v27 = vmul.f32 %v12294_v40, %v12038_v32  ;;  %v5839_v32 = vmul.f32 %v12306_v21, %v12050_v47 }
 0xff5   : > { %v5915_v2 = vmul.f32 %v5878_v63, %v12282_v42  ;;  %5959 = vrot.lane.b32.xlu0 %v5916_v57, %s10068_s20 }
 0xff6   : > { %v5884_v55 = vpop.permute.xlu0 %5883 }
 0xff7   : > { %v5918_v60 = vmul.f32 %v5884_v55, %v12288_v8  ;;  %5957 = vrot.lane.b32.xlu1 %v5915_v2, %s10068_s20  ;;  %v5834_v2 = vmul.f32 %v12264_v61, %v12008_v38  ;;  %v5836_v38 = vmul.f32 %v12276_v43, %v12020_v56  ;;  %v5838_v56 = vmul.f32 %v12288_v8, %v12032_v3 }
 0xff8   : > { %v5882_v11 = vpop.permute.xlu1 %5881  ;;  %v5840_v3 = vmul.f32 %v12300_v28, %v12044_v46 }
 0xff9   : > { %v5917_v23 = vmul.f32 %v5882_v11, %v12294_v40  ;;  %5963 = vrot.lane.b32.xlu0 %v5918_v60, %s10068_s20 }
 0xffa   : > { %v5888_v6 = vpop.permute.xlu0 %5887 }
 0xffb   : > { %v5920_v4 = vmul.f32 %v5888_v6, %v12300_v28  ;;  %5961 = vrot.lane.b32.xlu1 %v5917_v23, %s10068_s20 }
 0xffc   : > { %v5886_v59 = vpop.permute.xlu1 %5885 }
 0xffd   : > { %v5919_v31 = vmul.f32 %v5886_v59, %v12306_v21  ;;  %5967 = vrot.lane.b32.xlu0 %v5920_v4, %s10068_s20 }
 0xfff   : > { %5965 = vrot.lane.b32.xlu1 %v5919_v31, %s10068_s20 }
0x1001   : > { %956 = vperm.xlu0 %9148, %v10014_v54  }
0x1003   : > { %953 = vperm.xlu1 %9147, %v10015_v50  }
0x1052   : > { %v5940_v48 = vpop.permute.xlu0 %5939 }
0x1053   : > { %v12346_v49 = vadd.f32 %v5940_v48, %v5826_v39 }
0x1054   : > { %v5938_v34 = vpop.permute.xlu1 %5937 }
0x1055   : > { %9695 = vtanh.f32 %v12346_v49  ;;  %v12351_v20 = vadd.f32 %v5938_v34, %v5825_v25 }
0x1056   : > { %v5944_v18 = vpop.permute.xlu0 %5943 }
0x1057   : > { %9697 = vtanh.f32 %v12351_v20  ;;  %v12356_v45 = vadd.f32 %v5944_v18, %v5828_v10 }
0x1058   : > { %v5942_v9 = vpop.permute.xlu1 %5941 }
0x1059   : > { %9699 = vtanh.f32 %v12356_v45  ;;  %v12361_v24 = vadd.f32 %v5942_v9, %v5827_v17 }
0x105a   : > { %v5948_v19 = vpop.permute.xlu0 %5947 }
0x105b   : > { %9701 = vtanh.f32 %v12361_v24  ;;  %v12366_v22 = vadd.f32 %v5948_v19, %v5830_v13 }
0x105c   : > { %v5946_v37 = vpop.permute.xlu1 %5945 }
0x105d   : > { %9703 = vtanh.f32 %v12366_v22  ;;  %v12371_v5 = vadd.f32 %v5946_v37, %v5829_v30 }
0x105e   : > { %v5952_v62 = vpop.permute.xlu0 %5951 }
0x105f   : > { %9705 = vtanh.f32 %v12371_v5  ;;  %v12376_v53 = vadd.f32 %v5952_v62, %v5832_v33 }
0x1060   : > { %v5950_v57 = vpop.permute.xlu1 %5949 }
0x1061   : > { %9707 = vtanh.f32 %v12376_v53  ;;  %v12381_v14 = vadd.f32 %v5950_v57, %v5831_v41 }
0x1062   : > { %v9696_v63 = vpop.eup %9695 }
0x1063   : > { %9709 = vtanh.f32 %v12381_v14  ;;  %v5956_v51 = vpop.permute.xlu0 %5955  ;;  %6035 = vrot.lane.b32.xlu0 %v9696_v63, %s10066_s19 }
0x1064   : > { %v9698_v55 = vpop.eup %9697  ;;  %v12387_v60 = vadd.f32 %v5956_v51, %v5834_v2 }
0x1065   : > { %v5954_v11 = vpop.permute.xlu1 %5953  ;;  %6033 = vrot.lane.b32.xlu1 %v9698_v55, %s10066_s19 }
0x1066   : > { %v9700_v23 = vpop.eup %9699  ;;  %9711 = vtanh.f32 %v12387_v60  ;;  %v12393_v6 = vadd.f32 %v5954_v11, %v5833_v12 }
0x1067   : > { %v5960_v4 = vpop.permute.xlu0 %5959  ;;  %6039 = vrot.lane.b32.xlu0 %v9700_v23, %s10066_s19  ;;  %v10016_v23 = vld [vmem:[%s10148_s21 + $0x20] sm:$0xff] }
0x1068   : > { %v9702_v59 = vpop.eup %9701  ;;  %9713 = vtanh.f32 %v12393_v6  ;;  %v12399_v31 = vadd.f32 %v5960_v4, %v5836_v38  ;;  %v10017_v38 = vld [vmem:[%s10148_s21 + $0x10] sm:$0xff] }
0x1069   : > { %v5958_v54 = vpop.permute.xlu1 %5957  ;;  %6037 = vrot.lane.b32.xlu1 %v9702_v59, %s10066_s19  ;;  %v10018_v4 = vld [vmem:[%s10148_s21 + $0x30] sm:$0xff]  ;;  %v10019_v59 = vld [vmem:[%s10148_s21 + $0x18] sm:$0xff] }
0x106a   : > { %v9704_v50 = vpop.eup %9703  ;;  %9715 = vtanh.f32 %v12399_v31  ;;  %v12405_v39 = vadd.f32 %v5958_v54, %v5835_v35  ;;  %v10020_v35 = vld [vmem:[%s10148_s21 + $0x40] sm:$0xff]  ;;  %v10021_v54 = vld [vmem:[%s10148_s21 + $0x28] sm:$0xff] }
0x106b   : > { %v5964_v48 = vpop.permute.xlu0 %5963  ;;  %6043 = vrot.lane.b32.xlu0 %v9704_v50, %s10066_s19  ;;  %v10022_v50 = vld [vmem:[%s10148_s21 + $0x50] sm:$0xff] }
0x106c   : > { %v9706_v25 = vpop.eup %9705  ;;  %9717 = vtanh.f32 %v12405_v39  ;;  %v12411_v34 = vadd.f32 %v5964_v48, %v5838_v56  ;;  %v10023_v56 = vld [vmem:[%s10148_s21 + $0x38] sm:$0xff]  ;;  %v10024_v48 = vld [vmem:[%s10148_s21 + $0x60] sm:$0xff] }
0x106d   : > { %v5962_v10 = vpop.permute.xlu1 %5961  ;;  %6041 = vrot.lane.b32.xlu1 %v9706_v25, %s10066_s19  ;;  %v10025_v25 = vld [vmem:[%s10148_s21 + $0x48] sm:$0xff] }
0x106e   : > { %v9708_v18 = vpop.eup %9707  ;;  %9719 = vtanh.f32 %v12411_v34  ;;  %v12417_v17 = vadd.f32 %v5962_v10, %v5837_v27  ;;  %v10026_v27 = vld [vmem:[%s10148_s21 + $0x70] sm:$0xff]  ;;  %v10027_v10 = vld [vmem:[%s10148_s21 + $0x58] sm:$0xff] }
0x106f   : > { %v5968_v9 = vpop.permute.xlu0 %5967  ;;  %6047 = vrot.lane.b32.xlu0 %v9708_v18, %s10066_s19  ;;  %v10028_v18 = vld [vmem:[%s10148_s21 + $0x68] sm:$0xff] }
0x1070   : > { %v9710_v13 = vpop.eup %9709  ;;  %9721 = vtanh.f32 %v12417_v17  ;;  %v12423_v19 = vadd.f32 %v5968_v9, %v5840_v3  ;;  %v10029_v3 = vld [vmem:[%s10148_s21 + $0x78] sm:$0xff] }
0x1071   : > { %v5966_v30 = vpop.permute.xlu1 %5965  ;;  %6045 = vrot.lane.b32.xlu1 %v9710_v13, %s10066_s19 }
0x1072   : > { %9723 = vtanh.f32 %v12423_v19  ;;  %v12429_v37 = vadd.f32 %v5966_v30, %v5839_v32 }
0x1073   : > { %v9712_v33 = vpop.eup %9711 }
0x1074   : > { %9725 = vtanh.f32 %v12429_v37  ;;  %6051 = vrot.lane.b32.xlu0 %v9712_v33, %s10066_s19 }
0x1075   : > { %v9714_v46 = vpop.eup %9713 }
0x1076   : > { %6049 = vrot.lane.b32.xlu1 %v9714_v46, %s10066_s19 }
0x1077   : > { %v9716_v62 = vpop.eup %9715 }
0x1078   : > { %6055 = vrot.lane.b32.xlu0 %v9716_v62, %s10066_s19 }
0x1079   : > { %v9718_v41 = vpop.eup %9717 }
0x107a   : > { %6053 = vrot.lane.b32.xlu1 %v9718_v41, %s10066_s19 }
0x107b   : > { %v9720_v47 = vpop.eup %9719 }
0x107c   : > { %6059 = vrot.lane.b32.xlu0 %v9720_v47, %s10066_s19  ;;  %v957_v57 = vpop.permute.xlu0 %956 }
0x107d   : > { %v9722_v63 = vpop.eup %9721  ;;  %vm1001_vm12 = vcmp.eq.s32.totalorder %v957_v57, %v10229_v26 }
0x107e   : > { %6057 = vrot.lane.b32.xlu1 %v9722_v63, %s10066_s19  ;;  %v954_v2 = vpop.permute.xlu1 %953  ;;  %v7923_v55 = vsel %vm1001_vm12, 1.0, %v10065_v29 }
0x107f   : > { %v9724_v51 = vpop.eup %9723  ;;  %vm1000_vm13 = vcmp.eq.s32.totalorder %v954_v2, %v10229_v26 }
0x1080   : > { %6063 = vrot.lane.b32.xlu0 %v9724_v51, %s10066_s19  ;;  %v7922_v12 = vsel %vm1000_vm13, 1.0, %v10065_v29 }
0x1081   : > { %v9726_v11 = vpop.eup %9725  ;;  %8804 = vmatprep.mubr.msk.f32.mxu0 %vm1159_vm0, %v7922_v12 }
0x1082   : > { %6061 = vrot.lane.b32.xlu1 %v9726_v11, %s10066_s19  ;;  %8805 = vmatmul.mubr.msk.f32.gmra.mxu0 %vm1159_vm0, %v7923_v55 }
0x1084   : > { %965 = vperm.xlu0 %9148, %v10016_v23  }
0x1086   : > { %959 = vperm.xlu1 %9147, %v10017_v38  }
0x1088   : > { %971 = vperm.xlu0 %9148, %v10018_v4  }
0x108a   : > { %962 = vperm.xlu1 %9147, %v10019_v59  }
0x108c   : > { %977 = vperm.xlu0 %9148, %v10020_v35  }
0x108e   : > { %968 = vperm.xlu1 %9147, %v10021_v54  }
0x1090   : > { %983 = vperm.xlu0 %9148, %v10022_v50  }
0x1092   : > { %974 = vperm.xlu1 %9147, %v10023_v56  }
0x1094   : > { %989 = vperm.xlu0 %9148, %v10024_v48  }
0x1096   : > { %980 = vperm.xlu1 %9147, %v10025_v25  }
0x1098   : > { %995 = vperm.xlu0 %9148, %v10026_v27  }
0x109a   : > { %986 = vperm.xlu1 %9147, %v10027_v10  }
0x109e   : > { %992 = vperm.xlu1 %9147, %v10028_v18  }
0x10a2   : > { %998 = vperm.xlu1 %9147, %v10029_v3  }
0x10d5   : > { %v6036_v9 = vpop.permute.xlu0 %6035 }
0x10d6   : > { %v6082_v13 = vmul.f32 %v6036_v9, %v12216_v7 }
0x10d7   : > { %v6034_v32 = vpop.permute.xlu1 %6033 }
0x10d8   : > { %v6081_v30 = vmul.f32 %v6034_v32, %v12222_v16  ;;  %6131 = vrot.lane.b32.xlu1 %v6082_v13, %s10068_s20 }
0x10d9   : > { %v6040_v33 = vpop.permute.xlu0 %6039 }
0x10da   : > { %v6084_v46 = vmul.f32 %v6040_v33, %v12228_v0  ;;  %6129 = vrot.lane.b32.xlu0 %v6081_v30, %s10068_s20 }
0x10db   : > { %v6038_v62 = vpop.permute.xlu1 %6037 }
0x10dc   : > { %v6083_v41 = vmul.f32 %v6038_v62, %v12234_v1  ;;  %6135 = vrot.lane.b32.xlu1 %v6084_v46, %s10068_s20 }
0x10dd   : > { %v6044_v47 = vpop.permute.xlu0 %6043 }
0x10de   : > { %v6086_v57 = vmul.f32 %v6044_v47, %v12240_v58  ;;  %6133 = vrot.lane.b32.xlu0 %v6083_v41, %s10068_s20 }
0x10df   : > { %v6042_v7 = vpop.permute.xlu1 %6041 }
0x10e0   : > { %v6085_v16 = vmul.f32 %v6042_v7, %v12246_v15  ;;  %6139 = vrot.lane.b32.xlu1 %v6086_v57, %s10068_s20 }
0x10e1   : > { %v6048_v63 = vpop.permute.xlu0 %6047 }
0x10e2   : > { %v6088_v0 = vmul.f32 %v6048_v63, %v12252_v52  ;;  %6137 = vrot.lane.b32.xlu0 %v6085_v16, %s10068_s20 }
0x10e3   : > { %v6046_v2 = vpop.permute.xlu1 %6045 }
0x10e4   : > { %v6087_v1 = vmul.f32 %v6046_v2, %v12258_v36  ;;  %6143 = vrot.lane.b32.xlu1 %v6088_v0, %s10068_s20 }
0x10e6   : > { %v6052_v51 = vpop.permute.xlu0 %6051  ;;  %6141 = vrot.lane.b32.xlu0 %v6087_v1, %s10068_s20 }
0x10e7   : > { %v6090_v58 = vmul.f32 %v6052_v51, %v12264_v61 }
0x10e8   : > { %v6050_v55 = vpop.permute.xlu1 %6049 }
0x10e9   : > { %v6089_v15 = vmul.f32 %v6050_v55, %v12270_v44  ;;  %6147 = vrot.lane.b32.xlu1 %v6090_v58, %s10068_s20  ;;  %v10030_v58 = vld [vmem:[%s13294_s4 + $0x18] sm:$0xff] }
0x10ea   : > { %v6056_v12 = vpop.permute.xlu0 %6055 }
0x10eb   : > { %v6092_v52 = vmul.f32 %v6056_v12, %v12276_v43  ;;  %6145 = vrot.lane.b32.xlu0 %v6089_v15, %s10068_s20  ;;  %v10031_v15 = vld [vmem:[%s13294_s4 + $0x10] sm:$0xff] }
0x10ec   : > { %v6054_v11 = vpop.permute.xlu1 %6053 }
0x10ed   : > { %v6091_v36 = vmul.f32 %v6054_v11, %v12282_v42  ;;  %6151 = vrot.lane.b32.xlu1 %v6092_v52, %s10068_s20  ;;  %v10032_v52 = vld [vmem:[%s13294_s4 + $0x8] sm:$0xff] }
0x10ee   : > { %v6060_v23 = vpop.permute.xlu0 %6059 }
0x10ef   : > { %v6094_v38 = vmul.f32 %v6060_v23, %v12288_v8  ;;  %6149 = vrot.lane.b32.xlu0 %v6091_v36, %s10068_s20  ;;  %v10033_v36 = vld [vmem:[%s13294_s4] sm:$0xff] }
0x10f0   : > { %v6058_v61 = vpop.permute.xlu1 %6057 }
0x10f1   : > { %v6093_v44 = vmul.f32 %v6058_v61, %v12294_v40  ;;  %6155 = vrot.lane.b32.xlu1 %v6094_v38, %s10068_s20 }
0x10f2   : > { %v6064_v4 = vpop.permute.xlu0 %6063 }
0x10f3   : > { %v6096_v43 = vmul.f32 %v6064_v4, %v12300_v28  ;;  %6153 = vrot.lane.b32.xlu0 %v6093_v44, %s10068_s20 }
0x10f4   : > { %v6062_v59 = vpop.permute.xlu1 %6061 }
0x10f5   : > { %v6095_v42 = vmul.f32 %v6062_v59, %v12306_v21  ;;  %6159 = vrot.lane.b32.xlu1 %v6096_v43, %s10068_s20 }
0x10f7   : > { %6157 = vrot.lane.b32.xlu0 %v6095_v42, %s10068_s20 }
0x10ff   : > { %v966_v8 = vpop.permute.xlu0 %965 }
0x1100   : > { %vm1004_vm15 = vcmp.eq.s32.totalorder %v966_v8, %v10229_v26 }
0x1101   : > { %v960_v35 = vpop.permute.xlu1 %959  ;;  %v7926_v56 = vsel %vm1004_vm15, 1.0, %v10065_v29 }
0x1102   : > { %vm1002_vm14 = vcmp.eq.s32.totalorder %v960_v35, %v10229_v26 }
0x1103   : > { %v7924_v40 = vsel %vm1002_vm14, 1.0, %v10065_v29  ;;  %v972_v54 = vpop.permute.xlu0 %971 }
0x1104   : > { %8807 = vmatprep.mubr.msk.f32.mxu0 %vm1159_vm0, %v7924_v40  ;;  %vm1006_vm2 = vcmp.eq.s32.totalorder %v972_v54, %v10229_v26 }
0x1105   : > { %v963_v28 = vpop.permute.xlu1 %962  ;;  %v7928_v10 = vsel %vm1006_vm2, 1.0, %v10065_v29 }
0x1106   : > { %vm1003_vm1 = vcmp.eq.s32.totalorder %v963_v28, %v10229_v26 }
0x1107   : > { %v7925_v21 = vsel %vm1003_vm1, 1.0, %v10065_v29  ;;  %v978_v50 = vpop.permute.xlu0 %977 }
0x1108   : > { %8808 = vmatmul.mubr.msk.f32.gmra.mxu0 %vm1159_vm0, %v7925_v21  ;;  %vm1008_vm5 = vcmp.eq.s32.totalorder %v978_v50, %v10229_v26 }
0x1109   : > { %v969_v48 = vpop.permute.xlu1 %968  ;;  %8810 = vmatprep.mubr.msk.f32.mxu0 %vm1159_vm0, %v7926_v56  ;;  %v7930_v9 = vsel %vm1008_vm5, 1.0, %v10065_v29 }
0x110a   : > { %vm1005_vm4 = vcmp.eq.s32.totalorder %v969_v48, %v10229_v26 }
0x110b   : > { %v7927_v25 = vsel %vm1005_vm4, 1.0, %v10065_v29  ;;  %v984_v27 = vpop.permute.xlu0 %983 }
0x110c   : > { %8811 = vmatmul.mubr.msk.f32.gmra.mxu0 %vm1159_vm0, %v7927_v25  ;;  %vm1010_vm7 = vcmp.eq.s32.totalorder %v984_v27, %v10229_v26  ;;  %v12565_v27 = vld [vmem:[%s13293_s3] ss:$0 sm:$0xff] }
0x110d   : > { %v975_v18 = vpop.permute.xlu1 %974  ;;  %8813 = vmatprep.mubr.msk.f32.mxu0 %vm1159_vm0, %v7928_v10  ;;  %v7932_v33 = vsel %vm1010_vm7, 1.0, %v10065_v29 }
0x110e   : > { %vm1007_vm6 = vcmp.eq.s32.totalorder %v975_v18, %v10229_v26 }
0x110f   : > { %v7929_v3 = vsel %vm1007_vm6, 1.0, %v10065_v29  ;;  %v990_v13 = vpop.permute.xlu0 %989 }
0x1110   : > { %8814 = vmatmul.mubr.msk.f32.gmra.mxu0 %vm1159_vm0, %v7929_v3  ;;  %vm1012_vm9 = vcmp.eq.s32.totalorder %v990_v13, %v10229_v26 }
0x1111   : > { %v981_v32 = vpop.permute.xlu1 %980  ;;  %8816 = vmatprep.mubr.msk.f32.mxu0 %vm1159_vm0, %v7930_v9  ;;  %v7934_v47 = vsel %vm1012_vm9, 1.0, %v10065_v29 }
0x1112   : > { %vm1009_vm8 = vcmp.eq.s32.totalorder %v981_v32, %v10229_v26 }
0x1113   : > { %v7931_v30 = vsel %vm1009_vm8, 1.0, %v10065_v29  ;;  %v996_v62 = vpop.permute.xlu0 %995 }
0x1114   : > { %8817 = vmatmul.mubr.msk.f32.gmra.mxu0 %vm1159_vm0, %v7931_v30  ;;  %vm1014_vm11 = vcmp.eq.s32.totalorder %v996_v62, %v10229_v26 }
0x1115   : > { %v987_v46 = vpop.permute.xlu1 %986  ;;  %8819 = vmatprep.mubr.msk.f32.mxu0 %vm1159_vm0, %v7932_v33  ;;  %v7936_v16 = vsel %vm1014_vm11, 1.0, %v10065_v29 }
0x1116   : > { %vm1011_vm10 = vcmp.eq.s32.totalorder %v987_v46, %v10229_v26 }
0x1117   : > { %v7933_v41 = vsel %vm1011_vm10, 1.0, %v10065_v29 }
0x1118   : > { %8820 = vmatmul.mubr.msk.f32.gmra.mxu0 %vm1159_vm0, %v7933_v41 }
0x1119   : > { %v993_v57 = vpop.permute.xlu1 %992  ;;  %8822 = vmatprep.mubr.msk.f32.mxu0 %vm1159_vm0, %v7934_v47 }
0x111a   : > { %vm1013_vm12 = vcmp.eq.s32.totalorder %v993_v57, %v10229_v26 }
0x111b   : > { %v7935_v7 = vsel %vm1013_vm12, 1.0, %v10065_v29 }
0x111c   : > { %8823 = vmatmul.mubr.msk.f32.gmra.mxu0 %vm1159_vm0, %v7935_v7 }
0x111d   : > { %v999_v63 = vpop.permute.xlu1 %998  ;;  %8825 = vmatprep.mubr.msk.f32.mxu0 %vm1159_vm0, %v7936_v16 }
0x111e   : > { %vm1015_vm13 = vcmp.eq.s32.totalorder %v999_v63, %v10229_v26 }
0x111f   : > { %v7937_v0 = vsel %vm1015_vm13, 1.0, %v10065_v29 }
0x1120   : > { %8826 = vmatmul.mubr.msk.f32.gmra.mxu0 %vm1159_vm0, %v7937_v0 }
0x1142   : > { %v8806_v40 = vpop.f32.mrf.mxu0 }
0x1143   : > { %v2096_v10 = vadd.f32 %v12565_v27, %v8806_v40 }
0x1144   : > { %v2090_v54 = vpop.f32.mrf.mxu0 }
0x1145   : > { %v2091_v9 = vadd.f32 %v12565_v27, %v2090_v54 }
0x114a   : > { %v6132_v2 = vpop.permute.xlu1 %6131 }
0x114c   : > { %v6130_v1 = vpop.permute.xlu0 %6129 }
0x114d   : > { %9020 = vmatprep.mubr.msk.f32.mxu1 %vm2875_vm3, %v6130_v1 }
0x114e   : > { %v6136_v51 = vpop.permute.xlu1 %6135  ;;  %9021 = vmatmul.mubr.msk.f32.vlgmr.msra.gmra.mxu1 %vm2875_vm3, %v6132_v2 }
0x114f   : > { %9045 = vmatpush3.msra.mxu1 %v10030_v58 }
0x1150   : > { %v6134_v55 = vpop.permute.xlu0 %6133  ;;  %9046 = vmatprep.subr.mxu1 %v10031_v15 }
0x1151   : > { %9023 = vmatprep.mubr.msk.f32.mxu1 %vm2875_vm3, %v6134_v55  ;;  %9047 = vmatpush3.msra.mxu1 %v10031_v15 }
0x1152   : > { %v6140_v12 = vpop.permute.xlu1 %6139  ;;  %9024 = vmatmul.mubr.msk.f32.gmra.mxu1 %vm2875_vm3, %v6136_v51  ;;  %9048 = vmatprep.subr.mxu1 %v10032_v52 }
0x1153   : > { %9049 = vmatpush3.msra.mxu1 %v10032_v52 }
0x1154   : > { %v6138_v11 = vpop.permute.xlu0 %6137  ;;  %9050 = vmatprep.subr.mxu1 %v10033_v36 }
0x1155   : > { %9026 = vmatprep.mubr.msk.f32.mxu1 %vm2875_vm3, %v6138_v11  ;;  %9051 = vmatpush3.msra.mxu1 %v10033_v36 }
0x1156   : > { %v6144_v23 = vpop.permute.xlu1 %6143  ;;  %9027 = vmatmul.mubr.msk.f32.gmra.mxu1 %vm2875_vm3, %v6140_v12 }
0x1158   : > { %v6142_v38 = vpop.permute.xlu0 %6141 }
0x1159   : > { %9029 = vmatprep.mubr.msk.f32.mxu1 %vm2875_vm3, %v6142_v38 }
0x115a   : > { %9030 = vmatmul.mubr.msk.f32.gmra.mxu1 %vm2875_vm3, %v6144_v23 }
0x115b   : > { %v6148_v61 = vpop.permute.xlu1 %6147 }
0x115d   : > { %v6146_v44 = vpop.permute.xlu0 %6145 }
0x115e   : > { %9032 = vmatprep.mubr.msk.f32.mxu1 %vm2875_vm3, %v6146_v44 }
0x115f   : > { %v6152_v4 = vpop.permute.xlu1 %6151  ;;  %9033 = vmatmul.mubr.msk.f32.gmra.mxu1 %vm2875_vm3, %v6148_v61 }
0x1161   : > { %v6150_v43 = vpop.permute.xlu0 %6149 }
0x1162   : > { %9035 = vmatprep.mubr.msk.f32.mxu1 %vm2875_vm3, %v6150_v43 }
0x1163   : > { %9036 = vmatmul.mubr.msk.f32.gmra.mxu1 %vm2875_vm3, %v6152_v4  ;;  %v6156_v59 = vpop.permute.xlu1 %6155 }
0x1165   : > { %v6154_v42 = vpop.permute.xlu0 %6153 }
0x1166   : > { %9038 = vmatprep.mubr.msk.f32.mxu1 %vm2875_vm3, %v6154_v42 }
0x1167   : > { %9039 = vmatmul.mubr.msk.f32.gmra.mxu1 %vm2875_vm3, %v6156_v59  ;;  %v6160_v35 = vpop.permute.xlu1 %6159 }
0x1169   : > { %v6158_v8 = vpop.permute.xlu0 %6157 }
0x116a   : > { %9041 = vmatprep.mubr.msk.f32.mxu1 %vm2875_vm3, %v6158_v8 }
0x116b   : > { %9042 = vmatmul.mubr.msk.f32.gmra.mxu1 %vm2875_vm3, %v6160_v35 }
0x11c8   : > { %v8809_v28 = vpop.f32.mrf.mxu0 }
0x11c9   : > { %v2106_v30 = vadd.f32 %v12565_v27, %v8809_v28 }
0x11ca   : > { %v2100_v21 = vpop.f32.mrf.mxu0 }
0x11cb   : > { %v2101_v47 = vadd.f32 %v12565_v27, %v2100_v21 }
0x11cc   : > { %v8812_v50 = vpop.f32.mrf.mxu0 }
0x11cd   : > { %v2116_v63 = vadd.f32 %v12565_v27, %v8812_v50 }
0x11ce   : > { %v2110_v56 = vpop.f32.mrf.mxu0 }
0x11cf   : > { %v2111_v58 = vadd.f32 %v12565_v27, %v2110_v56 }
0x11d0   : > { %v8815_v48 = vpop.f32.mrf.mxu0 }
0x11d1   : > { %v2126_v52 = vadd.f32 %v12565_v27, %v8815_v48 }
0x11d2   : > { %v2120_v25 = vpop.f32.mrf.mxu0 }
0x11d3   : > { %v2121_v61 = vadd.f32 %v12565_v27, %v2120_v25 }
0x11d4   : > { %v8818_v18 = vpop.f32.mrf.mxu0 }
0x11d5   : > { %v2136_v35 = vadd.f32 %v12565_v27, %v8818_v18 }
0x11d6   : > { %v2130_v33 = vpop.f32.mrf.mxu0 }
0x11d7   : > { %v2131_v21 = vadd.f32 %v12565_v27, %v2130_v33 }
0x11d8   : > { %v8821_v0 = vpop.f32.mrf.mxu0 }
0x11da   : > { %v2140_v11 = vpop.f32.mrf.mxu0 }
0x11dc   : > { %v8824_v59 = vpop.f32.mrf.mxu0 }
0x11de   : > { %v2150_v56 = vpop.f32.mrf.mxu0 }
0x11e0   : > { %v8827_v33 = vpop.f32.mrf.mxu0 }
0x120e   : > { %v9022_v3 = vpop.f32.mrf.mxu1 }
0x120f   : > { %v6339_v13 = vadd.f32 %v9022_v3, %v2096_v10  ;;  %v2146_v3 = vadd.f32 %v12565_v27, %v8821_v0 }
0x1210   : > { %v6259_v32 = vpop.f32.mrf.mxu1 }
0x1211   : > { %v8278_v46 = vmul.f32 -1.442695, %v6339_v13  ;;  %v6338_v62 = vadd.f32 %v6259_v32, %v2091_v9 }
0x1212   : > { %v9025_v41 = vpop.f32.mrf.mxu1 }
0x1213   : > { %9727 = vpow2.f32 %v8278_v46  ;;  %v8277_v57 = vmul.f32 -1.442695, %v6338_v62  ;;  %v6341_v7 = vadd.f32 %v9025_v41, %v2106_v30  ;;  %v2141_v46 = vadd.f32 %v12565_v27, %v2140_v11 }
0x1214   : > { %v6269_v16 = vpop.f32.mrf.mxu1 }
0x1215   : > { %9729 = vpow2.f32 %v8277_v57  ;;  %v8280_v2 = vmul.f32 -1.442695, %v6341_v7  ;;  %v6340_v1 = vadd.f32 %v6269_v16, %v2101_v47  ;;  %v2156_v16 = vadd.f32 %v12565_v27, %v8824_v59 }
0x1216   : > { %v9028_v51 = vpop.f32.mrf.mxu1 }
0x1217   : > { %9731 = vpow2.f32 %v8280_v2  ;;  %v8279_v55 = vmul.f32 -1.442695, %v6340_v1  ;;  %v6343_v15 = vadd.f32 %v9028_v51, %v2116_v63 }
0x1218   : > { %v6279_v12 = vpop.f32.mrf.mxu1 }
0x1219   : > { %9733 = vpow2.f32 %v8279_v55  ;;  %v8282_v36 = vmul.f32 -1.442695, %v6343_v15  ;;  %v6342_v23 = vadd.f32 %v6279_v12, %v2111_v58  ;;  %v2151_v58 = vadd.f32 %v12565_v27, %v2150_v56  ;;  %v2160_v12 = vpop.f32.mrf.mxu0 }
0x121a   : > { %v9031_v38 = vpop.f32.mrf.mxu1  ;;  %v2161_v59 = vadd.f32 %v12565_v27, %v2160_v12 }
0x121b   : > { %9735 = vpow2.f32 %v8282_v36  ;;  %v8281_v44 = vmul.f32 -1.442695, %v6342_v23  ;;  %v6345_v4 = vadd.f32 %v9031_v38, %v2126_v52  ;;  %v2166_v23 = vadd.f32 %v12565_v27, %v8827_v33  ;;  %v12586_v27 = vld [vmem:[%s13295_s5] ss:$0 sm:$0xff] }
0x121c   : > { %v6289_v43 = vpop.f32.mrf.mxu1 }
0x121d   : > { %9737 = vpow2.f32 %v8281_v44  ;;  %v8284_v42 = vmul.f32 -1.442695, %v6345_v4  ;;  %v6344_v8 = vadd.f32 %v6289_v43, %v2121_v61 }
0x121f   : > { %9739 = vpow2.f32 %v8284_v42  ;;  %v8283_v40 = vmul.f32 -1.442695, %v6344_v8  ;;  %v9034_v54 = vpop.f32.mrf.mxu1 }
0x1220   : > { %v9728_v28 = vpop.eup %9727  ;;  %v6347_v50 = vadd.f32 %v9034_v54, %v2136_v35 }
0x1221   : > { %v6403_v48 = vadd.f32 1.0, %v9728_v28  ;;  %9741 = vpow2.f32 %v8283_v40  ;;  %v6299_v25 = vpop.f32.mrf.mxu1 }
0x1222   : > { %v9730_v10 = vpop.eup %9729  ;;  %v8286_v9 = vmul.f32 -1.442695, %v6347_v50  ;;  %v6346_v13 = vadd.f32 %v6299_v25, %v2131_v21 }
0x1223   : > { %9743 = vrcp.f32 %v6403_v48  ;;  %v6402_v32 = vadd.f32 1.0, %v9730_v10  ;;  %v9037_v30 = vpop.f32.mrf.mxu1 }
0x1224   : > { %v9732_v18 = vpop.eup %9731  ;;  %9745 = vpow2.f32 %v8286_v9  ;;  %v8285_v62 = vmul.f32 -1.442695, %v6346_v13  ;;  %v6349_v41 = vadd.f32 %v9037_v30, %v2146_v3 }
0x1225   : > { %9747 = vrcp.f32 %v6402_v32  ;;  %v6405_v47 = vadd.f32 1.0, %v9732_v18  ;;  %v6309_v57 = vpop.f32.mrf.mxu1  ;;  %v12592_v32 = vld [vmem:[%s13296_s6] ss:$0 sm:$0xff] }
0x1226   : > { %v9734_v7 = vpop.eup %9733  ;;  %9749 = vpow2.f32 %v8285_v62  ;;  %v8288_v63 = vmul.f32 -1.442695, %v6349_v41  ;;  %v6348_v0 = vadd.f32 %v6309_v57, %v2141_v46 }
0x1227   : > { %9751 = vrcp.f32 %v6405_v47  ;;  %v6404_v2 = vadd.f32 1.0, %v9734_v7  ;;  %v9040_v1 = vpop.f32.mrf.mxu1 }
0x1228   : > { %v9736_v51 = vpop.eup %9735  ;;  %9753 = vpow2.f32 %v8288_v63  ;;  %v8287_v55 = vmul.f32 -1.442695, %v6348_v0  ;;  %v6351_v15 = vadd.f32 %v9040_v1, %v2156_v16 }
0x1229   : > { %9755 = vrcp.f32 %v6404_v2  ;;  %v6407_v52 = vadd.f32 1.0, %v9736_v51  ;;  %v6319_v11 = vpop.f32.mrf.mxu1 }
0x122a   : > { %v9738_v36 = vpop.eup %9737  ;;  %9757 = vpow2.f32 %v8287_v55  ;;  %v8290_v38 = vmul.f32 -1.442695, %v6351_v15  ;;  %v6350_v61 = vadd.f32 %v6319_v11, %v2151_v58 }
0x122b   : > { %9759 = vrcp.f32 %v6407_v52  ;;  %v6406_v44 = vadd.f32 1.0, %v9738_v36  ;;  %v9043_v4 = vpop.f32.mrf.mxu1 }
0x122c   : > { %v9740_v43 = vpop.eup %9739  ;;  %9761 = vpow2.f32 %v8290_v38  ;;  %v8289_v42 = vmul.f32 -1.442695, %v6350_v61  ;;  %v6353_v8 = vadd.f32 %v9043_v4, %v2166_v23 }
0x122d   : > { %9763 = vrcp.f32 %v6406_v44  ;;  %v6409_v35 = vadd.f32 1.0, %v9740_v43  ;;  %v6329_v40 = vpop.f32.mrf.mxu1 }
0x122e   : > { %v9742_v54 = vpop.eup %9741  ;;  %9765 = vpow2.f32 %v8289_v42  ;;  %v8292_v28 = vmul.f32 -1.442695, %v6353_v8  ;;  %v6352_v21 = vadd.f32 %v6329_v40, %v2161_v59 }
0x122f   : > { %9767 = vrcp.f32 %v6409_v35  ;;  %v6408_v50 = vadd.f32 1.0, %v9742_v54 }
0x1230   : > { %v9744_v56 = vpop.eup %9743  ;;  %9769 = vpow2.f32 %v8292_v28  ;;  %v8291_v48 = vmul.f32 -1.442695, %v6352_v21 }
0x1231   : > { %v9746_v25 = vpop.eup %9745  ;;  %9771 = vrcp.f32 %v6408_v50  ;;  %v6451_v10 = vmul.f32 %v12586_v27, %v9744_v56 }
0x1232   : > { %v9748_v3 = vpop.eup %9747  ;;  %v6411_v9 = vadd.f32 1.0, %v9746_v25  ;;  %9773 = vpow2.f32 %v8291_v48 }
0x1233   : > { %v9750_v13 = vpop.eup %9749  ;;  %v12595_v30 = vadd.f32 %v12592_v32, %v6451_v10  ;;  %v6450_v18 = vmul.f32 %v12586_v27, %v9748_v3 }
0x1234   : > { %v9752_v46 = vpop.eup %9751  ;;  %9775 = vrcp.f32 %v6411_v9  ;;  %v6410_v62 = vadd.f32 1.0, %v9750_v13 }
0x1235   : > { %v9754_v41 = vpop.eup %9753  ;;  %6516 = vrot.lane.b32.xlu1 %v12595_v30, %s10066_s19  ;;  %v12601_v33 = vadd.f32 %v12592_v32, %v6450_v18  ;;  %v6453_v47 = vmul.f32 %v12586_v27, %v9752_v46 }
0x1236   : > { %v9756_v57 = vpop.eup %9755  ;;  %9777 = vrcp.f32 %v6410_v62  ;;  %v6413_v7 = vadd.f32 1.0, %v9754_v41 }
0x1237   : > { %v9758_v16 = vpop.eup %9757  ;;  %6514 = vrot.lane.b32.xlu0 %v12601_v33, %s10066_s19  ;;  %v12607_v63 = vadd.f32 %v12592_v32, %v6453_v47  ;;  %v6452_v0 = vmul.f32 %v12586_v27, %v9756_v57 }
0x1238   : > { %v9760_v2 = vpop.eup %9759  ;;  %9779 = vrcp.f32 %v6413_v7  ;;  %v6412_v1 = vadd.f32 1.0, %v9758_v16 }
0x1239   : > { %v9762_v51 = vpop.eup %9761  ;;  %6520 = vrot.lane.b32.xlu1 %v12607_v63, %s10066_s19  ;;  %v12613_v58 = vadd.f32 %v12592_v32, %v6452_v0  ;;  %v6455_v55 = vmul.f32 %v12586_v27, %v9760_v2 }
0x123a   : > { %v9764_v15 = vpop.eup %9763  ;;  %9781 = vrcp.f32 %v6412_v1  ;;  %v6415_v12 = vadd.f32 1.0, %v9762_v51 }
0x123b   : > { %v9766_v52 = vpop.eup %9765  ;;  %6518 = vrot.lane.b32.xlu0 %v12613_v58, %s10066_s19  ;;  %v12619_v11 = vadd.f32 %v12592_v32, %v6455_v55  ;;  %v6454_v36 = vmul.f32 %v12586_v27, %v9764_v15 }
0x123c   : > { %v9768_v23 = vpop.eup %9767  ;;  %9783 = vrcp.f32 %v6415_v12  ;;  %v6414_v38 = vadd.f32 1.0, %v9766_v52  ;;  %v10074_v12 = vmov 7  }
0x123d   : > { %v9770_v61 = vpop.eup %9769  ;;  %6524 = vrot.lane.b32.xlu1 %v12619_v11, %s10066_s19  ;;  %v12625_v44 = vadd.f32 %v12592_v32, %v6454_v36  ;;  %v6457_v4 = vmul.f32 %v12586_v27, %v9768_v23  ;;  %9149 = vset.pattern.permute.xlu0 %v10074_v12 }
0x123e   : > { %v9772_v43 = vpop.eup %9771  ;;  %9785 = vrcp.f32 %v6414_v38  ;;  %v6417_v59 = vadd.f32 1.0, %v9770_v61  ;;  %9150 = vset.pattern.permute.xlu1 %v10074_v12 }
0x123f   : > { %v9774_v42 = vpop.eup %9773  ;;  %6522 = vrot.lane.b32.xlu0 %v12625_v44, %s10066_s19  ;;  %v12631_v8 = vadd.f32 %v12592_v32, %v6457_v4  ;;  %v6456_v35 = vmul.f32 %v12586_v27, %v9772_v43 }
0x1240   : > { %9787 = vrcp.f32 %v6417_v59  ;;  %v6416_v40 = vadd.f32 1.0, %v9774_v42 }
0x1241   : > { %v9776_v54 = vpop.eup %9775  ;;  %6528 = vrot.lane.b32.xlu1 %v12631_v8, %s10066_s19  ;;  %v12637_v28 = vadd.f32 %v12592_v32, %v6456_v35 }
0x1242   : > { %9789 = vrcp.f32 %v6416_v40  ;;  %v6459_v21 = vmul.f32 %v12586_v27, %v9776_v54 }
0x1243   : > { %v9778_v50 = vpop.eup %9777  ;;  %6526 = vrot.lane.b32.xlu0 %v12637_v28, %s10066_s19 }
0x1244   : > { %v12643_v56 = vadd.f32 %v12592_v32, %v6459_v21  ;;  %v6458_v48 = vmul.f32 %v12586_v27, %v9778_v50 }
0x1245   : > { %v9780_v25 = vpop.eup %9779 }
0x1246   : > { %6532 = vrot.lane.b32.xlu1 %v12643_v56, %s10066_s19  ;;  %v12649_v10 = vadd.f32 %v12592_v32, %v6458_v48  ;;  %v6461_v3 = vmul.f32 %v12586_v27, %v9780_v25 }
0x1247   : > { %v9782_v9 = vpop.eup %9781 }
0x1248   : > { %6530 = vrot.lane.b32.xlu0 %v12649_v10, %s10066_s19  ;;  %v12655_v13 = vadd.f32 %v12592_v32, %v6461_v3  ;;  %v6460_v18 = vmul.f32 %v12586_v27, %v9782_v9 }
0x1249   : > { %v9784_v46 = vpop.eup %9783 }
0x124a   : > { %6536 = vrot.lane.b32.xlu1 %v12655_v13, %s10066_s19  ;;  %v12661_v62 = vadd.f32 %v12592_v32, %v6460_v18  ;;  %v6463_v41 = vmul.f32 %v12586_v27, %v9784_v46 }
0x124b   : > { %v9786_v47 = vpop.eup %9785 }
0x124c   : > { %6534 = vrot.lane.b32.xlu0 %v12661_v62, %s10066_s19  ;;  %v12667_v57 = vadd.f32 %v12592_v32, %v6463_v41  ;;  %v6462_v7 = vmul.f32 %v12586_v27, %v9786_v47 }
0x124d   : > { %v9788_v16 = vpop.eup %9787 }
0x124e   : > { %6540 = vrot.lane.b32.xlu1 %v12667_v57, %s10066_s19  ;;  %v12673_v0 = vadd.f32 %v12592_v32, %v6462_v7  ;;  %v6465_v2 = vmul.f32 %v12586_v27, %v9788_v16 }
0x124f   : > { %v9790_v1 = vpop.eup %9789 }
0x1250   : > { %6538 = vrot.lane.b32.xlu0 %v12673_v0, %s10066_s19  ;;  %v12679_v51 = vadd.f32 %v12592_v32, %v6465_v2  ;;  %v6464_v55 = vmul.f32 %v12586_v27, %v9790_v1 }
0x1252   : > { %6544 = vrot.lane.b32.xlu1 %v12679_v51, %s10066_s19  ;;  %v12685_v15 = vadd.f32 %v12592_v32, %v6464_v55 }
0x1254   : > { %6542 = vrot.lane.b32.xlu0 %v12685_v15, %s10066_s19 }
0x12a7   : > { %v6517_v52 = vpop.permute.xlu1 %6516 }
0x12a8   : > { %v6563_v36 = vmul.f32 %v6517_v52, %v12595_v30 }
0x12a9   : > { %v6515_v23 = vpop.permute.xlu0 %6514 }
0x12aa   : > { %v6562_v38 = vmul.f32 %v6515_v23, %v12601_v33  ;;  %6596 = vrot.lane.b32.xlu1 %v6563_v36, %s10068_s20  ;;  %v10037_v23 = vld [vmem:[%s10148_s21 + $0x8] sm:$0xff] }
0x12ab   : > { %v6521_v27 = vpop.permute.xlu1 %6520 }
0x12ac   : > { %v6565_v61 = vmul.f32 %v6521_v27, %v12607_v63  ;;  %6594 = vrot.lane.b32.xlu0 %v6562_v38, %s10068_s20  ;;  %v10038_v38 = vld [vmem:[%s10148_s21] sm:$0xff]  ;;  %v6483_v27 = vmul.f32 %v12595_v30, %v12346_v49  ;;  %v6484_v49 = vmul.f32 %v12613_v58, %v12361_v24 }
0x12ad   : > { %v6519_v32 = vpop.permute.xlu0 %6518 }
0x12ae   : > { %v6564_v4 = vmul.f32 %v6519_v32, %v12613_v58  ;;  %6600 = vrot.lane.b32.xlu1 %v6565_v61, %s10068_s20 }
0x12af   : > { %v6525_v43 = vpop.permute.xlu1 %6524 }
0x12b0   : > { %v6567_v59 = vmul.f32 %v6525_v43, %v12619_v11  ;;  %6598 = vrot.lane.b32.xlu0 %v6564_v4, %s10068_s20  ;;  %v6482_v4 = vmul.f32 %v12601_v33, %v12351_v20 }
0x12b1   : > { %v6523_v42 = vpop.permute.xlu0 %6522 }
0x12b2   : > { %v6566_v35 = vmul.f32 %v6523_v42, %v12625_v44  ;;  %6604 = vrot.lane.b32.xlu1 %v6567_v59, %s10068_s20  ;;  %v6485_v42 = vmul.f32 %v12607_v63, %v12356_v45 }
0x12b3   : > { %v6529_v40 = vpop.permute.xlu1 %6528 }
0x12b4   : > { %v6569_v54 = vmul.f32 %v6529_v40, %v12631_v8  ;;  %6602 = vrot.lane.b32.xlu0 %v6566_v35, %s10068_s20 }
0x12b5   : > { %v6527_v21 = vpop.permute.xlu0 %6526 }
0x12b6   : > { %v6568_v50 = vmul.f32 %v6527_v21, %v12637_v28  ;;  %6608 = vrot.lane.b32.xlu1 %v6569_v54, %s10068_s20  ;;  %v6487_v21 = vmul.f32 %v12619_v11, %v12366_v22 }
0x12b8   : > { %v6533_v48 = vpop.permute.xlu1 %6532  ;;  %6606 = vrot.lane.b32.xlu0 %v6568_v50, %s10068_s20 }
0x12b9   : > { %v6571_v25 = vmul.f32 %v6533_v48, %v12643_v56  ;;  %v6486_v48 = vmul.f32 %v12625_v44, %v12371_v5 }
0x12ba   : > { %v6531_v3 = vpop.permute.xlu0 %6530 }
0x12bb   : > { %v6570_v9 = vmul.f32 %v6531_v3, %v12649_v10  ;;  %6612 = vrot.lane.b32.xlu1 %v6571_v25, %s10068_s20  ;;  %v6489_v3 = vmul.f32 %v12631_v8, %v12376_v53 }
0x12bc   : > { %v6537_v18 = vpop.permute.xlu1 %6536 }
0x12bd   : > { %v6573_v46 = vmul.f32 %v6537_v18, %v12655_v13  ;;  %6610 = vrot.lane.b32.xlu0 %v6570_v9, %s10068_s20  ;;  %v6488_v18 = vmul.f32 %v12637_v28, %v12381_v14  ;;  %v6490_v14 = vmul.f32 %v12649_v10, %v12393_v6  ;;  %v6492_v6 = vmul.f32 %v12661_v62, %v12405_v39 }
0x12be   : > { %v6535_v41 = vpop.permute.xlu0 %6534  ;;  %v6494_v39 = vmul.f32 %v12673_v0, %v12417_v17  ;;  %v6496_v17 = vmul.f32 %v12685_v15, %v12429_v37 }
0x12bf   : > { %v6572_v47 = vmul.f32 %v6535_v41, %v12661_v62  ;;  %6616 = vrot.lane.b32.xlu1 %v6573_v46, %s10068_s20 }
0x12c0   : > { %v6541_v7 = vpop.permute.xlu1 %6540 }
0x12c1   : > { %v6575_v16 = vmul.f32 %v6541_v7, %v12667_v57  ;;  %6614 = vrot.lane.b32.xlu0 %v6572_v47, %s10068_s20  ;;  %v6491_v47 = vmul.f32 %v12643_v56, %v12387_v60  ;;  %v6493_v60 = vmul.f32 %v12655_v13, %v12399_v31  ;;  %v6495_v31 = vmul.f32 %v12667_v57, %v12411_v34 }
0x12c2   : > { %v6539_v2 = vpop.permute.xlu0 %6538  ;;  %v6497_v34 = vmul.f32 %v12679_v51, %v12423_v19 }
0x12c3   : > { %v6574_v1 = vmul.f32 %v6539_v2, %v12673_v0  ;;  %6620 = vrot.lane.b32.xlu1 %v6575_v16, %s10068_s20 }
0x12c4   : > { %v6545_v55 = vpop.permute.xlu1 %6544 }
0x12c5   : > { %v6577_v12 = vmul.f32 %v6545_v55, %v12679_v51  ;;  %6618 = vrot.lane.b32.xlu0 %v6574_v1, %s10068_s20 }
0x12c6   : > { %v6543_v52 = vpop.permute.xlu0 %6542 }
0x12c7   : > { %v6576_v36 = vmul.f32 %v6543_v52, %v12685_v15  ;;  %6624 = vrot.lane.b32.xlu1 %v6577_v12, %s10068_s20 }
0x12c9   : > { %6622 = vrot.lane.b32.xlu0 %v6576_v36, %s10068_s20 }
0x12cb   : > { %1052 = vperm.xlu1 %9150, %v10037_v23  }
0x12cd   : > { %1049 = vperm.xlu0 %9149, %v10038_v38  }
0x131c   : > { %v6597_v61 = vpop.permute.xlu1 %6596 }
0x131d   : > { %v12725_v32 = vadd.f32 %v6597_v61, %v6483_v27 }
0x131e   : > { %v6595_v43 = vpop.permute.xlu0 %6594 }
0x131f   : > { %9791 = vtanh.f32 %v12725_v32  ;;  %v12730_v59 = vadd.f32 %v6595_v43, %v6482_v4 }
0x1320   : > { %v6601_v35 = vpop.permute.xlu1 %6600 }
0x1321   : > { %9793 = vtanh.f32 %v12730_v59  ;;  %v12735_v40 = vadd.f32 %v6601_v35, %v6485_v42 }
0x1322   : > { %v6599_v54 = vpop.permute.xlu0 %6598 }
0x1323   : > { %9795 = vtanh.f32 %v12735_v40  ;;  %v12740_v20 = vadd.f32 %v6599_v54, %v6484_v49 }
0x1324   : > { %v6605_v50 = vpop.permute.xlu1 %6604 }
0x1325   : > { %9797 = vtanh.f32 %v12740_v20  ;;  %v12745_v45 = vadd.f32 %v6605_v50, %v6487_v21 }
0x1326   : > { %v6603_v25 = vpop.permute.xlu0 %6602 }
0x1327   : > { %9799 = vtanh.f32 %v12745_v45  ;;  %v12750_v24 = vadd.f32 %v6603_v25, %v6486_v48 }
0x1328   : > { %v6609_v9 = vpop.permute.xlu1 %6608 }
0x1329   : > { %9801 = vtanh.f32 %v12750_v24  ;;  %v12755_v22 = vadd.f32 %v6609_v9, %v6489_v3 }
0x132a   : > { %v6607_v46 = vpop.permute.xlu0 %6606 }
0x132b   : > { %9803 = vtanh.f32 %v12755_v22  ;;  %v12760_v5 = vadd.f32 %v6607_v46, %v6488_v18 }
0x132c   : > { %v9792_v41 = vpop.eup %9791 }
0x132d   : > { %9805 = vtanh.f32 %v12760_v5  ;;  %v6613_v53 = vpop.permute.xlu1 %6612  ;;  %6692 = vrot.lane.b32.xlu1 %v9792_v41, %s10066_s19 }
0x132e   : > { %v9794_v7 = vpop.eup %9793  ;;  %v12766_v16 = vadd.f32 %v6613_v53, %v6491_v47 }
0x132f   : > { %v6611_v2 = vpop.permute.xlu0 %6610  ;;  %6690 = vrot.lane.b32.xlu0 %v9794_v7, %s10066_s19 }
0x1330   : > { %v9796_v1 = vpop.eup %9795  ;;  %9807 = vtanh.f32 %v12766_v16  ;;  %v12772_v55 = vadd.f32 %v6611_v2, %v6490_v14 }
0x1331   : > { %v6617_v12 = vpop.permute.xlu1 %6616  ;;  %6696 = vrot.lane.b32.xlu1 %v9796_v1, %s10066_s19  ;;  %v10039_v1 = vld [vmem:[%s10148_s21 + $0x10] sm:$0xff] }
0x1332   : > { %v9798_v52 = vpop.eup %9797  ;;  %9809 = vtanh.f32 %v12772_v55  ;;  %v12778_v36 = vadd.f32 %v6617_v12, %v6493_v60  ;;  %v10040_v60 = vld [vmem:[%s10148_s21 + $0x18] sm:$0xff]  ;;  %v10041_v12 = vld [vmem:[%s10148_s21 + $0x20] sm:$0xff] }
0x1333   : > { %v6615_v23 = vpop.permute.xlu0 %6614  ;;  %6694 = vrot.lane.b32.xlu0 %v9798_v52, %s10066_s19  ;;  %v10042_v52 = vld [vmem:[%s10148_s21 + $0x28] sm:$0xff] }
0x1334   : > { %v9800_v38 = vpop.eup %9799  ;;  %9811 = vtanh.f32 %v12778_v36  ;;  %v12784_v27 = vadd.f32 %v6615_v23, %v6492_v6  ;;  %v10043_v6 = vld [vmem:[%s10148_s21 + $0x30] sm:$0xff]  ;;  %v10044_v23 = vld [vmem:[%s10148_s21 + $0x38] sm:$0xff] }
0x1335   : > { %v6621_v61 = vpop.permute.xlu1 %6620  ;;  %6700 = vrot.lane.b32.xlu1 %v9800_v38, %s10066_s19  ;;  %v10045_v38 = vld [vmem:[%s10148_s21 + $0x40] sm:$0xff] }
0x1336   : > { %v9802_v4 = vpop.eup %9801  ;;  %9813 = vtanh.f32 %v12784_v27  ;;  %v12790_v43 = vadd.f32 %v6621_v61, %v6495_v31  ;;  %v10046_v31 = vld [vmem:[%s10148_s21 + $0x48] sm:$0xff]  ;;  %v10047_v61 = vld [vmem:[%s10148_s21 + $0x50] sm:$0xff] }
0x1337   : > { %v6619_v42 = vpop.permute.xlu0 %6618  ;;  %6698 = vrot.lane.b32.xlu0 %v9802_v4, %s10066_s19  ;;  %v10048_v4 = vld [vmem:[%s10148_s21 + $0x58] sm:$0xff] }
0x1338   : > { %v9804_v35 = vpop.eup %9803  ;;  %9815 = vtanh.f32 %v12790_v43  ;;  %v12796_v49 = vadd.f32 %v6619_v42, %v6494_v39  ;;  %v10049_v39 = vld [vmem:[%s10148_s21 + $0x60] sm:$0xff]  ;;  %v10050_v42 = vld [vmem:[%s10148_s21 + $0x68] sm:$0xff] }
0x1339   : > { %v6625_v54 = vpop.permute.xlu1 %6624  ;;  %6704 = vrot.lane.b32.xlu1 %v9804_v35, %s10066_s19  ;;  %v10051_v35 = vld [vmem:[%s10148_s21 + $0x70] sm:$0xff] }
0x133a   : > { %v9806_v21 = vpop.eup %9805  ;;  %9817 = vtanh.f32 %v12796_v49  ;;  %v12802_v50 = vadd.f32 %v6625_v54, %v6497_v34  ;;  %v10052_v34 = vld [vmem:[%s10148_s21 + $0x78] sm:$0xff] }
0x133b   : > { %v6623_v48 = vpop.permute.xlu0 %6622  ;;  %6702 = vrot.lane.b32.xlu0 %v9806_v21, %s10066_s19 }
0x133c   : > { %9819 = vtanh.f32 %v12802_v50  ;;  %v12808_v25 = vadd.f32 %v6623_v48, %v6496_v17 }
0x133d   : > { %v9808_v3 = vpop.eup %9807 }
0x133e   : > { %9821 = vtanh.f32 %v12808_v25  ;;  %6708 = vrot.lane.b32.xlu1 %v9808_v3, %s10066_s19 }
0x133f   : > { %v9810_v19 = vpop.eup %9809 }
0x1340   : > { %6706 = vrot.lane.b32.xlu0 %v9810_v19, %s10066_s19 }
0x1341   : > { %v9812_v9 = vpop.eup %9811 }
0x1342   : > { %6712 = vrot.lane.b32.xlu1 %v9812_v9, %s10066_s19 }
0x1343   : > { %v9814_v18 = vpop.eup %9813 }
0x1344   : > { %6710 = vrot.lane.b32.xlu0 %v9814_v18, %s10066_s19 }
0x1345   : > { %v9816_v37 = vpop.eup %9815 }
0x1346   : > { %6716 = vrot.lane.b32.xlu1 %v9816_v37, %s10066_s19  ;;  %v1053_v46 = vpop.permute.xlu1 %1052 }
0x1347   : > { %v9818_v41 = vpop.eup %9817  ;;  %vm1097_vm14 = vcmp.eq.s32.totalorder %v1053_v46, %v10229_v26 }
0x1348   : > { %6714 = vrot.lane.b32.xlu0 %v9818_v41, %s10066_s19  ;;  %v1050_v47 = vpop.permute.xlu0 %1049  ;;  %v7939_v7 = vsel %vm1097_vm14, 1.0, %v10065_v29 }
0x1349   : > { %v9820_v53 = vpop.eup %9819  ;;  %vm1096_vm15 = vcmp.eq.s32.totalorder %v1050_v47, %v10229_v26 }
0x134a   : > { %6720 = vrot.lane.b32.xlu1 %v9820_v53, %s10066_s19  ;;  %v7938_v14 = vsel %vm1096_vm15, 1.0, %v10065_v29 }
0x134b   : > { %v9822_v2 = vpop.eup %9821  ;;  %8828 = vmatprep.mubr.msk.f32.mxu0 %vm1159_vm0, %v7938_v14 }
0x134c   : > { %6718 = vrot.lane.b32.xlu0 %v9822_v2, %s10066_s19  ;;  %8829 = vmatmul.mubr.msk.f32.gmra.mxu0 %vm1159_vm0, %v7939_v7 }
0x134e   : > { %1055 = vperm.xlu1 %9150, %v10039_v1  }
0x1350   : > { %1058 = vperm.xlu0 %9149, %v10040_v60  }
0x1352   : > { %1061 = vperm.xlu1 %9150, %v10041_v12  }
0x1354   : > { %1064 = vperm.xlu0 %9149, %v10042_v52  }
0x1356   : > { %1067 = vperm.xlu1 %9150, %v10043_v6  }
0x1358   : > { %1070 = vperm.xlu0 %9149, %v10044_v23  }
0x135a   : > { %1073 = vperm.xlu1 %9150, %v10045_v38  }
0x135c   : > { %1076 = vperm.xlu0 %9149, %v10046_v31  }
0x135e   : > { %1079 = vperm.xlu1 %9150, %v10047_v61  }
0x1360   : > { %1082 = vperm.xlu0 %9149, %v10048_v4  }
0x1362   : > { %1085 = vperm.xlu1 %9150, %v10049_v39  }
0x1364   : > { %1088 = vperm.xlu0 %9149, %v10050_v42  }
0x1366   : > { %1091 = vperm.xlu1 %9150, %v10051_v35  }
0x1368   : > { %1094 = vperm.xlu0 %9149, %v10052_v34  }
0x139f   : > { %v6693_v54 = vpop.permute.xlu1 %6692 }
0x13a0   : > { %v6739_v21 = vmul.f32 %v6693_v54, %v12595_v30 }
0x13a1   : > { %v6691_v17 = vpop.permute.xlu0 %6690 }
0x13a2   : > { %v6738_v48 = vmul.f32 %v6691_v17, %v12601_v33  ;;  %6788 = vrot.lane.b32.xlu0 %v6739_v21, %s10068_s20 }
0x13a3   : > { %v6697_v3 = vpop.permute.xlu1 %6696 }
0x13a4   : > { %v6741_v19 = vmul.f32 %v6697_v3, %v12607_v63  ;;  %6786 = vrot.lane.b32.xlu1 %v6738_v48, %s10068_s20 }
0x13a5   : > { %v6695_v9 = vpop.permute.xlu0 %6694 }
0x13a6   : > { %v6740_v18 = vmul.f32 %v6695_v9, %v12613_v58  ;;  %6792 = vrot.lane.b32.xlu0 %v6741_v19, %s10068_s20 }
0x13a7   : > { %v6701_v37 = vpop.permute.xlu1 %6700 }
0x13a8   : > { %v6743_v46 = vmul.f32 %v6701_v37, %v12619_v11  ;;  %6790 = vrot.lane.b32.xlu1 %v6740_v18, %s10068_s20 }
0x13a9   : > { %v6699_v30 = vpop.permute.xlu0 %6698 }
0x13aa   : > { %v6742_v33 = vmul.f32 %v6699_v30, %v12625_v44  ;;  %6796 = vrot.lane.b32.xlu0 %v6743_v46, %s10068_s20 }
0x13ab   : > { %v6705_v41 = vpop.permute.xlu1 %6704 }
0x13ac   : > { %v6745_v63 = vmul.f32 %v6705_v41, %v12631_v8  ;;  %6794 = vrot.lane.b32.xlu1 %v6742_v33, %s10068_s20 }
0x13ad   : > { %v6703_v47 = vpop.permute.xlu0 %6702 }
0x13ae   : > { %v6744_v58 = vmul.f32 %v6703_v47, %v12637_v28  ;;  %6800 = vrot.lane.b32.xlu0 %v6745_v63, %s10068_s20 }
0x13b0   : > { %v6709_v53 = vpop.permute.xlu1 %6708  ;;  %6798 = vrot.lane.b32.xlu1 %v6744_v58, %s10068_s20 }
0x13b1   : > { %v6747_v11 = vmul.f32 %v6709_v53, %v12643_v56 }
0x13b2   : > { %v6707_v7 = vpop.permute.xlu0 %6706 }
0x13b3   : > { %v6746_v44 = vmul.f32 %v6707_v7, %v12649_v10  ;;  %6804 = vrot.lane.b32.xlu0 %v6747_v11, %s10068_s20 }
0x13b4   : > { %v6713_v14 = vpop.permute.xlu1 %6712 }
0x13b5   : > { %v6749_v8 = vmul.f32 %v6713_v14, %v12655_v13  ;;  %6802 = vrot.lane.b32.xlu1 %v6746_v44, %s10068_s20 }
0x13b6   : > { %v6711_v2 = vpop.permute.xlu0 %6710 }
0x13b7   : > { %v6748_v28 = vmul.f32 %v6711_v2, %v12661_v62  ;;  %6808 = vrot.lane.b32.xlu0 %v6749_v8, %s10068_s20 }
0x13b8   : > { %v6717_v1 = vpop.permute.xlu1 %6716 }
0x13b9   : > { %v6751_v60 = vmul.f32 %v6717_v1, %v12667_v57  ;;  %6806 = vrot.lane.b32.xlu1 %v6748_v28, %s10068_s20 }
0x13ba   : > { %v6715_v56 = vpop.permute.xlu0 %6714 }
0x13bb   : > { %v6750_v10 = vmul.f32 %v6715_v56, %v12673_v0  ;;  %6812 = vrot.lane.b32.xlu0 %v6751_v60, %s10068_s20 }
0x13bc   : > { %v6721_v12 = vpop.permute.xlu1 %6720 }
0x13bd   : > { %v6753_v13 = vmul.f32 %v6721_v12, %v12679_v51  ;;  %6810 = vrot.lane.b32.xlu1 %v6750_v10, %s10068_s20 }
0x13be   : > { %v6719_v52 = vpop.permute.xlu0 %6718 }
0x13bf   : > { %v6752_v62 = vmul.f32 %v6719_v52, %v12685_v15  ;;  %6816 = vrot.lane.b32.xlu0 %v6753_v13, %s10068_s20 }
0x13c1   : > { %6814 = vrot.lane.b32.xlu1 %v6752_v62, %s10068_s20 }
0x13c9   : > { %v1056_v57 = vpop.permute.xlu1 %1055 }
0x13ca   : > { %vm1098_vm1 = vcmp.eq.s32.totalorder %v1056_v57, %v10229_v26 }
0x13cb   : > { %v7940_v6 = vsel %vm1098_vm1, 1.0, %v10065_v29  ;;  %v1059_v0 = vpop.permute.xlu0 %1058 }
0x13cc   : > { %vm1099_vm2 = vcmp.eq.s32.totalorder %v1059_v0, %v10229_v26  ;;  %8831 = vmatprep.mubr.msk.f32.mxu0 %vm1159_vm0, %v7940_v6 }
0x13cd   : > { %v7941_v51 = vsel %vm1099_vm2, 1.0, %v10065_v29  ;;  %v1062_v23 = vpop.permute.xlu1 %1061 }
0x13ce   : > { %vm1100_vm4 = vcmp.eq.s32.totalorder %v1062_v23, %v10229_v26  ;;  %8832 = vmatmul.mubr.msk.f32.gmra.mxu0 %vm1159_vm0, %v7941_v51  ;;  %v12932_v23 = vld [vmem:[%s13293_s3] ss:$0 sm:$0xff] }
0x13cf   : > { %v7942_v15 = vsel %vm1100_vm4, 1.0, %v10065_v29  ;;  %v1065_v38 = vpop.permute.xlu0 %1064 }
0x13d0   : > { %vm1101_vm5 = vcmp.eq.s32.totalorder %v1065_v38, %v10229_v26  ;;  %8834 = vmatprep.mubr.msk.f32.mxu0 %vm1159_vm0, %v7942_v15 }
0x13d1   : > { %v7943_v31 = vsel %vm1101_vm5, 1.0, %v10065_v29  ;;  %v1068_v61 = vpop.permute.xlu1 %1067 }
0x13d2   : > { %vm1102_vm6 = vcmp.eq.s32.totalorder %v1068_v61, %v10229_v26  ;;  %8835 = vmatmul.mubr.msk.f32.gmra.mxu0 %vm1159_vm0, %v7943_v31 }
0x13d3   : > { %v7944_v4 = vsel %vm1102_vm6, 1.0, %v10065_v29  ;;  %v1071_v39 = vpop.permute.xlu0 %1070 }
0x13d4   : > { %vm1103_vm7 = vcmp.eq.s32.totalorder %v1071_v39, %v10229_v26  ;;  %8837 = vmatprep.mubr.msk.f32.mxu0 %vm1159_vm0, %v7944_v4 }
0x13d5   : > { %v7945_v42 = vsel %vm1103_vm7, 1.0, %v10065_v29  ;;  %v1074_v35 = vpop.permute.xlu1 %1073 }
0x13d6   : > { %vm1104_vm8 = vcmp.eq.s32.totalorder %v1074_v35, %v10229_v26  ;;  %8838 = vmatmul.mubr.msk.f32.gmra.mxu0 %vm1159_vm0, %v7945_v42 }
0x13d7   : > { %v7946_v34 = vsel %vm1104_vm8, 1.0, %v10065_v29  ;;  %v1077_v54 = vpop.permute.xlu0 %1076 }
0x13d8   : > { %vm1105_vm9 = vcmp.eq.s32.totalorder %v1077_v54, %v10229_v26  ;;  %8840 = vmatprep.mubr.msk.f32.mxu0 %vm1159_vm0, %v7946_v34 }
0x13d9   : > { %v7947_v21 = vsel %vm1105_vm9, 1.0, %v10065_v29  ;;  %v1080_v17 = vpop.permute.xlu1 %1079 }
0x13da   : > { %vm1106_vm10 = vcmp.eq.s32.totalorder %v1080_v17, %v10229_v26  ;;  %8841 = vmatmul.mubr.msk.f32.gmra.mxu0 %vm1159_vm0, %v7947_v21 }
0x13db   : > { %v7948_v48 = vsel %vm1106_vm10, 1.0, %v10065_v29  ;;  %v1083_v3 = vpop.permute.xlu0 %1082 }
0x13dc   : > { %vm1107_vm11 = vcmp.eq.s32.totalorder %v1083_v3, %v10229_v26  ;;  %8843 = vmatprep.mubr.msk.f32.mxu0 %vm1159_vm0, %v7948_v48 }
0x13dd   : > { %v7949_v19 = vsel %vm1107_vm11, 1.0, %v10065_v29  ;;  %v1086_v9 = vpop.permute.xlu1 %1085 }
0x13de   : > { %vm1108_vm12 = vcmp.eq.s32.totalorder %v1086_v9, %v10229_v26  ;;  %8844 = vmatmul.mubr.msk.f32.gmra.mxu0 %vm1159_vm0, %v7949_v19 }
0x13df   : > { %v7950_v18 = vsel %vm1108_vm12, 1.0, %v10065_v29  ;;  %v1089_v37 = vpop.permute.xlu0 %1088 }
0x13e0   : > { %vm1109_vm13 = vcmp.eq.s32.totalorder %v1089_v37, %v10229_v26  ;;  %8846 = vmatprep.mubr.msk.f32.mxu0 %vm1159_vm0, %v7950_v18 }
0x13e1   : > { %v7951_v46 = vsel %vm1109_vm13, 1.0, %v10065_v29  ;;  %v1092_v30 = vpop.permute.xlu1 %1091 }
0x13e2   : > { %vm1110_vm14 = vcmp.eq.s32.totalorder %v1092_v30, %v10229_v26  ;;  %8847 = vmatmul.mubr.msk.f32.gmra.mxu0 %vm1159_vm0, %v7951_v46 }
0x13e3   : > { %v7952_v33 = vsel %vm1110_vm14, 1.0, %v10065_v29  ;;  %v1095_v41 = vpop.permute.xlu0 %1094 }
0x13e4   : > { %vm1111_vm15 = vcmp.eq.s32.totalorder %v1095_v41, %v10229_v26  ;;  %8849 = vmatprep.mubr.msk.f32.mxu0 %vm1159_vm0, %v7952_v33 }
0x13e5   : > { %v7953_v63 = vsel %vm1111_vm15, 1.0, %v10065_v29 }
0x13e6   : > { %8850 = vmatmul.mubr.msk.f32.gmra.mxu0 %vm1159_vm0, %v7953_v63 }
0x140c   : > { %v8830_v12 = vpop.f32.mrf.mxu0 }
0x140d   : > { %v2176_v15 = vadd.f32 %v12932_v23, %v8830_v12 }
0x140e   : > { %v2170_v13 = vpop.f32.mrf.mxu0 }
0x140f   : > { %v2171_v61 = vadd.f32 %v12932_v23, %v2170_v13 }
0x1414   : > { %v6789_v47 = vpop.permute.xlu0 %6788 }
0x1416   : > { %v6787_v58 = vpop.permute.xlu1 %6786 }
0x1417   : > { %9052 = vmatprep.mubr.msk.f32.mxu1 %vm2875_vm3, %v6787_v58 }
0x1418   : > { %9053 = vmatmul.mubr.msk.f32.vlgmr.msra.gmra.mxu1 %vm2875_vm3, %v6789_v47  ;;  %v6793_v53 = vpop.permute.xlu0 %6792 }
0x141a   : > { %v6791_v11 = vpop.permute.xlu1 %6790 }
0x141b   : > { %9055 = vmatprep.mubr.msk.f32.mxu1 %vm2875_vm3, %v6791_v11 }
0x141c   : > { %9056 = vmatmul.mubr.msk.f32.gmra.mxu1 %vm2875_vm3, %v6793_v53  ;;  %v6797_v7 = vpop.permute.xlu0 %6796 }
0x141e   : > { %v6795_v26 = vpop.permute.xlu1 %6794 }
0x141f   : > { %9058 = vmatprep.mubr.msk.f32.mxu1 %vm2875_vm3, %v6795_v26 }
0x1420   : > { %9059 = vmatmul.mubr.msk.f32.gmra.mxu1 %vm2875_vm3, %v6797_v7  ;;  %v6801_v29 = vpop.permute.xlu0 %6800 }
0x1422   : > { %v6799_v44 = vpop.permute.xlu1 %6798 }
0x1423   : > { %9061 = vmatprep.mubr.msk.f32.mxu1 %vm2875_vm3, %v6799_v44 }
0x1424   : > { %9062 = vmatmul.mubr.msk.f32.gmra.mxu1 %vm2875_vm3, %v6801_v29 }
0x1425   : > { %v6805_v14 = vpop.permute.xlu0 %6804 }
0x1427   : > { %v6803_v8 = vpop.permute.xlu1 %6802 }
0x1428   : > { %9064 = vmatprep.mubr.msk.f32.mxu1 %vm2875_vm3, %v6803_v8 }
0x1429   : > { %9065 = vmatmul.mubr.msk.f32.gmra.mxu1 %vm2875_vm3, %v6805_v14  ;;  %v6809_v2 = vpop.permute.xlu0 %6808 }
0x142b   : > { %v6807_v28 = vpop.permute.xlu1 %6806 }
0x142c   : > { %9067 = vmatprep.mubr.msk.f32.mxu1 %vm2875_vm3, %v6807_v28 }
0x142d   : > { %9068 = vmatmul.mubr.msk.f32.gmra.mxu1 %vm2875_vm3, %v6809_v2  ;;  %v6813_v1 = vpop.permute.xlu0 %6812 }
0x142f   : > { %v6811_v60 = vpop.permute.xlu1 %6810 }
0x1430   : > { %9070 = vmatprep.mubr.msk.f32.mxu1 %vm2875_vm3, %v6811_v60 }
0x1431   : > { %9071 = vmatmul.mubr.msk.f32.gmra.mxu1 %vm2875_vm3, %v6813_v1  ;;  %v6817_v10 = vpop.permute.xlu0 %6816 }
0x1433   : > { %v6815_v56 = vpop.permute.xlu1 %6814 }
0x1434   : > { %9073 = vmatprep.mubr.msk.f32.mxu1 %vm2875_vm3, %v6815_v56 }
0x1435   : > { %9074 = vmatmul.mubr.msk.f32.gmra.mxu1 %vm2875_vm3, %v6817_v10 }
0x148e   : > { %v8833_v52 = vpop.f32.mrf.mxu0 }
0x148f   : > { %v2186_v42 = vadd.f32 %v12932_v23, %v8833_v52 }
0x1490   : > { %v2180_v62 = vpop.f32.mrf.mxu0 }
0x1491   : > { %v2181_v17 = vadd.f32 %v12932_v23, %v2180_v62 }
0x1492   : > { %v8836_v57 = vpop.f32.mrf.mxu0 }
0x1493   : > { %v2196_v9 = vadd.f32 %v12932_v23, %v8836_v57 }
0x1494   : > { %v2190_v6 = vpop.f32.mrf.mxu0 }
0x1495   : > { %v2191_v33 = vadd.f32 %v12932_v23, %v2190_v6 }
0x1496   : > { %v8839_v0 = vpop.f32.mrf.mxu0 }
0x1497   : > { %v2206_v58 = vadd.f32 %v12932_v23, %v8839_v0 }
0x1498   : > { %v2200_v51 = vpop.f32.mrf.mxu0 }
0x1499   : > { %v2201_v29 = vadd.f32 %v12932_v23, %v2200_v51 }
0x149a   : > { %v8842_v38 = vpop.f32.mrf.mxu0 }
0x149b   : > { %v2216_v60 = vadd.f32 %v12932_v23, %v8842_v38 }
0x149c   : > { %v2210_v35 = vpop.f32.mrf.mxu0 }
0x149d   : > { %v2211_v13 = vadd.f32 %v12932_v23, %v2210_v35 }
0x149e   : > { %v8845_v18 = vpop.f32.mrf.mxu0 }
0x149f   : > { %v2226_v51 = vadd.f32 %v12932_v23, %v8845_v18 }
0x14a0   : > { %v2220_v53 = vpop.f32.mrf.mxu0 }
0x14a2   : > { %v8848_v2 = vpop.f32.mrf.mxu0 }
0x14a4   : > { %v2230_v62 = vpop.f32.mrf.mxu0 }
0x14a6   : > { %v8851_v35 = vpop.f32.mrf.mxu0 }
0x14d8   : > { %v9054_v31 = vpop.f32.mrf.mxu1 }
0x14d9   : > { %v6996_v4 = vadd.f32 %v9054_v31, %v2176_v15 }
0x14da   : > { %v6916_v39 = vpop.f32.mrf.mxu1 }
0x14db   : > { %v8310_v34 = vmul.f32 -1.442695, %v6996_v4  ;;  %v6995_v54 = vadd.f32 %v6916_v39, %v2171_v61  ;;  %v2221_v39 = vadd.f32 %v12932_v23, %v2220_v53  ;;  %v2246_v53 = vadd.f32 %v12932_v23, %v8851_v35 }
0x14dc   : > { %v9057_v21 = vpop.f32.mrf.mxu1 }
0x14dd   : > { %9823 = vpow2.f32 %v8310_v34  ;;  %v8309_v48 = vmul.f32 -1.442695, %v6995_v54  ;;  %v6998_v3 = vadd.f32 %v9057_v21, %v2186_v42 }
0x14de   : > { %v6926_v19 = vpop.f32.mrf.mxu1 }
0x14df   : > { %9825 = vpow2.f32 %v8309_v48  ;;  %v8312_v37 = vmul.f32 -1.442695, %v6998_v3  ;;  %v6997_v46 = vadd.f32 %v6926_v19, %v2181_v17  ;;  %v2236_v48 = vadd.f32 %v12932_v23, %v8848_v2 }
0x14e0   : > { %v9060_v30 = vpop.f32.mrf.mxu1 }
0x14e1   : > { %9827 = vpow2.f32 %v8312_v37  ;;  %v8311_v41 = vmul.f32 -1.442695, %v6997_v46  ;;  %v7000_v63 = vadd.f32 %v9060_v30, %v2196_v9  ;;  %v2231_v46 = vadd.f32 %v12932_v23, %v2230_v62 }
0x14e2   : > { %v6936_v47 = vpop.f32.mrf.mxu1 }
0x14e3   : > { %9829 = vpow2.f32 %v8311_v41  ;;  %v8314_v11 = vmul.f32 -1.442695, %v7000_v63  ;;  %v6999_v7 = vadd.f32 %v6936_v47, %v2191_v33  ;;  %v2240_v41 = vpop.f32.mrf.mxu0 }
0x14e4   : > { %v9063_v26 = vpop.f32.mrf.mxu1 }
0x14e5   : > { %9831 = vpow2.f32 %v8314_v11  ;;  %v8313_v44 = vmul.f32 -1.442695, %v6999_v7  ;;  %v7002_v14 = vadd.f32 %v9063_v26, %v2206_v58 }
0x14e6   : > { %v6946_v8 = vpop.f32.mrf.mxu1 }
0x14e7   : > { %9833 = vpow2.f32 %v8313_v44  ;;  %v8316_v28 = vmul.f32 -1.442695, %v7002_v14  ;;  %v7001_v1 = vadd.f32 %v6946_v8, %v2201_v29  ;;  %v2241_v14 = vadd.f32 %v12932_v23, %v2240_v41  ;;  %v12953_v23 = vld [vmem:[%s13295_s5] ss:$0 sm:$0xff] }
0x14e9   : > { %9835 = vpow2.f32 %v8316_v28  ;;  %v8315_v56 = vmul.f32 -1.442695, %v7001_v1  ;;  %v9066_v10 = vpop.f32.mrf.mxu1 }
0x14ea   : > { %v9824_v12 = vpop.eup %9823  ;;  %v7004_v52 = vadd.f32 %v9066_v10, %v2216_v60 }
0x14eb   : > { %v7060_v57 = vadd.f32 1.0, %v9824_v12  ;;  %9837 = vpow2.f32 %v8315_v56  ;;  %v6956_v6 = vpop.f32.mrf.mxu1 }
0x14ec   : > { %v9826_v0 = vpop.eup %9825  ;;  %v8318_v15 = vmul.f32 -1.442695, %v7004_v52  ;;  %v7003_v31 = vadd.f32 %v6956_v6, %v2211_v13 }
0x14ed   : > { %9839 = vrcp.f32 %v7060_v57  ;;  %v7059_v61 = vadd.f32 1.0, %v9826_v0  ;;  %v9069_v4 = vpop.f32.mrf.mxu1 }
0x14ee   : > { %v9828_v38 = vpop.eup %9827  ;;  %9841 = vpow2.f32 %v8318_v15  ;;  %v8317_v42 = vmul.f32 -1.442695, %v7003_v31  ;;  %v7006_v34 = vadd.f32 %v9069_v4, %v2226_v51  ;;  %v12959_v15 = vld [vmem:[%s13296_s6] ss:$0 sm:$0xff] }
0x14ef   : > { %9843 = vrcp.f32 %v7059_v61  ;;  %v7062_v54 = vadd.f32 1.0, %v9828_v38  ;;  %v6966_v21 = vpop.f32.mrf.mxu1 }
0x14f0   : > { %v9830_v17 = vpop.eup %9829  ;;  %9845 = vpow2.f32 %v8317_v42  ;;  %v8320_v3 = vmul.f32 -1.442695, %v7006_v34  ;;  %v7005_v19 = vadd.f32 %v6966_v21, %v2221_v39 }
0x14f1   : > { %9847 = vrcp.f32 %v7062_v54  ;;  %v7061_v9 = vadd.f32 1.0, %v9830_v17  ;;  %v9072_v18 = vpop.f32.mrf.mxu1 }
0x14f2   : > { %v9832_v37 = vpop.eup %9831  ;;  %9849 = vpow2.f32 %v8320_v3  ;;  %v8319_v30 = vmul.f32 -1.442695, %v7005_v19  ;;  %v7008_v33 = vadd.f32 %v9072_v18, %v2236_v48 }
0x14f3   : > { %9851 = vrcp.f32 %v7061_v9  ;;  %v7064_v63 = vadd.f32 1.0, %v9832_v37  ;;  %v6976_v47 = vpop.f32.mrf.mxu1 }
0x14f4   : > { %v9834_v58 = vpop.eup %9833  ;;  %9853 = vpow2.f32 %v8319_v30  ;;  %v8322_v11 = vmul.f32 -1.442695, %v7008_v33  ;;  %v7007_v7 = vadd.f32 %v6976_v47, %v2231_v46 }
0x14f5   : > { %9855 = vrcp.f32 %v7064_v63  ;;  %v7063_v26 = vadd.f32 1.0, %v9834_v58  ;;  %v9075_v29 = vpop.f32.mrf.mxu1 }
0x14f6   : > { %v9836_v44 = vpop.eup %9835  ;;  %9857 = vpow2.f32 %v8322_v11  ;;  %v8321_v8 = vmul.f32 -1.442695, %v7007_v7  ;;  %v7010_v2 = vadd.f32 %v9075_v29, %v2246_v53 }
0x14f7   : > { %9859 = vrcp.f32 %v7063_v26  ;;  %v7066_v28 = vadd.f32 1.0, %v9836_v44  ;;  %v6986_v1 = vpop.f32.mrf.mxu1 }
0x14f8   : > { %v9838_v60 = vpop.eup %9837  ;;  %9861 = vpow2.f32 %v8321_v8  ;;  %v8324_v56 = vmul.f32 -1.442695, %v7010_v2  ;;  %v7009_v10 = vadd.f32 %v6986_v1, %v2241_v14 }
0x14f9   : > { %9863 = vrcp.f32 %v7066_v28  ;;  %v7065_v12 = vadd.f32 1.0, %v9838_v60 }
0x14fa   : > { %v9840_v13 = vpop.eup %9839  ;;  %9865 = vpow2.f32 %v8324_v56  ;;  %v8323_v52 = vmul.f32 -1.442695, %v7009_v10 }
0x14fb   : > { %v9842_v62 = vpop.eup %9841  ;;  %9867 = vrcp.f32 %v7065_v12  ;;  %v7108_v57 = vmul.f32 %v12953_v23, %v9840_v13 }
0x14fc   : > { %v9844_v6 = vpop.eup %9843  ;;  %v7068_v0 = vadd.f32 1.0, %v9842_v62  ;;  %9869 = vpow2.f32 %v8323_v52 }
0x14fd   : > { %v9846_v51 = vpop.eup %9845  ;;  %v12962_v31 = vadd.f32 %v12959_v15, %v7108_v57  ;;  %v7107_v61 = vmul.f32 %v12953_v23, %v9844_v6 }
0x14fe   : > { %v9848_v4 = vpop.eup %9847  ;;  %9871 = vrcp.f32 %v7068_v0  ;;  %v7067_v38 = vadd.f32 1.0, %v9846_v51 }
0x14ff   : > { %v9850_v39 = vpop.eup %9849  ;;  %7173 = vrot.lane.b32.xlu0 %v12962_v31, %s10066_s19  ;;  %v12968_v42 = vadd.f32 %v12959_v15, %v7107_v61  ;;  %v7110_v34 = vmul.f32 %v12953_v23, %v9848_v4 }
0x1500   : > { %v9852_v35 = vpop.eup %9851  ;;  %9873 = vrcp.f32 %v7067_v38  ;;  %v7070_v54 = vadd.f32 1.0, %v9850_v39 }
0x1501   : > { %v9854_v21 = vpop.eup %9853  ;;  %7171 = vrot.lane.b32.xlu1 %v12968_v42, %s10066_s19  ;;  %v12974_v17 = vadd.f32 %v12959_v15, %v7110_v34  ;;  %v7109_v48 = vmul.f32 %v12953_v23, %v9852_v35 }
0x1502   : > { %v9856_v3 = vpop.eup %9855  ;;  %9875 = vrcp.f32 %v7070_v54  ;;  %v7069_v19 = vadd.f32 1.0, %v9854_v21 }
0x1503   : > { %v9858_v9 = vpop.eup %9857  ;;  %7177 = vrot.lane.b32.xlu0 %v12974_v17, %s10066_s19  ;;  %v12980_v18 = vadd.f32 %v12959_v15, %v7109_v48  ;;  %v7112_v37 = vmul.f32 %v12953_v23, %v9856_v3 }
0x1504   : > { %v9860_v46 = vpop.eup %9859  ;;  %9877 = vrcp.f32 %v7069_v19  ;;  %v7072_v30 = vadd.f32 1.0, %v9858_v9 }
0x1505   : > { %v9862_v33 = vpop.eup %9861  ;;  %7175 = vrot.lane.b32.xlu1 %v12980_v18, %s10066_s19  ;;  %v12986_v41 = vadd.f32 %v12959_v15, %v7112_v37  ;;  %v7111_v63 = vmul.f32 %v12953_v23, %v9860_v46 }
0x1506   : > { %v9864_v47 = vpop.eup %9863  ;;  %9879 = vrcp.f32 %v7072_v30  ;;  %v7071_v58 = vadd.f32 1.0, %v9862_v33 }
0x1507   : > { %v9866_v53 = vpop.eup %9865  ;;  %7181 = vrot.lane.b32.xlu0 %v12986_v41, %s10066_s19  ;;  %v12992_v11 = vadd.f32 %v12959_v15, %v7111_v63  ;;  %v7114_v7 = vmul.f32 %v12953_v23, %v9864_v47 }
0x1508   : > { %v9868_v26 = vpop.eup %9867  ;;  %9881 = vrcp.f32 %v7071_v58  ;;  %v7074_v29 = vadd.f32 1.0, %v9866_v53 }
0x1509   : > { %v9870_v44 = vpop.eup %9869  ;;  %7179 = vrot.lane.b32.xlu1 %v12992_v11, %s10066_s19  ;;  %v12998_v14 = vadd.f32 %v12959_v15, %v7114_v7  ;;  %v7113_v8 = vmul.f32 %v12953_v23, %v9868_v26 }
0x150a   : > { %9883 = vrcp.f32 %v7074_v29  ;;  %v7073_v2 = vadd.f32 1.0, %v9870_v44 }
0x150b   : > { %v9872_v28 = vpop.eup %9871  ;;  %7185 = vrot.lane.b32.xlu0 %v12998_v14, %s10066_s19  ;;  %v13004_v1 = vadd.f32 %v12959_v15, %v7113_v8 }
0x150c   : > { %9885 = vrcp.f32 %v7073_v2  ;;  %v7116_v60 = vmul.f32 %v12953_v23, %v9872_v28 }
0x150d   : > { %v9874_v56 = vpop.eup %9873  ;;  %7183 = vrot.lane.b32.xlu1 %v13004_v1, %s10066_s19 }
0x150e   : > { %v13010_v10 = vadd.f32 %v12959_v15, %v7116_v60  ;;  %v7115_v12 = vmul.f32 %v12953_v23, %v9874_v56 }
0x150f   : > { %v9876_v13 = vpop.eup %9875 }
0x1510   : > { %7189 = vrot.lane.b32.xlu0 %v13010_v10, %s10066_s19  ;;  %v13016_v52 = vadd.f32 %v12959_v15, %v7115_v12  ;;  %v7118_v62 = vmul.f32 %v12953_v23, %v9876_v13 }
0x1511   : > { %v9878_v57 = vpop.eup %9877 }
0x1512   : > { %7187 = vrot.lane.b32.xlu1 %v13016_v52, %s10066_s19  ;;  %v13022_v6 = vadd.f32 %v12959_v15, %v7118_v62  ;;  %v7117_v0 = vmul.f32 %v12953_v23, %v9878_v57 }
0x1513   : > { %v9880_v51 = vpop.eup %9879 }
0x1514   : > { %7193 = vrot.lane.b32.xlu0 %v13022_v6, %s10066_s19  ;;  %v13028_v61 = vadd.f32 %v12959_v15, %v7117_v0  ;;  %v7120_v4 = vmul.f32 %v12953_v23, %v9880_v51 }
0x1515   : > { %v9882_v38 = vpop.eup %9881 }
0x1516   : > { %7191 = vrot.lane.b32.xlu1 %v13028_v61, %s10066_s19  ;;  %v13034_v39 = vadd.f32 %v12959_v15, %v7120_v4  ;;  %v7119_v34 = vmul.f32 %v12953_v23, %v9882_v38 }
0x1517   : > { %v9884_v35 = vpop.eup %9883 }
0x1518   : > { %7197 = vrot.lane.b32.xlu0 %v13034_v39, %s10066_s19  ;;  %v13040_v54 = vadd.f32 %v12959_v15, %v7119_v34  ;;  %v7122_v21 = vmul.f32 %v12953_v23, %v9884_v35 }
0x1519   : > { %v9886_v48 = vpop.eup %9885 }
0x151a   : > { %7195 = vrot.lane.b32.xlu1 %v13040_v54, %s10066_s19  ;;  %v13046_v3 = vadd.f32 %v12959_v15, %v7122_v21  ;;  %v7121_v19 = vmul.f32 %v12953_v23, %v9886_v48 }
0x151c   : > { %7201 = vrot.lane.b32.xlu0 %v13046_v3, %s10066_s19  ;;  %v13052_v9 = vadd.f32 %v12959_v15, %v7121_v19 }
0x151e   : > { %7199 = vrot.lane.b32.xlu1 %v13052_v9, %s10066_s19 }
0x1571   : > { %v7174_v37 = vpop.permute.xlu0 %7173 }
0x1572   : > { %v7220_v46 = vmul.f32 %v7174_v37, %v12962_v31  ;;  %v7140_v37 = vmul.f32 %v12962_v31, %v12725_v32 }
0x1573   : > { %v7172_v30 = vpop.permute.xlu1 %7171 }
0x1574   : > { %v7219_v33 = vmul.f32 %v7172_v30, %v12968_v42  ;;  %7253 = vrot.lane.b32.xlu0 %v7220_v46, %s10068_s20 }
0x1575   : > { %v7178_v63 = vpop.permute.xlu0 %7177 }
0x1576   : > { %v7222_v23 = vmul.f32 %v7178_v63, %v12974_v17  ;;  %7251 = vrot.lane.b32.xlu1 %v7219_v33, %s10068_s20  ;;  %v7139_v33 = vmul.f32 %v12968_v42, %v12730_v59 }
0x1577   : > { %v7176_v47 = vpop.permute.xlu1 %7175 }
0x1578   : > { %v7221_v15 = vmul.f32 %v7176_v47, %v12980_v18  ;;  %7257 = vrot.lane.b32.xlu0 %v7222_v23, %s10068_s20  ;;  %v7142_v47 = vmul.f32 %v12974_v17, %v12735_v40 }
0x1579   : > { %v7182_v58 = vpop.permute.xlu0 %7181 }
0x157a   : > { %v7224_v53 = vmul.f32 %v7182_v58, %v12986_v41  ;;  %7255 = vrot.lane.b32.xlu1 %v7221_v15, %s10068_s20 }
0x157b   : > { %v7180_v7 = vpop.permute.xlu1 %7179 }
0x157c   : > { %v7223_v26 = vmul.f32 %v7180_v7, %v12992_v11  ;;  %7261 = vrot.lane.b32.xlu0 %v7224_v53, %s10068_s20  ;;  %v7141_v53 = vmul.f32 %v12980_v18, %v12740_v20 }
0x157d   : > { %v7186_v29 = vpop.permute.xlu0 %7185 }
0x157e   : > { %v7226_v44 = vmul.f32 %v7186_v29, %v12998_v14  ;;  %7259 = vrot.lane.b32.xlu1 %v7223_v26, %s10068_s20  ;;  %v7144_v26 = vmul.f32 %v12986_v41, %v12745_v45 }
0x157f   : > { %v7184_v8 = vpop.permute.xlu1 %7183 }
0x1580   : > { %v7225_v2 = vmul.f32 %v7184_v8, %v13004_v1  ;;  %7265 = vrot.lane.b32.xlu0 %v7226_v44, %s10068_s20  ;;  %v7143_v44 = vmul.f32 %v12992_v11, %v12750_v24 }
0x1582   : > { %v7190_v28 = vpop.permute.xlu0 %7189  ;;  %7263 = vrot.lane.b32.xlu1 %v7225_v2, %s10068_s20  ;;  %v7146_v2 = vmul.f32 %v12998_v14, %v12755_v22  ;;  %v7147_v22 = vmul.f32 %v13016_v52, %v12772_v55 }
0x1583   : > { %v7228_v60 = vmul.f32 %v7190_v28, %v13010_v10 }
0x1584   : > { %v7188_v56 = vpop.permute.xlu1 %7187 }
0x1585   : > { %v7227_v12 = vmul.f32 %v7188_v56, %v13016_v52  ;;  %7269 = vrot.lane.b32.xlu0 %v7228_v60, %s10068_s20  ;;  %v7145_v60 = vmul.f32 %v13004_v1, %v12760_v5 }
0x1586   : > { %v7194_v13 = vpop.permute.xlu0 %7193 }
0x1587   : > { %v7230_v62 = vmul.f32 %v7194_v13, %v13022_v6  ;;  %7267 = vrot.lane.b32.xlu1 %v7227_v12, %s10068_s20  ;;  %v7148_v13 = vmul.f32 %v13010_v10, %v12766_v16 }
0x1588   : > { %v7192_v57 = vpop.permute.xlu1 %7191 }
0x1589   : > { %v7229_v0 = vmul.f32 %v7192_v57, %v13028_v61  ;;  %7273 = vrot.lane.b32.xlu0 %v7230_v62, %s10068_s20 }
0x158a   : > { %v7198_v51 = vpop.permute.xlu0 %7197 }
0x158b   : > { %v7232_v4 = vmul.f32 %v7198_v51, %v13034_v39  ;;  %7271 = vrot.lane.b32.xlu1 %v7229_v0, %s10068_s20 }
0x158c   : > { %v7196_v38 = vpop.permute.xlu1 %7195 }
0x158d   : > { %v7231_v34 = vmul.f32 %v7196_v38, %v13040_v54  ;;  %7277 = vrot.lane.b32.xlu0 %v7232_v4, %s10068_s20  ;;  %v7150_v4 = vmul.f32 %v13022_v6, %v12778_v36 }
0x158e   : > { %v7202_v35 = vpop.permute.xlu0 %7201 }
0x158f   : > { %v7234_v21 = vmul.f32 %v7202_v35, %v13046_v3  ;;  %7275 = vrot.lane.b32.xlu1 %v7231_v34, %s10068_s20  ;;  %v7149_v35 = vmul.f32 %v13028_v61, %v12784_v27 }
0x1590   : > { %v7200_v48 = vpop.permute.xlu1 %7199 }
0x1591   : > { %v7233_v19 = vmul.f32 %v7200_v48, %v13052_v9  ;;  %7281 = vrot.lane.b32.xlu0 %v7234_v21, %s10068_s20 }
0x1593   : > { %7279 = vrot.lane.b32.xlu1 %v7233_v19, %s10068_s20  ;;  %v7152_v19 = vmul.f32 %v13034_v39, %v12790_v43  ;;  %s13196_s20 = scalar_lea.vmem %s13291_s1, %s10142_s18 }
0x15e6   : > { %v7254_v46 = vpop.permute.xlu0 %7253 }
0x15e7   : > { %v7300_v30 = vadd.f32 %v7254_v46, %v7140_v37 }
0x15e8   : > { %v7252_v63 = vpop.permute.xlu1 %7251 }
0x15e9   : > { %9887 = vtanh.f32 %v7300_v30  ;;  %v7299_v23 = vadd.f32 %v7252_v63, %v7139_v33  ;;  %v7151_v30 = vmul.f32 %v13040_v54, %v12796_v49 }
0x15ea   : > { %v7258_v15 = vpop.permute.xlu0 %7257 }
0x15eb   : > { %9889 = vtanh.f32 %v7299_v23  ;;  %v7302_v58 = vadd.f32 %v7258_v15, %v7142_v47  ;;  %v7154_v23 = vmul.f32 %v13046_v3, %v12802_v50 }
0x15ec   : > { %v7256_v7 = vpop.permute.xlu1 %7255 }
0x15ed   : > { %9891 = vtanh.f32 %v7302_v58  ;;  %v7301_v32 = vadd.f32 %v7256_v7, %v7141_v53  ;;  %v7153_v58 = vmul.f32 %v13052_v9, %v12808_v25  ;;  %v7513_v25 = vld [vmem:[%s13297_s7 + $0x30] sm:$0xff] }
0x15ee   : > { %v7262_v29 = vpop.permute.xlu0 %7261 }
0x15ef   : > { %9893 = vtanh.f32 %v7301_v32  ;;  %v7304_v59 = vadd.f32 %v7262_v29, %v7144_v26  ;;  %v7514_v26 = vld [vmem:[%s13297_s7 + $0x38] sm:$0xff] }
0x15f0   : > { %v7260_v8 = vpop.permute.xlu1 %7259  ;;  %9076 = vmatprep.subr.mxu1 %v7514_v26 }
0x15f1   : > { %9895 = vtanh.f32 %v7304_v59  ;;  %v7303_v40 = vadd.f32 %v7260_v8, %v7143_v44  ;;  %9077 = vmatpush3.msra.mxu1 %v7514_v26  ;;  %v7512_v59 = vld [vmem:[%s13297_s7 + $0x28] sm:$0xff]  ;;  %v7511_v8 = vld [vmem:[%s13297_s7 + $0x20] sm:$0xff]  ;;  %v7417_v26 = vld [vmem:[%s13196_s20 + $0x30] sm:$0xff] }
0x15f2   : > { %v7266_v28 = vpop.permute.xlu0 %7265  ;;  %9078 = vmatprep.subr.mxu1 %v7513_v25 }
0x15f3   : > { %9897 = vtanh.f32 %v7303_v40  ;;  %v7306_v20 = vadd.f32 %v7266_v28, %v7146_v2  ;;  %9079 = vmatpush3.msra.mxu1 %v7513_v25  ;;  %v7510_v2 = vld [vmem:[%s13297_s7 + $0x18] sm:$0xff] }
0x15f4   : > { %v7264_v56 = vpop.permute.xlu1 %7263  ;;  %9080 = vmatprep.subr.mxu1 %v7512_v59  ;;  %v7418_v25 = vld [vmem:[%s13196_s20 + $0x38] sm:$0xff] }
0x15f5   : > { %9899 = vtanh.f32 %v7306_v20  ;;  %v7305_v45 = vadd.f32 %v7264_v56, %v7145_v60  ;;  %9081 = vmatpush3.msra.mxu1 %v7512_v59  ;;  %v7509_v20 = vld [vmem:[%s13297_s7 + $0x10] sm:$0xff]  ;;  %v7508_v56 = vld [vmem:[%s13297_s7 + $0x8] sm:$0xff] }
0x15f6   : > { %v9888_v12 = vpop.eup %9887  ;;  %9082 = vmatprep.subr.mxu1 %v7511_v8 }
0x15f7   : > { %9901 = vtanh.f32 %v7305_v45  ;;  %v7270_v24 = vpop.permute.xlu0 %7269  ;;  %7349 = vrot.lane.b32.xlu0 %v9888_v12, %s10066_s19  ;;  %9083 = vmatpush3.msra.mxu1 %v7511_v8  ;;  %v7507_v45 = vld [vmem:[%s13297_s7] sm:$0xff] }
0x15f8   : > { %v9890_v62 = vpop.eup %9889  ;;  %v7308_v57 = vadd.f32 %v7270_v24, %v7148_v13  ;;  %9084 = vmatprep.subr.mxu1 %v7510_v2 }
0x15f9   : > { %v7268_v0 = vpop.permute.xlu1 %7267  ;;  %7347 = vrot.lane.b32.xlu1 %v9890_v62, %s10066_s19  ;;  %9085 = vmatpush3.msra.mxu1 %v7510_v2  ;;  %v7420_v2 = vld [vmem:[%s13196_s20 + $0x48] sm:$0xff] }
0x15fa   : > { %v9892_v5 = vpop.eup %9891  ;;  %9903 = vtanh.f32 %v7308_v57  ;;  %v7307_v51 = vadd.f32 %v7268_v0, %v7147_v22  ;;  %9086 = vmatprep.subr.mxu1 %v7509_v20 }
0x15fb   : > { %v7274_v38 = vpop.permute.xlu0 %7273  ;;  %7353 = vrot.lane.b32.xlu0 %v9892_v5, %s10066_s19  ;;  %9087 = vmatpush3.msra.mxu1 %v7509_v20 }
0x15fc   : > { %v9894_v16 = vpop.eup %9893  ;;  %9905 = vtanh.f32 %v7307_v51  ;;  %v7310_v34 = vadd.f32 %v7274_v38, %v7150_v4  ;;  %9088 = vmatprep.subr.mxu1 %v7508_v56 }
0x15fd   : > { %v7272_v21 = vpop.permute.xlu1 %7271  ;;  %7351 = vrot.lane.b32.xlu1 %v9894_v16, %s10066_s19  ;;  %9089 = vmatpush3.msra.mxu1 %v7508_v56 }
0x15fe   : > { %v9896_v55 = vpop.eup %9895  ;;  %9907 = vtanh.f32 %v7310_v34  ;;  %v7309_v48 = vadd.f32 %v7272_v21, %v7149_v35  ;;  %9090 = vmatprep.subr.mxu1 %v7507_v45 }
0x15ff   : > { %v7278_v37 = vpop.permute.xlu0 %7277  ;;  %7357 = vrot.lane.b32.xlu0 %v9896_v55, %s10066_s19  ;;  %9091 = vmatpush3.msra.mxu1 %v7507_v45  ;;  %v7421_v45 = vld [vmem:[%s13196_s20 + $0x50] sm:$0xff] }
0x1600   : > { %v9898_v36 = vpop.eup %9897  ;;  %9909 = vtanh.f32 %v7309_v48  ;;  %v7312_v46 = vadd.f32 %v7278_v37, %v7152_v19 }
0x1601   : > { %v7276_v33 = vpop.permute.xlu1 %7275  ;;  %7355 = vrot.lane.b32.xlu1 %v9898_v36, %s10066_s19 }
0x1602   : > { %v9900_v27 = vpop.eup %9899  ;;  %9911 = vtanh.f32 %v7312_v46  ;;  %v7311_v63 = vadd.f32 %v7276_v33, %v7151_v30 }
0x1603   : > { %v7282_v47 = vpop.permute.xlu0 %7281  ;;  %7361 = vrot.lane.b32.xlu0 %v9900_v27, %s10066_s19  ;;  %v7413_v27 = vld [vmem:[%s13196_s20 + $0x10] sm:$0xff] }
0x1604   : > { %v9902_v43 = vpop.eup %9901  ;;  %9913 = vtanh.f32 %v7311_v63  ;;  %v7314_v15 = vadd.f32 %v7282_v47, %v7154_v23  ;;  %v7414_v63 = vld [vmem:[%s13196_s20 + $0x18] sm:$0xff] }
0x1605   : > { %v7280_v53 = vpop.permute.xlu1 %7279  ;;  %7359 = vrot.lane.b32.xlu1 %v9902_v43, %s10066_s19 }
0x1606   : > { %9915 = vtanh.f32 %v7314_v15  ;;  %v7313_v49 = vadd.f32 %v7280_v53, %v7153_v58  ;;  %v7415_v58 = vld [vmem:[%s13196_s20 + $0x20] sm:$0xff]  ;;  %v7416_v53 = vld [vmem:[%s13196_s20 + $0x28] sm:$0xff] }
0x1607   : > { %v9904_v7 = vpop.eup %9903 }
0x1608   : > { %9917 = vtanh.f32 %v7313_v49  ;;  %7365 = vrot.lane.b32.xlu0 %v9904_v7, %s10066_s19 }
0x1609   : > { %v9906_v32 = vpop.eup %9905 }
0x160a   : > { %7363 = vrot.lane.b32.xlu1 %v9906_v32, %s10066_s19 }
0x160b   : > { %v9908_v50 = vpop.eup %9907 }
0x160c   : > { %7369 = vrot.lane.b32.xlu0 %v9908_v50, %s10066_s19 }
0x160d   : > { %v9910_v29 = vpop.eup %9909 }
0x160e   : > { %7367 = vrot.lane.b32.xlu1 %v9910_v29, %s10066_s19 }
0x160f   : > { %v9912_v44 = vpop.eup %9911 }
0x1610   : > { %7373 = vrot.lane.b32.xlu0 %v9912_v44, %s10066_s19 }
0x1611   : > { %v9914_v40 = vpop.eup %9913 }
0x1612   : > { %7371 = vrot.lane.b32.xlu1 %v9914_v40, %s10066_s19  ;;  %v7419_v40 = vld [vmem:[%s13196_s20 + $0x40] sm:$0xff] }
0x1613   : > { %v9916_v28 = vpop.eup %9915 }
0x1614   : > { %7377 = vrot.lane.b32.xlu0 %v9916_v28, %s10066_s19 }
0x1615   : > { %v9918_v60 = vpop.eup %9917 }
0x1616   : > { %7375 = vrot.lane.b32.xlu1 %v9918_v60, %s10066_s19 }
0x1669   : > { %v7350_v12 = vpop.permute.xlu0 %7349 }
0x166a   : > { %v7396_v13 = vmul.f32 %v7350_v12, %v12962_v31  ;;  %v7422_v12 = vld [vmem:[%s13196_s20 + $0x58] sm:$0xff] }
0x166b   : > { %v7348_v24 = vpop.permute.xlu1 %7347 }
0x166c   : > { %v7395_v62 = vmul.f32 %v7348_v24, %v12968_v42  ;;  %7445 = vrot.lane.b32.xlu0 %v7396_v13, %s10066_s19 }
0x166d   : > { %v7354_v57 = vpop.permute.xlu0 %7353 }
0x166e   : > { %v7398_v22 = vmul.f32 %v7354_v57, %v12974_v17  ;;  %7443 = vrot.lane.b32.xlu1 %v7395_v62, %s10066_s19 }
0x166f   : > { %v7352_v0 = vpop.permute.xlu1 %7351 }
0x1670   : > { %v7397_v5 = vmul.f32 %v7352_v0, %v12980_v18  ;;  %7449 = vrot.lane.b32.xlu0 %v7398_v22, %s10066_s19  ;;  %v7423_v22 = vld [vmem:[%s13196_s20 + $0x60] sm:$0xff]  ;;  %v7424_v0 = vld [vmem:[%s13196_s20 + $0x68] sm:$0xff] }
0x1671   : > { %v7358_v51 = vpop.permute.xlu0 %7357 }
0x1672   : > { %v7400_v4 = vmul.f32 %v7358_v51, %v12986_v41  ;;  %7447 = vrot.lane.b32.xlu1 %v7397_v5, %s10066_s19 }
0x1673   : > { %v7356_v31 = vpop.permute.xlu1 %7355 }
0x1674   : > { %v7399_v42 = vmul.f32 %v7356_v31, %v12992_v11  ;;  %7453 = vrot.lane.b32.xlu0 %v7400_v4, %s10066_s19  ;;  %v7425_v31 = vld [vmem:[%s13196_s20 + $0x70] sm:$0xff] }
0x1675   : > { %v7362_v38 = vpop.permute.xlu0 %7361 }
0x1676   : > { %v7402_v17 = vmul.f32 %v7362_v38, %v12998_v14  ;;  %7451 = vrot.lane.b32.xlu1 %v7399_v42, %s10066_s19  ;;  %v7426_v42 = vld [vmem:[%s13196_s20 + $0x78] sm:$0xff] }
0x1677   : > { %v7360_v16 = vpop.permute.xlu1 %7359 }
0x1678   : > { %v7401_v18 = vmul.f32 %v7360_v16, %v13004_v1  ;;  %7457 = vrot.lane.b32.xlu0 %v7402_v17, %s10066_s19 }
0x167a   : > { %v7366_v34 = vpop.permute.xlu0 %7365  ;;  %7455 = vrot.lane.b32.xlu1 %v7401_v18, %s10066_s19 }
0x167b   : > { %v7404_v41 = vmul.f32 %v7366_v34, %v13010_v10  ;;  %v8325_v34 = vld [vmem:[%s13298_s8] ss:$0 sm:$0xff] }
0x167c   : > { %v7364_v35 = vpop.permute.xlu1 %7363 }
0x167d   : > { %v7403_v11 = vmul.f32 %v7364_v35, %v13016_v52  ;;  %7461 = vrot.lane.b32.xlu0 %v7404_v41, %s10066_s19 }
0x167e   : > { %v7370_v21 = vpop.permute.xlu0 %7369 }
0x167f   : > { %v7406_v14 = vmul.f32 %v7370_v21, %v13022_v6  ;;  %7459 = vrot.lane.b32.xlu1 %v7403_v11, %s10066_s19 }
0x1680   : > { %v7368_v55 = vpop.permute.xlu1 %7367 }
0x1681   : > { %v7405_v1 = vmul.f32 %v7368_v55, %v13028_v61  ;;  %7465 = vrot.lane.b32.xlu0 %v7406_v14, %s10066_s19 }
0x1682   : > { %v7374_v48 = vpop.permute.xlu0 %7373 }
0x1683   : > { %v7408_v19 = vmul.f32 %v7374_v48, %v13034_v39  ;;  %7463 = vrot.lane.b32.xlu1 %v7405_v1, %s10066_s19 }
0x1684   : > { %v7372_v10 = vpop.permute.xlu1 %7371 }
0x1685   : > { %v7407_v52 = vmul.f32 %v7372_v10, %v13040_v54  ;;  %7469 = vrot.lane.b32.xlu0 %v7408_v19, %s10066_s19  ;;  %v7411_v54 = vld [vmem:[%s13196_s20] sm:$0xff] }
0x1686   : > { %v7378_v37 = vpop.permute.xlu0 %7377 }
0x1687   : > { %v7410_v6 = vmul.f32 %v7378_v37, %v13046_v3  ;;  %7467 = vrot.lane.b32.xlu1 %v7407_v52, %s10066_s19  ;;  %v7412_v3 = vld [vmem:[%s13196_s20 + $0x8] sm:$0xff] }
0x1688   : > { %v7376_v36 = vpop.permute.xlu1 %7375 }
0x1689   : > { %v7409_v61 = vmul.f32 %v7376_v36, %v13052_v9  ;;  %7473 = vrot.lane.b32.xlu0 %v7410_v6, %s10066_s19 }
0x168b   : > { %7471 = vrot.lane.b32.xlu1 %v7409_v61, %s10066_s19 }
0x16de   : > { %v7446_v39 = vpop.permute.xlu0 %7445 }
0x16df   : > { %v7492_v30 = vsel %vm2875_vm3, %v7412_v3, %v7446_v39 }
0x16e0   : > { %v7444_v46 = vpop.permute.xlu1 %7443 }
0x16e1   : > { %v7491_v9 = vsel %vm2875_vm3, %v7411_v54, %v7444_v46 }
0x16e2   : > { %9092 = vmatprep.mubr.msk.f32.mxu1 %vm1159_vm0, %v7491_v9  ;;  %v7450_v33 = vpop.permute.xlu0 %7449 }
0x16e3   : > { %9093 = vmatmul.mubr.msk.f32.vlgmr.msra.gmra.mxu1 %vm1159_vm0, %v7492_v30  ;;  %v7494_v43 = vsel %vm2875_vm3, %v7414_v63, %v7450_v33 }
0x16e4   : > { %v7448_v23 = vpop.permute.xlu1 %7447 }
0x16e5   : > { %v7493_v47 = vsel %vm2875_vm3, %v7413_v27, %v7448_v23 }
0x16e6   : > { %9095 = vmatprep.mubr.msk.f32.mxu1 %vm1159_vm0, %v7493_v47  ;;  %v7454_v15 = vpop.permute.xlu0 %7453 }
0x16e7   : > { %9096 = vmatmul.mubr.msk.f32.gmra.mxu1 %vm1159_vm0, %v7494_v43  ;;  %v7496_v32 = vsel %vm2875_vm3, %v7416_v53, %v7454_v15 }
0x16e8   : > { %v7452_v49 = vpop.permute.xlu1 %7451 }
0x16e9   : > { %v7495_v7 = vsel %vm2875_vm3, %v7415_v58, %v7452_v49 }
0x16ea   : > { %9098 = vmatprep.mubr.msk.f32.mxu1 %vm1159_vm0, %v7495_v7  ;;  %v7458_v50 = vpop.permute.xlu0 %7457 }
0x16eb   : > { %9099 = vmatmul.mubr.msk.f32.gmra.mxu1 %vm1159_vm0, %v7496_v32  ;;  %v7498_v44 = vsel %vm2875_vm3, %v7418_v25, %v7458_v50 }
0x16ec   : > { %v7456_v29 = vpop.permute.xlu1 %7455 }
0x16ed   : > { %v7497_v59 = vsel %vm2875_vm3, %v7417_v26, %v7456_v29 }
0x16ee   : > { %9101 = vmatprep.mubr.msk.f32.mxu1 %vm1159_vm0, %v7497_v59 }
0x16ef   : > { %v7462_v8 = vpop.permute.xlu0 %7461  ;;  %9102 = vmatmul.mubr.msk.f32.gmra.mxu1 %vm1159_vm0, %v7498_v44 }
0x16f0   : > { %v7500_v60 = vsel %vm2875_vm3, %v7420_v2, %v7462_v8 }
0x16f1   : > { %v7460_v28 = vpop.permute.xlu1 %7459 }
0x16f2   : > { %v7499_v20 = vsel %vm2875_vm3, %v7419_v40, %v7460_v28 }
0x16f3   : > { %9104 = vmatprep.mubr.msk.f32.mxu1 %vm1159_vm0, %v7499_v20  ;;  %v7466_v56 = vpop.permute.xlu0 %7465 }
0x16f4   : > { %9105 = vmatmul.mubr.msk.f32.gmra.mxu1 %vm1159_vm0, %v7500_v60  ;;  %v7502_v62 = vsel %vm2875_vm3, %v7422_v12, %v7466_v56 }
0x16f5   : > { %v7464_v13 = vpop.permute.xlu1 %7463 }
0x16f6   : > { %v7501_v24 = vsel %vm2875_vm3, %v7421_v45, %v7464_v13 }
0x16f7   : > { %9107 = vmatprep.mubr.msk.f32.mxu1 %vm1159_vm0, %v7501_v24  ;;  %v7470_v57 = vpop.permute.xlu0 %7469 }
0x16f8   : > { %9108 = vmatmul.mubr.msk.f32.gmra.mxu1 %vm1159_vm0, %v7502_v62  ;;  %v7504_v4 = vsel %vm2875_vm3, %v7424_v0, %v7470_v57 }
0x16f9   : > { %v7468_v5 = vpop.permute.xlu1 %7467 }
0x16fa   : > { %v7503_v51 = vsel %vm2875_vm3, %v7423_v22, %v7468_v5 }
0x16fb   : > { %9110 = vmatprep.mubr.msk.f32.mxu1 %vm1159_vm0, %v7503_v51  ;;  %v7474_v38 = vpop.permute.xlu0 %7473 }
0x16fc   : > { %9111 = vmatmul.mubr.msk.f32.gmra.mxu1 %vm1159_vm0, %v7504_v4  ;;  %v7506_v18 = vsel %vm2875_vm3, %v7426_v42, %v7474_v38 }
0x16fd   : > { %v7472_v17 = vpop.permute.xlu1 %7471 }
0x16fe   : > { %v7505_v16 = vsel %vm2875_vm3, %v7425_v31, %v7472_v17 }
0x16ff   : > { %9113 = vmatprep.mubr.msk.f32.mxu1 %vm1159_vm0, %v7505_v16 }
0x1700   : > { %9114 = vmatmul.mubr.msk.f32.gmra.mxu1 %vm1159_vm0, %v7506_v18 }
0x17a3   : > { %v9094_v41 = vpop.f32.mrf.mxu1 }
0x17a4   : > { %v7642_v35 = vadd.f32 %v9094_v41, %v8325_v34 }
0x17a5   : > { %v7636_v11 = vpop.f32.mrf.mxu1 }
0x17a6   : > { %v7716_v21 = vmax.f32 %v7642_v35, 0.0  ;;  %v7637_v14 = vadd.f32 %v8325_v34, %v7636_v11 }
0x17a7   : > { %v9097_v55 = vpop.f32.mrf.mxu1 }
0x17a8   : > { %7732 = vst.msk [vmem:[%s13253_s14 + $0x8] sm:$0xff] %vm2875_vm3, %v7716_v21  ;;  %v7715_v1 = vmax.f32 %v7637_v14, 0.0  ;;  %v7652_v48 = vadd.f32 %v9097_v55, %v8325_v34 }
0x17a9   : > { %v7646_v19 = vpop.f32.mrf.mxu1 }
0x17aa   : > { %7731 = vst.msk [vmem:[%s13253_s14] sm:$0xff] %vm2875_vm3, %v7715_v1  ;;  %v7718_v10 = vmax.f32 %v7652_v48, 0.0  ;;  %v7647_v52 = vadd.f32 %v8325_v34, %v7646_v19 }
0x17ab   : > { %v9100_v37 = vpop.f32.mrf.mxu1 }
0x17ac   : > { %7734 = vst.msk [vmem:[%s13253_s14 + $0x18] sm:$0xff] %vm2875_vm3, %v7718_v10  ;;  %v7717_v6 = vmax.f32 %v7647_v52, 0.0  ;;  %v7662_v36 = vadd.f32 %v9100_v37, %v8325_v34 }
0x17ad   : > { %v7656_v61 = vpop.f32.mrf.mxu1 }
0x17ae   : > { %7733 = vst.msk [vmem:[%s13253_s14 + $0x10] sm:$0xff] %vm2875_vm3, %v7717_v6  ;;  %v7720_v39 = vmax.f32 %v7662_v36, 0.0  ;;  %v7657_v54 = vadd.f32 %v8325_v34, %v7656_v61 }
0x17af   : > { %v9103_v3 = vpop.f32.mrf.mxu1 }
0x17b0   : > { %7736 = vst.msk [vmem:[%s13253_s14 + $0x28] sm:$0xff] %vm2875_vm3, %v7720_v39  ;;  %v7719_v46 = vmax.f32 %v7657_v54, 0.0  ;;  %v7672_v9 = vadd.f32 %v9103_v3, %v8325_v34 }
0x17b1   : > { %v7666_v30 = vpop.f32.mrf.mxu1 }
0x17b2   : > { %7735 = vst.msk [vmem:[%s13253_s14 + $0x20] sm:$0xff] %vm2875_vm3, %v7719_v46  ;;  %v7722_v33 = vmax.f32 %v7672_v9, 0.0  ;;  %v7667_v27 = vadd.f32 %v8325_v34, %v7666_v30 }
0x17b4   : > { %7738 = vst.msk [vmem:[%s13253_s14 + $0x38] sm:$0xff] %vm2875_vm3, %v7722_v33  ;;  %v7721_v63 = vmax.f32 %v7667_v27, 0.0  ;;  %v9106_v23 = vpop.f32.mrf.mxu1 }
0x17b5   : > { %v7682_v47 = vadd.f32 %v9106_v23, %v8325_v34 }
0x17b6   : > { %7737 = vst.msk [vmem:[%s13253_s14 + $0x30] sm:$0xff] %vm2875_vm3, %v7721_v63  ;;  %v7676_v43 = vpop.f32.mrf.mxu1 }
0x17b7   : > { %v7724_v15 = vmax.f32 %v7682_v47, 0.0  ;;  %v7677_v58 = vadd.f32 %v8325_v34, %v7676_v43 }
0x17b8   : > { %v9109_v53 = vpop.f32.mrf.mxu1 }
0x17b9   : > { %7740 = vst.msk [vmem:[%s13253_s14 + $0x48] sm:$0xff] %vm2875_vm3, %v7724_v15  ;;  %v7723_v49 = vmax.f32 %v7677_v58, 0.0  ;;  %v7692_v7 = vadd.f32 %v9109_v53, %v8325_v34 }
0x17ba   : > { %v7686_v32 = vpop.f32.mrf.mxu1 }
0x17bb   : > { %7739 = vst.msk [vmem:[%s13253_s14 + $0x40] sm:$0xff] %vm2875_vm3, %v7723_v49  ;;  %v7726_v50 = vmax.f32 %v7692_v7, 0.0  ;;  %v7687_v26 = vadd.f32 %v8325_v34, %v7686_v32 }
0x17bc   : > { %v9112_v25 = vpop.f32.mrf.mxu1 }
0x17bd   : > { %7742 = vst.msk [vmem:[%s13253_s14 + $0x58] sm:$0xff] %vm2875_vm3, %v7726_v50  ;;  %v7725_v29 = vmax.f32 %v7687_v26, 0.0  ;;  %v7702_v59 = vadd.f32 %v9112_v25, %v8325_v34 }
0x17be   : > { %v7696_v44 = vpop.f32.mrf.mxu1 }
0x17bf   : > { %7741 = vst.msk [vmem:[%s13253_s14 + $0x50] sm:$0xff] %vm2875_vm3, %v7725_v29  ;;  %v7728_v8 = vmax.f32 %v7702_v59, 0.0  ;;  %v7697_v40 = vadd.f32 %v8325_v34, %v7696_v44 }
0x17c0   : > { %v9115_v2 = vpop.f32.mrf.mxu1 }
0x17c1   : > { %7744 = vst.msk [vmem:[%s13253_s14 + $0x68] sm:$0xff] %vm2875_vm3, %v7728_v8  ;;  %v7727_v28 = vmax.f32 %v7697_v40, 0.0  ;;  %v7712_v20 = vadd.f32 %v9115_v2, %v8325_v34 }
0x17c2   : > { %v7706_v60 = vpop.f32.mrf.mxu1 }
0x17c3   : > { %7743 = vst.msk [vmem:[%s13253_s14 + $0x60] sm:$0xff] %vm2875_vm3, %v7727_v28  ;;  %v7730_v56 = vmax.f32 %v7712_v20, 0.0  ;;  %v7707_v45 = vadd.f32 %v8325_v34, %v7706_v60 }
0x17c5   : > { %7746 = vst.msk [vmem:[%s13253_s14 + $0x78] sm:$0xff] %vm2875_vm3, %v7730_v56  ;;  %v7729_v12 = vmax.f32 %v7707_v45, 0.0 }
0x17c7   : > { %7745 = vst.msk [vmem:[%s13253_s14 + $0x70] sm:$0xff] %vm2875_vm3, %v7729_v12 }
0x17c8 PF: > { %s19_s30 = sadd.s32 1, %s10062_s30  }
0x17c9   : > { %p16_p4 = scmp.ge.s32.totalorder %s19_s30, 4  }
0x17cb   :  { %18 = sbr.rel (!%p16_p4) target bundleno = 1 (0x1), region = 89 }

</bundles_post_ra>
